<compile_context>
chip_gen: v7x
topology: tpu7x:2x2x1
jax: 0.10.0
libtpu: 0.0.40
codegen_flags: <defaults>
</compile_context>

<pallas_src>
import numpy as np
import jax
import jax.numpy as jnp
from jax.experimental import pallas as pl
from jax.experimental.pallas import tpu as pltpu

IN_F = 16           # input features (2x 2x2 channel matrix, 2x sigma pair, r_bar, 2 spare)
NEURON = 100        # logical hidden width (torch module)
NEURON_PAD = 128    # lane-dense padded hidden width
OUT_R = 4
W1SEL_COLS = 256    # 128 (w1) + 32 (selection) + 96 zero pad (fills MXU weight push)
TM = 512            # batch tile (rows per grid step)


def cvxnn_kernel(x_ref, w1sel_ref, w23h_ref, bias_ref, out_ref):
    # ---- MLP hot path: bf16 MXU matmuls, f32 accumulation, f32 bias+ReLU ----
    x0 = x_ref[...].astype(jnp.bfloat16)                                   # (TM, 16)

    # fused layer-1 + x-selection gather: ONE (TM,16)@(16,256) matmul
    pre = jnp.dot(x0, w1sel_ref[...], preferred_element_type=jnp.float32)  # (TM, 256)
    h = jnp.maximum(pre[:, 0:NEURON_PAD] + bias_ref[0:1, :], 0.0)          # (TM, 128)
    h = jnp.maximum(
        jnp.dot(h.astype(jnp.bfloat16), w23h_ref[0],
                preferred_element_type=jnp.float32) + bias_ref[1:2, :], 0.0)
    h = jnp.maximum(
        jnp.dot(h.astype(jnp.bfloat16), w23h_ref[1],
                preferred_element_type=jnp.float32) + bias_ref[2:3, :], 0.0)
    # head emits [r_swapped_within_pairs | r] in lanes 0..7 (weight zero-padded to 128 cols)
    r8 = jnp.dot(h.astype(jnp.bfloat16), w23h_ref[2],
                 preferred_element_type=jnp.float32)[:, 0:8] + bias_ref[3:4, 0:8]

    # ---- pair-packed (TM, 8) tail: lanes 0:4 = swapped-within-pair, lanes 4:8 = direct ----
    diag8 = pre[:, 128:136]    # [diag(G)_sw | diag(G)]
    off8  = pre[:, 136:144]    # [off(G)_sw  | off(G) ]
    sig8  = pre[:, 144:152]    # [sigma_sw   | sigma  ]
    rbar8 = pre[:, 152:160]    # [rbar_exp   | rbar_exp] (pair-symmetric)

    def swap_halves(a):        # partner values within the 8-lane slab: [X|Y] -> [Y|X]
        return jnp.concatenate([a[:, 4:8], a[:, 0:4]], axis=1)

    # cvxL preliminaries: pinv(diag(G)) applied per lane
    inv_d8 = jnp.where(diag8 != 0.0, pl.reciprocal(diag8, approx=True), 0.0)
    f8 = off8 * inv_d8          # F off-diagonal entries
    v8 = sig8 * inv_d8          # v = pinv(diag G) @ sigma

    # projectionL: r_tilde = rbar_exp * r / (r + r_partner); pair-sum identical in both halves
    den8 = r8 + swap_halves(r8)
    rt8 = rbar8 * r8 * pl.reciprocal(den8, approx=True)   # [rt_sw | rt]

    # cvxL closed form: p = (w + cross * w_partner) / (1 - cross * cross_partner)
    w8 = rt8 * v8
    c8 = rt8 * f8
    det8 = 1.0 - c8 * swap_halves(c8)                      # pair-constant determinant
    num8 = swap_halves(w8) + swap_halves(c8) * w8          # direct p lands in lanes 0:4
    p8 = jnp.maximum(num8 / det8, 0.0)                     # exact divide for det (robustness)

    # single lane-aligned (TM, 8) store: lanes 0:4 = p_predict_f, lanes 4:8 = r_predict
    lane = jax.lax.broadcasted_iota(jnp.int32, (r8.shape[0], 8), 1)
    out_ref[...] = jnp.where(lane < 4, p8, r8)


def build_selection_matrix():
    """(16, 32) 0/1 matrix producing pair-packed 8-lane slabs:
    cols 0-7 diag(G), 8-15 off(G), 16-23 sigma, 24-31 rbar_exp; within each
    slab lanes 0:4 are the within-pair-swapped values, lanes 4:8 the direct ones."""
    S = np.zeros((IN_F, 32), np.float32)
    # diag_sw = [G1_11, G1_00, G2_11, G2_00] ; diag = [G1_00, G1_11, G2_00, G2_11]
    S[3, 0] = S[0, 1] = S[7, 2] = S[4, 3] = 1.0
    S[0, 4] = S[3, 5] = S[4, 6] = S[7, 7] = 1.0
    # off_sw = [G1_10, G1_01, G2_10, G2_01] ; off = [G1_01, G1_10, G2_01, G2_10]
    S[2, 8] = S[1, 9] = S[6, 10] = S[5, 11] = 1.0
    S[1, 12] = S[2, 13] = S[5, 14] = S[6, 15] = 1.0
    # sigma_sw ; sigma
    S[9, 16] = S[8, 17] = S[11, 18] = S[10, 19] = 1.0
    S[8, 20] = S[9, 21] = S[10, 22] = S[11, 23] = 1.0
    # rbar expanded [rb0, rb0, rb1, rb1] — pair-symmetric, same in both halves
    S[12, 24] = S[12, 25] = S[13, 26] = S[13, 27] = 1.0
    S[12, 28] = S[12, 29] = S[13, 30] = S[13, 31] = 1.0
    return jnp.asarray(S)


def init_params(key):
    """Raw f32 parameters with the torch module's logical shapes."""
    ks = jax.random.split(key, 8)

    def lin(kw, kb, fin, fout, w_scale=1.0):
        bound = 1.0 / np.sqrt(fin)
        w = jax.random.uniform(kw, (fin, fout), jnp.float32, -bound, bound) * w_scale
        b = jax.random.uniform(kb, (1, fout), jnp.float32, -bound, bound)
        return w, b

    w1, b1 = lin(ks[0], ks[1], IN_F, NEURON)
    w2, b2 = lin(ks[2], ks[3], NEURON, NEURON)
    w3, b3 = lin(ks[4], ks[5], NEURON, NEURON)
    # small head weights + positive biases keep projectionL/cvxL well conditioned
    wr, _ = lin(ks[6], ks[7], NEURON, OUT_R, w_scale=0.05)
    br = jnp.array([[1.0, 1.5, 2.0, 2.5]], jnp.float32)
    return (w1, b1, w2, b2, w3, b3, wr, br)


def pack_params(raw):
    """Pack raw f32 params into 3 VMEM-resident kernel operands (bf16 matmul weights)."""
    w1, b1, w2, b2, w3, b3, wr, br = raw

    def pad(a, rows, cols):
        return jnp.pad(a, ((0, rows - a.shape[0]), (0, cols - a.shape[1])))

    # zero-pad hidden width 100 -> 128: dead neurons, identical math, lane-dense
    w1p = pad(w1, IN_F, NEURON_PAD)
    w2p = pad(w2, NEURON_PAD, NEURON_PAD)
    w3p = pad(w3, NEURON_PAD, NEURON_PAD)
    wrp = pad(wr, NEURON_PAD, OUT_R)

    # fused layer-1 RHS: [ w1 | selection | zero pad ] -> (16, 256)
    sel = build_selection_matrix()
    w1sel = jnp.concatenate(
        [w1p, sel, jnp.zeros((IN_F, W1SEL_COLS - NEURON_PAD - 32), jnp.float32)],
        axis=1).astype(jnp.bfloat16)

    # head weight emits [r_swapped_within_pairs | r] in cols 0..7, zero-padded to 128 cols
    perm = jnp.array([1, 0, 3, 2])
    wrh = jnp.concatenate([wrp[:, perm], wrp], axis=1)          # (128, 8)
    wrh = jnp.pad(wrh, ((0, 0), (0, NEURON_PAD - 8)))           # (128, 128)
    w23h = jnp.stack([w2p, w3p, wrh], axis=0).astype(jnp.bfloat16)   # (3, 128, 128)

    # bias slab (f32): rows 0..2 = b1,b2,b3; row 3 lanes 0..7 = [br_sw | br]
    b1p = pad(b1, 1, NEURON_PAD)
    b2p = pad(b2, 1, NEURON_PAD)
    b3p = pad(b3, 1, NEURON_PAD)
    br8 = jnp.pad(jnp.concatenate([br[:, perm], br], axis=1), ((0, 0), (0, NEURON_PAD - 8)))
    bias = jnp.concatenate([b1p, b2p, b3p, br8], axis=0)        # (4, 128)
    return (w1sel, w23h, bias)


def cvxnn_forward(x, kparams, *, tm=TM):
    B = x.shape[0]
    assert B % tm == 0, "batch must be a multiple of the tile size"
    w1sel, w23h, bias = kparams

    out = pl.pallas_call(
        cvxnn_kernel,
        out_shape=jax.ShapeDtypeStruct((B, 8), jnp.float32),
        grid_spec=pltpu.PrefetchScalarGridSpec(
            num_scalar_prefetch=0,
            grid=(B // tm,),
            in_specs=[
                pl.BlockSpec((tm, IN_F), lambda i: (i, 0)),
                # constants: full block + constant index map -> fetched once, VMEM-resident
                pl.BlockSpec(w1sel.shape, lambda i: (0, 0)),
                pl.BlockSpec(w23h.shape, lambda i: (0, 0, 0)),
                pl.BlockSpec(bias.shape, lambda i: (0, 0)),
            ],
            out_specs=pl.BlockSpec((tm, 8), lambda i: (i, 0)),
        ),
        compiler_params=pltpu.CompilerParams(
            dimension_semantics=("parallel",)),   # grid of 2 -> both TCs on v7x
    )(x, w1sel, w23h, bias)

    return out[:, 0:4], out[:, 4:8]               # (p_predict_f, r_predict)


def reference_forward(x, raw):
    """Pure-JAX f32 re-implementation mirroring the torch code (per-row), for validation."""
    w1, b1, w2, b2, w3, b3, wr, br = raw
    h = jax.nn.relu(x @ w1 + b1)
    h = jax.nn.relu(h @ w2 + b2)
    h = jax.nn.relu(h @ w3 + b3)
    r = h @ wr + br                                   # (B, 4)

    def one(x0, rv):
        rbar = x0[12:14]
        rbar_exp = jnp.array([rbar[0], rbar[0], rbar[1], rbar[1]])
        denom = jnp.array([rv[0] + rv[1], rv[0] + rv[1], rv[2] + rv[3], rv[2] + rv[3]])
        rt = rbar_exp * rv / denom

        def block(g_flat, sig, rpair):
            G = g_flat.reshape(2, 2)
            d = jnp.diag(G)
            dpinv = jnp.where(d != 0, 1.0 / d, 0.0)
            Fm = jnp.diag(dpinv) @ (G - jnp.diag(d))
            v = jnp.diag(dpinv) @ sig.reshape(2, 1)
            D = jnp.diag(rpair)
            M = jnp.eye(2) - D @ Fm
            p = jnp.linalg.inv(M) @ D @ v
            return p[:, 0]

        p1 = block(x0[0:4], x0[8:10], rt[0:2])
        p2 = block(x0[4:8], x0[10:12], rt[2:4])
        return jax.nn.relu(jnp.concatenate([p1, p2]))

    p = jax.vmap(one)(x, r)
    return p, r


if __name__ == "__main__":
    root = jax.random.PRNGKey(0)
    k_in, k_par = jax.random.split(root)

    # Each row is processed exactly like one batch-1 torch forward; the batch
    # axis fills MXU rows and amortizes grid-step / DMA overhead (TM=512, grid=2).
    B = 1024
    base = jnp.array([[1.0, 0.1, 0.1, 1.2,       # G1 (diag-dominant)
                       0.9, 0.2, 0.15, 1.1,      # G2
                       0.8, 0.7,                 # sigma1
                       0.6, 0.9,                 # sigma2
                       1.5, 2.0,                 # r_bar
                       0.3, 0.4]], jnp.float32)
    x = base + 0.05 * jax.random.uniform(k_in, (B, IN_F), jnp.float32)

    raw = init_params(k_par)
    kparams = pack_params(raw)

    p_f, r_pred = cvxnn_forward(x, kparams)
    jax.block_until_ready((p_f, r_pred))

    p_ref, r_ref = reference_forward(x, raw)
    np.testing.assert_allclose(np.asarray(r_pred), np.asarray(r_ref), rtol=1e-2, atol=1e-2)
    np.testing.assert_allclose(np.asarray(p_f), np.asarray(p_ref), rtol=1e-2, atol=1e-2)

    print("KERNEL_OK")
</pallas_src>

<mosaic_0001>
module attributes {stable_mosaic.version = 11 : i64} {
  func.func @cvxnn_kernel(%arg0: i32, %arg1: memref<512x16xf32, #tpu.memory_space<vmem>>, %arg2: memref<16x256xbf16, #tpu.memory_space<vmem>>, %arg3: memref<3x128x128xbf16, #tpu.memory_space<vmem>>, %arg4: memref<4x128xf32, #tpu.memory_space<vmem>>, %arg5: memref<512x8xf32, #tpu.memory_space<vmem>>) attributes {dimension_semantics = [#tpu.dimension_semantics<parallel>], iteration_bounds = array<i64: 2>, scalar_prefetch = 0 : i64, scratch_operands = 0 : i64, tpu.core_type = #tpu.core_type<tc>, window_params = [{transform_indices = @transform_0, window_bounds = array<i64: 512, 16>}, {pipeline_mode = #tpu.pipeline_mode<synchronous>, transform_indices = @transform_1, window_bounds = array<i64: 16, 256>}, {pipeline_mode = #tpu.pipeline_mode<synchronous>, transform_indices = @transform_2, window_bounds = array<i64: 3, 128, 128>}, {pipeline_mode = #tpu.pipeline_mode<synchronous>, transform_indices = @transform_3, window_bounds = array<i64: 4, 128>}, {transform_indices = @transform_4, window_bounds = array<i64: 512, 8>}]} {
    %c0 = arith.constant 0 : index
    %c0_0 = arith.constant 0 : index
    %0 = vector.load %arg1[%c0, %c0_0] : memref<512x16xf32, #tpu.memory_space<vmem>>, vector<512x16xf32>
    %1 = arith.truncf %0 : vector<512x16xf32> to vector<512x16xbf16>
    %c0_1 = arith.constant 0 : index
    %c0_2 = arith.constant 0 : index
    %2 = vector.load %arg2[%c0_1, %c0_2] : memref<16x256xbf16, #tpu.memory_space<vmem>>, vector<16x256xbf16>
    %cst = arith.constant dense<0.000000e+00> : vector<512x256xf32>
    %3 = tpu.matmul %1, %2, %cst {dimension_numbers = #tpu.dot_dimension_numbers<[1], [0], [0], [1], [0, 0, 1, 1], [], []>} : vector<512x16xbf16>, vector<16x256xbf16>, vector<512x256xf32> -> vector<512x256xf32>
    %4 = vector.extract_strided_slice %3 {offsets = [0, 0], sizes = [512, 128], strides = [1, 1]} : vector<512x256xf32> to vector<512x128xf32>
    %c0_3 = arith.constant 0 : index
    %c0_4 = arith.constant 0 : index
    %5 = vector.load %arg4[%c0_3, %c0_4] : memref<4x128xf32, #tpu.memory_space<vmem>>, vector<1x128xf32>
    %6 = vector.broadcast %5 : vector<1x128xf32> to vector<512x128xf32>
    %7 = arith.addf %4, %6 : vector<512x128xf32>
    %cst_5 = arith.constant 0.000000e+00 : f32
    %8 = vector.broadcast %cst_5 : f32 to vector<512x128xf32>
    %9 = arith.maximumf %7, %8 : vector<512x128xf32>
    %10 = arith.truncf %9 : vector<512x128xf32> to vector<512x128xbf16>
    %c0_6 = arith.constant 0 : index
    %c0_7 = arith.constant 0 : index
    %c0_8 = arith.constant 0 : index
    %11 = vector.load %arg3[%c0_6, %c0_7, %c0_8] : memref<3x128x128xbf16, #tpu.memory_space<vmem>>, vector<1x128x128xbf16>
    %12 = vector.shape_cast %11 : vector<1x128x128xbf16> to vector<128x128xbf16>
    %cst_9 = arith.constant dense<0.000000e+00> : vector<512x128xf32>
    %13 = tpu.matmul %10, %12, %cst_9 {dimension_numbers = #tpu.dot_dimension_numbers<[1], [0], [0], [1], [0, 0, 1, 1], [], []>} : vector<512x128xbf16>, vector<128x128xbf16>, vector<512x128xf32> -> vector<512x128xf32>
    %c1 = arith.constant 1 : index
    %c0_10 = arith.constant 0 : index
    %14 = vector.load %arg4[%c1, %c0_10] : memref<4x128xf32, #tpu.memory_space<vmem>>, vector<1x128xf32>
    %15 = vector.broadcast %14 : vector<1x128xf32> to vector<512x128xf32>
    %16 = arith.addf %13, %15 : vector<512x128xf32>
    %cst_11 = arith.constant 0.000000e+00 : f32
    %17 = vector.broadcast %cst_11 : f32 to vector<512x128xf32>
    %18 = arith.maximumf %16, %17 : vector<512x128xf32>
    %19 = arith.truncf %18 : vector<512x128xf32> to vector<512x128xbf16>
    %c1_12 = arith.constant 1 : index
    %c0_13 = arith.constant 0 : index
    %c0_14 = arith.constant 0 : index
    %20 = vector.load %arg3[%c1_12, %c0_13, %c0_14] : memref<3x128x128xbf16, #tpu.memory_space<vmem>>, vector<1x128x128xbf16>
    %21 = vector.shape_cast %20 : vector<1x128x128xbf16> to vector<128x128xbf16>
    %cst_15 = arith.constant dense<0.000000e+00> : vector<512x128xf32>
    %22 = tpu.matmul %19, %21, %cst_15 {dimension_numbers = #tpu.dot_dimension_numbers<[1], [0], [0], [1], [0, 0, 1, 1], [], []>} : vector<512x128xbf16>, vector<128x128xbf16>, vector<512x128xf32> -> vector<512x128xf32>
    %c2 = arith.constant 2 : index
    %c0_16 = arith.constant 0 : index
    %23 = vector.load %arg4[%c2, %c0_16] : memref<4x128xf32, #tpu.memory_space<vmem>>, vector<1x128xf32>
    %24 = vector.broadcast %23 : vector<1x128xf32> to vector<512x128xf32>
    %25 = arith.addf %22, %24 : vector<512x128xf32>
    %cst_17 = arith.constant 0.000000e+00 : f32
    %26 = vector.broadcast %cst_17 : f32 to vector<512x128xf32>
    %27 = arith.maximumf %25, %26 : vector<512x128xf32>
    %28 = arith.truncf %27 : vector<512x128xf32> to vector<512x128xbf16>
    %c2_18 = arith.constant 2 : index
    %c0_19 = arith.constant 0 : index
    %c0_20 = arith.constant 0 : index
    %29 = vector.load %arg3[%c2_18, %c0_19, %c0_20] : memref<3x128x128xbf16, #tpu.memory_space<vmem>>, vector<1x128x128xbf16>
    %30 = vector.shape_cast %29 : vector<1x128x128xbf16> to vector<128x128xbf16>
    %cst_21 = arith.constant dense<0.000000e+00> : vector<512x128xf32>
    %31 = tpu.matmul %28, %30, %cst_21 {dimension_numbers = #tpu.dot_dimension_numbers<[1], [0], [0], [1], [0, 0, 1, 1], [], []>} : vector<512x128xbf16>, vector<128x128xbf16>, vector<512x128xf32> -> vector<512x128xf32>
    %32 = vector.extract_strided_slice %31 {offsets = [0, 0], sizes = [512, 8], strides = [1, 1]} : vector<512x128xf32> to vector<512x8xf32>
    %c3 = arith.constant 3 : index
    %c0_22 = arith.constant 0 : index
    %33 = vector.load %arg4[%c3, %c0_22] : memref<4x128xf32, #tpu.memory_space<vmem>>, vector<1x8xf32>
    %34 = vector.broadcast %33 : vector<1x8xf32> to vector<512x8xf32>
    %35 = arith.addf %32, %34 : vector<512x8xf32>
    %36 = vector.extract_strided_slice %3 {offsets = [0, 128], sizes = [512, 8], strides = [1, 1]} : vector<512x256xf32> to vector<512x8xf32>
    %37 = vector.extract_strided_slice %3 {offsets = [0, 136], sizes = [512, 8], strides = [1, 1]} : vector<512x256xf32> to vector<512x8xf32>
    %38 = vector.extract_strided_slice %3 {offsets = [0, 144], sizes = [512, 8], strides = [1, 1]} : vector<512x256xf32> to vector<512x8xf32>
    %39 = vector.extract_strided_slice %3 {offsets = [0, 152], sizes = [512, 8], strides = [1, 1]} : vector<512x256xf32> to vector<512x8xf32>
    %cst_23 = arith.constant 0.000000e+00 : f32
    %40 = vector.broadcast %cst_23 : f32 to vector<512x8xf32>
    %41 = arith.cmpf one, %36, %40 : vector<512x8xf32>
    %42 = tpu.reciprocal %36 {approx = true} : vector<512x8xf32> -> vector<512x8xf32>
    %cst_24 = arith.constant 0.000000e+00 : f32
    %43 = vector.broadcast %cst_24 : f32 to vector<512x8xf32>
    %44 = arith.select %41, %42, %43 : vector<512x8xi1>, vector<512x8xf32>
    %45 = arith.mulf %37, %44 : vector<512x8xf32>
    %46 = arith.mulf %38, %44 : vector<512x8xf32>
    %47 = vector.extract_strided_slice %35 {offsets = [0, 4], sizes = [512, 4], strides = [1, 1]} : vector<512x8xf32> to vector<512x4xf32>
    %48 = vector.extract_strided_slice %35 {offsets = [0, 0], sizes = [512, 4], strides = [1, 1]} : vector<512x8xf32> to vector<512x4xf32>
    %49 = tpu.concatenate %47, %48 in 1 : vector<512x4xf32>, vector<512x4xf32> -> vector<512x8xf32>
    %50 = arith.addf %35, %49 : vector<512x8xf32>
    %51 = arith.mulf %39, %35 : vector<512x8xf32>
    %52 = tpu.reciprocal %50 {approx = true} : vector<512x8xf32> -> vector<512x8xf32>
    %53 = arith.mulf %51, %52 : vector<512x8xf32>
    %54 = arith.mulf %53, %46 : vector<512x8xf32>
    %55 = arith.mulf %53, %45 : vector<512x8xf32>
    %56 = vector.extract_strided_slice %55 {offsets = [0, 4], sizes = [512, 4], strides = [1, 1]} : vector<512x8xf32> to vector<512x4xf32>
    %57 = vector.extract_strided_slice %55 {offsets = [0, 0], sizes = [512, 4], strides = [1, 1]} : vector<512x8xf32> to vector<512x4xf32>
    %58 = tpu.concatenate %56, %57 in 1 : vector<512x4xf32>, vector<512x4xf32> -> vector<512x8xf32>
    %59 = arith.mulf %55, %58 : vector<512x8xf32>
    %cst_25 = arith.constant 1.000000e+00 : f32
    %60 = vector.broadcast %cst_25 : f32 to vector<512x8xf32>
    %61 = arith.subf %60, %59 : vector<512x8xf32>
    %62 = vector.extract_strided_slice %54 {offsets = [0, 4], sizes = [512, 4], strides = [1, 1]} : vector<512x8xf32> to vector<512x4xf32>
    %63 = vector.extract_strided_slice %54 {offsets = [0, 0], sizes = [512, 4], strides = [1, 1]} : vector<512x8xf32> to vector<512x4xf32>
    %64 = tpu.concatenate %62, %63 in 1 : vector<512x4xf32>, vector<512x4xf32> -> vector<512x8xf32>
    %65 = vector.extract_strided_slice %55 {offsets = [0, 4], sizes = [512, 4], strides = [1, 1]} : vector<512x8xf32> to vector<512x4xf32>
    %66 = vector.extract_strided_slice %55 {offsets = [0, 0], sizes = [512, 4], strides = [1, 1]} : vector<512x8xf32> to vector<512x4xf32>
    %67 = tpu.concatenate %65, %66 in 1 : vector<512x4xf32>, vector<512x4xf32> -> vector<512x8xf32>
    %68 = arith.mulf %67, %54 : vector<512x8xf32>
    %69 = arith.addf %64, %68 : vector<512x8xf32>
    %70 = arith.divf %69, %61 : vector<512x8xf32>
    %cst_26 = arith.constant 0.000000e+00 : f32
    %71 = vector.broadcast %cst_26 : f32 to vector<512x8xf32>
    %72 = arith.maximumf %70, %71 : vector<512x8xf32>
    %73 = tpu.iota {dimensions = array<i32: 1>} : vector<512x8xi32>
    %c4_i32 = arith.constant 4 : i32
    %74 = vector.broadcast %c4_i32 : i32 to vector<512x8xi32>
    %75 = arith.cmpi slt, %73, %74 : vector<512x8xi32>
    %76 = arith.select %75, %72, %35 : vector<512x8xi1>, vector<512x8xf32>
    %c0_27 = arith.constant 0 : index
    %c0_28 = arith.constant 0 : index
    %77 = vector.load %arg5[%c0_27, %c0_28] : memref<512x8xf32, #tpu.memory_space<vmem>>, vector<512x8xf32>
    tpu.vector_store %arg5[%c0_27, %c0_28], %76 {strides = array<i32>} : memref<512x8xf32, #tpu.memory_space<vmem>>, vector<512x8xf32>,
    return
  }
  func.func @transform_0(%arg0: i32) -> (i32, i32) {
    %c0_i32 = arith.constant 0 : i32
    %c0_i32_0 = arith.constant 0 : i32
    return %arg0, %c0_i32 : i32, i32
  }
  func.func @transform_1(%arg0: i32) -> (i32, i32) {
    %c0_i32 = arith.constant 0 : i32
    %c0_i32_0 = arith.constant 0 : i32
    %c0_i32_1 = arith.constant 0 : i32
    return %c0_i32, %c0_i32_0 : i32, i32
  }
  func.func @transform_2(%arg0: i32) -> (i32, i32, i32) {
    %c0_i32 = arith.constant 0 : i32
    %c0_i32_0 = arith.constant 0 : i32
    %c0_i32_1 = arith.constant 0 : i32
    %c0_i32_2 = arith.constant 0 : i32
    return %c0_i32, %c0_i32_0, %c0_i32_1 : i32, i32, i32
  }
  func.func @transform_3(%arg0: i32) -> (i32, i32) {
    %c0_i32 = arith.constant 0 : i32
    %c0_i32_0 = arith.constant 0 : i32
    %c0_i32_1 = arith.constant 0 : i32
    return %c0_i32, %c0_i32_0 : i32, i32
  }
  func.func @transform_4(%arg0: i32) -> (i32, i32) {
    %c0_i32 = arith.constant 0 : i32
    %c0_i32_0 = arith.constant 0 : i32
    return %arg0, %c0_i32 : i32, i32
  }
}

</mosaic_0001>

<bundles_post_ra>
// kernel: tpu_custom_call.1
= control target key start
LH: loop header
LB: loop body
LE: loop exit
PB: predicated region body
PF: predicated region fallthrough
CT: control target
= control target key end

     0   :  { %s8186_s15 = smov 0   ;;  %s14850_s0 = inlined_call_operand.vmem [shape: f32[1024,16], index: 0, kind: input, shape index: {}]   ;;  %s14851_s1 = inlined_call_operand.vmem [shape: bf16[16,256], index: 1, kind: input, shape index: {}]   ;;  %s14852_s2 = inlined_call_operand.vmem [shape: bf16[3,128,128], index: 2, kind: input, shape index: {}]   ;;  %s14853_s3 = inlined_call_operand.vmem [shape: f32[4,128], index: 3, kind: input, shape index: {}]   ;;  %s14854_s4 = inlined_call_operand.vmem [shape: f32[1024,8], index: 4, kind: output, shape index: {}]  }
   0x1 LB: > { %s7246_s16 = sadd.s32 4294967295, %s8150_s15   ;;  %p7250_p0 = scmp.ge.s32.totalorder %s8150_s15, 1  ;;  %s8150_s15 = sphi %s8186_s15, %s14_s15  }
   0x2   : > { %p163_p1 = scmp.lt.s32.totalorder %s8150_s15, 3 }
   0x4   : > { %p164_p2 = pnand %p7250_p0, %p163_p1 }
   0x6   : > { %167 = sbr.rel (%p164_p2) target bundleno = 2446 (0x98e), region = 36 }
   0xd   : > { %v7730_v0 = vld [vmem:[%s14851_s1 + $0x4] ss:$8 sps:$4 sm:$0xff]   ;;  %s7251_s19 = sshll.u32 %s7246_s16, 6  ;;  %v7732_v1 = vld [vmem:[%s14851_s1] ss:$8 sps:$4 sm:$0xff]   ;;  %v8152_v2 = vmov 0  }
   0xe   : > { %439 = vmatprep.mubr.bf16.mxu0 %v8152_v2  ;;  %679 = vmatprep.mubr.bf16.mxu1 %v8152_v2  ;;  %p190_p3 = scmp.lt.s32.totalorder %s7251_s19, 127  ;;  %vm310_vm0 = vcmask 130048   ;;  %v7733_v33 = vld [vmem:[%s14852_s2] sm:$0xff]   ;;  %v7734_v40 = vld [vmem:[%s14852_s2 + $0x8] sm:$0xff]   ;;  %v7735_v47 = vld [vmem:[%s14852_s2 + $0x10] sm:$0xff]   ;;  %s8153_s23 = smov 8  }
   0xf   : > { %407 = vmatprep.subr.bf16.mxu0 %v7730_v0  ;;  %7711 = vmatprep.subr.bf16.mxu1 %v7730_v0  ;;  %v7736_v54 = vld [vmem:[%s14852_s2 + $0x18] sm:$0xff]   ;;  %v7737_v55 = vld [vmem:[%s14852_s2 + $0x20] sm:$0xff]   ;;  %v7738_v59 = vld [vmem:[%s14852_s2 + $0x28] sm:$0xff]   ;;  %s8154_s28 = smov 16   ;;  %s8155_s17 = smov 124  }
  0x10   : > { %408 = vmatpush1.bf16.msra.mxu0 %v7732_v1  ;;  %7712 = vmatpush1.bf16.msra.mxu1 %v7732_v1  ;;  %s16907_s19 = smov (!%p190_p3, %s7251_s19), 127  ;;  %s8156_s18 = smov 4  }
  0x11   : > { %s7252_s22 = sshll.u32 %s16907_s19, 3  ;;  %7471 = vmatprep.subr.bf16.mxu1 %v7733_v33  ;;  %s8157_s20 = smov 24  }
  0x12   : > { %s8210_s25 = scalar_lea.vmem %s14850_s0, %s7252_s22  ;;  %s8159_s26 = smov 108  }
  0x13   : > { %v202_v3 = vld [vmem:[%s8210_s25] sm:$0xff]  ;;  %v203_v4 = vld [vmem:[%s8210_s25 + $0x8] sm:$0xff]  ;;  %v204_v9 = vld [vmem:[%s8210_s25 + $0x10] sm:$0xff]  ;;  %s8160_s27 = smov 104   ;;  %s14224_s5 = scalar_lea.vmem %s14854_s4, %s7252_s22 }
  0x14   : > { %v250_v5 = vld [vmem:[%s8210_s25 + $0x180] sm:$0xff]  ;;  %v266_v6 = vpack.c.bf16 %v203_v4, %v202_v3  ;;  %v251_v7 = vld [vmem:[%s8210_s25 + $0x188] sm:$0xff]  ;;  %v205_v10 = vld [vmem:[%s8210_s25 + $0x18] sm:$0xff] }
  0x15   : > { %v290_v8 = vpack.c.bf16 %v251_v7, %v250_v5  ;;  %v252_v11 = vld [vmem:[%s8210_s25 + $0x190] sm:$0xff]  ;;  %v253_v12 = vld [vmem:[%s8210_s25 + $0x198] sm:$0xff]  ;;  %v267_v13 = vpack.c.bf16 %v205_v10, %v204_v9  ;;  %v206_v15 = vld [vmem:[%s8210_s25 + $0x20] sm:$0xff] }
  0x16   : > { %7257 = vmatmul.mubr.msk.bf16.vlgmr.msra.gmra.mrb[0].mxu0 %vm310_vm0, %v266_v6  ;;  %v291_v14 = vpack.c.bf16 %v253_v12, %v252_v11  ;;  %v207_v16 = vld [vmem:[%s8210_s25 + $0x28] sm:$0xff]  ;;  %v254_v17 = vld [vmem:[%s8210_s25 + $0x1a0] sm:$0xff]  ;;  %v208_v21 = vld [vmem:[%s8210_s25 + $0x30] sm:$0xff] }
  0x17   : > { %7281 = vmatmul.mubr.msk.bf16.vlgmr.msra.gmra.mrb[0].mxu1 %vm310_vm0, %v290_v8  ;;  %449 = vmatprep.mubr.bf16.mxu0 %v8152_v2  ;;  %v255_v18 = vld [vmem:[%s8210_s25 + $0x1a8] sm:$0xff]  ;;  %v268_v19 = vpack.c.bf16 %v207_v16, %v206_v15  ;;  %v209_v22 = vld [vmem:[%s8210_s25 + $0x38] sm:$0xff]  ;;  %v256_v23 = vld [vmem:[%s8210_s25 + $0x1b0] sm:$0xff] }
  0x18   : > { %689 = vmatprep.mubr.bf16.mxu1 %v8152_v2  ;;  %v292_v20 = vpack.c.bf16 %v255_v18, %v254_v17  ;;  %v257_v24 = vld [vmem:[%s8210_s25 + $0x1b8] sm:$0xff]  ;;  %v269_v25 = vpack.c.bf16 %v209_v22, %v208_v21  ;;  %v210_v27 = vld [vmem:[%s8210_s25 + $0x40] sm:$0xff]  ;;  %v211_v28 = vld [vmem:[%s8210_s25 + $0x48] sm:$0xff]  ;;  %7472 = vmatpush3.bf16.msra.mxu1 %v7733_v33 }
  0x19   : > { %v293_v26 = vpack.c.bf16 %v257_v24, %v256_v23  ;;  %v258_v29 = vld [vmem:[%s8210_s25 + $0x1c0] sm:$0xff]  ;;  %v259_v30 = vld [vmem:[%s8210_s25 + $0x1c8] sm:$0xff]  ;;  %v270_v31 = vpack.c.bf16 %v211_v28, %v210_v27  ;;  %v212_v34 = vld [vmem:[%s8210_s25 + $0x50] sm:$0xff]  ;;  %7473 = vmatprep.subr.bf16.mxu1 %v7734_v40 }
  0x1a   : > { %v294_v32 = vpack.c.bf16 %v259_v30, %v258_v29  ;;  %v213_v35 = vld [vmem:[%s8210_s25 + $0x58] sm:$0xff]  ;;  %v260_v36 = vld [vmem:[%s8210_s25 + $0x1d0] sm:$0xff]  ;;  %v214_v41 = vld [vmem:[%s8210_s25 + $0x60] sm:$0xff] }
  0x1b   : > { %v261_v37 = vld [vmem:[%s8210_s25 + $0x1d8] sm:$0xff]  ;;  %v271_v38 = vpack.c.bf16 %v213_v35, %v212_v34  ;;  %v215_v42 = vld [vmem:[%s8210_s25 + $0x68] sm:$0xff]  ;;  %v262_v43 = vld [vmem:[%s8210_s25 + $0x1e0] sm:$0xff] }
  0x1c   : > { %v295_v39 = vpack.c.bf16 %v261_v37, %v260_v36  ;;  %v263_v44 = vld [vmem:[%s8210_s25 + $0x1e8] sm:$0xff]  ;;  %7474 = vmatpush3.bf16.msra.mxu1 %v7734_v40  ;;  %v272_v45 = vpack.c.bf16 %v215_v42, %v214_v41  ;;  %v216_v48 = vld [vmem:[%s8210_s25 + $0x70] sm:$0xff]  ;;  %v217_v49 = vld [vmem:[%s8210_s25 + $0x78] sm:$0xff] }
  0x1d   : > { %v296_v46 = vpack.c.bf16 %v263_v44, %v262_v43  ;;  %v264_v50 = vld [vmem:[%s8210_s25 + $0x1f0] sm:$0xff]  ;;  %v265_v51 = vld [vmem:[%s8210_s25 + $0x1f8] sm:$0xff]  ;;  %7475 = vmatprep.subr.bf16.mxu1 %v7735_v47  ;;  %v273_v52 = vpack.c.bf16 %v217_v49, %v216_v48  ;;  %v218_v56 = vld [vmem:[%s8210_s25 + $0x80] sm:$0xff] }
  0x1e   : > { %7258 = vmatmul.mubr.msk.bf16.gmra.mrb[4].mxu0 %vm310_vm0, %v267_v13  ;;  %v297_v53 = vpack.c.bf16 %v265_v51, %v264_v50  ;;  %v219_v57 = vld [vmem:[%s8210_s25 + $0x88] sm:$0xff]  ;;  %v220_v60 = vld [vmem:[%s8210_s25 + $0x90] sm:$0xff]  ;;  %v221_v61 = vld [vmem:[%s8210_s25 + $0x98] sm:$0xff] }
  0x1f   : > { %459 = vmatprep.mubr.bf16.mxu0 %v8152_v2  ;;  %7282 = vmatmul.mubr.msk.bf16.gmra.mrb[4].mxu1 %vm310_vm0, %v291_v14  ;;  %v274_v58 = vpack.c.bf16 %v219_v57, %v218_v56  ;;  %v275_v62 = vpack.c.bf16 %v221_v61, %v220_v60  ;;  %v222_v63 = vld [vmem:[%s8210_s25 + $0xa0] sm:$0xff]  ;;  %v223_v0 = vld [vmem:[%s8210_s25 + $0xa8] sm:$0xff]  ;;  %v224_v3 = vld [vmem:[%s8210_s25 + $0xb0] sm:$0xff] }
  0x20   : > { %699 = vmatprep.mubr.bf16.mxu1 %v8152_v2  ;;  %7476 = vmatpush3.bf16.msra.mxu1 %v7735_v47  ;;  %v276_v1 = vpack.c.bf16 %v223_v0, %v222_v63  ;;  %v225_v4 = vld [vmem:[%s8210_s25 + $0xb8] sm:$0xff]  ;;  %v7739_v6 = vld [vmem:[%s14852_s2 + $0x30] sm:$0xff]   ;;  %v226_v7 = vld [vmem:[%s8210_s25 + $0xc0] sm:$0xff] }
  0x21   : > { %7477 = vmatprep.subr.bf16.mxu1 %v7736_v54  ;;  %v277_v5 = vpack.c.bf16 %v225_v4, %v224_v3  ;;  %v227_v8 = vld [vmem:[%s8210_s25 + $0xc8] sm:$0xff]  ;;  %v7740_v10 = vld [vmem:[%s14852_s2 + $0x38] sm:$0xff]   ;;  %v228_v11 = vld [vmem:[%s8210_s25 + $0xd0] sm:$0xff] }
  0x22   : > { %v278_v9 = vpack.c.bf16 %v227_v8, %v226_v7  ;;  %v229_v12 = vld [vmem:[%s8210_s25 + $0xd8] sm:$0xff]  ;;  %v230_v14 = vld [vmem:[%s8210_s25 + $0xe0] sm:$0xff]  ;;  %v231_v15 = vld [vmem:[%s8210_s25 + $0xe8] sm:$0xff] }
  0x23   : > { %v279_v13 = vpack.c.bf16 %v229_v12, %v228_v11  ;;  %v280_v16 = vpack.c.bf16 %v231_v15, %v230_v14  ;;  %v232_v17 = vld [vmem:[%s8210_s25 + $0xf0] sm:$0xff]  ;;  %v233_v18 = vld [vmem:[%s8210_s25 + $0xf8] sm:$0xff]  ;;  %v235_v21 = vld [vmem:[%s8210_s25 + $0x108] sm:$0xff] }
  0x24   : > { %7478 = vmatpush3.bf16.msra.mxu1 %v7736_v54  ;;  %v236_v23 = vld [vmem:[%s8210_s25 + $0x110] sm:$0xff]  ;;  %v237_v24 = vld [vmem:[%s8210_s25 + $0x118] sm:$0xff]  ;;  %v239_v27 = vld [vmem:[%s8210_s25 + $0x128] sm:$0xff] }
  0x25   : > { %7479 = vmatprep.subr.bf16.mxu1 %v7737_v55  ;;  %v240_v29 = vld [vmem:[%s8210_s25 + $0x130] sm:$0xff]  ;;  %v241_v30 = vld [vmem:[%s8210_s25 + $0x138] sm:$0xff]  ;;  %v243_v33 = vld [vmem:[%s8210_s25 + $0x148] sm:$0xff] }
  0x26   : > { %7259 = vmatmul.mubr.msk.bf16.gmra.mrb[8].mxu0 %vm310_vm0, %v268_v19  ;;  %v281_v19 = vpack.c.bf16 %v233_v18, %v232_v17  ;;  %v244_v35 = vld [vmem:[%s8210_s25 + $0x150] sm:$0xff]  ;;  %v245_v36 = vld [vmem:[%s8210_s25 + $0x158] sm:$0xff]  ;;  %v8365_v44 = vld [vmem:[%s14852_s2 + $0x40] sm:$0xff]  }
  0x27   : > { %469 = vmatprep.mubr.bf16.mxu0 %v8152_v2  ;;  %7283 = vmatmul.mubr.msk.bf16.gmra.mrb[8].mxu1 %vm310_vm0, %v292_v20  ;;  %v234_v20 = vld [vmem:[%s8210_s25 + $0x100] sm:$0xff]  ;;  %v287_v37 = vpack.c.bf16 %v245_v36, %v244_v35  ;;  %v248_v41 = vld [vmem:[%s8210_s25 + $0x170] sm:$0xff]  ;;  %v249_v42 = vld [vmem:[%s8210_s25 + $0x178] sm:$0xff] }
  0x28   : > { %709 = vmatprep.mubr.bf16.mxu1 %v8152_v2  ;;  %7480 = vmatpush3.bf16.msra.mxu1 %v7737_v55  ;;  %v282_v22 = vpack.c.bf16 %v235_v21, %v234_v20  ;;  %v289_v43 = vpack.c.bf16 %v249_v42, %v248_v41 }
  0x29   : > { %7481 = vmatprep.subr.bf16.mxu1 %v7738_v59 }
  0x2c   : > { %7482 = vmatpush3.bf16.msra.mxu1 %v7738_v59 }
  0x2d   : > { %7483 = vmatprep.subr.bf16.mxu1 %v7739_v6 }
  0x2e   : > { %7260 = vmatmul.mubr.msk.bf16.gmra.mrb[12].mxu0 %vm310_vm0, %v269_v25  ;;  %v283_v25 = vpack.c.bf16 %v237_v24, %v236_v23 }
  0x2f   : > { %479 = vmatprep.mubr.bf16.mxu0 %v8152_v2  ;;  %7284 = vmatmul.mubr.msk.bf16.gmra.mrb[12].mxu1 %vm310_vm0, %v293_v26  ;;  %v238_v26 = vld [vmem:[%s8210_s25 + $0x120] sm:$0xff] }
  0x30   : > { %719 = vmatprep.mubr.bf16.mxu1 %v8152_v2  ;;  %7484 = vmatpush3.bf16.msra.mxu1 %v7739_v6  ;;  %v284_v28 = vpack.c.bf16 %v239_v27, %v238_v26 }
  0x31   : > { %7485 = vmatprep.subr.bf16.mxu1 %v7740_v10 }
  0x34   : > { %7486 = vmatpush3.bf16.msra.mxu1 %v7740_v10 }
  0x35   : > { %7551 = vmatprep.subr.bf16.mxu1 %v8365_v44 }
  0x36   : > { %7261 = vmatmul.mubr.msk.bf16.gmra.mrb[16].mxu0 %vm310_vm0, %v270_v31  ;;  %v285_v31 = vpack.c.bf16 %v241_v30, %v240_v29 }
  0x37   : > { %489 = vmatprep.mubr.bf16.mxu0 %v8152_v2  ;;  %7285 = vmatmul.mubr.msk.bf16.gmra.mrb[16].mxu1 %vm310_vm0, %v294_v32  ;;  %v242_v32 = vld [vmem:[%s8210_s25 + $0x140] sm:$0xff] }
  0x38   : > { %729 = vmatprep.mubr.bf16.mxu1 %v8152_v2  ;;  %v286_v34 = vpack.c.bf16 %v243_v33, %v242_v32 }
  0x3e   : > { %7262 = vmatmul.mubr.msk.bf16.gmra.mrb[20].mxu0 %vm310_vm0, %v271_v38  ;;  %v246_v38 = vld [vmem:[%s8210_s25 + $0x160] sm:$0xff] }
  0x3f   : > { %499 = vmatprep.mubr.bf16.mxu0 %v8152_v2  ;;  %7286 = vmatmul.mubr.msk.bf16.gmra.mrb[20].mxu1 %vm310_vm0, %v295_v39  ;;  %v247_v39 = vld [vmem:[%s8210_s25 + $0x168] sm:$0xff]  ;;  %s8158_s25 = smov 100  }
  0x40   : > { %739 = vmatprep.mubr.bf16.mxu1 %v8152_v2  ;;  %v288_v40 = vpack.c.bf16 %v247_v39, %v246_v38 }
  0x46   : > { %7263 = vmatmul.mubr.msk.bf16.gmra.mrb[24].mxu0 %vm310_vm0, %v272_v45  ;;  %v8371_v45 = vld [vmem:[%s14853_s3] ss:$0 sm:$0xff] }
  0x47   : > { %509 = vmatprep.mubr.bf16.mxu0 %v8152_v2  ;;  %7287 = vmatmul.mubr.msk.bf16.gmra.mrb[24].mxu1 %vm310_vm0, %v296_v46 }
  0x48   : > { %749 = vmatprep.mubr.bf16.mxu1 %v8152_v2 }
  0x4e   : > { %7264 = vmatmul.mubr.msk.bf16.gmra.mrb[28].mxu0 %vm310_vm0, %v273_v52 }
  0x4f   : > { %519 = vmatprep.mubr.bf16.mxu0 %v8152_v2  ;;  %7288 = vmatmul.mubr.msk.bf16.gmra.mrb[28].mxu1 %vm310_vm0, %v297_v53 }
  0x56   : > { %7265 = vmatmul.mubr.msk.bf16.gmra.mrb[32].mxu0 %vm310_vm0, %v274_v58 }
  0x57   : > { %529 = vmatprep.mubr.bf16.mxu0 %v8152_v2 }
  0x5e   : > { %7266 = vmatmul.mubr.msk.bf16.gmra.mrb[36].mxu0 %vm310_vm0, %v275_v62 }
  0x5f   : > { %539 = vmatprep.mubr.bf16.mxu0 %v8152_v2 }
  0x66   : > { %7267 = vmatmul.mubr.msk.bf16.gmra.mrb[40].mxu0 %vm310_vm0, %v276_v1 }
  0x67   : > { %549 = vmatprep.mubr.bf16.mxu0 %v8152_v2 }
  0x6e   : > { %7268 = vmatmul.mubr.msk.bf16.gmra.mrb[44].mxu0 %vm310_vm0, %v277_v5 }
  0x6f   : > { %559 = vmatprep.mubr.bf16.mxu0 %v8152_v2 }
  0x76   : > { %7269 = vmatmul.mubr.msk.bf16.gmra.mrb[48].mxu0 %vm310_vm0, %v278_v9 }
  0x77   : > { %569 = vmatprep.mubr.bf16.mxu0 %v8152_v2 }
  0x7e   : > { %7270 = vmatmul.mubr.msk.bf16.gmra.mrb[52].mxu0 %vm310_vm0, %v279_v13 }
  0x7f   : > { %579 = vmatprep.mubr.bf16.mxu0 %v8152_v2 }
  0x86   : > { %7271 = vmatmul.mubr.msk.bf16.gmra.mrb[56].mxu0 %vm310_vm0, %v280_v16 }
  0x87   : > { %589 = vmatprep.mubr.bf16.mxu0 %v8152_v2 }
  0x8e   : > { %7272 = vmatmul.mubr.msk.bf16.gmra.mrb[60].mxu0 %vm310_vm0, %v281_v19 }
  0x8f   : > { %599 = vmatprep.mubr.bf16.mxu0 %v8152_v2 }
  0x96   : > { %7273 = vmatmul.mubr.msk.bf16.gmra.mrb[64].mxu0 %vm310_vm0, %v282_v22  ;;  %v7742_v22 = vld [vmem:[%s14852_s2 + $0x48] sm:$0xff]  }
  0x97   : > { %609 = vmatprep.mubr.bf16.mxu0 %v8152_v2 }
  0x9e   : > { %7274 = vmatmul.mubr.msk.bf16.gmra.mrb[68].mxu0 %vm310_vm0, %v283_v25 }
  0x9f   : > { %619 = vmatprep.mubr.bf16.mxu0 %v8152_v2 }
  0xa6   : > { %7275 = vmatmul.mubr.msk.bf16.gmra.mrb[72].mxu0 %vm310_vm0, %v284_v28 }
  0xa7   : > { %629 = vmatprep.mubr.bf16.mxu0 %v8152_v2 }
  0xae   : > { %7276 = vmatmul.mubr.msk.bf16.gmra.mrb[76].mxu0 %vm310_vm0, %v285_v31 }
  0xaf   : > { %639 = vmatprep.mubr.bf16.mxu0 %v8152_v2 }
  0xb6   : > { %7277 = vmatmul.mubr.msk.bf16.gmra.mrb[80].mxu0 %vm310_vm0, %v286_v34 }
  0xb7   : > { %649 = vmatprep.mubr.bf16.mxu0 %v8152_v2 }
  0xbe   : > { %7278 = vmatmul.mubr.msk.bf16.gmra.mrb[84].mxu0 %vm310_vm0, %v287_v37  ;;  %v7743_v37 = vld [vmem:[%s14852_s2 + $0x50] sm:$0xff]  }
  0xbf   : > { %659 = vmatprep.mubr.bf16.mxu0 %v8152_v2 }
  0xc6   : > { %7279 = vmatmul.mubr.msk.bf16.gmra.mrb[88].mxu0 %vm310_vm0, %v288_v40 }
  0xc7   : > { %669 = vmatprep.mubr.bf16.mxu0 %v8152_v2 }
  0xce   : > { %7280 = vmatmul.mubr.msk.bf16.gmra.mrb[92].mxu0 %vm310_vm0, %v289_v43 }
  0xe9   : > { %v441_v46 = vpop.f32.mrb[0].mxu0 }
  0xea   : > { %v765_v2 = vadd.f32 %v8371_v45, %v441_v46  ;;  %v681_v47 = vpop.f32.mrb[0].mxu1  ;;  %v8374_v48 = vpop.f32.mrb[1].mxu0 }
  0xeb   : > { %15314 = vst [vmem:[#allocation2_spill] sm:$0xff] %v8374_v48  ;;  %v813_v49 = vadd.f32 %v8371_v45, %v681_v47  ;;  %7757 = vrcp.f32 %v8374_v48  ;;  %v8378_v50 = vpop.f32.mrb[1].mxu1  ;;  %v445_v51 = vpop.f32.mrb[2].mxu0  ;;  %vm2257_vm1 = vcmp.ne.f32.partialorder %v8374_v48, 0.0 }
  0xec   : > { %15315 = vst [vmem:[#allocation3_spill] sm:$0xff] %v8378_v50  ;;  %7759 = vrcp.f32 %v8378_v50  ;;  %v766_v52 = vadd.f32 %v8371_v45, %v445_v51  ;;  %v685_v53 = vpop.f32.mrb[2].mxu1  ;;  %v8382_v54 = vpop.f32.mrb[3].mxu0  ;;  %v829_v58 = vmax.f32 %v765_v2, 0.0  ;;  %vm2305_vm2 = vcmp.ne.f32.partialorder %v8378_v50, 0.0 }
  0xed   : > { %15316 = vst [vmem:[#allocation4_spill] sm:$0xff] %v8382_v54  ;;  %v877_v55 = vmax.f32 %v813_v49, 0.0  ;;  %v814_v56 = vadd.f32 %v8371_v45, %v685_v53  ;;  %v8385_v57 = vpop.f32.mrb[3].mxu1  ;;  %vm2258_vm4 = vcmp.ne.f32.partialorder %v8382_v54, 0.0 }
  0xee   : > { %15317 = vst [vmem:[#allocation5_spill] sm:$0xff] %v8385_v57  ;;  %v830_v59 = vmax.f32 %v766_v52, 0.0  ;;  %7761 = vrcp.f32 %v8385_v57  ;;  %vm2306_vm3 = vcmp.ne.f32.partialorder %v8385_v57, 0.0 }
  0xef   : > { %v878_v60 = vmax.f32 %v814_v56, 0.0  ;;  %7763 = vrcp.f32 %v8382_v54 }
  0xf0   : > { %v893_v61 = vpack.c.bf16 %v830_v59, %v829_v58 }
  0xf1   : > { %v8389_v62 = vpack.c.bf16 %v878_v60, %v877_v55  ;;  %v451_v63 = vpop.f32.mrb[4].mxu0 }
  0xf2   : > { %v767_v0 = vadd.f32 %v8371_v45, %v451_v63  ;;  %v8392_v1 = vpop.f32.mrb[5].mxu0  ;;  %7487 = vmatprep.mubr.bf16.mxu1 %v893_v61  ;;  %v691_v3 = vpop.f32.mrb[4].mxu1 }
  0xf3   : > { %15318 = vst [vmem:[#allocation6_spill] sm:$0xff] %v8392_v1  ;;  %v455_v4 = vpop.f32.mrb[6].mxu0  ;;  %v815_v5 = vadd.f32 %v8371_v45, %v691_v3  ;;  %v8395_v6 = vpop.f32.mrb[5].mxu1  ;;  %7765 = vrcp.f32 %v8392_v1  ;;  %vm2259_vm5 = vcmp.ne.f32.partialorder %v8392_v1, 0.0 }
  0xf4   : > { %15319 = vst [vmem:[#allocation7_spill] sm:$0xff] %v8395_v6  ;;  %v768_v7 = vadd.f32 %v8371_v45, %v455_v4  ;;  %v8398_v8 = vpop.f32.mrb[7].mxu0  ;;  %v695_v9 = vpop.f32.mrb[6].mxu1  ;;  %v831_v15 = vmax.f32 %v767_v0, 0.0  ;;  %7767 = vrcp.f32 %v8395_v6  ;;  %vm2307_vm6 = vcmp.ne.f32.partialorder %v8395_v6, 0.0 }
  0xf5   : > { %15320 = vst [vmem:[#allocation8_spill] sm:$0xff] %v8398_v8  ;;  %v7758_v10 = vpop.eup %7757  ;;  %v879_v11 = vmax.f32 %v815_v5, 0.0  ;;  %v816_v12 = vadd.f32 %v8371_v45, %v695_v9  ;;  %v8403_v13 = vpop.f32.mrb[7].mxu1  ;;  %7769 = vrcp.f32 %v8398_v8  ;;  %vm2260_vm7 = vcmp.ne.f32.partialorder %v8398_v8, 0.0 }
  0xf6   : > { %15321 = vst [vmem:[#allocation9_spill] sm:$0xff] %v8403_v13  ;;  %v7760_v14 = vpop.eup %7759  ;;  %v832_v16 = vmax.f32 %v768_v7, 0.0  ;;  %v2385_v17 = vsel %vm2257_vm1, %v7758_v10, 0.0  ;;  %7771 = vrcp.f32 %v8403_v13  ;;  %vm2308_vm8 = vcmp.ne.f32.partialorder %v8403_v13, 0.0 }
  0xf7   : > { %2513 = vrot.lane.b32.xlu0 %v2385_v17, %s8153_s23  ;;  %v880_v18 = vmax.f32 %v816_v12, 0.0  ;;  %v2433_v21 = vsel %vm2305_vm2, %v7760_v14, 0.0 }
  0xf8   : > { %v7762_v19 = vpop.eup %7761  ;;  %v894_v20 = vpack.c.bf16 %v832_v16, %v831_v15  ;;  %v7744_v15 = vld [vmem:[%s14852_s2 + $0x58] sm:$0xff]  }
  0xf9   : > { %v2434_v23 = vsel %vm2306_vm3, %v7762_v19, 0.0  ;;  %v461_v24 = vpop.f32.mrb[8].mxu0  ;;  %v8411_v25 = vpack.c.bf16 %v880_v18, %v879_v11  ;;  %v7764_v26 = vpop.eup %7763 }
  0xfa   : > { %2611 = vrot.lane.b32.xlu1 %v2434_v23, %s8153_s23  ;;  %v769_v27 = vadd.f32 %v8371_v45, %v461_v24  ;;  %v8415_v28 = vpop.f32.mrb[9].mxu0  ;;  %7488 = vmatmul.mubr.bf16.vlgmr.msra.gmra.mrb[32].mxu1 %v894_v20  ;;  %v701_v29 = vpop.f32.mrb[8].mxu1  ;;  %v2386_v38 = vsel %vm2258_vm4, %v7764_v26, 0.0 }
  0xfb   : > { %15322 = vst [vmem:[#allocation10_spill] sm:$0xff] %v8415_v28  ;;  %2609 = vrot.lane.b32.xlu0 %v2433_v21, %s8153_s23  ;;  %v465_v30 = vpop.f32.mrb[10].mxu0  ;;  %v817_v31 = vadd.f32 %v8371_v45, %v701_v29  ;;  %v8420_v32 = vpop.f32.mrb[9].mxu1  ;;  %7552 = vmatpush3.bf16.msra.mxu1 %v8365_v44  ;;  %7773 = vrcp.f32 %v8415_v28  ;;  %vm2261_vm9 = vcmp.ne.f32.partialorder %v8415_v28, 0.0 }
  0xfc   : > { %15323 = vst [vmem:[#allocation11_spill] sm:$0xff] %v8420_v32  ;;  %v833_v33 = vmax.f32 %v769_v27, 0.0  ;;  %v770_v34 = vadd.f32 %v8371_v45, %v465_v30  ;;  %v8425_v35 = vpop.f32.mrb[11].mxu0  ;;  %v705_v36 = vpop.f32.mrb[10].mxu1  ;;  %7553 = vmatprep.subr.bf16.mxu1 %v7742_v22  ;;  %7775 = vrcp.f32 %v8420_v32  ;;  %vm2309_vm10 = vcmp.ne.f32.partialorder %v8420_v32, 0.0 }
  0xfd   : > { %15324 = vst [vmem:[#allocation12_spill] sm:$0xff] %v8425_v35  ;;  %v881_v39 = vmax.f32 %v817_v31, 0.0  ;;  %v818_v40 = vadd.f32 %v8371_v45, %v705_v36  ;;  %v8432_v41 = vpop.f32.mrb[11].mxu1  ;;  %v7766_v47 = vpop.eup %7765  ;;  %7777 = vrcp.f32 %v8425_v35  ;;  %vm2262_vm11 = vcmp.ne.f32.partialorder %v8425_v35, 0.0 }
  0xfe   : > { %15325 = vst [vmem:[#allocation13_spill] sm:$0xff] %v8432_v41  ;;  %v834_v42 = vmax.f32 %v770_v34, 0.0  ;;  %2771 = vrot.lane.b32.xlu1 %v2386_v38, %s8154_s28  ;;  %v7768_v63 = vpop.eup %7767  ;;  %v2387_v0 = vsel %vm2259_vm5, %v7766_v47, 0.0  ;;  %7779 = vrcp.f32 %v8432_v41  ;;  %vm2310_vm12 = vcmp.ne.f32.partialorder %v8432_v41, 0.0 }
  0xff   : > { %2769 = vrot.lane.b32.xlu0 %v2385_v17, %s8154_s28  ;;  %v882_v43 = vmax.f32 %v818_v40, 0.0  ;;  %7554 = vmatpush3.bf16.msra.mxu1 %v7742_v22  ;;  %v7770_v7 = vpop.eup %7769  ;;  %v2435_v14 = vsel %vm2307_vm6, %v7768_v63, 0.0 }
 0x100   : > { %v895_v44 = vpack.c.bf16 %v834_v42, %v833_v33  ;;  %7555 = vmatprep.subr.bf16.mxu1 %v7743_v37  ;;  %v7772_v11 = vpop.eup %7771  ;;  %v2388_v16 = vsel %vm2260_vm7, %v7770_v7, 0.0 }
 0x101   : > { %v471_v46 = vpop.f32.mrb[12].mxu0  ;;  %v8437_v2 = vpack.c.bf16 %v882_v43, %v881_v39 }
 0x102   : > { %2867 = vrot.lane.b32.xlu1 %v2434_v23, %s8154_s28  ;;  %v771_v49 = vadd.f32 %v8371_v45, %v471_v46  ;;  %v8441_v51 = vpop.f32.mrb[13].mxu0  ;;  %7491 = vmatprep.mubr.bf16.mxu1 %v895_v44  ;;  %v711_v52 = vpop.f32.mrb[12].mxu1  ;;  %v2436_v23 = vsel %vm2308_vm8, %v7772_v11, 0.0 }
 0x103   : > { %15326 = vst [vmem:[#allocation14_spill] sm:$0xff] %v8441_v51  ;;  %2865 = vrot.lane.b32.xlu0 %v2433_v21, %s8154_s28  ;;  %v475_v53 = vpop.f32.mrb[14].mxu0  ;;  %v819_v55 = vadd.f32 %v8371_v45, %v711_v52  ;;  %v8445_v56 = vpop.f32.mrb[13].mxu1  ;;  %7556 = vmatpush3.bf16.msra.mxu1 %v7743_v37  ;;  %7781 = vrcp.f32 %v8441_v51  ;;  %vm2263_vm13 = vcmp.ne.f32.partialorder %v8441_v51, 0.0 }
 0x104   : > { %15327 = vst [vmem:[#allocation15_spill] sm:$0xff] %v8445_v56  ;;  %v835_v58 = vmax.f32 %v771_v49, 0.0  ;;  %v772_v59 = vadd.f32 %v8371_v45, %v475_v53  ;;  %v8448_v60 = vpop.f32.mrb[15].mxu0  ;;  %v715_v61 = vpop.f32.mrb[14].mxu1  ;;  %7557 = vmatprep.subr.bf16.mxu1 %v7744_v15  ;;  %7783 = vrcp.f32 %v8445_v56  ;;  %vm2311_vm14 = vcmp.ne.f32.partialorder %v8445_v56, 0.0 }
 0x105   : > { %15328 = vst [vmem:[#allocation16_spill] sm:$0xff] %v8448_v60  ;;  %v883_v3 = vmax.f32 %v819_v55, 0.0  ;;  %v820_v4 = vadd.f32 %v8371_v45, %v715_v61  ;;  %v8453_v5 = vpop.f32.mrb[15].mxu1  ;;  %v7774_v47 = vpop.eup %7773  ;;  %7785 = vrcp.f32 %v8448_v60  ;;  %vm2264_vm15 = vcmp.ne.f32.partialorder %v8448_v60, 0.0 }
 0x106   : > { %15329 = vst [vmem:[#allocation17_spill] sm:$0xff] %v8453_v5  ;;  %v836_v9 = vmax.f32 %v772_v59, 0.0  ;;  %2517 = vrot.lane.b32.xlu1 %v2387_v0, %s8153_s23  ;;  %v7776_v63 = vpop.eup %7775  ;;  %7787 = vrcp.f32 %v8453_v5  ;;  %vm2312_vm0 = vcmp.ne.f32.partialorder %v8453_v5, 0.0 }
 0x107   : > { %2515 = vrot.lane.b32.xlu0 %v2386_v38, %s8153_s23  ;;  %v884_v10 = vmax.f32 %v820_v4, 0.0  ;;  %7558 = vmatpush3.bf16.msra.mxu1 %v7744_v15  ;;  %v7778_v7 = vpop.eup %7777  ;;  %v2437_v15 = vsel %vm2309_vm10, %v7776_v63, 0.0 }
 0x108   : > { %v896_v12 = vpack.c.bf16 %v836_v9, %v835_v58 }
 0x109   : > { %v481_v17 = vpop.f32.mrb[16].mxu0  ;;  %v8463_v18 = vpack.c.bf16 %v884_v10, %v883_v3  ;;  %v2389_v10 = vsel %vm2261_vm9, %v7774_v47, 0.0 }
 0x10a   : > { %2519 = vrot.lane.b32.xlu1 %v2388_v16, %s8153_s23  ;;  %v773_v19 = vadd.f32 %v8371_v45, %v481_v17  ;;  %v8467_v20 = vpop.f32.mrb[17].mxu0  ;;  %7492 = vmatmul.mubr.bf16.gmra.mrb[36].mxu1 %v896_v12  ;;  %v721_v21 = vpop.f32.mrb[16].mxu1  ;;  %v2390_v17 = vsel %vm2262_vm11, %v7778_v7, 0.0 }
 0x10b   : > { %15330 = vst [vmem:[#allocation18_spill] sm:$0xff] %v8467_v20  ;;  %2613 = vrot.lane.b32.xlu0 %v2435_v14, %s8153_s23  ;;  %v485_v22 = vpop.f32.mrb[18].mxu0  ;;  %v821_v24 = vadd.f32 %v8371_v45, %v721_v21  ;;  %v8472_v26 = vpop.f32.mrb[17].mxu1  ;;  %7789 = vrcp.f32 %v8467_v20  ;;  %vm2265_vm1 = vcmp.ne.f32.partialorder %v8467_v20, 0.0 }
 0x10c   : > { %15331 = vst [vmem:[#allocation19_spill] sm:$0xff] %v8472_v26  ;;  %v837_v27 = vmax.f32 %v773_v19, 0.0  ;;  %v774_v29 = vadd.f32 %v8371_v45, %v485_v22  ;;  %v8476_v30 = vpop.f32.mrb[19].mxu0  ;;  %v725_v31 = vpop.f32.mrb[18].mxu1  ;;  %7791 = vrcp.f32 %v8472_v26  ;;  %vm2313_vm2 = vcmp.ne.f32.partialorder %v8472_v26, 0.0 }
 0x10d   : > { %15332 = vst [vmem:[#allocation20_spill] sm:$0xff] %v8476_v30  ;;  %v885_v33 = vmax.f32 %v821_v24, 0.0  ;;  %v822_v34 = vadd.f32 %v8371_v45, %v725_v31  ;;  %v8479_v36 = vpop.f32.mrb[19].mxu1  ;;  %v7780_v12 = vpop.eup %7779  ;;  %7793 = vrcp.f32 %v8476_v30  ;;  %vm2266_vm3 = vcmp.ne.f32.partialorder %v8476_v30, 0.0 }
 0x10e   : > { %15333 = vst [vmem:[#allocation21_spill] sm:$0xff] %v8479_v36  ;;  %v838_v37 = vmax.f32 %v774_v29, 0.0  ;;  %2615 = vrot.lane.b32.xlu1 %v2436_v23, %s8153_s23  ;;  %v2438_v29 = vsel %vm2310_vm12, %v7780_v12, 0.0  ;;  %7795 = vrcp.f32 %v8479_v36  ;;  %vm2314_vm4 = vcmp.ne.f32.partialorder %v8479_v36, 0.0 }
 0x10f   : > { %2773 = vrot.lane.b32.xlu0 %v2387_v0, %s8154_s28  ;;  %v886_v38 = vmax.f32 %v822_v34, 0.0 }
 0x110   : > { %v897_v39 = vpack.c.bf16 %v838_v37, %v837_v27 }
 0x111   : > { %v491_v40 = vpop.f32.mrb[20].mxu0  ;;  %v8484_v42 = vpack.c.bf16 %v886_v38, %v885_v33 }
 0x112   : > { %2775 = vrot.lane.b32.xlu1 %v2388_v16, %s8154_s28  ;;  %v775_v43 = vadd.f32 %v8371_v45, %v491_v40  ;;  %v8488_v44 = vpop.f32.mrb[21].mxu0  ;;  %7495 = vmatprep.mubr.bf16.mxu1 %v897_v39  ;;  %v731_v46 = vpop.f32.mrb[20].mxu1  ;;  %v7745_v16 = vld [vmem:[%s14852_s2 + $0x60] sm:$0xff]  }
 0x113   : > { %15334 = vst [vmem:[#allocation22_spill] sm:$0xff] %v8488_v44  ;;  %2869 = vrot.lane.b32.xlu0 %v2435_v14, %s8154_s28  ;;  %v495_v49 = vpop.f32.mrb[22].mxu0  ;;  %v823_v52 = vadd.f32 %v8371_v45, %v731_v46  ;;  %v8492_v53 = vpop.f32.mrb[21].mxu1  ;;  %7559 = vmatprep.subr.bf16.mxu1 %v7745_v16  ;;  %7797 = vrcp.f32 %v8488_v44  ;;  %vm2267_vm5 = vcmp.ne.f32.partialorder %v8488_v44, 0.0 }
 0x114   : > { %15335 = vst [vmem:[#allocation23_spill] sm:$0xff] %v8492_v53  ;;  %v839_v55 = vmax.f32 %v775_v43, 0.0  ;;  %v776_v58 = vadd.f32 %v8371_v45, %v495_v49  ;;  %v8495_v59 = vpop.f32.mrb[23].mxu0  ;;  %v735_v61 = vpop.f32.mrb[22].mxu1  ;;  %7560 = vmatpush3.bf16.msra.mxu1 %v7745_v16  ;;  %7799 = vrcp.f32 %v8492_v53  ;;  %vm2315_vm6 = vcmp.ne.f32.partialorder %v8492_v53, 0.0 }
 0x115   : > { %15336 = vst [vmem:[#allocation24_spill] sm:$0xff] %v8495_v59  ;;  %v887_v0 = vmax.f32 %v823_v52, 0.0  ;;  %v824_v3 = vadd.f32 %v8371_v45, %v735_v61  ;;  %v8500_v4 = vpop.f32.mrb[23].mxu1  ;;  %7801 = vrcp.f32 %v8495_v59  ;;  %vm2268_vm7 = vcmp.ne.f32.partialorder %v8495_v59, 0.0 }
 0x116   : > { %15337 = vst [vmem:[#allocation25_spill] sm:$0xff] %v8500_v4  ;;  %v840_v9 = vmax.f32 %v776_v58, 0.0  ;;  %2871 = vrot.lane.b32.xlu1 %v2436_v23, %s8154_s28  ;;  %7803 = vrcp.f32 %v8500_v4  ;;  %vm2316_vm8 = vcmp.ne.f32.partialorder %v8500_v4, 0.0 }
 0x117   : > { %2521 = vrot.lane.b32.xlu0 %v2389_v10, %s8153_s23  ;;  %v888_v11 = vmax.f32 %v824_v3, 0.0  ;;  %v7782_v3 = vpop.eup %7781 }
 0x118   : > { %v898_v14 = vpack.c.bf16 %v840_v9, %v839_v55 }
 0x119   : > { %v501_v19 = vpop.f32.mrb[24].mxu0  ;;  %v8510_v21 = vpack.c.bf16 %v888_v11, %v887_v0 }
 0x11a   : > { %2523 = vrot.lane.b32.xlu1 %v2390_v17, %s8153_s23  ;;  %v777_v22 = vadd.f32 %v8371_v45, %v501_v19  ;;  %v8514_v23 = vpop.f32.mrb[25].mxu0  ;;  %7496 = vmatmul.mubr.bf16.gmra.mrb[40].mxu1 %v898_v14  ;;  %v741_v24 = vpop.f32.mrb[24].mxu1 }
 0x11b   : > { %15338 = vst [vmem:[#allocation26_spill] sm:$0xff] %v8514_v23  ;;  %2617 = vrot.lane.b32.xlu0 %v2437_v15, %s8153_s23  ;;  %v505_v27 = vpop.f32.mrb[26].mxu0  ;;  %v825_v31 = vadd.f32 %v8371_v45, %v741_v24  ;;  %v8519_v33 = vpop.f32.mrb[25].mxu1  ;;  %7805 = vrcp.f32 %v8514_v23  ;;  %vm2269_vm9 = vcmp.ne.f32.partialorder %v8514_v23, 0.0 }
 0x11c   : > { %15339 = vst [vmem:[#allocation27_spill] sm:$0xff] %v8519_v33  ;;  %v841_v34 = vmax.f32 %v777_v22, 0.0  ;;  %v778_v37 = vadd.f32 %v8371_v45, %v505_v27  ;;  %v8523_v38 = vpop.f32.mrb[27].mxu0  ;;  %v745_v39 = vpop.f32.mrb[26].mxu1  ;;  %7807 = vrcp.f32 %v8519_v33  ;;  %vm2317_vm10 = vcmp.ne.f32.partialorder %v8519_v33, 0.0 }
 0x11d   : > { %15340 = vst [vmem:[#allocation28_spill] sm:$0xff] %v8523_v38  ;;  %v889_v40 = vmax.f32 %v825_v31, 0.0  ;;  %v826_v43 = vadd.f32 %v8371_v45, %v745_v39  ;;  %v8526_v46 = vpop.f32.mrb[27].mxu1  ;;  %v2391_v31 = vsel %vm2263_vm13, %v7782_v3, 0.0  ;;  %7809 = vrcp.f32 %v8523_v38 }
 0x11e   : > { %15341 = vst [vmem:[#allocation29_spill] sm:$0xff] %v8526_v46  ;;  %v842_v47 = vmax.f32 %v778_v37, 0.0  ;;  %2619 = vrot.lane.b32.xlu1 %v2438_v29, %s8153_s23  ;;  %7811 = vrcp.f32 %v8526_v46  ;;  %vm2270_vm11 = vcmp.ne.f32.partialorder %v8523_v38, 0.0  ;;  %vm2318_vm12 = vcmp.ne.f32.partialorder %v8526_v46, 0.0 }
 0x11f   : > { %2777 = vrot.lane.b32.xlu0 %v2389_v10, %s8154_s28  ;;  %v890_v49 = vmax.f32 %v826_v43, 0.0  ;;  %v7746_v43 = vld [vmem:[%s14852_s2 + $0x68] sm:$0xff]  }
 0x120   : > { %v899_v52 = vpack.c.bf16 %v842_v47, %v841_v34  ;;  %7561 = vmatprep.subr.bf16.mxu1 %v7746_v43 }
 0x121   : > { %v511_v55 = vpop.f32.mrb[28].mxu0  ;;  %v8531_v58 = vpack.c.bf16 %v890_v49, %v889_v40  ;;  %7562 = vmatpush3.bf16.msra.mxu1 %v7746_v43 }
 0x122   : > { %2779 = vrot.lane.b32.xlu1 %v2390_v17, %s8154_s28  ;;  %v779_v61 = vadd.f32 %v8371_v45, %v511_v55  ;;  %v8535_v63 = vpop.f32.mrb[29].mxu0  ;;  %7499 = vmatprep.mubr.bf16.mxu1 %v899_v52  ;;  %v751_v0 = vpop.f32.mrb[28].mxu1 }
 0x123   : > { %15342 = vst [vmem:[#allocation30_spill] sm:$0xff] %v8535_v63  ;;  %2873 = vrot.lane.b32.xlu0 %v2437_v15, %s8154_s28  ;;  %v515_v7 = vpop.f32.mrb[30].mxu0  ;;  %v827_v9 = vadd.f32 %v8371_v45, %v751_v0  ;;  %v8539_v10 = vpop.f32.mrb[29].mxu1  ;;  %7813 = vrcp.f32 %v8535_v63  ;;  %vm2271_vm13 = vcmp.ne.f32.partialorder %v8535_v63, 0.0 }
 0x124   : > { %15343 = vst [vmem:[#allocation31_spill] sm:$0xff] %v8539_v10  ;;  %v843_v11 = vmax.f32 %v779_v61, 0.0  ;;  %v780_v12 = vadd.f32 %v8371_v45, %v515_v7  ;;  %v8542_v14 = vpop.f32.mrb[31].mxu0  ;;  %v755_v16 = vpop.f32.mrb[30].mxu1 }
 0x125   : > { %15344 = vst [vmem:[#allocation32_spill] sm:$0xff] %v8542_v14  ;;  %v7784_v17 = vpop.eup %7783  ;;  %v891_v19 = vmax.f32 %v827_v9, 0.0  ;;  %v828_v22 = vadd.f32 %v8371_v45, %v755_v16  ;;  %v8547_v15 = vpop.f32.mrb[31].mxu1  ;;  %7815 = vrcp.f32 %v8539_v10 }
 0x126   : > { %15345 = vst [vmem:[#allocation33_spill] sm:$0xff] %v8547_v15  ;;  %v7786_v24 = vpop.eup %7785  ;;  %v844_v27 = vmax.f32 %v780_v12, 0.0  ;;  %2875 = vrot.lane.b32.xlu1 %v2438_v29, %s8154_s28  ;;  %v2439_v40 = vsel %vm2311_vm14, %v7784_v17, 0.0  ;;  %7817 = vrcp.f32 %v8542_v14  ;;  %vm2319_vm14 = vcmp.ne.f32.partialorder %v8539_v10, 0.0 }
 0x127   : > { %2525 = vrot.lane.b32.xlu0 %v2391_v31, %s8153_s23  ;;  %v892_v34 = vmax.f32 %v828_v22, 0.0  ;;  %v7788_v37 = vpop.eup %7787  ;;  %v2392_v47 = vsel %vm2264_vm15, %v7786_v24, 0.0  ;;  %7819 = vrcp.f32 %v8547_v15  ;;  %vm2272_vm15 = vcmp.ne.f32.partialorder %v8542_v14, 0.0 }
 0x128   : > { %v900_v39 = vpack.c.bf16 %v844_v27, %v843_v11  ;;  %v2440_v0 = vsel %vm2312_vm0, %v7788_v37, 0.0  ;;  %v7790_v22 = vpop.eup %7789  ;;  %vm2320_vm0 = vcmp.ne.f32.partialorder %v8547_v15, 0.0 }
 0x129   : > { %v521_v49 = vpop.f32.mrb[32].mxu0  ;;  %v8557_v29 = vpack.c.bf16 %v892_v34, %v891_v19 }
 0x12a   : > { %2527 = vrot.lane.b32.xlu1 %v2392_v47, %s8153_s23  ;;  %v781_v52 = vadd.f32 %v8371_v45, %v521_v49  ;;  %v8561_v55 = vpop.f32.mrb[33].mxu0  ;;  %7500 = vmatmul.mubr.bf16.gmra.mrb[44].mxu1 %v900_v39  ;;  %v7792_v39 = vpop.eup %7791 }
 0x12b   : > { %15346 = vst [vmem:[#allocation34_spill] sm:$0xff] %v8561_v55  ;;  %2621 = vrot.lane.b32.xlu0 %v2439_v40, %s8153_s23  ;;  %v525_v61 = vpop.f32.mrb[34].mxu0  ;;  %7821 = vrcp.f32 %v8561_v55 }
 0x12c   : > { %v845_v3 = vmax.f32 %v781_v52, 0.0  ;;  %v782_v7 = vadd.f32 %v8371_v45, %v525_v61  ;;  %v8567_v9 = vpop.f32.mrb[35].mxu0  ;;  %v2441_v61 = vsel %vm2313_vm2, %v7792_v39, 0.0 }
 0x12d   : > { %15347 = vst [vmem:[#allocation35_spill] sm:$0xff] %v8567_v9  ;;  %7823 = vrcp.f32 %v8567_v9  ;;  %vm2274_vm2 = vcmp.ne.f32.partialorder %v8567_v9, 0.0 }
 0x12e   : > { %v846_v11 = vmax.f32 %v782_v7, 0.0  ;;  %2623 = vrot.lane.b32.xlu1 %v2440_v0, %s8153_s23 }
 0x12f   : > { %2781 = vrot.lane.b32.xlu0 %v2391_v31, %s8154_s28  ;;  %v7794_v31 = vpop.eup %7793 }
 0x130   : > { %v901_v12 = vpack.c.bf16 %v846_v11, %v845_v3  ;;  %v7796_v49 = vpop.eup %7795  ;;  %v2394_v3 = vsel %vm2266_vm3, %v7794_v31, 0.0 }
 0x131   : > { %v531_v16 = vpop.f32.mrb[36].mxu0 }
 0x132   : > { %2783 = vrot.lane.b32.xlu1 %v2392_v47, %s8154_s28  ;;  %v783_v17 = vadd.f32 %v8371_v45, %v531_v16  ;;  %v8574_v19 = vpop.f32.mrb[37].mxu0  ;;  %7503 = vmatprep.mubr.bf16.mxu1 %v901_v12  ;;  %v2393_v47 = vsel %vm2265_vm1, %v7790_v22, 0.0  ;;  %v2442_v16 = vsel %vm2314_vm4, %v7796_v49, 0.0  ;;  %vm2273_vm1 = vcmp.ne.f32.partialorder %v8561_v55, 0.0 }
 0x133   : > { %15348 = vst [vmem:[#allocation36_spill] sm:$0xff] %v8574_v19  ;;  %2877 = vrot.lane.b32.xlu0 %v2439_v40, %s8154_s28  ;;  %v535_v24 = vpop.f32.mrb[38].mxu0  ;;  %v7747_v40 = vld [vmem:[%s14852_s2 + $0x70] sm:$0xff]   ;;  %7825 = vrcp.f32 %v8574_v19  ;;  %vm2275_vm3 = vcmp.ne.f32.partialorder %v8574_v19, 0.0 }
 0x134   : > { %v847_v27 = vmax.f32 %v783_v17, 0.0  ;;  %v784_v34 = vadd.f32 %v8371_v45, %v535_v24  ;;  %v8578_v37 = vpop.f32.mrb[39].mxu0  ;;  %7563 = vmatprep.subr.bf16.mxu1 %v7747_v40 }
 0x135   : > { %15349 = vst [vmem:[#allocation37_spill] sm:$0xff] %v8578_v37  ;;  %7564 = vmatpush3.bf16.msra.mxu1 %v7747_v40  ;;  %v7798_v40 = vpop.eup %7797  ;;  %7827 = vrcp.f32 %v8578_v37  ;;  %vm2276_vm4 = vcmp.ne.f32.partialorder %v8578_v37, 0.0 }
 0x136   : > { %v848_v43 = vmax.f32 %v784_v34, 0.0  ;;  %2879 = vrot.lane.b32.xlu1 %v2440_v0, %s8154_s28 }
 0x137   : > { %2529 = vrot.lane.b32.xlu0 %v2393_v47, %s8153_s23 }
 0x138   : > { %v902_v52 = vpack.c.bf16 %v848_v43, %v847_v27 }
 0x139   : > { %v541_v7 = vpop.f32.mrb[40].mxu0 }
 0x13a   : > { %2531 = vrot.lane.b32.xlu1 %v2394_v3, %s8153_s23  ;;  %v785_v0 = vadd.f32 %v8371_v45, %v541_v7  ;;  %v8592_v11 = vpop.f32.mrb[41].mxu0  ;;  %7504 = vmatmul.mubr.bf16.gmra.mrb[48].mxu1 %v902_v52 }
 0x13b   : > { %15350 = vst [vmem:[#allocation38_spill] sm:$0xff] %v8592_v11  ;;  %2625 = vrot.lane.b32.xlu0 %v2441_v61, %s8153_s23  ;;  %v545_v12 = vpop.f32.mrb[42].mxu0  ;;  %7829 = vrcp.f32 %v8592_v11 }
 0x13c   : > { %v849_v17 = vmax.f32 %v785_v0, 0.0  ;;  %v786_v22 = vadd.f32 %v8371_v45, %v545_v12  ;;  %v8598_v24 = vpop.f32.mrb[43].mxu0  ;;  %v7800_v12 = vpop.eup %7799 }
 0x13d   : > { %15351 = vst [vmem:[#allocation39_spill] sm:$0xff] %v8598_v24  ;;  %7831 = vrcp.f32 %v8598_v24 }
 0x13e   : > { %v850_v27 = vmax.f32 %v786_v22, 0.0  ;;  %2627 = vrot.lane.b32.xlu1 %v2442_v16, %s8153_s23 }
 0x13f   : > { %2785 = vrot.lane.b32.xlu0 %v2393_v47, %s8154_s28  ;;  %v7802_v47 = vpop.eup %7801 }
 0x140   : > { %v903_v34 = vpack.c.bf16 %v850_v27, %v849_v17  ;;  %v2395_v17 = vsel %vm2267_vm5, %v7798_v40, 0.0  ;;  %v7804_v22 = vpop.eup %7803  ;;  %vm2277_vm5 = vcmp.ne.f32.partialorder %v8592_v11, 0.0 }
 0x141   : > { %v551_v39 = vpop.f32.mrb[44].mxu0 }
 0x142   : > { %2787 = vrot.lane.b32.xlu1 %v2394_v3, %s8154_s28  ;;  %v787_v31 = vadd.f32 %v8371_v45, %v551_v39  ;;  %v8605_v43 = vpop.f32.mrb[45].mxu0  ;;  %7507 = vmatprep.mubr.bf16.mxu1 %v903_v34  ;;  %v2443_v34 = vsel %vm2315_vm6, %v7800_v12, 0.0  ;;  %v2396_v39 = vsel %vm2268_vm7, %v7802_v47, 0.0  ;;  %vm2278_vm6 = vcmp.ne.f32.partialorder %v8598_v24, 0.0 }
 0x143   : > { %15352 = vst [vmem:[#allocation40_spill] sm:$0xff] %v8605_v43  ;;  %2881 = vrot.lane.b32.xlu0 %v2441_v61, %s8154_s28  ;;  %v555_v49 = vpop.f32.mrb[46].mxu0  ;;  %v7748_v61 = vld [vmem:[%s14852_s2 + $0x78] sm:$0xff]   ;;  %7833 = vrcp.f32 %v8605_v43  ;;  %vm2279_vm7 = vcmp.ne.f32.partialorder %v8605_v43, 0.0 }
 0x144   : > { %v851_v52 = vmax.f32 %v787_v31, 0.0  ;;  %v788_v7 = vadd.f32 %v8371_v45, %v555_v49  ;;  %v8609_v0 = vpop.f32.mrb[47].mxu0  ;;  %7565 = vmatprep.subr.bf16.mxu1 %v7748_v61 }
 0x145   : > { %15353 = vst [vmem:[#allocation41_spill] sm:$0xff] %v8609_v0  ;;  %7566 = vmatpush3.bf16.msra.mxu1 %v7748_v61  ;;  %7835 = vrcp.f32 %v8609_v0 }
 0x146   : > { %v852_v3 = vmax.f32 %v788_v7, 0.0  ;;  %2883 = vrot.lane.b32.xlu1 %v2442_v16, %s8154_s28 }
 0x147   : > { %2533 = vrot.lane.b32.xlu0 %v2395_v17, %s8153_s23 }
 0x148   : > { %v904_v27 = vpack.c.bf16 %v852_v3, %v851_v52  ;;  %v2444_v52 = vsel %vm2316_vm8, %v7804_v22, 0.0  ;;  %vm2280_vm8 = vcmp.ne.f32.partialorder %v8609_v0, 0.0 }
 0x149   : > { %v561_v31 = vpop.f32.mrb[48].mxu0 }
 0x14a   : > { %2535 = vrot.lane.b32.xlu1 %v2396_v39, %s8153_s23  ;;  %v789_v16 = vadd.f32 %v8371_v45, %v561_v31  ;;  %v8623_v40 = vpop.f32.mrb[49].mxu0  ;;  %7508 = vmatmul.mubr.bf16.gmra.mrb[52].mxu1 %v904_v27 }
 0x14b   : > { %15354 = vst [vmem:[#allocation42_spill] sm:$0xff] %v8623_v40  ;;  %2629 = vrot.lane.b32.xlu0 %v2443_v34, %s8153_s23  ;;  %v565_v49 = vpop.f32.mrb[50].mxu0 }
 0x14c   : > { %v853_v7 = vmax.f32 %v789_v16, 0.0  ;;  %v790_v12 = vadd.f32 %v8371_v45, %v565_v49  ;;  %v8629_v47 = vpop.f32.mrb[51].mxu0  ;;  %v7806_v16 = vpop.eup %7805  ;;  %7837 = vrcp.f32 %v8623_v40 }
 0x14d   : > { %15355 = vst [vmem:[#allocation43_spill] sm:$0xff] %v8629_v47  ;;  %v7808_v59 = vpop.eup %7807  ;;  %7839 = vrcp.f32 %v8629_v47 }
 0x14e   : > { %v854_v3 = vmax.f32 %v790_v12, 0.0  ;;  %2631 = vrot.lane.b32.xlu1 %v2444_v52, %s8153_s23 }
 0x14f   : > { %2789 = vrot.lane.b32.xlu0 %v2395_v17, %s8154_s28  ;;  %v7810_v17 = vpop.eup %7809 }
 0x150   : > { %v905_v61 = vpack.c.bf16 %v854_v3, %v853_v7  ;;  %v2397_v7 = vsel %vm2269_vm9, %v7806_v16, 0.0  ;;  %v7812_v3 = vpop.eup %7811  ;;  %vm2281_vm9 = vcmp.ne.f32.partialorder %v8623_v40, 0.0 }
 0x151   : > { %v571_v27 = vpop.f32.mrb[52].mxu0  ;;  %v2446_v16 = vsel %vm2318_vm12, %v7812_v3, 0.0 }
 0x152   : > { %2791 = vrot.lane.b32.xlu1 %v2396_v39, %s8154_s28  ;;  %v791_v22 = vadd.f32 %v8371_v45, %v571_v27  ;;  %v8636_v31 = vpop.f32.mrb[53].mxu0  ;;  %7511 = vmatprep.mubr.bf16.mxu1 %v905_v61  ;;  %v2445_v61 = vsel %vm2317_vm10, %v7808_v59, 0.0  ;;  %v2398_v27 = vsel %vm2270_vm11, %v7810_v17, 0.0  ;;  %vm2282_vm10 = vcmp.ne.f32.partialorder %v8629_v47, 0.0 }
 0x153   : > { %15356 = vst [vmem:[#allocation44_spill] sm:$0xff] %v8636_v31  ;;  %2885 = vrot.lane.b32.xlu0 %v2443_v34, %s8154_s28  ;;  %v575_v49 = vpop.f32.mrb[54].mxu0  ;;  %7841 = vrcp.f32 %v8636_v31  ;;  %vm2283_vm11 = vcmp.ne.f32.partialorder %v8636_v31, 0.0 }
 0x154   : > { %v855_v12 = vmax.f32 %v791_v22, 0.0  ;;  %v792_v4 = vadd.f32 %v8371_v45, %v575_v49  ;;  %v8640_v53 = vpop.f32.mrb[55].mxu0 }
 0x155   : > { %15357 = vst [vmem:[#allocation45_spill] sm:$0xff] %v8640_v53  ;;  %7843 = vrcp.f32 %v8640_v53  ;;  %vm2284_vm12 = vcmp.ne.f32.partialorder %v8640_v53, 0.0 }
 0x156   : > { %v856_v39 = vmax.f32 %v792_v4, 0.0  ;;  %2887 = vrot.lane.b32.xlu1 %v2444_v52, %s8154_s28 }
 0x157   : > { %2537 = vrot.lane.b32.xlu0 %v2397_v7, %s8153_s23 }
 0x158   : > { %v906_v34 = vpack.c.bf16 %v856_v39, %v855_v12 }
 0x159   : > { %v581_v22 = vpop.f32.mrb[56].mxu0 }
 0x15a   : > { %2539 = vrot.lane.b32.xlu1 %v2398_v27, %s8153_s23  ;;  %v793_v4 = vadd.f32 %v8371_v45, %v581_v22  ;;  %v8651_v49 = vpop.f32.mrb[57].mxu0  ;;  %7512 = vmatmul.mubr.bf16.gmra.mrb[56].mxu1 %v906_v34 }
 0x15b   : > { %15358 = vst [vmem:[#allocation46_spill] sm:$0xff] %v8651_v49  ;;  %2633 = vrot.lane.b32.xlu0 %v2445_v61, %s8153_s23  ;;  %v585_v52 = vpop.f32.mrb[58].mxu0 }
 0x15c   : > { %v857_v59 = vmax.f32 %v793_v4, 0.0  ;;  %v794_v12 = vadd.f32 %v8371_v45, %v585_v52  ;;  %v8657_v17 = vpop.f32.mrb[59].mxu0  ;;  %v7814_v4 = vpop.eup %7813  ;;  %7845 = vrcp.f32 %v8651_v49 }
 0x15d   : > { %15359 = vst [vmem:[#allocation47_spill] sm:$0xff] %v8657_v17  ;;  %v7816_v23 = vpop.eup %7815  ;;  %7847 = vrcp.f32 %v8657_v17 }
 0x15e   : > { %v858_v39 = vmax.f32 %v794_v12, 0.0  ;;  %2635 = vrot.lane.b32.xlu1 %v2446_v16, %s8153_s23 }
 0x15f   : > { %2793 = vrot.lane.b32.xlu0 %v2397_v7, %s8154_s28  ;;  %v7818_v7 = vpop.eup %7817 }
 0x160   : > { %v907_v34 = vpack.c.bf16 %v858_v39, %v857_v59  ;;  %v2399_v59 = vsel %vm2271_vm13, %v7814_v4, 0.0  ;;  %v7820_v39 = vpop.eup %7819  ;;  %vm2285_vm13 = vcmp.ne.f32.partialorder %v8651_v49, 0.0 }
 0x161   : > { %v591_v22 = vpop.f32.mrb[60].mxu0 }
 0x162   : > { %2795 = vrot.lane.b32.xlu1 %v2398_v27, %s8154_s28  ;;  %v795_v3 = vadd.f32 %v8371_v45, %v591_v22  ;;  %v8664_v46 = vpop.f32.mrb[61].mxu0  ;;  %7515 = vmatprep.mubr.bf16.mxu1 %v907_v34  ;;  %v2447_v34 = vsel %vm2319_vm14, %v7816_v23, 0.0  ;;  %vm2286_vm14 = vcmp.ne.f32.partialorder %v8657_v17, 0.0 }
 0x163   : > { %15360 = vst [vmem:[#allocation48_spill] sm:$0xff] %v8664_v46  ;;  %2889 = vrot.lane.b32.xlu0 %v2445_v61, %s8154_s28  ;;  %v595_v52 = vpop.f32.mrb[62].mxu0  ;;  %7849 = vrcp.f32 %v8664_v46 }
 0x164   : > { %v859_v12 = vmax.f32 %v795_v3, 0.0  ;;  %v796_v33 = vadd.f32 %v8371_v45, %v595_v52  ;;  %v8668_v38 = vpop.f32.mrb[63].mxu0  ;;  %v2400_v3 = vsel %vm2272_vm15, %v7818_v7, 0.0  ;;  %vm2287_vm15 = vcmp.ne.f32.partialorder %v8664_v46, 0.0 }
 0x165   : > { %15361 = vst [vmem:[#allocation49_spill] sm:$0xff] %v8668_v38  ;;  %7851 = vrcp.f32 %v8668_v38 }
 0x166   : > { %v860_v27 = vmax.f32 %v796_v33, 0.0  ;;  %2891 = vrot.lane.b32.xlu1 %v2446_v16, %s8154_s28 }
 0x167   : > { %2541 = vrot.lane.b32.xlu0 %v2399_v59, %s8153_s23 }
 0x168   : > { %v908_v61 = vpack.c.bf16 %v860_v27, %v859_v12  ;;  %v2448_v12 = vsel %vm2320_vm0, %v7820_v39, 0.0  ;;  %vm2288_vm0 = vcmp.ne.f32.partialorder %v8668_v38, 0.0 }
 0x169   : > { %v8677_v22 = vpop.permute.xlu0 %2513  ;;  %v601_v52 = vpop.f32.mrb[64].mxu0 }
 0x16a   : > { %2543 = vrot.lane.b32.xlu1 %v2400_v3, %s8153_s23  ;;  %v797_v33 = vadd.f32 %v8371_v45, %v601_v52  ;;  %v8681_v16 = vpop.f32.mrb[65].mxu0  ;;  %7516 = vmatmul.mubr.bf16.gmra.mrb[60].mxu1 %v908_v61 }
 0x16b   : > { %15362 = vst [vmem:[#allocation50_spill] sm:$0xff] %v8681_v16  ;;  %2637 = vrot.lane.b32.xlu0 %v2447_v34, %s8153_s23  ;;  %v605_v4 = vpop.f32.mrb[66].mxu0 }
 0x16c   : > { %v861_v23 = vmax.f32 %v797_v33, 0.0  ;;  %v8685_v27 = vpop.permute.xlu1 %2611  ;;  %v798_v15 = vadd.f32 %v8371_v45, %v605_v4  ;;  %v8688_v7 = vpop.f32.mrb[67].mxu0 }
 0x16d   : > { %15363 = vst [vmem:[#allocation51_spill] sm:$0xff] %v8688_v7  ;;  %v8690_v10 = vpop.permute.xlu0 %2609 }
 0x16e   : > { %v862_v14 = vmax.f32 %v798_v15, 0.0  ;;  %2639 = vrot.lane.b32.xlu1 %v2448_v12, %s8153_s23  ;;  %v7822_v15 = vpop.eup %7821  ;;  %7853 = vrcp.f32 %v8681_v16 }
 0x16f   : > { %2797 = vrot.lane.b32.xlu0 %v2399_v59, %s8154_s28 }
 0x170   : > { %v909_v61 = vpack.c.bf16 %v862_v14, %v861_v23  ;;  %v8694_v52 = vpop.permute.xlu1 %2771 }
 0x171   : > { %v8697_v39 = vpop.permute.xlu0 %2769  ;;  %v611_v33 = vpop.f32.mrb[68].mxu0 }
 0x172   : > { %2799 = vrot.lane.b32.xlu1 %v2400_v3, %s8154_s28  ;;  %v799_v4 = vadd.f32 %v8371_v45, %v611_v33  ;;  %v8701_v63 = vpop.f32.mrb[69].mxu0  ;;  %7519 = vmatprep.mubr.bf16.mxu1 %v909_v61  ;;  %v7749_v3 = vld [vmem:[%s14852_s2 + $0x80] sm:$0xff]   ;;  %v7824_v61 = vpop.eup %7823  ;;  %v2401_v33 = vsel %vm2273_vm1, %v7822_v15, 0.0  ;;  %7855 = vrcp.f32 %v8688_v7  ;;  %vm2289_vm1 = vcmp.ne.f32.partialorder %v8681_v16, 0.0 }
 0x173   : > { %15364 = vst [vmem:[#allocation52_spill] sm:$0xff] %v8701_v63  ;;  %2893 = vrot.lane.b32.xlu0 %v2447_v34, %s8154_s28  ;;  %v615_v44 = vpop.f32.mrb[70].mxu0  ;;  %7631 = vmatprep.subr.bf16.mxu0 %v7749_v3  ;;  %v2402_v30 = vsel %vm2274_vm2, %v7824_v61, 0.0  ;;  %vm2290_vm2 = vcmp.ne.f32.partialorder %v8688_v7, 0.0 }
 0x174   : > { %v863_v14 = vmax.f32 %v799_v4, 0.0  ;;  %v8705_v59 = vpop.permute.xlu1 %2867  ;;  %v800_v23 = vadd.f32 %v8371_v45, %v615_v44  ;;  %v8708_v36 = vpop.f32.mrb[71].mxu0  ;;  %7632 = vmatpush3.bf16.msra.mxu0 %v7749_v3 }
 0x175   : > { %15365 = vst [vmem:[#allocation53_spill] sm:$0xff] %v8708_v36  ;;  %v8710_v26 = vpop.permute.xlu0 %2865 }
 0x176   : > { %v864_v34 = vmax.f32 %v800_v23, 0.0  ;;  %2895 = vrot.lane.b32.xlu1 %v2448_v12, %s8154_s28  ;;  %v7826_v23 = vpop.eup %7825  ;;  %7857 = vrcp.f32 %v8701_v63 }
 0x177   : > { %2545 = vrot.lane.b32.xlu0 %v2401_v33, %s8153_s23 }
 0x178   : > { %v910_v4 = vpack.c.bf16 %v864_v34, %v863_v14  ;;  %v8718_v44 = vpop.permute.xlu1 %2517 }
 0x179   : > { %v8722_v55 = vpop.permute.xlu0 %2515  ;;  %v621_v20 = vpop.f32.mrb[72].mxu0 }
 0x17a   : > { %2547 = vrot.lane.b32.xlu1 %v2402_v30, %s8153_s23  ;;  %v801_v12 = vadd.f32 %v8371_v45, %v621_v20  ;;  %v8726_v15 = vpop.f32.mrb[73].mxu0  ;;  %7520 = vmatmul.mubr.bf16.gmra.mrb[64].mxu1 %v910_v4  ;;  %v7828_v20 = vpop.eup %7827  ;;  %v2403_v4 = vsel %vm2275_vm3, %v7826_v23, 0.0  ;;  %7859 = vrcp.f32 %v8708_v36  ;;  %vm2291_vm3 = vcmp.ne.f32.partialorder %v8701_v63, 0.0 }
 0x17b   : > { %15366 = vst [vmem:[#allocation54_spill] sm:$0xff] %v8726_v15  ;;  %2801 = vrot.lane.b32.xlu0 %v2401_v33, %s8154_s28  ;;  %v625_v14 = vpop.f32.mrb[74].mxu0  ;;  %v7830_v23 = vpop.eup %7829 }
 0x17c   : > { %v865_v3 = vmax.f32 %v801_v12, 0.0  ;;  %v8730_v34 = vpop.permute.xlu1 %2519  ;;  %v802_v9 = vadd.f32 %v8371_v45, %v625_v14  ;;  %v8733_v61 = vpop.f32.mrb[75].mxu0  ;;  %v2404_v12 = vsel %vm2276_vm4, %v7828_v20, 0.0  ;;  %vm2292_vm4 = vcmp.ne.f32.partialorder %v8708_v36, 0.0 }
 0x17d   : > { %15367 = vst [vmem:[#allocation55_spill] sm:$0xff] %v8733_v61  ;;  %v8735_v5 = vpop.permute.xlu0 %2613 }
 0x17e   : > { %v866_v56 = vmax.f32 %v802_v9, 0.0  ;;  %2803 = vrot.lane.b32.xlu1 %v2402_v30, %s8154_s28  ;;  %v8750_v30 = vld [vmem:[%s14853_s3] ss:$0 sm:$0xff] }
 0x17f   : > { %2549 = vrot.lane.b32.xlu0 %v2403_v4, %s8153_s23 }
 0x180   : > { %v911_v33 = vpack.c.bf16 %v866_v56, %v865_v3  ;;  %v8740_v15 = vpop.permute.xlu1 %2615 }
 0x181   : > { %v8744_v45 = vpop.permute.xlu0 %2773  ;;  %v631_v14 = vpop.f32.mrb[76].mxu0 }
 0x182   : > { %2551 = vrot.lane.b32.xlu1 %v2404_v12, %s8153_s23  ;;  %v803_v9 = vadd.f32 %v8750_v30, %v631_v14  ;;  %v8753_v56 = vpop.f32.mrb[77].mxu0  ;;  %7523 = vmatprep.mubr.bf16.mxu1 %v911_v33  ;;  %v7832_v14 = vpop.eup %7831  ;;  %v2405_v33 = vsel %vm2277_vm5, %v7830_v23, 0.0 }
 0x183   : > { %15368 = vst [vmem:[#allocation56_spill] sm:$0xff] %v8753_v56  ;;  %2805 = vrot.lane.b32.xlu0 %v2403_v4, %s8154_s28  ;;  %v635_v3 = vpop.f32.mrb[78].mxu0 }
 0x184   : > { %v867_v20 = vmax.f32 %v803_v9, 0.0  ;;  %v8757_v37 = vpop.permute.xlu1 %2775  ;;  %v804_v19 = vadd.f32 %v8750_v30, %v635_v3  ;;  %v8760_v61 = vpop.f32.mrb[79].mxu0  ;;  %v2406_v3 = vsel %vm2278_vm6, %v7832_v14, 0.0 }
 0x185   : > { %15369 = vst [vmem:[#allocation57_spill] sm:$0xff] %v8760_v61  ;;  %v8762_v60 = vpop.permute.xlu0 %2869 }
 0x186   : > { %v868_v56 = vmax.f32 %v804_v19, 0.0  ;;  %2807 = vrot.lane.b32.xlu1 %v2404_v12, %s8154_s28  ;;  %v7834_v12 = vpop.eup %7833 }
 0x187   : > { %2553 = vrot.lane.b32.xlu0 %v2405_v33, %s8153_s23 }
 0x188   : > { %v912_v4 = vpack.c.bf16 %v868_v56, %v867_v20  ;;  %v8767_v51 = vpop.permute.xlu1 %2871 }
 0x189   : > { %v8771_v9 = vpop.permute.xlu0 %2521  ;;  %v641_v61 = vpop.f32.mrb[80].mxu0 }
 0x18a   : > { %15370 = vst [vmem:[#allocation58_spill] sm:$0xff] %v8771_v9  ;;  %2555 = vrot.lane.b32.xlu1 %v2406_v3, %s8153_s23  ;;  %v805_v19 = vadd.f32 %v8750_v30, %v641_v61  ;;  %v8775_v11 = vpop.f32.mrb[81].mxu0  ;;  %7524 = vmatmul.mubr.bf16.gmra.mrb[68].mxu1 %v912_v4  ;;  %v7836_v61 = vpop.eup %7835  ;;  %v2407_v4 = vsel %vm2279_vm7, %v7834_v12, 0.0 }
 0x18b   : > { %15371 = vst [vmem:[#allocation59_spill] sm:$0xff] %v8775_v11  ;;  %2809 = vrot.lane.b32.xlu0 %v2405_v33, %s8154_s28  ;;  %v645_v56 = vpop.f32.mrb[82].mxu0  ;;  %v2408_v43 = vsel %vm2280_vm8, %v7836_v61, 0.0 }
 0x18c   : > { %v869_v23 = vmax.f32 %v805_v19, 0.0  ;;  %v8779_v20 = vpop.permute.xlu1 %2523  ;;  %v806_v24 = vadd.f32 %v8750_v30, %v645_v56  ;;  %v8782_v14 = vpop.f32.mrb[83].mxu0  ;;  %v7750_v19 = vld [vmem:[%s14852_s2 + $0x88] sm:$0xff]  }
 0x18d   : > { %15372 = vst [vmem:[#allocation60_spill] sm:$0xff] %v8779_v20  ;;  %15373 = vst [vmem:[#allocation61_spill] sm:$0xff] %v8782_v14  ;;  %v8784_v9 = vpop.permute.xlu0 %2617  ;;  %7633 = vmatprep.subr.bf16.mxu0 %v7750_v19 }
 0x18e   : > { %15374 = vst [vmem:[#allocation62_spill] sm:$0xff] %v8784_v9  ;;  %v870_v11 = vmax.f32 %v806_v24, 0.0  ;;  %2811 = vrot.lane.b32.xlu1 %v2406_v3, %s8154_s28  ;;  %7634 = vmatpush3.bf16.msra.mxu0 %v7750_v19 }
 0x18f   : > { %2557 = vrot.lane.b32.xlu0 %v2407_v4, %s8153_s23 }
 0x190   : > { %v913_v33 = vpack.c.bf16 %v870_v11, %v869_v23  ;;  %v8789_v41 = vpop.permute.xlu1 %2619  ;;  %v7838_v11 = vpop.eup %7837 }
 0x191   : > { %15375 = vst [vmem:[#allocation63_spill] sm:$0xff] %v8789_v41  ;;  %v8796_v56 = vpop.permute.xlu0 %2777  ;;  %v651_v24 = vpop.f32.mrb[84].mxu0 }
 0x192   : > { %2559 = vrot.lane.b32.xlu1 %v2408_v43, %s8153_s23  ;;  %v807_v3 = vadd.f32 %v8750_v30, %v651_v24  ;;  %v8800_v12 = vpop.f32.mrb[85].mxu0  ;;  %7527 = vmatprep.mubr.bf16.mxu1 %v913_v33  ;;  %v7840_v33 = vpop.eup %7839 }
 0x193   : > { %15376 = vst [vmem:[#allocation64_spill] sm:$0xff] %v8800_v12  ;;  %2813 = vrot.lane.b32.xlu0 %v2407_v4, %s8154_s28  ;;  %v655_v23 = vpop.f32.mrb[86].mxu0  ;;  %v2409_v4 = vsel %vm2281_vm9, %v7838_v11, 0.0  ;;  %v2410_v19 = vsel %vm2282_vm10, %v7840_v33, 0.0 }
 0x194   : > { %v871_v0 = vmax.f32 %v807_v3, 0.0  ;;  %v8804_v14 = vpop.permute.xlu1 %2779  ;;  %v808_v61 = vadd.f32 %v8750_v30, %v655_v23  ;;  %v8807_v41 = vpop.f32.mrb[87].mxu0 }
 0x195   : > { %15377 = vst [vmem:[#allocation65_spill] sm:$0xff] %v8807_v41  ;;  %v8809_v9 = vpop.permute.xlu0 %2873 }
 0x196   : > { %v872_v24 = vmax.f32 %v808_v61, 0.0  ;;  %2815 = vrot.lane.b32.xlu1 %v2408_v43, %s8154_s28  ;;  %v7842_v43 = vpop.eup %7841 }
 0x197   : > { %2561 = vrot.lane.b32.xlu0 %v2409_v4, %s8153_s23 }
 0x198   : > { %v914_v12 = vpack.c.bf16 %v872_v24, %v871_v0  ;;  %v8814_v3 = vpop.permute.xlu1 %2875 }
 0x199   : > { %v8818_v23 = vpop.permute.xlu0 %2525  ;;  %v661_v41 = vpop.f32.mrb[88].mxu0 }
 0x19a   : > { %15378 = vst [vmem:[#allocation66_spill] sm:$0xff] %v8818_v23  ;;  %2563 = vrot.lane.b32.xlu1 %v2410_v19, %s8153_s23  ;;  %v809_v61 = vadd.f32 %v8750_v30, %v661_v41  ;;  %v8822_v40 = vpop.f32.mrb[89].mxu0  ;;  %7528 = vmatmul.mubr.bf16.gmra.mrb[72].mxu1 %v914_v12  ;;  %v7844_v41 = vpop.eup %7843  ;;  %v2411_v12 = vsel %vm2283_vm11, %v7842_v43, 0.0 }
 0x19b   : > { %15379 = vst [vmem:[#allocation67_spill] sm:$0xff] %v8822_v40  ;;  %2817 = vrot.lane.b32.xlu0 %v2409_v4, %s8154_s28  ;;  %v665_v0 = vpop.f32.mrb[90].mxu0 }
 0x19c   : > { %v873_v11 = vmax.f32 %v809_v61, 0.0  ;;  %v8826_v24 = vpop.permute.xlu1 %2527  ;;  %v810_v47 = vadd.f32 %v8750_v30, %v665_v0  ;;  %v8829_v33 = vpop.f32.mrb[91].mxu0  ;;  %v2412_v0 = vsel %vm2284_vm12, %v7844_v41, 0.0 }
 0x19d   : > { %15380 = vst [vmem:[#allocation68_spill] sm:$0xff] %v8829_v33  ;;  %v8831_v23 = vpop.permute.xlu0 %2621 }
 0x19e   : > { %15381 = vst [vmem:[#allocation69_spill] sm:$0xff] %v8831_v23  ;;  %v874_v40 = vmax.f32 %v810_v47, 0.0  ;;  %2819 = vrot.lane.b32.xlu1 %v2410_v19, %s8154_s28  ;;  %v7846_v47 = vpop.eup %7845 }
 0x19f   : > { %2565 = vrot.lane.b32.xlu0 %v2411_v12, %s8153_s23 }
 0x1a0   : > { %v915_v4 = vpack.c.bf16 %v874_v40, %v873_v11  ;;  %v8836_v20 = vpop.permute.xlu1 %2623 }
 0x1a1   : > { %v8839_v61 = vpop.permute.xlu0 %2781  ;;  %v671_v33 = vpop.f32.mrb[92].mxu0 }
 0x1a2   : > { %2567 = vrot.lane.b32.xlu1 %v2412_v0, %s8153_s23  ;;  %v811_v31 = vadd.f32 %v8750_v30, %v671_v33  ;;  %v8843_v23 = vpop.f32.mrb[93].mxu0  ;;  %7531 = vmatprep.mubr.bf16.mxu1 %v915_v4  ;;  %v7751_v33 = vld [vmem:[%s14852_s2 + $0x90] sm:$0xff]   ;;  %v7848_v4 = vpop.eup %7847 }
 0x1a3   : > { %15382 = vst [vmem:[#allocation70_spill] sm:$0xff] %v8843_v23  ;;  %2821 = vrot.lane.b32.xlu0 %v2411_v12, %s8154_s28  ;;  %v675_v19 = vpop.f32.mrb[94].mxu0  ;;  %v2413_v12 = vsel %vm2285_vm13, %v7846_v47, 0.0  ;;  %7635 = vmatprep.subr.bf16.mxu0 %v7751_v33  ;;  %v2414_v49 = vsel %vm2286_vm14, %v7848_v4, 0.0  ;;  %v2753_v4 = vmul.f32 %v8690_v10, %v8378_v50  ;;  %v7752_v10 = vld [vmem:[%s14852_s2 + $0x98] sm:$0xff]  }
 0x1a4   : > { %v875_v40 = vmax.f32 %v811_v31, 0.0  ;;  %v8846_v43 = vpop.permute.xlu1 %2783  ;;  %v812_v11 = vadd.f32 %v8750_v30, %v675_v19  ;;  %v8849_v53 = vpop.f32.mrb[95].mxu0  ;;  %7636 = vmatpush3.bf16.msra.mxu0 %v7751_v33 }
 0x1a5   : > { %15383 = vst [vmem:[#allocation71_spill] sm:$0xff] %v8849_v53  ;;  %v8851_v41 = vpop.permute.xlu0 %2877  ;;  %7637 = vmatprep.subr.bf16.mxu0 %v7752_v10 }
 0x1a6   : > { %v876_v23 = vmax.f32 %v812_v11, 0.0  ;;  %2823 = vrot.lane.b32.xlu1 %v2412_v0, %s8154_s28 }
 0x1a7   : > { %2569 = vrot.lane.b32.xlu0 %v2413_v12, %s8153_s23 }
 0x1a8   : > { %v916_v31 = vpack.c.bf16 %v876_v23, %v875_v40  ;;  %v8859_v30 = vpop.permute.xlu1 %2879  ;;  %v2961_v23 = vmul.f32 %v8697_v39, %v8374_v48  ;;  %v2962_v40 = vmul.f32 %v8694_v52, %v8382_v54  ;;  %7638 = vmatpush3.bf16.msra.mxu0 %v7752_v10 }
 0x1a9   : > { %v8862_v19 = vpop.permute.xlu0 %2529 }
 0x1aa   : > { %2571 = vrot.lane.b32.xlu1 %v2414_v49, %s8153_s23  ;;  %7532 = vmatmul.mubr.bf16.gmra.mrb[76].mxu1 %v916_v31 }
 0x1ab   : > { %2825 = vrot.lane.b32.xlu0 %v2413_v12, %s8154_s28  ;;  %7535 = vmatprep.mubr.bf16.mxu1 %v8389_v62  ;;  %v3009_v62 = vmul.f32 %v8710_v26, %v8378_v50  ;;  %v2705_v26 = vmul.f32 %v8677_v22, %v8374_v48  ;;  %v7850_v22 = vpop.eup %7849  ;;  %v2754_v12 = vmul.f32 %v8685_v27, %v8385_v57 }
 0x1ac   : > { %v8867_v0 = vpop.permute.xlu1 %2531 }
 0x1ad   : > { %v8871_v47 = vpop.permute.xlu0 %2625 }
 0x1ae   : > { %2827 = vrot.lane.b32.xlu1 %v2414_v49, %s8154_s28  ;;  %v3010_v49 = vmul.f32 %v8705_v59, %v8385_v57 }
 0x1af   : > { %4306 = vrot.lane.b32.xlu0 %v2961_v23, %s8153_s23  ;;  %v7852_v23 = vpop.eup %7851 }
 0x1b0   : > { %v8877_v11 = vpop.permute.xlu1 %2627 }
 0x1b1   : > { %v8882_v33 = vpop.permute.xlu0 %2785 }
 0x1b2   : > { %4308 = vrot.lane.b32.xlu1 %v2962_v40, %s8153_s23  ;;  %7536 = vmatmul.mubr.bf16.gmra.mrb[80].mxu1 %v8411_v25  ;;  %v2706_v25 = vmul.f32 %v8722_v55, %v8382_v54  ;;  %v2416_v40 = vsel %vm2288_vm0, %v7852_v23, 0.0  ;;  %vm2304_vm0 = vcmp.ne.f32.partialorder %v8849_v53, 0.0 }
 0x1b3   : > { %4402 = vrot.lane.b32.xlu0 %v3009_v62, %s8153_s23  ;;  %7539 = vmatprep.mubr.bf16.mxu1 %v8437_v2 }
 0x1b4   : > { %v8891_v52 = vpop.permute.xlu1 %2787 }
 0x1b5   : > { %v8895_v39 = vpop.permute.xlu0 %2881 }
 0x1b6   : > { %4404 = vrot.lane.b32.xlu1 %v3010_v49, %s8153_s23  ;;  %v2963_v49 = vmul.f32 %v8744_v45, %v8392_v1  ;;  %v8955_v45 = vld [vmem:[%s14853_s3 + $0x1] ss:$0 sm:$0xff] }
 0x1b7   : > { %4626 = vrot.lane.b32.xlu0 %v2705_v26, %s8154_s28 }
 0x1b8   : > { %v8901_v2 = vpop.permute.xlu1 %2883 }
 0x1b9   : > { %v8905_v59 = vpop.permute.xlu0 %2533 }
 0x1ba   : > { %4628 = vrot.lane.b32.xlu1 %v2706_v25, %s8154_s28  ;;  %7540 = vmatmul.mubr.bf16.gmra.mrb[84].mxu1 %v8463_v18  ;;  %v2415_v18 = vsel %vm2287_vm15, %v7850_v22, 0.0  ;;  %v2964_v25 = vmul.f32 %v8757_v37, %v8398_v8  ;;  %v3012_v37 = vmul.f32 %v8767_v51, %v8403_v13  ;;  %v2708_v51 = vmul.f32 %v8730_v34, %v8398_v8 }
 0x1bb   : > { %4722 = vrot.lane.b32.xlu0 %v2753_v4, %s8154_s28  ;;  %7543 = vmatprep.mubr.bf16.mxu1 %v8484_v42  ;;  %v2756_v34 = vmul.f32 %v8740_v15, %v8403_v13 }
 0x1bc   : > { %v8913_v55 = vpop.permute.xlu1 %2535 }
 0x1bd   : > { %v8918_v31 = vpop.permute.xlu0 %2629 }
 0x1be   : > { %4724 = vrot.lane.b32.xlu1 %v2754_v12, %s8154_s28 }
 0x1bf   : > { %2573 = vrot.lane.b32.xlu0 %v2415_v18, %s8153_s23 }
 0x1c0   : > { %v8923_v42 = vpop.permute.xlu1 %2631 }
 0x1c1   : > { %v8926_v27 = vpop.permute.xlu0 %2789 }
 0x1c2   : > { %2575 = vrot.lane.b32.xlu1 %v2416_v40, %s8153_s23  ;;  %7544 = vmatmul.mubr.bf16.gmra.mrb[88].mxu1 %v8510_v21  ;;  %v3011_v21 = vmul.f32 %v8762_v60, %v8395_v6  ;;  %v2707_v60 = vmul.f32 %v8718_v44, %v8392_v1 }
 0x1c3   : > { %2829 = vrot.lane.b32.xlu0 %v2415_v18, %s8154_s28  ;;  %7547 = vmatprep.mubr.bf16.mxu1 %v8531_v58 }
 0x1c4   : > { %v8932_v62 = vpop.permute.xlu1 %2791 }
 0x1c5   : > { %v8936_v26 = vpop.permute.xlu0 %2885 }
 0x1c6   : > { %2831 = vrot.lane.b32.xlu1 %v2416_v40, %s8154_s28 }
 0x1c7   : > { %4310 = vrot.lane.b32.xlu0 %v2963_v49, %s8153_s23 }
 0x1c8   : > { %v8942_v4 = vpop.permute.xlu1 %2887 }
 0x1c9   : > { %v8947_v58 = vpop.permute.xlu0 %2537 }
 0x1ca   : > { %4312 = vrot.lane.b32.xlu1 %v2964_v25, %s8153_s23  ;;  %7548 = vmatmul.mubr.bf16.gmra.mrb[92].mxu1 %v8557_v29 }
 0x1cb   : > { %4406 = vrot.lane.b32.xlu0 %v3011_v21, %s8153_s23  ;;  %v2755_v21 = vmul.f32 %v8735_v5, %v8395_v6 }
 0x1cc   : > { %v8960_v22 = vpop.permute.xlu1 %2539 }
 0x1cd   : > { %v7489_v12 = vpop.f32.mrb[32].mxu1  ;;  %v8964_v10 = vpop.permute.xlu0 %2633 }
 0x1ce   : > { %v1037_v29 = vadd.f32 %v7489_v12, %v8955_v45  ;;  %4408 = vrot.lane.b32.xlu1 %v3012_v37, %s8153_s23  ;;  %v1028_v23 = vpop.f32.mrb[33].mxu1 }
 0x1cf   : > { %v1029_v18 = vadd.f32 %v8955_v45, %v1028_v23  ;;  %v7490_v40 = vpop.f32.mrb[34].mxu1  ;;  %4630 = vrot.lane.b32.xlu0 %v2707_v60, %s8154_s28  ;;  %v7854_v60 = vpop.eup %7853 }
 0x1d0   : > { %v1040_v49 = vadd.f32 %v7490_v40, %v8955_v45  ;;  %v8973_v25 = vpop.permute.xlu1 %2635  ;;  %v1031_v44 = vpop.f32.mrb[35].mxu1  ;;  %v1285_v57 = vmax.f32 %v1037_v29, 0.0  ;;  %v7753_v29 = vld [vmem:[%s14852_s2 + $0xa0] sm:$0xff]  }
 0x1d1   : > { %v1032_v12 = vadd.f32 %v8955_v45, %v1031_v44  ;;  %v8978_v37 = vpop.permute.xlu0 %2793  ;;  %v1283_v50 = vmax.f32 %v1029_v18, 0.0  ;;  %v2417_v18 = vsel %vm2289_vm1, %v7854_v60, 0.0  ;;  %7639 = vmatprep.subr.bf16.mxu0 %v7753_v29  ;;  %vm3473_vm1 = vcmask 31744  }
 0x1d2   : > { %v1286_v23 = vmax.f32 %v1040_v49, 0.0  ;;  %4632 = vrot.lane.b32.xlu1 %v2708_v51, %s8154_s28  ;;  %v7856_v51 = vpop.eup %7855  ;;  %7640 = vmatpush3.bf16.msra.mxu0 %v7753_v29  ;;  %v2965_v49 = vmul.f32 %v8796_v56, %v8415_v28 }
 0x1d3   : > { %v1284_v54 = vmax.f32 %v1032_v12, 0.0  ;;  %4726 = vrot.lane.b32.xlu0 %v2755_v21, %s8154_s28 }
 0x1d4   : > { %v1348_v40 = vpack.c.bf16 %v1286_v23, %v1285_v57  ;;  %v8984_v48 = vpop.permute.xlu1 %2795 }
 0x1d5   : > { %v1347_v5 = vpack.c.bf16 %v1284_v54, %v1283_v50  ;;  %v8986_v6 = vpop.permute.xlu0 %2889  ;;  %v2418_v54 = vsel %vm2290_vm2, %v7856_v51, 0.0 }
 0x1d6   : > { %4728 = vrot.lane.b32.xlu1 %v2756_v34, %s8154_s28 }
 0x1d7   : > { %2577 = vrot.lane.b32.xlu0 %v2417_v18, %s8153_s23  ;;  %7567 = vmatprep.mubr.bf16.mxu1 %v1347_v5 }
 0x1d8   : > { %v8994_v15 = vpop.permute.xlu1 %2891  ;;  %7568 = vmatmul.mubr.bf16.vlgmr.msra.gmra.mrb[96].mxu1 %v1348_v40  ;;  %v2966_v40 = vmul.f32 %v8804_v14, %v8425_v35 }
 0x1d9   : > { %v8997_v50 = vpop.permute.xlu0 %2541 }
 0x1da   : > { %2579 = vrot.lane.b32.xlu1 %v2418_v54, %s8153_s23 }
 0x1db   : > { %2833 = vrot.lane.b32.xlu0 %v2417_v18, %s8154_s28  ;;  %v3013_v18 = vmul.f32 %v8809_v9, %v8420_v32  ;;  %v15385_v9 = vld [vmem:[#allocation58_spill] sm:$0xff] }
 0x1dc   : > { %v9001_v57 = vpop.permute.xlu1 %2543 }
 0x1dd   : > { %v7493_v44 = vpop.f32.mrb[36].mxu1  ;;  %v9005_v21 = vpop.permute.xlu0 %2637 }
 0x1de   : > { %v1053_v12 = vadd.f32 %v7493_v44, %v8955_v45  ;;  %2835 = vrot.lane.b32.xlu1 %v2418_v54, %s8154_s28  ;;  %v1044_v23 = vpop.f32.mrb[37].mxu1 }
 0x1df   : > { %v1045_v60 = vadd.f32 %v8955_v45, %v1044_v23  ;;  %v7494_v34 = vpop.f32.mrb[38].mxu1  ;;  %4314 = vrot.lane.b32.xlu0 %v2965_v49, %s8153_s23 }
 0x1e0   : > { %v1289_v5 = vmax.f32 %v1053_v12, 0.0  ;;  %v1056_v29 = vadd.f32 %v7494_v34, %v8955_v45  ;;  %v9014_v56 = vpop.permute.xlu1 %2639  ;;  %v1047_v51 = vpop.f32.mrb[39].mxu1  ;;  %v15384_v12 = vld [vmem:[#allocation13_spill] sm:$0xff] }
 0x1e1   : > { %v1287_v54 = vmax.f32 %v1045_v60, 0.0  ;;  %v1048_v44 = vadd.f32 %v8955_v45, %v1047_v51  ;;  %v9020_v23 = vpop.permute.xlu0 %2797  ;;  %v3014_v34 = vmul.f32 %v8814_v3, %v15384_v12  ;;  %v2709_v60 = vmul.f32 %v15385_v9, %v8415_v28  ;;  %v15387_v3 = vld [vmem:[#allocation62_spill] sm:$0xff]  ;;  %v7754_v9 = vld [vmem:[%s14852_s2 + $0xa8] sm:$0xff]  }
 0x1e2   : > { %v1290_v49 = vmax.f32 %v1056_v29, 0.0  ;;  %4316 = vrot.lane.b32.xlu1 %v2966_v40, %s8153_s23  ;;  %v15386_v40 = vld [vmem:[#allocation60_spill] sm:$0xff]  ;;  %7641 = vmatprep.subr.bf16.mxu0 %v7754_v9 }
 0x1e3   : > { %v1288_v14 = vmax.f32 %v1048_v44, 0.0  ;;  %4410 = vrot.lane.b32.xlu0 %v3013_v18, %s8153_s23  ;;  %v2710_v29 = vmul.f32 %v15386_v40, %v8425_v35  ;;  %7642 = vmatpush3.bf16.msra.mxu0 %v7754_v9 }
 0x1e4   : > { %v1350_v13 = vpack.c.bf16 %v1290_v49, %v1289_v5  ;;  %v9027_v8 = vpop.permute.xlu1 %2799  ;;  %v2757_v5 = vmul.f32 %v15387_v3, %v8420_v32  ;;  %v15388_v49 = vld [vmem:[#allocation63_spill] sm:$0xff] }
 0x1e5   : > { %v1349_v51 = vpack.c.bf16 %v1288_v14, %v1287_v54  ;;  %v9031_v1 = vpop.permute.xlu0 %2893  ;;  %v7858_v54 = vpop.eup %7857  ;;  %v2758_v14 = vmul.f32 %v15388_v49, %v15384_v12 }
 0x1e6   : > { %4412 = vrot.lane.b32.xlu1 %v3014_v34, %s8153_s23  ;;  %v2419_v3 = vsel %vm2291_vm3, %v7858_v54, 0.0  ;;  %vm7125_vm3 = vcmask 64512  }
 0x1e7   : > { %4634 = vrot.lane.b32.xlu0 %v2709_v60, %s8154_s28  ;;  %7571 = vmatprep.mubr.bf16.mxu1 %v1349_v51  ;;  %v7860_v51 = vpop.eup %7859 }
 0x1e8   : > { %v9037_v18 = vpop.permute.xlu1 %2895  ;;  %7572 = vmatmul.mubr.bf16.gmra.mrb[100].mxu1 %v1350_v13  ;;  %v2420_v54 = vsel %vm2292_vm4, %v7860_v51, 0.0 }
 0x1e9   : > { %v9041_v44 = vpop.permute.xlu0 %2545 }
 0x1ea   : > { %4636 = vrot.lane.b32.xlu1 %v2710_v29, %s8154_s28 }
 0x1eb   : > { %4730 = vrot.lane.b32.xlu0 %v2757_v5, %s8154_s28 }
 0x1ec   : > { %v9047_v34 = vpop.permute.xlu1 %2547 }
 0x1ed   : > { %v7497_v13 = vpop.f32.mrb[40].mxu1  ;;  %v9052_v60 = vpop.permute.xlu0 %2801 }
 0x1ee   : > { %v1069_v40 = vadd.f32 %v7497_v13, %v8955_v45  ;;  %4732 = vrot.lane.b32.xlu1 %v2758_v14, %s8154_s28  ;;  %v1060_v29 = vpop.f32.mrb[41].mxu1 }
 0x1ef   : > { %v1061_v5 = vadd.f32 %v8955_v45, %v1060_v29  ;;  %v7498_v49 = vpop.f32.mrb[42].mxu1  ;;  %2581 = vrot.lane.b32.xlu0 %v2419_v3, %s8153_s23 }
 0x1f0   : > { %v1293_v12 = vmax.f32 %v1069_v40, 0.0  ;;  %v1072_v32 = vadd.f32 %v7498_v49, %v8955_v45  ;;  %v9060_v35 = vpop.permute.xlu1 %2803  ;;  %v1063_v28 = vpop.f32.mrb[43].mxu1  ;;  %v15390_v49 = vld [vmem:[#allocation14_spill] sm:$0xff] }
 0x1f1   : > { %v1291_v13 = vmax.f32 %v1061_v5, 0.0  ;;  %v1064_v14 = vadd.f32 %v8955_v45, %v1063_v28  ;;  %v9064_v63 = vpop.permute.xlu0 %2549  ;;  %v2967_v16 = vmul.f32 %v8839_v61, %v15390_v49  ;;  %v15391_v28 = vld [vmem:[#allocation16_spill] sm:$0xff]  ;;  %v15395_v5 = vld [vmem:[#allocation55_spill] sm:$0xff] }
 0x1f2   : > { %v1294_v7 = vmax.f32 %v1072_v32, 0.0  ;;  %2583 = vrot.lane.b32.xlu1 %v2420_v54, %s8153_s23  ;;  %v2968_v32 = vmul.f32 %v8846_v43, %v15391_v28  ;;  %vm2294_vm6 = vcmp.ne.f32.partialorder %v15395_v5, 0.0 }
 0x1f3   : > { %v1292_v29 = vmax.f32 %v1064_v14, 0.0  ;;  %2837 = vrot.lane.b32.xlu0 %v2419_v3, %s8154_s28 }
 0x1f4   : > { %v1352_v9 = vpack.c.bf16 %v1294_v7, %v1293_v12  ;;  %v9068_v40 = vpop.permute.xlu1 %2551  ;;  %v15392_v7 = vld [vmem:[#allocation54_spill] sm:$0xff]  ;;  %v15393_v12 = vld [vmem:[#allocation15_spill] sm:$0xff] }
 0x1f5   : > { %15389 = vst [vmem:[#allocation58_spill] sm:$0xff] %v9068_v40  ;;  %v1351_v38 = vpack.c.bf16 %v1292_v29, %v1291_v13  ;;  %v9072_v36 = vpop.permute.xlu0 %2805  ;;  %7861 = vrcp.f32 %v15392_v7  ;;  %v3015_v3 = vmul.f32 %v8851_v41, %v15393_v12  ;;  %v15398_v13 = vld [vmem:[#allocation66_spill] sm:$0xff]  ;;  %vm2293_vm5 = vcmp.ne.f32.partialorder %v15392_v7, 0.0 }
 0x1f6   : > { %2839 = vrot.lane.b32.xlu1 %v2420_v54, %s8154_s28  ;;  %7863 = vrcp.f32 %v15395_v5  ;;  %v2711_v14 = vmul.f32 %v15398_v13, %v15390_v49  ;;  %v15407_v5 = vld [vmem:[#allocation56_spill] sm:$0xff] }
 0x1f7   : > { %4318 = vrot.lane.b32.xlu0 %v2967_v16, %s8153_s23  ;;  %7575 = vmatprep.mubr.bf16.mxu1 %v1351_v38  ;;  %v15396_v38 = vld [vmem:[#allocation17_spill] sm:$0xff]  ;;  %7865 = vrcp.f32 %v15407_v5  ;;  %vm2295_vm7 = vcmp.ne.f32.partialorder %v15407_v5, 0.0 }
 0x1f8   : > { %v9078_v51 = vpop.permute.xlu1 %2807  ;;  %7576 = vmatmul.mubr.bf16.gmra.mrb[104].mxu1 %v1352_v9  ;;  %v3016_v16 = vmul.f32 %v8859_v30, %v15396_v38  ;;  %v2712_v30 = vmul.f32 %v8826_v24, %v15391_v28  ;;  %v2760_v24 = vmul.f32 %v8836_v20, %v15396_v38 }
 0x1f9   : > { %v9083_v61 = vpop.permute.xlu0 %2553 }
 0x1fa   : > { %15394 = vst [vmem:[#allocation60_spill] sm:$0xff] %v9083_v61  ;;  %4320 = vrot.lane.b32.xlu1 %v2968_v32, %s8153_s23 }
 0x1fb   : > { %4414 = vrot.lane.b32.xlu0 %v3015_v3, %s8153_s23 }
 0x1fc   : > { %v9090_v43 = vpop.permute.xlu1 %2555 }
 0x1fd   : > { %15397 = vst [vmem:[#allocation62_spill] sm:$0xff] %v9090_v43  ;;  %v7501_v54 = vpop.f32.mrb[44].mxu1  ;;  %v9094_v29 = vpop.permute.xlu0 %2809  ;;  %v15400_v43 = vld [vmem:[#allocation69_spill] sm:$0xff] }
 0x1fe   : > { %15399 = vst [vmem:[#allocation63_spill] sm:$0xff] %v9094_v29  ;;  %v1085_v41 = vadd.f32 %v7501_v54, %v8955_v45  ;;  %4416 = vrot.lane.b32.xlu1 %v3016_v16, %s8153_s23  ;;  %v1076_v9 = vpop.f32.mrb[45].mxu1  ;;  %v2759_v54 = vmul.f32 %v15400_v43, %v15393_v12 }
 0x1ff   : > { %v1077_v32 = vadd.f32 %v8955_v45, %v1076_v9  ;;  %v7502_v3 = vpop.f32.mrb[46].mxu1  ;;  %4638 = vrot.lane.b32.xlu0 %v2711_v14, %s8154_s28  ;;  %v7862_v14 = vpop.eup %7861 }
 0x200   : > { %v1297_v46 = vmax.f32 %v1085_v41, 0.0  ;;  %v1088_v17 = vadd.f32 %v7502_v3, %v8955_v45  ;;  %v9103_v13 = vpop.permute.xlu1 %2811  ;;  %v1079_v49 = vpop.f32.mrb[47].mxu1 }
 0x201   : > { %v1295_v61 = vmax.f32 %v1077_v32, 0.0  ;;  %v1080_v16 = vadd.f32 %v8955_v45, %v1079_v49  ;;  %v9108_v29 = vpop.permute.xlu0 %2557  ;;  %v7864_v49 = vpop.eup %7863  ;;  %v2421_v32 = vsel %vm2293_vm5, %v7862_v14, 0.0 }
 0x202   : > { %v1298_v9 = vmax.f32 %v1088_v17, 0.0  ;;  %4640 = vrot.lane.b32.xlu1 %v2712_v30, %s8154_s28  ;;  %v7755_v17 = vld [vmem:[%s14852_s2 + $0xb0] sm:$0xff]   ;;  %v15403_v30 = vld [vmem:[#allocation18_spill] sm:$0xff] }
 0x203   : > { %v1296_v40 = vmax.f32 %v1080_v16, 0.0  ;;  %4734 = vrot.lane.b32.xlu0 %v2759_v54, %s8154_s28  ;;  %7643 = vmatprep.subr.bf16.mxu0 %v7755_v17  ;;  %v2969_v54 = vmul.f32 %v8882_v33, %v15403_v30 }
 0x204   : > { %v1354_v41 = vpack.c.bf16 %v1298_v9, %v1297_v46  ;;  %v9114_v3 = vpop.permute.xlu1 %2559  ;;  %7644 = vmatpush3.bf16.msra.mxu0 %v7755_v17  ;;  %v15405_v17 = vld [vmem:[#allocation20_spill] sm:$0xff] }
 0x205   : > { %v1353_v28 = vpack.c.bf16 %v1296_v40, %v1295_v61  ;;  %v9116_v43 = vpop.permute.xlu0 %2813  ;;  %v2422_v40 = vsel %vm2294_vm6, %v7864_v49, 0.0  ;;  %v2970_v49 = vmul.f32 %v8891_v52, %v15405_v17 }
 0x206   : > { %4736 = vrot.lane.b32.xlu1 %v2760_v24, %s8154_s28 }
 0x207   : > { %2585 = vrot.lane.b32.xlu0 %v2421_v32, %s8153_s23  ;;  %7579 = vmatprep.mubr.bf16.mxu1 %v1353_v28 }
 0x208   : > { %v9124_v20 = vpop.permute.xlu1 %2815  ;;  %7580 = vmatmul.mubr.bf16.gmra.mrb[108].mxu1 %v1354_v41 }
 0x209   : > { %v9127_v46 = vpop.permute.xlu0 %2561 }
 0x20a   : > { %15401 = vst [vmem:[#allocation66_spill] sm:$0xff] %v9127_v46  ;;  %2587 = vrot.lane.b32.xlu1 %v2422_v40, %s8153_s23 }
 0x20b   : > { %2841 = vrot.lane.b32.xlu0 %v2421_v32, %s8154_s28 }
 0x20c   : > { %v9131_v61 = vpop.permute.xlu1 %2563 }
 0x20d   : > { %15402 = vst [vmem:[#allocation69_spill] sm:$0xff] %v9131_v61  ;;  %v7505_v28 = vpop.f32.mrb[48].mxu1  ;;  %v9135_v16 = vpop.permute.xlu0 %2817 }
 0x20e   : > { %15404 = vst [vmem:[#allocation72_spill] sm:$0xff] %v9135_v16  ;;  %v1101_v9 = vadd.f32 %v7505_v28, %v8955_v45  ;;  %2843 = vrot.lane.b32.xlu1 %v2422_v40, %s8154_s28  ;;  %v1092_v14 = vpop.f32.mrb[49].mxu1  ;;  %v15408_v28 = vld [vmem:[#allocation19_spill] sm:$0xff] }
 0x20f   : > { %v1093_v24 = vadd.f32 %v8955_v45, %v1092_v14  ;;  %v7506_v41 = vpop.f32.mrb[50].mxu1  ;;  %4322 = vrot.lane.b32.xlu0 %v2969_v54, %s8153_s23  ;;  %v3017_v40 = vmul.f32 %v8895_v39, %v15408_v28  ;;  %v2713_v39 = vmul.f32 %v8862_v19, %v15403_v30  ;;  %v7866_v19 = vpop.eup %7865  ;;  %v15413_v30 = vld [vmem:[#allocation22_spill] sm:$0xff] }
 0x210   : > { %v1301_v32 = vmax.f32 %v1101_v9, 0.0  ;;  %v1104_v38 = vadd.f32 %v7506_v41, %v8955_v45  ;;  %v9144_v33 = vpop.permute.xlu1 %2819  ;;  %v1095_v12 = vpop.f32.mrb[51].mxu1  ;;  %v15409_v9 = vld [vmem:[#allocation57_spill] sm:$0xff]  ;;  %v2971_v5 = vmul.f32 %v8926_v27, %v15413_v30 }
 0x211   : > { %15406 = vst [vmem:[#allocation73_spill] sm:$0xff] %v9144_v33  ;;  %v1299_v7 = vmax.f32 %v1093_v24, 0.0  ;;  %v1096_v14 = vadd.f32 %v8955_v45, %v1095_v12  ;;  %v9150_v61 = vpop.permute.xlu0 %2565  ;;  %7867 = vrcp.f32 %v15409_v9  ;;  %v15410_v41 = vld [vmem:[#allocation21_spill] sm:$0xff]  ;;  %vm2296_vm8 = vcmp.ne.f32.partialorder %v15409_v9, 0.0 }
 0x212   : > { %v1302_v54 = vmax.f32 %v1104_v38, 0.0  ;;  %4324 = vrot.lane.b32.xlu1 %v2970_v49, %s8153_s23  ;;  %v3018_v46 = vmul.f32 %v8901_v2, %v15410_v41  ;;  %v2714_v38 = vmul.f32 %v8867_v0, %v15405_v17  ;;  %v2761_v2 = vmul.f32 %v8871_v47, %v15408_v28  ;;  %v7756_v47 = vld [vmem:[%s14852_s2 + $0xb8] sm:$0xff]  }
 0x213   : > { %v1300_v52 = vmax.f32 %v1096_v14, 0.0  ;;  %4418 = vrot.lane.b32.xlu0 %v3017_v40, %s8153_s23  ;;  %7645 = vmatprep.subr.bf16.mxu0 %v7756_v47 }
 0x214   : > { %v1356_v33 = vpack.c.bf16 %v1302_v54, %v1301_v32  ;;  %v9157_v16 = vpop.permute.xlu1 %2567  ;;  %7646 = vmatpush3.bf16.msra.mxu0 %v7756_v47 }
 0x215   : > { %v1355_v12 = vpack.c.bf16 %v1300_v52, %v1299_v7  ;;  %v9161_v24 = vpop.permute.xlu0 %2821  ;;  %v2762_v7 = vmul.f32 %v8877_v11, %v15410_v41  ;;  %v2423_v52 = vsel %vm2295_vm7, %v7866_v19, 0.0 }
 0x216   : > { %4420 = vrot.lane.b32.xlu1 %v3018_v46, %s8153_s23 }
 0x217   : > { %4642 = vrot.lane.b32.xlu0 %v2713_v39, %s8154_s28  ;;  %7583 = vmatprep.mubr.bf16.mxu1 %v1355_v12 }
 0x218   : > { %v9167_v49 = vpop.permute.xlu1 %2823  ;;  %7584 = vmatmul.mubr.bf16.gmra.mrb[112].mxu1 %v1356_v33 }
 0x219   : > { %v9171_v32 = vpop.permute.xlu0 %2569 }
 0x21a   : > { %4644 = vrot.lane.b32.xlu1 %v2714_v38, %s8154_s28 }
 0x21b   : > { %4738 = vrot.lane.b32.xlu0 %v2761_v2, %s8154_s28  ;;  %v7868_v33 = vpop.eup %7867 }
 0x21c   : > { %v9177_v46 = vpop.permute.xlu1 %2571  ;;  %v2424_v19 = vsel %vm2296_vm8, %v7868_v33, 0.0 }
 0x21d   : > { %v7509_v40 = vpop.f32.mrb[52].mxu1  ;;  %v9179_v0 = vpop.permute.xlu0 %2825 }
 0x21e   : > { %v1117_v14 = vadd.f32 %v7509_v40, %v8955_v45  ;;  %4740 = vrot.lane.b32.xlu1 %v2762_v7, %s8154_s28  ;;  %v1108_v54 = vpop.f32.mrb[53].mxu1 }
 0x21f   : > { %v1109_v11 = vadd.f32 %v8955_v45, %v1108_v54  ;;  %v7510_v39 = vpop.f32.mrb[54].mxu1  ;;  %2589 = vrot.lane.b32.xlu0 %v2423_v52, %s8153_s23 }
 0x220   : > { %v1305_v12 = vmax.f32 %v1117_v14, 0.0  ;;  %v1120_v38 = vadd.f32 %v7510_v39, %v8955_v45  ;;  %v9190_v2 = vpop.permute.xlu1 %2827  ;;  %v1111_v41 = vpop.f32.mrb[55].mxu1 }
 0x221   : > { %v1303_v40 = vmax.f32 %v1109_v11, 0.0  ;;  %v1112_v7 = vadd.f32 %v8955_v45, %v1111_v41  ;;  %v9194_v28 = vpop.permute.xlu0 %4306  ;;  %v15415_v41 = vld [vmem:[#allocation24_spill] sm:$0xff] }
 0x222   : > { %15411 = vst [vmem:[#allocation74_spill] sm:$0xff] %v9194_v28  ;;  %v1306_v54 = vmax.f32 %v1120_v38, 0.0  ;;  %2591 = vrot.lane.b32.xlu1 %v2424_v19, %s8153_s23  ;;  %v2972_v33 = vmul.f32 %v8932_v62, %v15415_v41 }
 0x223   : > { %v1304_v17 = vmax.f32 %v1112_v7, 0.0  ;;  %2845 = vrot.lane.b32.xlu0 %v2423_v52, %s8154_s28  ;;  %v15417_v52 = vld [vmem:[#allocation59_spill] sm:$0xff] }
 0x224   : > { %v1358_v14 = vpack.c.bf16 %v1306_v54, %v1305_v12  ;;  %v9198_v39 = vpop.permute.xlu1 %4308  ;;  %7869 = vrcp.f32 %v15417_v52  ;;  %v15418_v12 = vld [vmem:[#allocation23_spill] sm:$0xff]  ;;  %vm2297_vm9 = vcmp.ne.f32.partialorder %v15417_v52, 0.0 }
 0x225   : > { %15412 = vst [vmem:[#allocation75_spill] sm:$0xff] %v9198_v39  ;;  %v1357_v9 = vpack.c.bf16 %v1304_v17, %v1303_v40  ;;  %v9202_v47 = vpop.permute.xlu0 %4402  ;;  %v3019_v38 = vmul.f32 %v8936_v26, %v15418_v12  ;;  %v15420_v17 = vld [vmem:[#allocation61_spill] sm:$0xff]  ;;  %v2715_v40 = vmul.f32 %v8905_v59, %v15413_v30 }
 0x226   : > { %15414 = vst [vmem:[#allocation76_spill] sm:$0xff] %v9202_v47  ;;  %2847 = vrot.lane.b32.xlu1 %v2424_v19, %s8154_s28  ;;  %7871 = vrcp.f32 %v15420_v17  ;;  %vm2298_vm10 = vcmp.ne.f32.partialorder %v15420_v17, 0.0 }
 0x227   : > { %4326 = vrot.lane.b32.xlu0 %v2971_v5, %s8153_s23  ;;  %7587 = vmatprep.mubr.bf16.mxu1 %v1357_v9  ;;  %v15421_v5 = vld [vmem:[#allocation25_spill] sm:$0xff] }
 0x228   : > { %v9208_v11 = vpop.permute.xlu1 %4404  ;;  %7588 = vmatmul.mubr.bf16.gmra.mrb[116].mxu1 %v1358_v14  ;;  %v3020_v9 = vmul.f32 %v8942_v4, %v15421_v5  ;;  %v2716_v4 = vmul.f32 %v8913_v55, %v15415_v41  ;;  %v2764_v55 = vmul.f32 %v8923_v42, %v15421_v5 }
 0x229   : > { %15416 = vst [vmem:[#allocation77_spill] sm:$0xff] %v9208_v11  ;;  %v9213_v27 = vpop.permute.xlu0 %4626 }
 0x22a   : > { %15419 = vst [vmem:[#allocation78_spill] sm:$0xff] %v9213_v27  ;;  %4328 = vrot.lane.b32.xlu1 %v2972_v33, %s8153_s23 }
 0x22b   : > { %4422 = vrot.lane.b32.xlu0 %v3019_v38, %s8153_s23 }
 0x22c   : > { %v9220_v62 = vpop.permute.xlu1 %4628 }
 0x22d   : > { %15422 = vst [vmem:[#allocation79_spill] sm:$0xff] %v9220_v62  ;;  %v7513_v7 = vpop.f32.mrb[56].mxu1  ;;  %v9224_v19 = vpop.permute.xlu0 %4722 }
 0x22e   : > { %15423 = vst [vmem:[#allocation80_spill] sm:$0xff] %v9224_v19  ;;  %v1133_v26 = vadd.f32 %v7513_v7, %v8955_v45  ;;  %4424 = vrot.lane.b32.xlu1 %v3020_v9, %s8153_s23  ;;  %v1124_v54 = vpop.f32.mrb[57].mxu1  ;;  %v2763_v7 = vmul.f32 %v8918_v31, %v15418_v12  ;;  %v15431_v12 = vld [vmem:[#allocation64_spill] sm:$0xff] }
 0x22f   : > { %v1125_v14 = vadd.f32 %v8955_v45, %v1124_v54  ;;  %v7514_v33 = vpop.f32.mrb[58].mxu1  ;;  %4646 = vrot.lane.b32.xlu0 %v2715_v40, %s8154_s28  ;;  %v7870_v40 = vpop.eup %7869  ;;  %7873 = vrcp.f32 %v15431_v12  ;;  %vm2299_vm11 = vcmp.ne.f32.partialorder %v15431_v12, 0.0 }
 0x230   : > { %v1309_v38 = vmax.f32 %v1133_v26, 0.0  ;;  %v1136_v11 = vadd.f32 %v7514_v33, %v8955_v45  ;;  %v9233_v59 = vpop.permute.xlu1 %4724  ;;  %v1127_v47 = vpop.f32.mrb[59].mxu1 }
 0x231   : > { %15424 = vst [vmem:[#allocation81_spill] sm:$0xff] %v9233_v59  ;;  %v1307_v19 = vmax.f32 %v1125_v14, 0.0  ;;  %v1128_v9 = vadd.f32 %v8955_v45, %v1127_v47  ;;  %v9238_v30 = vpop.permute.xlu0 %2573  ;;  %v7872_v47 = vpop.eup %7871 }
 0x232   : > { %v1310_v54 = vmax.f32 %v1136_v11, 0.0  ;;  %4648 = vrot.lane.b32.xlu1 %v2716_v4, %s8154_s28  ;;  %v2425_v11 = vsel %vm2297_vm9, %v7870_v40, 0.0  ;;  %v2426_v4 = vsel %vm2298_vm10, %v7872_v47, 0.0 }
 0x233   : > { %v1308_v39 = vmax.f32 %v1128_v9, 0.0  ;;  %4742 = vrot.lane.b32.xlu0 %v2763_v7, %s8154_s28 }
 0x234   : > { %v1360_v26 = vpack.c.bf16 %v1310_v54, %v1309_v38  ;;  %v9244_v33 = vpop.permute.xlu1 %2575 }
 0x235   : > { %v1359_v59 = vpack.c.bf16 %v1308_v39, %v1307_v19  ;;  %v9246_v31 = vpop.permute.xlu0 %2829  ;;  %v15427_v19 = vld [vmem:[#allocation26_spill] sm:$0xff] }
 0x236   : > { %4744 = vrot.lane.b32.xlu1 %v2764_v55, %s8154_s28  ;;  %v2973_v38 = vmul.f32 %v8978_v37, %v15427_v19 }
 0x237   : > { %2593 = vrot.lane.b32.xlu0 %v2425_v11, %s8153_s23  ;;  %7591 = vmatprep.mubr.bf16.mxu1 %v1359_v59 }
 0x238   : > { %v9251_v14 = vpop.permute.xlu1 %2831  ;;  %7592 = vmatmul.mubr.bf16.gmra.mrb[120].mxu1 %v1360_v26  ;;  %v15429_v26 = vld [vmem:[#allocation28_spill] sm:$0xff] }
 0x239   : > { %v9254_v42 = vpop.permute.xlu0 %4310  ;;  %v2974_v47 = vmul.f32 %v8984_v48, %v15429_v26 }
 0x23a   : > { %15425 = vst [vmem:[#allocation82_spill] sm:$0xff] %v9254_v42  ;;  %2595 = vrot.lane.b32.xlu1 %v2426_v4, %s8153_s23 }
 0x23b   : > { %2849 = vrot.lane.b32.xlu0 %v2425_v11, %s8154_s28 }
 0x23c   : > { %v9258_v39 = vpop.permute.xlu1 %4312 }
 0x23d   : > { %15426 = vst [vmem:[#allocation83_spill] sm:$0xff] %v9258_v39  ;;  %v9262_v7 = vpop.permute.xlu0 %4406  ;;  %v7517_v59 = vpop.f32.mrb[60].mxu1 }
 0x23e   : > { %15428 = vst [vmem:[#allocation84_spill] sm:$0xff] %v9262_v7  ;;  %v1149_v9 = vadd.f32 %v7517_v59, %v8955_v45  ;;  %2851 = vrot.lane.b32.xlu1 %v2426_v4, %s8154_s28  ;;  %v1140_v54 = vpop.f32.mrb[61].mxu1  ;;  %v15432_v59 = vld [vmem:[#allocation27_spill] sm:$0xff] }
 0x23f   : > { %v1141_v40 = vadd.f32 %v8955_v45, %v1140_v54  ;;  %v7518_v55 = vpop.f32.mrb[62].mxu1  ;;  %4330 = vrot.lane.b32.xlu0 %v2973_v38, %s8153_s23  ;;  %v3021_v4 = vmul.f32 %v8986_v6, %v15432_v59  ;;  %v2717_v6 = vmul.f32 %v8947_v58, %v15427_v19  ;;  %v7874_v58 = vpop.eup %7873 }
 0x240   : > { %v1313_v11 = vmax.f32 %v1149_v9, 0.0  ;;  %v1152_v5 = vadd.f32 %v7518_v55, %v8955_v45  ;;  %v9271_v37 = vpop.permute.xlu1 %4408  ;;  %v1143_v7 = vpop.f32.mrb[63].mxu1  ;;  %v15434_v9 = vld [vmem:[#allocation65_spill] sm:$0xff] }
 0x241   : > { %15430 = vst [vmem:[#allocation85_spill] sm:$0xff] %v9271_v37  ;;  %v1311_v41 = vmax.f32 %v1141_v40, 0.0  ;;  %v1144_v54 = vadd.f32 %v8955_v45, %v1143_v7  ;;  %v9277_v28 = vpop.permute.xlu0 %4630  ;;  %7875 = vrcp.f32 %v15434_v9  ;;  %v15435_v55 = vld [vmem:[#allocation29_spill] sm:$0xff]  ;;  %vm2300_vm12 = vcmp.ne.f32.partialorder %v15434_v9, 0.0 }
 0x242   : > { %15433 = vst [vmem:[#allocation86_spill] sm:$0xff] %v9277_v28  ;;  %v1314_v38 = vmax.f32 %v1152_v5, 0.0  ;;  %4332 = vrot.lane.b32.xlu1 %v2974_v47, %s8153_s23  ;;  %v3022_v37 = vmul.f32 %v8994_v15, %v15435_v55  ;;  %v2718_v5 = vmul.f32 %v8960_v22, %v15429_v26  ;;  %v2765_v15 = vmul.f32 %v8964_v10, %v15432_v59 }
 0x243   : > { %v1312_v48 = vmax.f32 %v1144_v54, 0.0  ;;  %4426 = vrot.lane.b32.xlu0 %v3021_v4, %s8153_s23 }
 0x244   : > { %v1362_v62 = vpack.c.bf16 %v1314_v38, %v1313_v11  ;;  %v9284_v27 = vpop.permute.xlu1 %4632  ;;  %v2427_v38 = vsel %vm2299_vm11, %v7874_v58, 0.0 }
 0x245   : > { %15436 = vst [vmem:[#allocation87_spill] sm:$0xff] %v9284_v27  ;;  %v1361_v7 = vpack.c.bf16 %v1312_v48, %v1311_v41  ;;  %v9288_v40 = vpop.permute.xlu0 %4726  ;;  %v2766_v41 = vmul.f32 %v8973_v25, %v15435_v55 }
 0x246   : > { %15437 = vst [vmem:[#allocation88_spill] sm:$0xff] %v9288_v40  ;;  %4428 = vrot.lane.b32.xlu1 %v3022_v37, %s8153_s23  ;;  %v15441_v40 = vld [vmem:[#allocation30_spill] sm:$0xff] }
 0x247   : > { %4650 = vrot.lane.b32.xlu0 %v2717_v6, %s8154_s28  ;;  %7595 = vmatprep.mubr.bf16.mxu1 %v1361_v7 }
 0x248   : > { %v9294_v47 = vpop.permute.xlu1 %4728  ;;  %7596 = vmatmul.mubr.bf16.gmra.mrb[124].mxu1 %v1362_v62 }
 0x249   : > { %15438 = vst [vmem:[#allocation89_spill] sm:$0xff] %v9294_v47  ;;  %v9298_v11 = vpop.permute.xlu0 %2577 }
 0x24a   : > { %4652 = vrot.lane.b32.xlu1 %v2718_v5, %s8154_s28 }
 0x24b   : > { %4746 = vrot.lane.b32.xlu0 %v2765_v15, %s8154_s28  ;;  %v7876_v62 = vpop.eup %7875 }
 0x24c   : > { %v9304_v37 = vpop.permute.xlu1 %2579 }
 0x24d   : > { %v9306_v4 = vpop.permute.xlu0 %2833  ;;  %v7521_v22 = vpop.f32.mrb[64].mxu1 }
 0x24e   : > { %v1165_v10 = vadd.f32 %v7521_v22, %v8955_v45  ;;  %4748 = vrot.lane.b32.xlu1 %v2766_v41, %s8154_s28  ;;  %v1156_v54 = vpop.f32.mrb[65].mxu1  ;;  %v2428_v41 = vsel %vm2300_vm12, %v7876_v62, 0.0  ;;  %v15443_v62 = vld [vmem:[#allocation32_spill] sm:$0xff] }
 0x24f   : > { %v1157_v48 = vadd.f32 %v8955_v45, %v1156_v54  ;;  %v7522_v6 = vpop.f32.mrb[66].mxu1  ;;  %2597 = vrot.lane.b32.xlu0 %v2427_v38, %s8153_s23 }
 0x250   : > { %v1317_v25 = vmax.f32 %v1165_v10, 0.0  ;;  %v9313_v7 = vpop.permute.xlu1 %2835  ;;  %v1168_v5 = vadd.f32 %v7522_v6, %v8955_v45  ;;  %v1159_v15 = vpop.f32.mrb[67].mxu1  ;;  %v2975_v6 = vmul.f32 %v9020_v23, %v15441_v40 }
 0x251   : > { %v1315_v55 = vmax.f32 %v1157_v48, 0.0  ;;  %v1160_v22 = vadd.f32 %v8955_v45, %v1159_v15  ;;  %v9318_v59 = vpop.permute.xlu0 %4314  ;;  %v2976_v48 = vmul.f32 %v9027_v8, %v15443_v62 }
 0x252   : > { %15439 = vst [vmem:[#allocation90_spill] sm:$0xff] %v9318_v59  ;;  %v1318_v58 = vmax.f32 %v1168_v5, 0.0  ;;  %2599 = vrot.lane.b32.xlu1 %v2428_v41, %s8153_s23 }
 0x253   : > { %v1316_v54 = vmax.f32 %v1160_v22, 0.0  ;;  %2853 = vrot.lane.b32.xlu0 %v2427_v38, %s8154_s28  ;;  %v15445_v38 = vld [vmem:[#allocation67_spill] sm:$0xff] }
 0x254   : > { %v1364_v10 = vpack.c.bf16 %v1318_v58, %v1317_v25  ;;  %v9322_v47 = vpop.permute.xlu1 %4316  ;;  %7877 = vrcp.f32 %v15445_v38  ;;  %v15446_v25 = vld [vmem:[#allocation31_spill] sm:$0xff]  ;;  %vm2301_vm13 = vcmp.ne.f32.partialorder %v15445_v38, 0.0 }
 0x255   : > { %15440 = vst [vmem:[#allocation91_spill] sm:$0xff] %v9322_v47  ;;  %v1363_v26 = vpack.c.bf16 %v1316_v54, %v1315_v55  ;;  %v9326_v19 = vpop.permute.xlu0 %4410  ;;  %v3023_v15 = vmul.f32 %v9031_v1, %v15446_v25  ;;  %v15448_v55 = vld [vmem:[#allocation68_spill] sm:$0xff] }
 0x256   : > { %15442 = vst [vmem:[#allocation92_spill] sm:$0xff] %v9326_v19  ;;  %2855 = vrot.lane.b32.xlu1 %v2428_v41, %s8154_s28  ;;  %7879 = vrcp.f32 %v15448_v55  ;;  %v2719_v41 = vmul.f32 %v8997_v50, %v15441_v40  ;;  %vm2302_vm14 = vcmp.ne.f32.partialorder %v15448_v55, 0.0 }
 0x257   : > { %4334 = vrot.lane.b32.xlu0 %v2975_v6, %s8153_s23  ;;  %7599 = vmatprep.mubr.bf16.mxu1 %v1363_v26  ;;  %v15449_v26 = vld [vmem:[#allocation33_spill] sm:$0xff] }
 0x258   : > { %v9332_v5 = vpop.permute.xlu1 %4412  ;;  %7600 = vmatmul.mubr.bf16.gmra.mrb[128].mxu1 %v1364_v10  ;;  %v3024_v22 = vmul.f32 %v9037_v18, %v15449_v26  ;;  %v2720_v18 = vmul.f32 %v9001_v57, %v15443_v62  ;;  %v2768_v57 = vmul.f32 %v9014_v56, %v15449_v26  ;;  %v15453_v56 = vld [vmem:[#allocation70_spill] sm:$0xff] }
 0x259   : > { %15444 = vst [vmem:[#allocation93_spill] sm:$0xff] %v9332_v5  ;;  %v9337_v23 = vpop.permute.xlu0 %4634  ;;  %7881 = vrcp.f32 %v15453_v56  ;;  %vm2303_vm15 = vcmp.ne.f32.partialorder %v15453_v56, 0.0 }
 0x25a   : > { %15447 = vst [vmem:[#allocation94_spill] sm:$0xff] %v9337_v23  ;;  %4336 = vrot.lane.b32.xlu1 %v2976_v48, %s8153_s23  ;;  %7883 = vrcp.f32 %v8849_v53 }
 0x25b   : > { %4430 = vrot.lane.b32.xlu0 %v3023_v15, %s8153_s23 }
 0x25c   : > { %v9344_v8 = vpop.permute.xlu1 %4636 }
 0x25d   : > { %15450 = vst [vmem:[#allocation95_spill] sm:$0xff] %v9344_v8  ;;  %v9348_v58 = vpop.permute.xlu0 %4730  ;;  %v7525_v54 = vpop.f32.mrb[68].mxu1 }
 0x25e   : > { %15451 = vst [vmem:[#allocation96_spill] sm:$0xff] %v9348_v58  ;;  %v1181_v1 = vadd.f32 %v7525_v54, %v8955_v45  ;;  %4432 = vrot.lane.b32.xlu1 %v3024_v22, %s8153_s23  ;;  %v1172_v10 = vpop.f32.mrb[69].mxu1  ;;  %v2767_v54 = vmul.f32 %v9005_v21, %v15446_v25 }
 0x25f   : > { %v1173_v6 = vadd.f32 %v8955_v45, %v1172_v10  ;;  %v7526_v48 = vpop.f32.mrb[70].mxu1  ;;  %4654 = vrot.lane.b32.xlu0 %v2719_v41, %s8154_s28  ;;  %v7878_v41 = vpop.eup %7877 }
 0x260   : > { %v1321_v15 = vmax.f32 %v1181_v1, 0.0  ;;  %v9356_v5 = vpop.permute.xlu1 %4732  ;;  %v1184_v50 = vadd.f32 %v7526_v48, %v8955_v45  ;;  %v1175_v19 = vpop.f32.mrb[71].mxu1 }
 0x261   : > { %15452 = vst [vmem:[#allocation97_spill] sm:$0xff] %v9356_v5  ;;  %v1319_v58 = vmax.f32 %v1173_v6, 0.0  ;;  %v1176_v22 = vadd.f32 %v8955_v45, %v1175_v19  ;;  %v9362_v40 = vpop.permute.xlu0 %2581  ;;  %v7880_v19 = vpop.eup %7879  ;;  %v2429_v6 = vsel %vm2301_vm13, %v7878_v41, 0.0 }
 0x262   : > { %v1322_v10 = vmax.f32 %v1184_v50, 0.0  ;;  %4656 = vrot.lane.b32.xlu1 %v2720_v18, %s8154_s28  ;;  %v15456_v50 = vld [vmem:[#allocation34_spill] sm:$0xff] }
 0x263   : > { %v1320_v47 = vmax.f32 %v1176_v22, 0.0  ;;  %4750 = vrot.lane.b32.xlu0 %v2767_v54, %s8154_s28 }
 0x264   : > { %v1366_v1 = vpack.c.bf16 %v1322_v10, %v1321_v15  ;;  %v9368_v48 = vpop.permute.xlu1 %2583 }
 0x265   : > { %v1365_v5 = vpack.c.bf16 %v1320_v47, %v1319_v58  ;;  %v9370_v21 = vpop.permute.xlu0 %2837  ;;  %v2430_v47 = vsel %vm2302_vm14, %v7880_v19, 0.0  ;;  %v15458_v19 = vld [vmem:[#allocation35_spill] sm:$0xff] }
 0x266   : > { %4752 = vrot.lane.b32.xlu1 %v2768_v57, %s8154_s28 }
 0x267   : > { %2601 = vrot.lane.b32.xlu0 %v2429_v6, %s8153_s23  ;;  %7603 = vmatprep.mubr.bf16.mxu1 %v1365_v5  ;;  %v2977_v5 = vmul.f32 %v9052_v60, %v15456_v50 }
 0x268   : > { %v9375_v18 = vpop.permute.xlu1 %2839  ;;  %7604 = vmatmul.mubr.bf16.gmra.mrb[132].mxu1 %v1366_v1 }
 0x269   : > { %v9379_v15 = vpop.permute.xlu0 %4318 }
 0x26a   : > { %15454 = vst [vmem:[#allocation98_spill] sm:$0xff] %v9379_v15  ;;  %2603 = vrot.lane.b32.xlu1 %v2430_v47, %s8153_s23  ;;  %v15470_v15 = vld [vmem:[#allocation63_spill] sm:$0xff] }
 0x26b   : > { %2857 = vrot.lane.b32.xlu0 %v2429_v6, %s8154_s28  ;;  %v2978_v6 = vmul.f32 %v9060_v35, %v15458_v19  ;;  %v2722_v35 = vmul.f32 %v9047_v34, %v15458_v19 }
 0x26c   : > { %v9384_v58 = vpop.permute.xlu1 %4320 }
 0x26d   : > { %15455 = vst [vmem:[#allocation99_spill] sm:$0xff] %v9384_v58  ;;  %v9388_v54 = vpop.permute.xlu0 %4414  ;;  %v7529_v22 = vpop.f32.mrb[72].mxu1  ;;  %v15469_v58 = vld [vmem:[#allocation38_spill] sm:$0xff] }
 0x26e   : > { %15457 = vst [vmem:[#allocation100_spill] sm:$0xff] %v9388_v54  ;;  %v1197_v10 = vadd.f32 %v7529_v22, %v8955_v45  ;;  %2859 = vrot.lane.b32.xlu1 %v2430_v47, %s8154_s28  ;;  %v1188_v41 = vpop.f32.mrb[73].mxu1  ;;  %v2721_v22 = vmul.f32 %v9041_v44, %v15456_v50 }
 0x26f   : > { %v1189_v57 = vadd.f32 %v8955_v45, %v1188_v41  ;;  %v7530_v1 = vpop.f32.mrb[74].mxu1  ;;  %4338 = vrot.lane.b32.xlu0 %v2977_v5, %s8153_s23  ;;  %v7882_v5 = vpop.eup %7881 }
 0x270   : > { %v1325_v26 = vmax.f32 %v1197_v10, 0.0  ;;  %v9396_v25 = vpop.permute.xlu1 %4416  ;;  %v1200_v60 = vadd.f32 %v7530_v1, %v8955_v45  ;;  %v1191_v54 = vpop.f32.mrb[75].mxu1 }
 0x271   : > { %15459 = vst [vmem:[#allocation101_spill] sm:$0xff] %v9396_v25  ;;  %v1323_v62 = vmax.f32 %v1189_v57, 0.0  ;;  %v1192_v47 = vadd.f32 %v8955_v45, %v1191_v54  ;;  %v9402_v59 = vpop.permute.xlu0 %4638  ;;  %v7884_v54 = vpop.eup %7883  ;;  %v2431_v57 = vsel %vm2303_vm15, %v7882_v5, 0.0 }
 0x272   : > { %15460 = vst [vmem:[#allocation102_spill] sm:$0xff] %v9402_v59  ;;  %v1326_v41 = vmax.f32 %v1200_v60, 0.0  ;;  %4340 = vrot.lane.b32.xlu1 %v2978_v6, %s8153_s23 }
 0x273   : > { %v1324_v8 = vmax.f32 %v1192_v47, 0.0  ;;  %4658 = vrot.lane.b32.xlu0 %v2721_v22, %s8154_s28 }
 0x274   : > { %v1368_v10 = vpack.c.bf16 %v1326_v41, %v1325_v26  ;;  %v9408_v1 = vpop.permute.xlu1 %4640  ;;  %v2432_v26 = vsel %vm2304_vm0, %v7884_v54, 0.0 }
 0x275   : > { %15461 = vst [vmem:[#allocation103_spill] sm:$0xff] %v9408_v1  ;;  %v1367_v25 = vpack.c.bf16 %v1324_v8, %v1323_v62  ;;  %v9410_v44 = vpop.permute.xlu0 %4734  ;;  %v15464_v8 = vld [vmem:[#allocation36_spill] sm:$0xff] }
 0x276   : > { %15462 = vst [vmem:[#allocation104_spill] sm:$0xff] %v9410_v44  ;;  %4660 = vrot.lane.b32.xlu1 %v2722_v35, %s8154_s28  ;;  %v2979_v60 = vmul.f32 %v9072_v36, %v15464_v8 }
 0x277   : > { %2605 = vrot.lane.b32.xlu0 %v2431_v57, %s8153_s23  ;;  %7607 = vmatprep.mubr.bf16.mxu1 %v1367_v25 }
 0x278   : > { %v9415_v6 = vpop.permute.xlu1 %4736  ;;  %7608 = vmatmul.mubr.bf16.gmra.mrb[136].mxu1 %v1368_v10  ;;  %v15465_v10 = vld [vmem:[#allocation37_spill] sm:$0xff] }
 0x279   : > { %15463 = vst [vmem:[#allocation105_spill] sm:$0xff] %v9415_v6  ;;  %v9418_v34 = vpop.permute.xlu0 %2585  ;;  %v2980_v54 = vmul.f32 %v9078_v51, %v15465_v10  ;;  %v15467_v51 = vld [vmem:[#allocation58_spill] sm:$0xff] }
 0x27a   : > { %2607 = vrot.lane.b32.xlu1 %v2432_v26, %s8153_s23 }
 0x27b   : > { %2861 = vrot.lane.b32.xlu0 %v2431_v57, %s8154_s28 }
 0x27c   : > { %v9422_v62 = vpop.permute.xlu1 %2587 }
 0x27d   : > { %v9426_v22 = vpop.permute.xlu0 %2841  ;;  %v7533_v25 = vpop.f32.mrb[76].mxu1 }
 0x27e   : > { %v1213_v47 = vadd.f32 %v7533_v25, %v8955_v45  ;;  %2863 = vrot.lane.b32.xlu1 %v2432_v26, %s8154_s28  ;;  %v1204_v41 = vpop.f32.mrb[77].mxu1  ;;  %v2723_v25 = vmul.f32 %v9064_v63, %v15464_v8  ;;  %v2981_v63 = vmul.f32 %v15470_v15, %v15469_v58  ;;  %v15472_v15 = vld [vmem:[#allocation39_spill] sm:$0xff] }
 0x27f   : > { %v1205_v5 = vadd.f32 %v8955_v45, %v1204_v41  ;;  %4342 = vrot.lane.b32.xlu0 %v2979_v60, %s8153_s23  ;;  %v7534_v35 = vpop.f32.mrb[78].mxu1 }
 0x280   : > { %v1329_v57 = vmax.f32 %v1213_v47, 0.0  ;;  %v9434_v6 = vpop.permute.xlu1 %2843  ;;  %v1216_v36 = vadd.f32 %v7534_v35, %v8955_v45  ;;  %v1207_v44 = vpop.f32.mrb[79].mxu1  ;;  %v2724_v47 = vmul.f32 %v15467_v51, %v15465_v10  ;;  %v15474_v51 = vld [vmem:[#allocation60_spill] sm:$0xff] }
 0x281   : > { %v1327_v19 = vmax.f32 %v1205_v5, 0.0  ;;  %v1208_v26 = vadd.f32 %v8955_v45, %v1207_v44  ;;  %v9440_v50 = vpop.permute.xlu0 %4322  ;;  %v9455_v44 = vld [vmem:[%s14853_s3 + $0x1] ss:$0 sm:$0xff] }
 0x282   : > { %15466 = vst [vmem:[#allocation106_spill] sm:$0xff] %v9440_v50  ;;  %v1330_v41 = vmax.f32 %v1216_v36, 0.0  ;;  %4344 = vrot.lane.b32.xlu1 %v2980_v54, %s8153_s23 }
 0x283   : > { %v1328_v60 = vmax.f32 %v1208_v26, 0.0  ;;  %4662 = vrot.lane.b32.xlu0 %v2723_v25, %s8154_s28 }
 0x284   : > { %v1370_v23 = vpack.c.bf16 %v1330_v41, %v1329_v57  ;;  %v9446_v35 = vpop.permute.xlu1 %4324 }
 0x285   : > { %15468 = vst [vmem:[#allocation58_spill] sm:$0xff] %v9446_v35  ;;  %v1369_v5 = vpack.c.bf16 %v1328_v60, %v1327_v19  ;;  %v9450_v8 = vpop.permute.xlu0 %4418  ;;  %v7537_v45 = vpop.f32.mrb[80].mxu1  ;;  %v2982_v19 = vmul.f32 %v9103_v13, %v15472_v15  ;;  %v15476_v13 = vld [vmem:[#allocation62_spill] sm:$0xff]  ;;  %v15478_v35 = vld [vmem:[#allocation40_spill] sm:$0xff] }
 0x286   : > { %15471 = vst [vmem:[#allocation63_spill] sm:$0xff] %v9450_v8  ;;  %v1229_v54 = vadd.f32 %v9455_v44, %v7537_v45  ;;  %4664 = vrot.lane.b32.xlu1 %v2724_v47, %s8154_s28  ;;  %v1220_v36 = vpop.f32.mrb[81].mxu1  ;;  %v2725_v45 = vmul.f32 %v15474_v51, %v15469_v58  ;;  %v2983_v51 = vmul.f32 %v9116_v43, %v15478_v35 }
 0x287   : > { %v1221_v57 = vadd.f32 %v9455_v44, %v1220_v36  ;;  %4346 = vrot.lane.b32.xlu0 %v2981_v63, %s8153_s23  ;;  %v7538_v25 = vpop.f32.mrb[82].mxu1  ;;  %7611 = vmatprep.mubr.bf16.mxu1 %v1369_v5 }
 0x288   : > { %v9463_v26 = vpop.permute.xlu1 %4420  ;;  %v1232_v41 = vadd.f32 %v9455_v44, %v7538_v25  ;;  %v1223_v60 = vpop.f32.mrb[83].mxu1  ;;  %7612 = vmatmul.mubr.bf16.gmra.mrb[140].mxu1 %v1370_v23  ;;  %v1333_v36 = vmax.f32 %v1229_v54, 0.0  ;;  %v2726_v25 = vmul.f32 %v15476_v13, %v15472_v15 }
 0x289   : > { %15473 = vst [vmem:[#allocation107_spill] sm:$0xff] %v9463_v26  ;;  %v1224_v47 = vadd.f32 %v9455_v44, %v1223_v60  ;;  %v9469_v8 = vpop.permute.xlu0 %4642  ;;  %v1331_v5 = vmax.f32 %v1221_v57, 0.0 }
 0x28a   : > { %15475 = vst [vmem:[#allocation60_spill] sm:$0xff] %v9469_v8  ;;  %v1334_v63 = vmax.f32 %v1232_v41, 0.0  ;;  %4348 = vrot.lane.b32.xlu1 %v2982_v19, %s8153_s23 }
 0x28b   : > { %v1332_v10 = vmax.f32 %v1224_v47, 0.0  ;;  %4666 = vrot.lane.b32.xlu0 %v2725_v45, %s8154_s28  ;;  %v15480_v47 = vld [vmem:[#allocation41_spill] sm:$0xff] }
 0x28c   : > { %v1372_v26 = vpack.c.bf16 %v1334_v63, %v1333_v36  ;;  %v9475_v23 = vpop.permute.xlu1 %4644  ;;  %v2984_v36 = vmul.f32 %v9124_v20, %v15480_v47  ;;  %v2728_v20 = vmul.f32 %v9114_v3, %v15480_v47 }
 0x28d   : > { %15477 = vst [vmem:[#allocation62_spill] sm:$0xff] %v9475_v23  ;;  %v1371_v60 = vpack.c.bf16 %v1332_v10, %v1331_v5  ;;  %v9479_v58 = vpop.permute.xlu0 %4738  ;;  %v7541_v54 = vpop.f32.mrb[84].mxu1  ;;  %v2727_v5 = vmul.f32 %v9108_v29, %v15478_v35  ;;  %v15483_v29 = vld [vmem:[#allocation72_spill] sm:$0xff] }
 0x28e   : > { %15479 = vst [vmem:[#allocation108_spill] sm:$0xff] %v9479_v58  ;;  %v1245_v41 = vadd.f32 %v9455_v44, %v7541_v54  ;;  %4668 = vrot.lane.b32.xlu1 %v2726_v25, %s8154_s28  ;;  %v1236_v57 = vpop.f32.mrb[85].mxu1  ;;  %v15490_v23 = vld [vmem:[#allocation44_spill] sm:$0xff] }
 0x28f   : > { %v1237_v19 = vadd.f32 %v9455_v44, %v1236_v57  ;;  %4350 = vrot.lane.b32.xlu0 %v2983_v51, %s8153_s23  ;;  %v7542_v45 = vpop.f32.mrb[86].mxu1  ;;  %7615 = vmatprep.mubr.bf16.mxu1 %v1371_v60 }
 0x290   : > { %v9487_v63 = vpop.permute.xlu1 %4740  ;;  %v1248_v43 = vadd.f32 %v9455_v44, %v7542_v45  ;;  %v1239_v10 = vpop.f32.mrb[87].mxu1  ;;  %7616 = vmatmul.mubr.bf16.gmra.mrb[144].mxu1 %v1372_v26  ;;  %v1337_v54 = vmax.f32 %v1245_v41, 0.0 }
 0x291   : > { %15481 = vst [vmem:[#allocation109_spill] sm:$0xff] %v9487_v63  ;;  %v1240_v13 = vadd.f32 %v9455_v44, %v1239_v10  ;;  %v9493_v25 = vpop.permute.xlu0 %2589  ;;  %v1335_v60 = vmax.f32 %v1237_v19, 0.0  ;;  %v15482_v63 = vld [vmem:[#allocation42_spill] sm:$0xff] }
 0x292   : > { %v1338_v51 = vmax.f32 %v1248_v43, 0.0  ;;  %4352 = vrot.lane.b32.xlu1 %v2984_v36, %s8153_s23  ;;  %v2985_v58 = vmul.f32 %v15483_v29, %v15482_v63  ;;  %v15486_v29 = vld [vmem:[#allocation66_spill] sm:$0xff] }
 0x293   : > { %v1336_v57 = vmax.f32 %v1240_v13, 0.0  ;;  %4670 = vrot.lane.b32.xlu0 %v2727_v5, %s8154_s28  ;;  %v15484_v5 = vld [vmem:[#allocation43_spill] sm:$0xff]  ;;  %v15485_v13 = vld [vmem:[#allocation73_spill] sm:$0xff] }
 0x294   : > { %v1374_v45 = vpack.c.bf16 %v1338_v51, %v1337_v54  ;;  %v9499_v26 = vpop.permute.xlu1 %2591  ;;  %v2986_v54 = vmul.f32 %v15485_v13, %v15484_v5  ;;  %v15488_v13 = vld [vmem:[#allocation69_spill] sm:$0xff] }
 0x295   : > { %v1373_v10 = vpack.c.bf16 %v1336_v57, %v1335_v60  ;;  %v9503_v15 = vpop.permute.xlu0 %2845  ;;  %v7545_v41 = vpop.f32.mrb[88].mxu1 }
 0x296   : > { %v1261_v43 = vadd.f32 %v9455_v44, %v7545_v41  ;;  %4672 = vrot.lane.b32.xlu1 %v2728_v20, %s8154_s28  ;;  %v1252_v19 = vpop.f32.mrb[89].mxu1  ;;  %v2729_v41 = vmul.f32 %v15486_v29, %v15482_v63  ;;  %v2987_v29 = vmul.f32 %v9161_v24, %v15490_v23 }
 0x297   : > { %v1253_v36 = vadd.f32 %v9455_v44, %v1252_v19  ;;  %4354 = vrot.lane.b32.xlu0 %v2985_v58, %s8153_s23  ;;  %v7546_v3 = vpop.f32.mrb[90].mxu1  ;;  %7619 = vmatprep.mubr.bf16.mxu1 %v1373_v10 }
 0x298   : > { %v9511_v51 = vpop.permute.xlu1 %2847  ;;  %v1264_v60 = vadd.f32 %v9455_v44, %v7546_v3  ;;  %v1255_v57 = vpop.f32.mrb[91].mxu1  ;;  %7620 = vmatmul.mubr.bf16.gmra.mrb[148].mxu1 %v1374_v45  ;;  %v1341_v19 = vmax.f32 %v1261_v43, 0.0  ;;  %v2730_v3 = vmul.f32 %v15488_v13, %v15484_v5  ;;  %v2731_v13 = vmul.f32 %v9150_v61, %v15490_v23 }
 0x299   : > { %v1256_v20 = vadd.f32 %v9455_v44, %v1255_v57  ;;  %v9517_v47 = vpop.permute.xlu0 %4326  ;;  %v1339_v10 = vmax.f32 %v1253_v36, 0.0 }
 0x29a   : > { %15487 = vst [vmem:[#allocation72_spill] sm:$0xff] %v9517_v47  ;;  %v1342_v58 = vmax.f32 %v1264_v60, 0.0  ;;  %4356 = vrot.lane.b32.xlu1 %v2986_v54, %s8153_s23 }
 0x29b   : > { %v1340_v35 = vmax.f32 %v1256_v20, 0.0  ;;  %4674 = vrot.lane.b32.xlu0 %v2729_v41, %s8154_s28  ;;  %v15492_v20 = vld [vmem:[#allocation45_spill] sm:$0xff] }
 0x29c   : > { %v1376_v50 = vpack.c.bf16 %v1342_v58, %v1341_v19  ;;  %v9523_v45 = vpop.permute.xlu1 %4328  ;;  %v2988_v19 = vmul.f32 %v9167_v49, %v15492_v20  ;;  %v2732_v49 = vmul.f32 %v9157_v16, %v15492_v20 }
 0x29d   : > { %15489 = vst [vmem:[#allocation73_spill] sm:$0xff] %v9523_v45  ;;  %v1375_v57 = vpack.c.bf16 %v1340_v35, %v1339_v10  ;;  %v9527_v63 = vpop.permute.xlu0 %4422  ;;  %v7549_v43 = vpop.f32.mrb[92].mxu1 }
 0x29e   : > { %15491 = vst [vmem:[#allocation66_spill] sm:$0xff] %v9527_v63  ;;  %v1277_v60 = vadd.f32 %v9455_v44, %v7549_v43  ;;  %4676 = vrot.lane.b32.xlu1 %v2730_v3, %s8154_s28  ;;  %v1268_v36 = vpop.f32.mrb[93].mxu1 }
 0x29f   : > { %v1269_v54 = vadd.f32 %v9455_v44, %v1268_v36  ;;  %4358 = vrot.lane.b32.xlu0 %v2987_v29, %s8153_s23  ;;  %v7550_v41 = vpop.f32.mrb[94].mxu1  ;;  %7623 = vmatprep.mubr.bf16.mxu1 %v1375_v57 }
 0x2a0   : > { %v1345_v58 = vmax.f32 %v1277_v60, 0.0  ;;  %v9535_v24 = vpop.permute.xlu1 %4424  ;;  %v1280_v35 = vadd.f32 %v9455_v44, %v7550_v41  ;;  %v1271_v10 = vpop.f32.mrb[95].mxu1  ;;  %7624 = vmatmul.mubr.bf16.gmra.mrb[152].mxu1 %v1376_v50  ;;  %v15496_v50 = vld [vmem:[#allocation46_spill] sm:$0xff] }
 0x2a1   : > { %15493 = vst [vmem:[#allocation69_spill] sm:$0xff] %v9535_v24  ;;  %v1343_v3 = vmax.f32 %v1269_v54, 0.0  ;;  %v1272_v43 = vadd.f32 %v9455_v44, %v1271_v10  ;;  %v9541_v36 = vpop.permute.xlu0 %4646  ;;  %v2989_v61 = vmul.f32 %v9179_v0, %v15496_v50  ;;  %v15498_v44 = vld [vmem:[#allocation47_spill] sm:$0xff]  ;;  %v2733_v16 = vmul.f32 %v9171_v32, %v15496_v50  ;;  %v9566_v0 = vld [vmem:[%s14853_s3 + $0x2] ss:$0 sm:$0xff] }
 0x2a2   : > { %15494 = vst [vmem:[#allocation110_spill] sm:$0xff] %v9541_v36  ;;  %v1346_v29 = vmax.f32 %v1280_v35, 0.0  ;;  %4360 = vrot.lane.b32.xlu1 %v2988_v19, %s8153_s23  ;;  %v2990_v19 = vmul.f32 %v9190_v2, %v15498_v44  ;;  %v2734_v2 = vmul.f32 %v9177_v46, %v15498_v44 }
 0x2a3   : > { %v1344_v57 = vmax.f32 %v1272_v43, 0.0  ;;  %4678 = vrot.lane.b32.xlu0 %v2731_v13, %s8154_s28  ;;  %v15500_v43 = vld [vmem:[#allocation48_spill] sm:$0xff] }
 0x2a4   : > { %v1378_v60 = vpack.c.bf16 %v1346_v29, %v1345_v58  ;;  %v9547_v41 = vpop.permute.xlu1 %4648  ;;  %v2991_v29 = vmul.f32 %v9246_v31, %v15500_v43 }
 0x2a5   : > { %15495 = vst [vmem:[#allocation111_spill] sm:$0xff] %v9547_v41  ;;  %v1377_v54 = vpack.c.bf16 %v1344_v57, %v1343_v3  ;;  %v9551_v24 = vpop.permute.xlu0 %4742 }
 0x2a6   : > { %15497 = vst [vmem:[#allocation112_spill] sm:$0xff] %v9551_v24  ;;  %4680 = vrot.lane.b32.xlu1 %v2732_v49, %s8154_s28 }
 0x2a7   : > { %4362 = vrot.lane.b32.xlu0 %v2989_v61, %s8153_s23  ;;  %7627 = vmatprep.mubr.bf16.mxu1 %v1377_v54 }
 0x2a8   : > { %v9557_v35 = vpop.permute.xlu1 %4744  ;;  %7628 = vmatmul.mubr.bf16.gmra.mrb[156].mxu1 %v1378_v60 }
 0x2a9   : > { %15499 = vst [vmem:[#allocation113_spill] sm:$0xff] %v9557_v35  ;;  %v9561_v58 = vpop.permute.xlu0 %2593 }
 0x2aa   : > { %4364 = vrot.lane.b32.xlu1 %v2990_v19, %s8153_s23  ;;  %v15501_v19 = vld [vmem:[#allocation49_spill] sm:$0xff] }
 0x2ab   : > { %4682 = vrot.lane.b32.xlu0 %v2733_v16, %s8154_s28  ;;  %v7569_v10 = vpop.f32.mrb[96].mxu1  ;;  %v2992_v16 = vmul.f32 %v9251_v14, %v15501_v19  ;;  %v2736_v14 = vmul.f32 %v9244_v33, %v15501_v19 }
 0x2ac   : > { %v9572_v13 = vpop.permute.xlu1 %2595  ;;  %v1492_v3 = vadd.f32 %v7569_v10, %v9566_v0  ;;  %v1483_v32 = vpop.f32.mrb[97].mxu1 }
 0x2ad   : > { %v1484_v57 = vadd.f32 %v9566_v0, %v1483_v32  ;;  %v9578_v49 = vpop.permute.xlu0 %2849  ;;  %v7570_v60 = vpop.f32.mrb[98].mxu1  ;;  %v2735_v32 = vmul.f32 %v9238_v30, %v15500_v43  ;;  %v15506_v30 = vld [vmem:[#allocation51_spill] sm:$0xff] }
 0x2ae   : > { %v1495_v61 = vadd.f32 %v7570_v60, %v9566_v0  ;;  %4684 = vrot.lane.b32.xlu1 %v2734_v2, %s8154_s28  ;;  %v1486_v54 = vpop.f32.mrb[99].mxu1  ;;  %v1740_v10 = vmax.f32 %v1492_v3, 0.0 }
 0x2af   : > { %v1487_v46 = vadd.f32 %v9566_v0, %v1486_v54  ;;  %4366 = vrot.lane.b32.xlu0 %v2991_v29, %s8153_s23  ;;  %v1738_v35 = vmax.f32 %v1484_v57, 0.0  ;;  %v15504_v29 = vld [vmem:[#allocation50_spill] sm:$0xff]  ;;  %v2738_v57 = vmul.f32 %v9304_v37, %v15506_v30 }
 0x2b0   : > { %v1741_v63 = vmax.f32 %v1495_v61, 0.0  ;;  %v9586_v31 = vpop.permute.xlu1 %2851  ;;  %v2993_v61 = vmul.f32 %v9306_v4, %v15504_v29  ;;  %v2737_v33 = vmul.f32 %v9298_v11, %v15504_v29 }
 0x2b1   : > { %v1739_v24 = vmax.f32 %v1487_v46, 0.0  ;;  %v9590_v60 = vpop.permute.xlu0 %4330 }
 0x2b2   : > { %15502 = vst [vmem:[#allocation114_spill] sm:$0xff] %v9590_v60  ;;  %v1803_v2 = vpack.c.bf16 %v1741_v63, %v1740_v10  ;;  %4368 = vrot.lane.b32.xlu1 %v2992_v16, %s8153_s23  ;;  %v2994_v63 = vmul.f32 %v9313_v7, %v15506_v30  ;;  %v15510_v10 = vld [vmem:[#allocation52_spill] sm:$0xff] }
 0x2b3   : > { %v1802_v54 = vpack.c.bf16 %v1739_v24, %v1738_v35  ;;  %4686 = vrot.lane.b32.xlu0 %v2735_v32, %s8154_s28  ;;  %v2995_v32 = vmul.f32 %v9370_v21, %v15510_v10 }
 0x2b4   : > { %v9596_v3 = vpop.permute.xlu1 %4332 }
 0x2b5   : > { %15503 = vst [vmem:[#allocation115_spill] sm:$0xff] %v9596_v3  ;;  %v9600_v44 = vpop.permute.xlu0 %4426  ;;  %7647 = vmatprep.mubr.bf16.mxu0 %v1802_v54 }
 0x2b6   : > { %15505 = vst [vmem:[#allocation116_spill] sm:$0xff] %v9600_v44  ;;  %4688 = vrot.lane.b32.xlu1 %v2736_v14, %s8154_s28  ;;  %7648 = vmatmul.mubr.bf16.vlgmr.msra.gmra.mrb[96].mxu0 %v1803_v2 }
 0x2b7   : > { %4370 = vrot.lane.b32.xlu0 %v2993_v61, %s8153_s23 }
 0x2b8   : > { %v9606_v24 = vpop.permute.xlu1 %4428 }
 0x2b9   : > { %15507 = vst [vmem:[#allocation117_spill] sm:$0xff] %v9606_v24  ;;  %v9610_v35 = vpop.permute.xlu0 %4650 }
 0x2ba   : > { %15508 = vst [vmem:[#allocation118_spill] sm:$0xff] %v9610_v35  ;;  %4372 = vrot.lane.b32.xlu1 %v2994_v63, %s8153_s23  ;;  %v15512_v63 = vld [vmem:[#allocation53_spill] sm:$0xff] }
 0x2bb   : > { %4690 = vrot.lane.b32.xlu0 %v2737_v33, %s8154_s28  ;;  %v7573_v4 = vpop.f32.mrb[100].mxu1  ;;  %v2996_v33 = vmul.f32 %v9375_v18, %v15512_v63  ;;  %v2740_v18 = vmul.f32 %v9368_v48, %v15512_v63 }
 0x2bc   : > { %v9616_v46 = vpop.permute.xlu1 %4652  ;;  %v1508_v16 = vadd.f32 %v7573_v4, %v9566_v0  ;;  %v1499_v7 = vpop.f32.mrb[101].mxu1 }
 0x2bd   : > { %15509 = vst [vmem:[#allocation119_spill] sm:$0xff] %v9616_v46  ;;  %v1500_v11 = vadd.f32 %v9566_v0, %v1499_v7  ;;  %v9622_v2 = vpop.permute.xlu0 %4746  ;;  %v7574_v54 = vpop.f32.mrb[102].mxu1  ;;  %v2739_v7 = vmul.f32 %v9362_v40, %v15510_v10  ;;  %v15515_v40 = vld [vmem:[#allocation55_spill] sm:$0xff] }
 0x2be   : > { %15511 = vst [vmem:[#allocation120_spill] sm:$0xff] %v9622_v2  ;;  %v1511_v14 = vadd.f32 %v7574_v54, %v9566_v0  ;;  %4692 = vrot.lane.b32.xlu1 %v2738_v57, %s8154_s28  ;;  %v1502_v61 = vpop.f32.mrb[103].mxu1  ;;  %v1744_v4 = vmax.f32 %v1508_v16, 0.0 }
 0x2bf   : > { %v1503_v37 = vadd.f32 %v9566_v0, %v1502_v61  ;;  %4374 = vrot.lane.b32.xlu0 %v2995_v32, %s8153_s23  ;;  %v1742_v44 = vmax.f32 %v1500_v11, 0.0  ;;  %v15514_v32 = vld [vmem:[#allocation54_spill] sm:$0xff]  ;;  %v2742_v11 = vmul.f32 %v9422_v62, %v15515_v40 }
 0x2c0   : > { %v1745_v24 = vmax.f32 %v1511_v14, 0.0  ;;  %v9630_v21 = vpop.permute.xlu1 %4748  ;;  %v2997_v14 = vmul.f32 %v9426_v22, %v15514_v32 }
 0x2c1   : > { %15513 = vst [vmem:[#allocation121_spill] sm:$0xff] %v9630_v21  ;;  %v1743_v3 = vmax.f32 %v1503_v37, 0.0  ;;  %v9634_v54 = vpop.permute.xlu0 %2597 }
 0x2c2   : > { %v1805_v57 = vpack.c.bf16 %v1745_v24, %v1744_v4  ;;  %4376 = vrot.lane.b32.xlu1 %v2996_v33, %s8153_s23  ;;  %v2741_v24 = vmul.f32 %v9418_v34, %v15514_v32 }
 0x2c3   : > { %v1804_v61 = vpack.c.bf16 %v1743_v3, %v1742_v44  ;;  %4694 = vrot.lane.b32.xlu0 %v2739_v7, %s8154_s28  ;;  %v2998_v44 = vmul.f32 %v9434_v6, %v15515_v40  ;;  %v15518_v6 = vld [vmem:[#allocation56_spill] sm:$0xff] }
 0x2c4   : > { %v9640_v16 = vpop.permute.xlu1 %2599  ;;  %v2999_v7 = vmul.f32 %v9503_v15, %v15518_v6 }
 0x2c5   : > { %v2854_v60 = vpop.permute.xlu0 %2853  ;;  %7651 = vmatprep.mubr.bf16.mxu0 %v1804_v61 }
 0x2c6   : > { %4696 = vrot.lane.b32.xlu1 %v2740_v18, %s8154_s28  ;;  %7652 = vmatmul.mubr.bf16.gmra.mrb[100].mxu0 %v1805_v57 }
 0x2c7   : > { %4378 = vrot.lane.b32.xlu0 %v2997_v14, %s8153_s23 }
 0x2c8   : > { %v2856_v3 = vpop.permute.xlu1 %2855 }
 0x2c9   : > { %v9650_v48 = vpop.permute.xlu0 %4334 }
 0x2ca   : > { %15516 = vst [vmem:[#allocation122_spill] sm:$0xff] %v9650_v48  ;;  %4380 = vrot.lane.b32.xlu1 %v2998_v44, %s8153_s23  ;;  %v15520_v44 = vld [vmem:[#allocation57_spill] sm:$0xff] }
 0x2cb   : > { %4698 = vrot.lane.b32.xlu0 %v2741_v24, %s8154_s28  ;;  %v7577_v22 = vpop.f32.mrb[104].mxu1  ;;  %v3000_v24 = vmul.f32 %v9511_v51, %v15520_v44  ;;  %v2744_v51 = vmul.f32 %v9499_v26, %v15520_v44  ;;  %v2745_v26 = vmul.f32 %v9561_v58, %v15417_v52 }
 0x2cc   : > { %v9656_v37 = vpop.permute.xlu1 %4336  ;;  %v1524_v33 = vadd.f32 %v7577_v22, %v9566_v0  ;;  %v1515_v4 = vpop.f32.mrb[105].mxu1 }
 0x2cd   : > { %15517 = vst [vmem:[#allocation123_spill] sm:$0xff] %v9656_v37  ;;  %v1516_v34 = vadd.f32 %v9566_v0, %v1515_v4  ;;  %v9662_v57 = vpop.permute.xlu0 %4430  ;;  %v7578_v61 = vpop.f32.mrb[106].mxu1  ;;  %v2743_v4 = vmul.f32 %v9493_v25, %v15518_v6  ;;  %v3002_v25 = vmul.f32 %v9586_v31, %v15420_v17  ;;  %v3003_v31 = vmul.f32 %v2854_v60, %v15431_v12 }
 0x2ce   : > { %15519 = vst [vmem:[#allocation124_spill] sm:$0xff] %v9662_v57  ;;  %v1527_v18 = vadd.f32 %v7578_v61, %v9566_v0  ;;  %4700 = vrot.lane.b32.xlu1 %v2742_v11, %s8154_s28  ;;  %v1518_v14 = vpop.f32.mrb[107].mxu1  ;;  %v1748_v22 = vmax.f32 %v1524_v33, 0.0  ;;  %v2747_v60 = vmul.f32 %v9634_v54, %v15431_v12 }
 0x2cf   : > { %v1519_v62 = vadd.f32 %v9566_v0, %v1518_v14  ;;  %4382 = vrot.lane.b32.xlu0 %v2999_v7, %s8153_s23  ;;  %v1746_v57 = vmax.f32 %v1516_v34, 0.0  ;;  %v3001_v7 = vmul.f32 %v9578_v49, %v15417_v52  ;;  %v2746_v34 = vmul.f32 %v9572_v13, %v15420_v17 }
 0x2d0   : > { %v1749_v37 = vmax.f32 %v1527_v18, 0.0  ;;  %v9670_v15 = vpop.permute.xlu1 %4432  ;;  %v3004_v13 = vmul.f32 %v2856_v3, %v15434_v9 }
 0x2d1   : > { %15521 = vst [vmem:[#allocation125_spill] sm:$0xff] %v9670_v15  ;;  %v1747_v48 = vmax.f32 %v1519_v62, 0.0  ;;  %v9674_v61 = vpop.permute.xlu0 %4654 }
 0x2d2   : > { %15522 = vst [vmem:[#allocation126_spill] sm:$0xff] %v9674_v61  ;;  %v1807_v11 = vpack.c.bf16 %v1749_v37, %v1748_v22  ;;  %4384 = vrot.lane.b32.xlu1 %v3000_v24, %s8153_s23 }
 0x2d3   : > { %v1806_v14 = vpack.c.bf16 %v1747_v48, %v1746_v57  ;;  %4702 = vrot.lane.b32.xlu0 %v2743_v4, %s8154_s28 }
 0x2d4   : > { %v9680_v33 = vpop.permute.xlu1 %4656 }
 0x2d5   : > { %15523 = vst [vmem:[#allocation127_spill] sm:$0xff] %v9680_v33  ;;  %v9684_v18 = vpop.permute.xlu0 %4750  ;;  %7655 = vmatprep.mubr.bf16.mxu0 %v1806_v14 }
 0x2d6   : > { %15524 = vst [vmem:[#allocation128_spill] sm:$0xff] %v9684_v18  ;;  %4704 = vrot.lane.b32.xlu1 %v2744_v51, %s8154_s28  ;;  %7656 = vmatmul.mubr.bf16.gmra.mrb[104].mxu0 %v1807_v11 }
 0x2d7   : > { %4386 = vrot.lane.b32.xlu0 %v3001_v7, %s8153_s23 }
 0x2d8   : > { %v9690_v48 = vpop.permute.xlu1 %4752 }
 0x2d9   : > { %15525 = vst [vmem:[#allocation129_spill] sm:$0xff] %v9690_v48  ;;  %v2602_v37 = vpop.permute.xlu0 %2601 }
 0x2da   : > { %4388 = vrot.lane.b32.xlu1 %v3002_v25, %s8153_s23 }
 0x2db   : > { %4706 = vrot.lane.b32.xlu0 %v2745_v26, %s8154_s28  ;;  %v7581_v49 = vpop.f32.mrb[108].mxu1 }
 0x2dc   : > { %v2604_v57 = vpop.permute.xlu1 %2603  ;;  %v1540_v62 = vadd.f32 %v7581_v49, %v9566_v0  ;;  %v1531_v24 = vpop.f32.mrb[109].mxu1 }
 0x2dd   : > { %v1532_v22 = vadd.f32 %v9566_v0, %v1531_v24  ;;  %v2858_v4 = vpop.permute.xlu0 %2857  ;;  %v7582_v11 = vpop.f32.mrb[110].mxu1 }
 0x2de   : > { %v1543_v58 = vadd.f32 %v7582_v11, %v9566_v0  ;;  %4708 = vrot.lane.b32.xlu1 %v2746_v34, %s8154_s28  ;;  %v1534_v14 = vpop.f32.mrb[111].mxu1  ;;  %v1752_v7 = vmax.f32 %v1540_v62, 0.0  ;;  %v3005_v62 = vmul.f32 %v2858_v4, %v15445_v38  ;;  %v2750_v4 = vmul.f32 %v2604_v57, %v15448_v55 }
 0x2df   : > { %v1535_v51 = vadd.f32 %v9566_v0, %v1534_v14  ;;  %4390 = vrot.lane.b32.xlu0 %v3003_v31, %s8153_s23  ;;  %v1750_v49 = vmax.f32 %v1532_v22, 0.0  ;;  %v2748_v31 = vmul.f32 %v9640_v16, %v15434_v9  ;;  %v2749_v14 = vmul.f32 %v2602_v37, %v15445_v38 }
 0x2e0   : > { %v1753_v25 = vmax.f32 %v1543_v58, 0.0  ;;  %v2860_v26 = vpop.permute.xlu1 %2859 }
 0x2e1   : > { %v1751_v24 = vmax.f32 %v1535_v51, 0.0  ;;  %v9708_v15 = vpop.permute.xlu0 %4338  ;;  %v3006_v54 = vmul.f32 %v2860_v26, %v15448_v55 }
 0x2e2   : > { %15526 = vst [vmem:[#allocation130_spill] sm:$0xff] %v9708_v15  ;;  %v1809_v11 = vpack.c.bf16 %v1753_v25, %v1752_v7  ;;  %4392 = vrot.lane.b32.xlu1 %v3004_v13, %s8153_s23 }
 0x2e3   : > { %v1808_v34 = vpack.c.bf16 %v1751_v24, %v1750_v49  ;;  %4710 = vrot.lane.b32.xlu0 %v2747_v60, %s8154_s28 }
 0x2e4   : > { %v9714_v3 = vpop.permute.xlu1 %4340 }
 0x2e5   : > { %15527 = vst [vmem:[#allocation131_spill] sm:$0xff] %v9714_v3  ;;  %v9717_v58 = vpop.permute.xlu0 %4658  ;;  %7659 = vmatprep.mubr.bf16.mxu0 %v1808_v34 }
 0x2e6   : > { %15528 = vst [vmem:[#allocation132_spill] sm:$0xff] %v9717_v58  ;;  %4712 = vrot.lane.b32.xlu1 %v2748_v31, %s8154_s28  ;;  %7660 = vmatmul.mubr.bf16.gmra.mrb[108].mxu0 %v1809_v11 }
 0x2e7   : > { %4394 = vrot.lane.b32.xlu0 %v3005_v62, %s8153_s23 }
 0x2e8   : > { %v9722_v22 = vpop.permute.xlu1 %4660 }
 0x2e9   : > { %15529 = vst [vmem:[#allocation133_spill] sm:$0xff] %v9722_v22  ;;  %v2606_v51 = vpop.permute.xlu0 %2605 }
 0x2ea   : > { %4396 = vrot.lane.b32.xlu1 %v3006_v54, %s8153_s23 }
 0x2eb   : > { %4714 = vrot.lane.b32.xlu0 %v2749_v14, %s8154_s28  ;;  %v7585_v16 = vpop.f32.mrb[112].mxu1 }
 0x2ec   : > { %v1556_v13 = vadd.f32 %v7585_v16, %v9566_v0  ;;  %v2608_v7 = vpop.permute.xlu1 %2607  ;;  %v1547_v25 = vpop.f32.mrb[113].mxu1 }
 0x2ed   : > { %v1548_v60 = vadd.f32 %v9566_v0, %v1547_v25  ;;  %v2862_v49 = vpop.permute.xlu0 %2861  ;;  %v7586_v26 = vpop.f32.mrb[114].mxu1  ;;  %v2751_v25 = vmul.f32 %v2606_v51, %v15453_v56 }
 0x2ee   : > { %v3007_v24 = vmul.f32 %v2862_v49, %v15453_v56  ;;  %v1559_v37 = vadd.f32 %v7586_v26, %v9566_v0  ;;  %4716 = vrot.lane.b32.xlu1 %v2750_v4, %s8154_s28  ;;  %v1550_v11 = vpop.f32.mrb[115].mxu1  ;;  %v1756_v31 = vmax.f32 %v1556_v13, 0.0  ;;  %v2752_v4 = vmul.f32 %v2608_v7, %v8849_v53 }
 0x2ef   : > { %v1551_v34 = vadd.f32 %v9566_v0, %v1550_v11  ;;  %v1754_v54 = vmax.f32 %v1548_v60, 0.0 }
 0x2f0   : > { %v1757_v62 = vmax.f32 %v1559_v37, 0.0  ;;  %v2864_v57 = vpop.permute.xlu1 %2863  ;;  %4398 = vrot.lane.b32.xlu0 %v3007_v24, %s8153_s23 }
 0x2f1   : > { %v1755_v14 = vmax.f32 %v1551_v34, 0.0  ;;  %v3008_v16 = vmul.f32 %v2864_v57, %v8849_v53 }
 0x2f2   : > { %v1811_v3 = vpack.c.bf16 %v1757_v62, %v1756_v31 }
 0x2f3   : > { %v1810_v49 = vpack.c.bf16 %v1755_v14, %v1754_v54  ;;  %4400 = vrot.lane.b32.xlu1 %v3008_v16, %s8153_s23 }
 0x2f4   : > { %4718 = vrot.lane.b32.xlu0 %v2751_v25, %s8154_s28 }
 0x2f5   : > { %7663 = vmatprep.mubr.bf16.mxu0 %v1810_v49 }
 0x2f6   : > { %7664 = vmatmul.mubr.bf16.gmra.mrb[112].mxu0 %v1811_v3 }
 0x2f7   : > { %4720 = vrot.lane.b32.xlu1 %v2752_v4, %s8154_s28 }
 0x2fb   : > { %v7589_v13 = vpop.f32.mrb[116].mxu1 }
 0x2fc   : > { %v1572_v60 = vadd.f32 %v7589_v13, %v9566_v0  ;;  %v1563_v26 = vpop.f32.mrb[117].mxu1 }
 0x2fd   : > { %v1564_v24 = vadd.f32 %v9566_v0, %v1563_v26  ;;  %v7590_v37 = vpop.f32.mrb[118].mxu1 }
 0x2fe   : > { %v1575_v51 = vadd.f32 %v7590_v37, %v9566_v0  ;;  %v1566_v11 = vpop.f32.mrb[119].mxu1  ;;  %v1760_v31 = vmax.f32 %v1572_v60, 0.0 }
 0x2ff   : > { %v1567_v34 = vadd.f32 %v9566_v0, %v1566_v11  ;;  %v1758_v57 = vmax.f32 %v1564_v24, 0.0 }
 0x300   : > { %v1761_v62 = vmax.f32 %v1575_v51, 0.0 }
 0x301   : > { %v1759_v7 = vmax.f32 %v1567_v34, 0.0 }
 0x302   : > { %v1813_v54 = vpack.c.bf16 %v1761_v62, %v1760_v31 }
 0x303   : > { %v1812_v3 = vpack.c.bf16 %v1759_v7, %v1758_v57 }
 0x305   : > { %7667 = vmatprep.mubr.bf16.mxu0 %v1812_v3 }
 0x306   : > { %7668 = vmatmul.mubr.bf16.gmra.mrb[116].mxu0 %v1813_v54 }
 0x30b   : > { %v7593_v14 = vpop.f32.mrb[120].mxu1 }
 0x30c   : > { %v1588_v16 = vadd.f32 %v7593_v14, %v9566_v0  ;;  %v1579_v25 = vpop.f32.mrb[121].mxu1 }
 0x30d   : > { %v1580_v49 = vadd.f32 %v9566_v0, %v1579_v25  ;;  %v7594_v4 = vpop.f32.mrb[122].mxu1 }
 0x30e   : > { %v1591_v13 = vadd.f32 %v7594_v4, %v9566_v0  ;;  %v1582_v26 = vpop.f32.mrb[123].mxu1  ;;  %v1764_v60 = vmax.f32 %v1588_v16, 0.0 }
 0x30f   : > { %v1583_v37 = vadd.f32 %v9566_v0, %v1582_v26  ;;  %v1762_v24 = vmax.f32 %v1580_v49, 0.0 }
 0x310   : > { %v1765_v51 = vmax.f32 %v1591_v13, 0.0 }
 0x311   : > { %v1763_v11 = vmax.f32 %v1583_v37, 0.0 }
 0x312   : > { %v1815_v34 = vpack.c.bf16 %v1765_v51, %v1764_v60 }
 0x313   : > { %v1814_v31 = vpack.c.bf16 %v1763_v11, %v1762_v24 }
 0x315   : > { %7671 = vmatprep.mubr.bf16.mxu0 %v1814_v31 }
 0x316   : > { %7672 = vmatmul.mubr.bf16.gmra.mrb[120].mxu0 %v1815_v34 }
 0x31b   : > { %v7597_v62 = vpop.f32.mrb[124].mxu1 }
 0x31c   : > { %v1604_v57 = vadd.f32 %v7597_v62, %v9566_v0  ;;  %v1595_v7 = vpop.f32.mrb[125].mxu1 }
 0x31d   : > { %v1596_v54 = vadd.f32 %v9566_v0, %v1595_v7  ;;  %v7598_v3 = vpop.f32.mrb[126].mxu1 }
 0x31e   : > { %v1607_v14 = vadd.f32 %v7598_v3, %v9566_v0  ;;  %v1598_v25 = vpop.f32.mrb[127].mxu1  ;;  %v1768_v16 = vmax.f32 %v1604_v57, 0.0 }
 0x31f   : > { %v1599_v4 = vadd.f32 %v9566_v0, %v1598_v25  ;;  %v1766_v49 = vmax.f32 %v1596_v54, 0.0 }
 0x320   : > { %v1769_v13 = vmax.f32 %v1607_v14, 0.0 }
 0x321   : > { %v1767_v26 = vmax.f32 %v1599_v4, 0.0 }
 0x322   : > { %v1817_v37 = vpack.c.bf16 %v1769_v13, %v1768_v16 }
 0x323   : > { %v1816_v60 = vpack.c.bf16 %v1767_v26, %v1766_v49 }
 0x325   : > { %7675 = vmatprep.mubr.bf16.mxu0 %v1816_v60 }
 0x326   : > { %7676 = vmatmul.mubr.bf16.gmra.mrb[124].mxu0 %v1817_v37 }
 0x32b   : > { %v7601_v51 = vpop.f32.mrb[128].mxu1 }
 0x32c   : > { %v1620_v24 = vadd.f32 %v7601_v51, %v9566_v0  ;;  %v1611_v11 = vpop.f32.mrb[129].mxu1 }
 0x32d   : > { %v1612_v34 = vadd.f32 %v9566_v0, %v1611_v11  ;;  %v7602_v31 = vpop.f32.mrb[130].mxu1 }
 0x32e   : > { %v1623_v62 = vadd.f32 %v7602_v31, %v9566_v0  ;;  %v1614_v7 = vpop.f32.mrb[131].mxu1  ;;  %v1772_v57 = vmax.f32 %v1620_v24, 0.0 }
 0x32f   : > { %v1615_v3 = vadd.f32 %v9566_v0, %v1614_v7  ;;  %v1770_v54 = vmax.f32 %v1612_v34, 0.0 }
 0x330   : > { %v1773_v14 = vmax.f32 %v1623_v62, 0.0 }
 0x331   : > { %v1771_v25 = vmax.f32 %v1615_v3, 0.0 }
 0x332   : > { %v1819_v4 = vpack.c.bf16 %v1773_v14, %v1772_v57 }
 0x333   : > { %v1818_v16 = vpack.c.bf16 %v1771_v25, %v1770_v54  ;;  %v9761_v54 = vpop.permute.xlu0 %4342 }
 0x334   : > { %15530 = vst [vmem:[#allocation134_spill] sm:$0xff] %v9761_v54 }
 0x335   : > { %7679 = vmatprep.mubr.bf16.mxu0 %v1818_v16 }
 0x336   : > { %7680 = vmatmul.mubr.bf16.gmra.mrb[128].mxu0 %v1819_v4 }
 0x33b   : > { %v7605_v13 = vpop.f32.mrb[132].mxu1 }
 0x33c   : > { %v1636_v49 = vadd.f32 %v7605_v13, %v9566_v0  ;;  %v1627_v26 = vpop.f32.mrb[133].mxu1 }
 0x33d   : > { %v1628_v37 = vadd.f32 %v9566_v0, %v1627_v26  ;;  %v7606_v60 = vpop.f32.mrb[134].mxu1  ;;  %v9765_v26 = vpop.permute.xlu1 %4344 }
 0x33e   : > { %v1639_v51 = vadd.f32 %v7606_v60, %v9566_v0  ;;  %v1630_v11 = vpop.f32.mrb[135].mxu1  ;;  %v1776_v24 = vmax.f32 %v1636_v49, 0.0  ;;  %15531 = vst [vmem:[#allocation135_spill] sm:$0xff] %v9765_v26 }
 0x33f   : > { %v1631_v31 = vadd.f32 %v9566_v0, %v1630_v11  ;;  %v1774_v34 = vmax.f32 %v1628_v37, 0.0 }
 0x340   : > { %v1777_v62 = vmax.f32 %v1639_v51, 0.0 }
 0x341   : > { %v1775_v7 = vmax.f32 %v1631_v31, 0.0 }
 0x342   : > { %v1821_v3 = vpack.c.bf16 %v1777_v62, %v1776_v24  ;;  %v9769_v62 = vpop.permute.xlu0 %4662 }
 0x343   : > { %v1820_v57 = vpack.c.bf16 %v1775_v7, %v1774_v34  ;;  %15532 = vst [vmem:[#allocation136_spill] sm:$0xff] %v9769_v62 }
 0x345   : > { %7683 = vmatprep.mubr.bf16.mxu0 %v1820_v57 }
 0x346   : > { %7684 = vmatmul.mubr.bf16.gmra.mrb[132].mxu0 %v1821_v3  ;;  %v9771_v3 = vpop.permute.xlu1 %4664  ;;  %v9773_v57 = vpop.permute.xlu0 %4346 }
 0x347   : > { %15533 = vst [vmem:[#allocation137_spill] sm:$0xff] %v9771_v3  ;;  %15534 = vst [vmem:[#allocation138_spill] sm:$0xff] %v9773_v57 }
 0x34b   : > { %v7609_v14 = vpop.f32.mrb[136].mxu1 }
 0x34c   : > { %v1652_v25 = vadd.f32 %v7609_v14, %v9566_v0  ;;  %v1643_v4 = vpop.f32.mrb[137].mxu1  ;;  %v9775_v14 = vpop.permute.xlu1 %4348 }
 0x34d   : > { %v1644_v16 = vadd.f32 %v9566_v0, %v1643_v4  ;;  %v7610_v13 = vpop.f32.mrb[138].mxu1  ;;  %15535 = vst [vmem:[#allocation139_spill] sm:$0xff] %v9775_v14 }
 0x34e   : > { %v1655_v49 = vadd.f32 %v7610_v13, %v9566_v0  ;;  %v1646_v60 = vpop.f32.mrb[139].mxu1  ;;  %v1780_v51 = vmax.f32 %v1652_v25, 0.0 }
 0x34f   : > { %v1647_v37 = vadd.f32 %v9566_v0, %v1646_v60  ;;  %v1778_v31 = vmax.f32 %v1644_v16, 0.0 }
 0x350   : > { %v1781_v11 = vmax.f32 %v1655_v49, 0.0  ;;  %v9779_v49 = vpop.permute.xlu0 %4666 }
 0x351   : > { %v1779_v24 = vmax.f32 %v1647_v37, 0.0  ;;  %15536 = vst [vmem:[#allocation140_spill] sm:$0xff] %v9779_v49 }
 0x352   : > { %v1823_v34 = vpack.c.bf16 %v1781_v11, %v1780_v51 }
 0x353   : > { %v1822_v7 = vpack.c.bf16 %v1779_v24, %v1778_v31  ;;  %v9783_v31 = vpop.permute.xlu1 %4668 }
 0x354   : > { %15537 = vst [vmem:[#allocation141_spill] sm:$0xff] %v9783_v31  ;;  %v9785_v54 = vpop.permute.xlu0 %4350 }
 0x355   : > { %7687 = vmatprep.mubr.bf16.mxu0 %v1822_v7  ;;  %15538 = vst [vmem:[#allocation142_spill] sm:$0xff] %v9785_v54 }
 0x356   : > { %7688 = vmatmul.mubr.bf16.gmra.mrb[136].mxu0 %v1823_v34 }
 0x357   : > { %v9789_v2 = vpop.permute.xlu1 %4352 }
 0x358   : > { %15539 = vst [vmem:[#allocation143_spill] sm:$0xff] %v9789_v2 }
 0x35b   : > { %v7613_v4 = vpop.f32.mrb[140].mxu1 }
 0x35c   : > { %v1668_v13 = vadd.f32 %v7613_v4, %v9566_v0  ;;  %v1659_v60 = vpop.f32.mrb[141].mxu1 }
 0x35d   : > { %v1660_v25 = vadd.f32 %v9566_v0, %v1659_v60  ;;  %v7614_v16 = vpop.f32.mrb[142].mxu1 }
 0x35e   : > { %v1671_v37 = vadd.f32 %v7614_v16, %v9566_v0  ;;  %v1662_v51 = vpop.f32.mrb[143].mxu1  ;;  %v1784_v24 = vmax.f32 %v1668_v13, 0.0 }
 0x35f   : > { %v1663_v11 = vadd.f32 %v9566_v0, %v1662_v51  ;;  %v1782_v7 = vmax.f32 %v1660_v25, 0.0 }
 0x360   : > { %v1785_v34 = vmax.f32 %v1671_v37, 0.0 }
 0x361   : > { %v1783_v14 = vmax.f32 %v1663_v11, 0.0 }
 0x362   : > { %v1825_v57 = vpack.c.bf16 %v1785_v34, %v1784_v24  ;;  %v9793_v34 = vpop.permute.xlu0 %4670 }
 0x363   : > { %v1824_v26 = vpack.c.bf16 %v1783_v14, %v1782_v7  ;;  %v7617_v4 = vpop.f32.mrb[144].mxu1  ;;  %15540 = vst [vmem:[#allocation144_spill] sm:$0xff] %v9793_v34 }
 0x364   : > { %v1684_v60 = vadd.f32 %v7617_v4, %v9566_v0  ;;  %v1675_v15 = vpop.f32.mrb[145].mxu1 }
 0x365   : > { %v1676_v21 = vadd.f32 %v9566_v0, %v1675_v15  ;;  %v7618_v16 = vpop.f32.mrb[146].mxu1  ;;  %7691 = vmatprep.mubr.bf16.mxu0 %v1824_v26  ;;  %v9795_v15 = vpop.permute.xlu1 %4672 }
 0x366   : > { %v1687_v51 = vadd.f32 %v7618_v16, %v9566_v0  ;;  %v1678_v13 = vpop.f32.mrb[147].mxu1  ;;  %7692 = vmatmul.mubr.bf16.gmra.mrb[140].mxu0 %v1825_v57  ;;  %v1788_v37 = vmax.f32 %v1684_v60, 0.0  ;;  %15541 = vst [vmem:[#allocation145_spill] sm:$0xff] %v9795_v15 }
 0x367   : > { %v1679_v25 = vadd.f32 %v9566_v0, %v1678_v13  ;;  %v1786_v11 = vmax.f32 %v1676_v21, 0.0 }
 0x368   : > { %v1789_v14 = vmax.f32 %v1687_v51, 0.0  ;;  %v9801_v51 = vpop.permute.xlu0 %4354 }
 0x369   : > { %v1787_v24 = vmax.f32 %v1679_v25, 0.0  ;;  %15542 = vst [vmem:[#allocation146_spill] sm:$0xff] %v9801_v51 }
 0x36a   : > { %v1827_v7 = vpack.c.bf16 %v1789_v14, %v1788_v37 }
 0x36b   : > { %v1826_v4 = vpack.c.bf16 %v1787_v24, %v1786_v11  ;;  %v7621_v54 = vpop.f32.mrb[148].mxu1  ;;  %v9803_v11 = vpop.permute.xlu1 %4356 }
 0x36c   : > { %v1700_v26 = vadd.f32 %v7621_v54, %v9566_v0  ;;  %v1691_v2 = vpop.f32.mrb[149].mxu1  ;;  %15543 = vst [vmem:[#allocation147_spill] sm:$0xff] %v9803_v11 }
 0x36d   : > { %v1692_v16 = vadd.f32 %v9566_v0, %v1691_v2  ;;  %v7622_v48 = vpop.f32.mrb[150].mxu1  ;;  %7695 = vmatprep.mubr.bf16.mxu0 %v1826_v4 }
 0x36e   : > { %v1703_v57 = vadd.f32 %v7622_v48, %v9566_v0  ;;  %v1694_v60 = vpop.f32.mrb[151].mxu1  ;;  %7696 = vmatmul.mubr.bf16.gmra.mrb[144].mxu0 %v1827_v7  ;;  %v1792_v13 = vmax.f32 %v1700_v26, 0.0  ;;  %v9807_v7 = vpop.permute.xlu0 %4674 }
 0x36f   : > { %v1695_v21 = vadd.f32 %v9566_v0, %v1694_v60  ;;  %v1790_v37 = vmax.f32 %v1692_v16, 0.0  ;;  %15544 = vst [vmem:[#allocation148_spill] sm:$0xff] %v9807_v7 }
 0x370   : > { %v1793_v25 = vmax.f32 %v1703_v57, 0.0  ;;  %v9811_v57 = vpop.permute.xlu1 %4676 }
 0x371   : > { %v1791_v14 = vmax.f32 %v1695_v21, 0.0  ;;  %15545 = vst [vmem:[#allocation149_spill] sm:$0xff] %v9811_v57 }
 0x372   : > { %v1829_v54 = vpack.c.bf16 %v1793_v25, %v1792_v13 }
 0x373   : > { %v1828_v24 = vpack.c.bf16 %v1791_v14, %v1790_v37  ;;  %v7625_v18 = vpop.f32.mrb[152].mxu1 }
 0x374   : > { %v1716_v2 = vadd.f32 %v7625_v18, %v9566_v0  ;;  %v1707_v4 = vpop.f32.mrb[153].mxu1 }
 0x375   : > { %v1708_v48 = vadd.f32 %v9566_v0, %v1707_v4  ;;  %v7626_v55 = vpop.f32.mrb[154].mxu1  ;;  %7699 = vmatprep.mubr.bf16.mxu0 %v1828_v24  ;;  %v9813_v4 = vpop.permute.xlu0 %4358 }
 0x376   : > { %v1719_v60 = vadd.f32 %v7626_v55, %v9566_v0  ;;  %v1710_v26 = vpop.f32.mrb[155].mxu1  ;;  %7700 = vmatmul.mubr.bf16.gmra.mrb[148].mxu0 %v1829_v54  ;;  %v1796_v21 = vmax.f32 %v1716_v2, 0.0  ;;  %15546 = vst [vmem:[#allocation150_spill] sm:$0xff] %v9813_v4  ;;  %v9817_v54 = vpop.permute.xlu1 %4360 }
 0x377   : > { %v1711_v16 = vadd.f32 %v9566_v0, %v1710_v26  ;;  %v1794_v25 = vmax.f32 %v1708_v48, 0.0  ;;  %15547 = vst [vmem:[#allocation151_spill] sm:$0xff] %v9817_v54 }
 0x378   : > { %v1797_v13 = vmax.f32 %v1719_v60, 0.0 }
 0x379   : > { %v1795_v37 = vmax.f32 %v1711_v16, 0.0 }
 0x37a   : > { %v1831_v18 = vpack.c.bf16 %v1797_v13, %v1796_v21  ;;  %v9823_v4 = vpop.permute.xlu1 %4680 }
 0x37b   : > { %v1830_v14 = vpack.c.bf16 %v1795_v37, %v1794_v25  ;;  %v7629_v11 = vpop.f32.mrb[156].mxu1  ;;  %v9821_v25 = vpop.permute.xlu0 %4678  ;;  %15549 = vst [vmem:[#allocation153_spill] sm:$0xff] %v9823_v4 }
 0x37c   : > { %v1732_v24 = vadd.f32 %v7629_v11, %v9566_v0  ;;  %v1723_v51 = vpop.f32.mrb[157].mxu1  ;;  %15548 = vst [vmem:[#allocation152_spill] sm:$0xff] %v9821_v25 }
 0x37d   : > { %v1724_v55 = vadd.f32 %v9566_v0, %v1723_v51  ;;  %v7630_v38 = vpop.f32.mrb[158].mxu1  ;;  %7703 = vmatprep.mubr.bf16.mxu0 %v1830_v14 }
 0x37e   : > { %v1735_v26 = vadd.f32 %v7630_v38, %v9566_v0  ;;  %v1726_v2 = vpop.f32.mrb[159].mxu1  ;;  %7704 = vmatmul.mubr.bf16.gmra.mrb[152].mxu0 %v1831_v18  ;;  %v1800_v60 = vmax.f32 %v1732_v24, 0.0  ;;  %v9828_v38 = vld [vmem:[%s14853_s3 + $0x3] ss:$0 sm:$0xff]  ;;  %v9832_v18 = vpop.permute.xlu1 %4364 }
 0x37f   : > { %v1727_v48 = vadd.f32 %v9566_v0, %v1726_v2  ;;  %v1798_v21 = vmax.f32 %v1724_v55, 0.0  ;;  %v9830_v51 = vpop.permute.xlu0 %4362  ;;  %15551 = vst [vmem:[#allocation155_spill] sm:$0xff] %v9832_v18 }
 0x380   : > { %v1801_v16 = vmax.f32 %v1735_v26, 0.0  ;;  %15550 = vst [vmem:[#allocation154_spill] sm:$0xff] %v9830_v51 }
 0x381   : > { %v1799_v13 = vmax.f32 %v1727_v48, 0.0 }
 0x382   : > { %v1833_v11 = vpack.c.bf16 %v1801_v16, %v1800_v60  ;;  %v9846_v60 = vpop.permute.xlu1 %4684 }
 0x383   : > { %v1832_v37 = vpack.c.bf16 %v1799_v13, %v1798_v21  ;;  %v9842_v48 = vpop.permute.xlu0 %4682  ;;  %15555 = vst [vmem:[#allocation159_spill] sm:$0xff] %v9846_v60 }
 0x384   : > { %15554 = vst [vmem:[#allocation158_spill] sm:$0xff] %v9842_v48 }
 0x385   : > { %7707 = vmatprep.mubr.bf16.mxu0 %v1832_v37 }
 0x386   : > { %7708 = vmatmul.mubr.bf16.gmra.mrb[156].mxu0 %v1833_v11  ;;  %v9856_v21 = vpop.permute.xlu1 %4368 }
 0x387   : > { %v9852_v16 = vpop.permute.xlu0 %4366  ;;  %15557 = vst [vmem:[#allocation161_spill] sm:$0xff] %v9856_v21 }
 0x388   : > { %15556 = vst [vmem:[#allocation160_spill] sm:$0xff] %v9852_v16 }
 0x389   : > { %v7649_v0 = vpop.f32.mrb[96].mxu0 }
 0x38a   : > { %v9835_v14 = vadd.f32 %v7649_v0, %v9828_v38  ;;  %v1933_v24 = vpop.f32.mrb[97].mxu0  ;;  %v9872_v16 = vpop.permute.xlu1 %4688 }
 0x38b   : > { %v7650_v55 = vpop.f32.mrb[98].mxu0  ;;  %v9859_v13 = vadd.f32 %v9828_v38, %v1933_v24  ;;  %v9868_v0 = vpop.permute.xlu0 %4686  ;;  %15561 = vst [vmem:[#allocation165_spill] sm:$0xff] %v9872_v16 }
 0x38c   : > { %15552 = vst [vmem:[#allocation156_spill] sm:$0xff] %v9835_v14  ;;  %v9838_v26 = vadd.f32 %v7650_v55, %v9828_v38  ;;  %3093 = vrot.lane.b32.xlu0 %v9835_v14, %s8155_s17  ;;  %v1936_v2 = vpop.f32.mrb[99].mxu0  ;;  %15560 = vst [vmem:[#allocation164_spill] sm:$0xff] %v9868_v0 }
 0x38d   : > { %15558 = vst [vmem:[#allocation162_spill] sm:$0xff] %v9859_v13  ;;  %v9864_v11 = vadd.f32 %v9828_v38, %v1936_v2 }
 0x38e   : > { %15553 = vst [vmem:[#allocation157_spill] sm:$0xff] %v9838_v26  ;;  %3095 = vrot.lane.b32.xlu1 %v9838_v26, %s8155_s17  ;;  %v9882_v18 = vpop.permute.xlu1 %4372 }
 0x38f   : > { %15559 = vst [vmem:[#allocation163_spill] sm:$0xff] %v9864_v11  ;;  %v9878_v2 = vpop.permute.xlu0 %4370  ;;  %15563 = vst [vmem:[#allocation167_spill] sm:$0xff] %v9882_v18 }
 0x390   : > { %3285 = vrot.lane.b32.xlu0 %v9835_v14, %s8156_s18  ;;  %15562 = vst [vmem:[#allocation166_spill] sm:$0xff] %v9878_v2 }
 0x392   : > { %3287 = vrot.lane.b32.xlu1 %v9838_v26, %s8156_s18  ;;  %v9898_v2 = vpop.permute.xlu1 %4692 }
 0x393   : > { %v9894_v53 = vpop.permute.xlu0 %4690  ;;  %15567 = vst [vmem:[#allocation171_spill] sm:$0xff] %v9898_v2 }
 0x394   : > { %3606 = vrot.lane.b32.xlu0 %v9835_v14, %s8157_s20  ;;  %15566 = vst [vmem:[#allocation170_spill] sm:$0xff] %v9894_v53 }
 0x396   : > { %3608 = vrot.lane.b32.xlu1 %v9838_v26, %s8157_s20  ;;  %v9908_v52 = vpop.permute.xlu1 %4376 }
 0x397   : > { %v9904_v56 = vpop.permute.xlu0 %4374  ;;  %15569 = vst [vmem:[#allocation173_spill] sm:$0xff] %v9908_v52 }
 0x398   : > { %3089 = vrot.lane.b32.xlu0 %v9859_v13, %s8155_s17  ;;  %15568 = vst [vmem:[#allocation172_spill] sm:$0xff] %v9904_v56 }
 0x399   : > { %v7653_v37 = vpop.f32.mrb[100].mxu0 }
 0x39a   : > { %3091 = vrot.lane.b32.xlu1 %v9864_v11, %s8155_s17  ;;  %v1949_v55 = vpop.f32.mrb[101].mxu0  ;;  %v9885_v51 = vadd.f32 %v7653_v37, %v9828_v38  ;;  %v9924_v56 = vpop.permute.xlu1 %4696 }
 0x39b   : > { %v7654_v21 = vpop.f32.mrb[102].mxu0  ;;  %v9911_v9 = vadd.f32 %v9828_v38, %v1949_v55  ;;  %v9920_v40 = vpop.permute.xlu0 %4694  ;;  %15573 = vst [vmem:[#allocation177_spill] sm:$0xff] %v9924_v56 }
 0x39c   : > { %3281 = vrot.lane.b32.xlu0 %v9859_v13, %s8156_s18  ;;  %v1952_v24 = vpop.f32.mrb[103].mxu0  ;;  %15564 = vst [vmem:[#allocation168_spill] sm:$0xff] %v9885_v51  ;;  %v9890_v54 = vadd.f32 %v7654_v21, %v9828_v38  ;;  %15572 = vst [vmem:[#allocation176_spill] sm:$0xff] %v9920_v40 }
 0x39d   : > { %15570 = vst [vmem:[#allocation174_spill] sm:$0xff] %v9911_v9  ;;  %v9916_v12 = vadd.f32 %v9828_v38, %v1952_v24 }
 0x39e   : > { %3283 = vrot.lane.b32.xlu1 %v9864_v11, %s8156_s18  ;;  %15565 = vst [vmem:[#allocation169_spill] sm:$0xff] %v9890_v54  ;;  %v9934_v52 = vpop.permute.xlu1 %4380 }
 0x39f   : > { %15571 = vst [vmem:[#allocation175_spill] sm:$0xff] %v9916_v12  ;;  %v9930_v55 = vpop.permute.xlu0 %4378  ;;  %15575 = vst [vmem:[#allocation179_spill] sm:$0xff] %v9934_v52 }
 0x3a0   : > { %3602 = vrot.lane.b32.xlu0 %v9859_v13, %s8157_s20  ;;  %15574 = vst [vmem:[#allocation178_spill] sm:$0xff] %v9930_v55 }
 0x3a2   : > { %3604 = vrot.lane.b32.xlu1 %v9864_v11, %s8157_s20  ;;  %v9950_v52 = vpop.permute.xlu1 %4700 }
 0x3a3   : > { %v9946_v53 = vpop.permute.xlu0 %4698  ;;  %15579 = vst [vmem:[#allocation183_spill] sm:$0xff] %v9950_v52 }
 0x3a4   : > { %3101 = vrot.lane.b32.xlu0 %v9885_v51, %s8155_s17  ;;  %15578 = vst [vmem:[#allocation182_spill] sm:$0xff] %v9946_v53 }
 0x3a6   : > { %3103 = vrot.lane.b32.xlu1 %v9890_v54, %s8155_s17 }
 0x3a8   : > { %3293 = vrot.lane.b32.xlu0 %v9885_v51, %s8156_s18 }
 0x3a9   : > { %v7657_v37 = vpop.f32.mrb[104].mxu0 }
 0x3aa   : > { %3295 = vrot.lane.b32.xlu1 %v9890_v54, %s8156_s18  ;;  %v1965_v18 = vpop.f32.mrb[105].mxu0  ;;  %v9937_v32 = vadd.f32 %v7657_v37, %v9828_v38  ;;  %v9956_v37 = vpop.permute.xlu0 %4382 }
 0x3ab   : > { %v7658_v21 = vpop.f32.mrb[106].mxu0  ;;  %15580 = vst [vmem:[#allocation184_spill] sm:$0xff] %v9956_v37  ;;  %v9963_v53 = vadd.f32 %v9828_v38, %v1965_v18 }
 0x3ac   : > { %3614 = vrot.lane.b32.xlu0 %v9885_v51, %s8157_s20  ;;  %v1968_v17 = vpop.f32.mrb[107].mxu0  ;;  %15576 = vst [vmem:[#allocation180_spill] sm:$0xff] %v9937_v32  ;;  %v9942_v2 = vadd.f32 %v7658_v21, %v9828_v38  ;;  %v9960_v21 = vpop.permute.xlu1 %4384 }
 0x3ad   : > { %15581 = vst [vmem:[#allocation185_spill] sm:$0xff] %v9960_v21  ;;  %15582 = vst [vmem:[#allocation186_spill] sm:$0xff] %v9963_v53  ;;  %v9968_v52 = vadd.f32 %v9828_v38, %v1968_v17 }
 0x3ae   : > { %3616 = vrot.lane.b32.xlu1 %v9890_v54, %s8157_s20  ;;  %15577 = vst [vmem:[#allocation181_spill] sm:$0xff] %v9942_v2  ;;  %v9972_v56 = vpop.permute.xlu0 %4702 }
 0x3af   : > { %15583 = vst [vmem:[#allocation187_spill] sm:$0xff] %v9968_v52  ;;  %15584 = vst [vmem:[#allocation188_spill] sm:$0xff] %v9972_v56 }
 0x3b0   : > { %3097 = vrot.lane.b32.xlu0 %v9911_v9, %s8155_s17  ;;  %v9976_v29 = vpop.permute.xlu1 %4704 }
 0x3b1   : > { %15585 = vst [vmem:[#allocation189_spill] sm:$0xff] %v9976_v29 }
 0x3b2   : > { %3099 = vrot.lane.b32.xlu1 %v9916_v12, %s8155_s17  ;;  %v9982_v17 = vpop.permute.xlu0 %4386 }
 0x3b3   : > { %15586 = vst [vmem:[#allocation190_spill] sm:$0xff] %v9982_v17 }
 0x3b4   : > { %3289 = vrot.lane.b32.xlu0 %v9911_v9, %s8156_s18  ;;  %v9986_v56 = vpop.permute.xlu1 %4388 }
 0x3b5   : > { %15587 = vst [vmem:[#allocation191_spill] sm:$0xff] %v9986_v56 }
 0x3b6   : > { %3291 = vrot.lane.b32.xlu1 %v9916_v12, %s8156_s18  ;;  %v9998_v63 = vpop.permute.xlu0 %4706 }
 0x3b7   : > { %15590 = vst [vmem:[#allocation194_spill] sm:$0xff] %v9998_v63 }
 0x3b8   : > { %3610 = vrot.lane.b32.xlu0 %v9911_v9, %s8157_s20  ;;  %v10002_v17 = vpop.permute.xlu1 %4708 }
 0x3b9   : > { %v7661_v24 = vpop.f32.mrb[108].mxu0  ;;  %15591 = vst [vmem:[#allocation195_spill] sm:$0xff] %v10002_v17 }
 0x3ba   : > { %3612 = vrot.lane.b32.xlu1 %v9916_v12, %s8157_s20  ;;  %v1981_v44 = vpop.f32.mrb[109].mxu0  ;;  %v9989_v40 = vadd.f32 %v7661_v24, %v9828_v38  ;;  %v10010_v10 = vpop.permute.xlu0 %4390 }
 0x3bb   : > { %v7662_v6 = vpop.f32.mrb[110].mxu0  ;;  %15592 = vst [vmem:[#allocation196_spill] sm:$0xff] %v10010_v10  ;;  %v10019_v17 = vadd.f32 %v9828_v38, %v1981_v44 }
 0x3bc   : > { %3109 = vrot.lane.b32.xlu0 %v9937_v32, %s8155_s17  ;;  %v1984_v55 = vpop.f32.mrb[111].mxu0  ;;  %15588 = vst [vmem:[#allocation192_spill] sm:$0xff] %v9989_v40  ;;  %v9994_v29 = vadd.f32 %v7662_v6, %v9828_v38  ;;  %v10016_v60 = vpop.permute.xlu1 %4392 }
 0x3bd   : > { %15593 = vst [vmem:[#allocation197_spill] sm:$0xff] %v10016_v60  ;;  %15594 = vst [vmem:[#allocation198_spill] sm:$0xff] %v10019_v17  ;;  %v10024_v48 = vadd.f32 %v9828_v38, %v1984_v55 }
 0x3be   : > { %3111 = vrot.lane.b32.xlu1 %v9942_v2, %s8155_s17  ;;  %15589 = vst [vmem:[#allocation193_spill] sm:$0xff] %v9994_v29  ;;  %v10028_v10 = vpop.permute.xlu0 %4710 }
 0x3bf   : > { %15595 = vst [vmem:[#allocation199_spill] sm:$0xff] %v10024_v48  ;;  %15596 = vst [vmem:[#allocation200_spill] sm:$0xff] %v10028_v10 }
 0x3c0   : > { %3301 = vrot.lane.b32.xlu0 %v9937_v32, %s8156_s18  ;;  %v10032_v16 = vpop.permute.xlu1 %4712 }
 0x3c1   : > { %15597 = vst [vmem:[#allocation201_spill] sm:$0xff] %v10032_v16 }
 0x3c2   : > { %3303 = vrot.lane.b32.xlu1 %v9942_v2, %s8156_s18  ;;  %v10038_v44 = vpop.permute.xlu0 %4394 }
 0x3c3   : > { %15598 = vst [vmem:[#allocation202_spill] sm:$0xff] %v10038_v44 }
 0x3c4   : > { %3622 = vrot.lane.b32.xlu0 %v9937_v32, %s8157_s20  ;;  %v10044_v60 = vpop.permute.xlu1 %4396 }
 0x3c5   : > { %15599 = vst [vmem:[#allocation203_spill] sm:$0xff] %v10044_v60 }
 0x3c6   : > { %3624 = vrot.lane.b32.xlu1 %v9942_v2, %s8157_s20  ;;  %v10062_v19 = vpop.permute.xlu0 %4714 }
 0x3c7   : > { %15602 = vst [vmem:[#allocation206_spill] sm:$0xff] %v10062_v19 }
 0x3c8   : > { %3105 = vrot.lane.b32.xlu0 %v9963_v53, %s8155_s17 }
 0x3c9   : > { %v7665_v30 = vpop.f32.mrb[112].mxu0 }
 0x3ca   : > { %3107 = vrot.lane.b32.xlu1 %v9968_v52, %s8155_s17  ;;  %v1997_v37 = vpop.f32.mrb[113].mxu0  ;;  %v10047_v10 = vadd.f32 %v7665_v30, %v9828_v38  ;;  %v10066_v30 = vpop.permute.xlu1 %4716 }
 0x3cb   : > { %v7666_v21 = vpop.f32.mrb[114].mxu0  ;;  %15603 = vst [vmem:[#allocation207_spill] sm:$0xff] %v10066_v30  ;;  %v10079_v19 = vadd.f32 %v9828_v38, %v1997_v37 }
 0x3cc   : > { %3297 = vrot.lane.b32.xlu0 %v9963_v53, %s8156_s18  ;;  %v2000_v18 = vpop.f32.mrb[115].mxu0  ;;  %15600 = vst [vmem:[#allocation204_spill] sm:$0xff] %v10047_v10  ;;  %v10056_v0 = vadd.f32 %v7666_v21, %v9828_v38  ;;  %v10072_v21 = vpop.permute.xlu0 %4398 }
 0x3cd   : > { %15604 = vst [vmem:[#allocation208_spill] sm:$0xff] %v10072_v21  ;;  %15606 = vst [vmem:[#allocation210_spill] sm:$0xff] %v10079_v19  ;;  %v10084_v30 = vadd.f32 %v9828_v38, %v2000_v18 }
 0x3ce   : > { %3299 = vrot.lane.b32.xlu1 %v9968_v52, %s8156_s18  ;;  %15601 = vst [vmem:[#allocation205_spill] sm:$0xff] %v10056_v0  ;;  %v10076_v60 = vpop.permute.xlu1 %4400 }
 0x3cf   : > { %15605 = vst [vmem:[#allocation209_spill] sm:$0xff] %v10076_v60  ;;  %15607 = vst [vmem:[#allocation211_spill] sm:$0xff] %v10084_v30 }
 0x3d0   : > { %3618 = vrot.lane.b32.xlu0 %v9963_v53, %s8157_s20  ;;  %v10090_v21 = vpop.permute.xlu0 %4718 }
 0x3d1   : > { %15608 = vst [vmem:[#allocation212_spill] sm:$0xff] %v10090_v21 }
 0x3d2   : > { %3620 = vrot.lane.b32.xlu1 %v9968_v52, %s8157_s20  ;;  %v10098_v43 = vpop.permute.xlu1 %4720 }
 0x3d3   : > { %15609 = vst [vmem:[#allocation213_spill] sm:$0xff] %v10098_v43 }
 0x3d4   : > { %3117 = vrot.lane.b32.xlu0 %v9989_v40, %s8155_s17 }
 0x3d6   : > { %3119 = vrot.lane.b32.xlu1 %v9994_v29, %s8155_s17 }
 0x3d8   : > { %3309 = vrot.lane.b32.xlu0 %v9989_v40, %s8156_s18 }
 0x3d9   : > { %v7669_v24 = vpop.f32.mrb[116].mxu0 }
 0x3da   : > { %3311 = vrot.lane.b32.xlu1 %v9994_v29, %s8156_s18  ;;  %v10008_v56 = vpop.f32.mrb[117].mxu0  ;;  %v10113_v5 = vadd.f32 %v7669_v24, %v9828_v38 }
 0x3db   : > { %v7670_v6 = vpop.f32.mrb[118].mxu0  ;;  %v10152_v22 = vadd.f32 %v9828_v38, %v10008_v56 }
 0x3dc   : > { %3630 = vrot.lane.b32.xlu0 %v9989_v40, %s8157_s20  ;;  %v10014_v63 = vpop.f32.mrb[119].mxu0  ;;  %15610 = vst [vmem:[#allocation214_spill] sm:$0xff] %v10113_v5  ;;  %v10120_v43 = vadd.f32 %v7670_v6, %v9828_v38 }
 0x3dd   : > { %15614 = vst [vmem:[#allocation218_spill] sm:$0xff] %v10152_v22  ;;  %v10160_v3 = vadd.f32 %v9828_v38, %v10014_v63 }
 0x3de   : > { %3632 = vrot.lane.b32.xlu1 %v9994_v29, %s8157_s20  ;;  %15611 = vst [vmem:[#allocation215_spill] sm:$0xff] %v10120_v43 }
 0x3df   : > { %15615 = vst [vmem:[#allocation219_spill] sm:$0xff] %v10160_v3 }
 0x3e0   : > { %3113 = vrot.lane.b32.xlu0 %v10019_v17, %s8155_s17 }
 0x3e2   : > { %3115 = vrot.lane.b32.xlu1 %v10024_v48, %s8155_s17 }
 0x3e4   : > { %3305 = vrot.lane.b32.xlu0 %v10019_v17, %s8156_s18 }
 0x3e6   : > { %3307 = vrot.lane.b32.xlu1 %v10024_v48, %s8156_s18 }
 0x3e8   : > { %3626 = vrot.lane.b32.xlu0 %v10019_v17, %s8157_s20 }
 0x3e9   : > { %v10042_v55 = vpop.f32.mrb[120].mxu0 }
 0x3ea   : > { %3628 = vrot.lane.b32.xlu1 %v10024_v48, %s8157_s20  ;;  %v10051_v16 = vpop.f32.mrb[121].mxu0  ;;  %v10186_v61 = vadd.f32 %v10042_v55, %v9828_v38 }
 0x3eb   : > { %v10053_v50 = vpop.f32.mrb[122].mxu0 }
 0x3ec   : > { %3125 = vrot.lane.b32.xlu0 %v10047_v10, %s8155_s17  ;;  %v10060_v44 = vpop.f32.mrb[123].mxu0  ;;  %15618 = vst [vmem:[#allocation222_spill] sm:$0xff] %v10186_v61  ;;  %v10198_v41 = vadd.f32 %v10053_v50, %v9828_v38 }
 0x3ee   : > { %3127 = vrot.lane.b32.xlu1 %v10056_v0, %s8155_s17  ;;  %15619 = vst [vmem:[#allocation223_spill] sm:$0xff] %v10198_v41 }
 0x3f0   : > { %3317 = vrot.lane.b32.xlu0 %v10047_v10, %s8156_s18 }
 0x3f2   : > { %3319 = vrot.lane.b32.xlu1 %v10056_v0, %s8156_s18 }
 0x3f4   : > { %3638 = vrot.lane.b32.xlu0 %v10047_v10, %s8157_s20 }
 0x3f6   : > { %3640 = vrot.lane.b32.xlu1 %v10056_v0, %s8157_s20 }
 0x3f8   : > { %3121 = vrot.lane.b32.xlu0 %v10079_v19, %s8155_s17 }
 0x3f9   : > { %v10088_v57 = vpop.f32.mrb[124].mxu0 }
 0x3fa   : > { %3123 = vrot.lane.b32.xlu1 %v10084_v30, %s8155_s17  ;;  %v10094_v60 = vpop.f32.mrb[125].mxu0 }
 0x3fb   : > { %v10096_v37 = vpop.f32.mrb[126].mxu0 }
 0x3fc   : > { %3313 = vrot.lane.b32.xlu0 %v10079_v19, %s8156_s18  ;;  %v10102_v18 = vpop.f32.mrb[127].mxu0 }
 0x3fe   : > { %v10104_v7 = vpop.permute.xlu0 %3093  ;;  %3315 = vrot.lane.b32.xlu1 %v10084_v30, %s8156_s18 }
 0x400   : > { %v10108_v21 = vpop.permute.xlu1 %3095  ;;  %3634 = vrot.lane.b32.xlu0 %v10079_v19, %s8157_s20  ;;  %v10312_v19 = vadd.f32 %v9828_v38, %v10102_v18 }
 0x402   : > { %v10115_v4 = vpop.permute.xlu0 %3285  ;;  %3636 = vrot.lane.b32.xlu1 %v10084_v30, %s8157_s20  ;;  %15632 = vst [vmem:[#allocation236_spill] sm:$0xff] %v10312_v19 }
 0x404   : > { %v10122_v25 = vpop.permute.xlu1 %3287  ;;  %3133 = vrot.lane.b32.xlu0 %v10113_v5, %s8155_s17 }
 0x406   : > { %v10126_v20 = vpop.permute.xlu0 %3606  ;;  %3135 = vrot.lane.b32.xlu1 %v10120_v43, %s8155_s17 }
 0x407   : > { %15612 = vst [vmem:[#allocation216_spill] sm:$0xff] %v10126_v20 }
 0x408   : > { %v10130_v24 = vpop.permute.xlu1 %3608  ;;  %3325 = vrot.lane.b32.xlu0 %v10113_v5, %s8156_s18 }
 0x409   : > { %15613 = vst [vmem:[#allocation217_spill] sm:$0xff] %v10130_v24  ;;  %v10134_v23 = vpop.f32.mrb[128].mxu0 }
 0x40a   : > { %v10136_v31 = vpop.permute.xlu0 %3089  ;;  %3327 = vrot.lane.b32.xlu1 %v10120_v43, %s8156_s18  ;;  %v10140_v6 = vpop.f32.mrb[129].mxu0 }
 0x40b   : > { %v10142_v49 = vpop.f32.mrb[130].mxu0 }
 0x40c   : > { %v10144_v15 = vpop.permute.xlu1 %3091  ;;  %3646 = vrot.lane.b32.xlu0 %v10113_v5, %s8157_s20  ;;  %v10148_v34 = vpop.f32.mrb[131].mxu0  ;;  %v10304_v5 = vadd.f32 %v9828_v38, %v10094_v60 }
 0x40e   : > { %v10154_v58 = vpop.permute.xlu0 %3281  ;;  %3648 = vrot.lane.b32.xlu1 %v10120_v43, %s8157_s20  ;;  %15631 = vst [vmem:[#allocation235_spill] sm:$0xff] %v10304_v5 }
 0x410   : > { %v10162_v62 = vpop.permute.xlu1 %3283  ;;  %3129 = vrot.lane.b32.xlu0 %v10152_v22, %s8155_s17 }
 0x412   : > { %v10166_v46 = vpop.permute.xlu0 %3602  ;;  %3131 = vrot.lane.b32.xlu1 %v10160_v3, %s8155_s17 }
 0x413   : > { %15616 = vst [vmem:[#allocation220_spill] sm:$0xff] %v10166_v46 }
 0x414   : > { %v10170_v56 = vpop.permute.xlu1 %3604  ;;  %3321 = vrot.lane.b32.xlu0 %v10152_v22, %s8156_s18 }
 0x415   : > { %15617 = vst [vmem:[#allocation221_spill] sm:$0xff] %v10170_v56 }
 0x416   : > { %v10174_v35 = vpop.permute.xlu0 %3101  ;;  %3323 = vrot.lane.b32.xlu1 %v10160_v3, %s8156_s18 }
 0x418   : > { %v10178_v63 = vpop.permute.xlu1 %3103  ;;  %3642 = vrot.lane.b32.xlu0 %v10152_v22, %s8157_s20 }
 0x419   : > { %v10182_v33 = vpop.f32.mrb[132].mxu0 }
 0x41a   : > { %v10188_v8 = vpop.permute.xlu0 %3293  ;;  %3644 = vrot.lane.b32.xlu1 %v10160_v3, %s8157_s20  ;;  %v10192_v45 = vpop.f32.mrb[133].mxu0 }
 0x41b   : > { %v10194_v47 = vpop.f32.mrb[134].mxu0 }
 0x41c   : > { %v10200_v36 = vpop.permute.xlu1 %3295  ;;  %3141 = vrot.lane.b32.xlu0 %v10186_v61, %s8155_s17  ;;  %v10204_v55 = vpop.f32.mrb[135].mxu0 }
 0x41e   : > { %v10206_v1 = vpop.permute.xlu0 %3614  ;;  %3143 = vrot.lane.b32.xlu1 %v10198_v41, %s8155_s17 }
 0x41f   : > { %15620 = vst [vmem:[#allocation224_spill] sm:$0xff] %v10206_v1  ;;  %v10224_v1 = vadd.f32 %v9828_v38, %v10051_v16 }
 0x420   : > { %v10210_v59 = vpop.permute.xlu1 %3616  ;;  %3333 = vrot.lane.b32.xlu0 %v10186_v61, %s8156_s18 }
 0x421   : > { %15621 = vst [vmem:[#allocation225_spill] sm:$0xff] %v10210_v59  ;;  %15622 = vst [vmem:[#allocation226_spill] sm:$0xff] %v10224_v1  ;;  %v10232_v59 = vadd.f32 %v9828_v38, %v10060_v44 }
 0x422   : > { %v10214_v39 = vpop.permute.xlu0 %3097  ;;  %3335 = vrot.lane.b32.xlu1 %v10198_v41, %s8156_s18 }
 0x423   : > { %15623 = vst [vmem:[#allocation227_spill] sm:$0xff] %v10232_v59 }
 0x424   : > { %v10218_v50 = vpop.permute.xlu1 %3099  ;;  %3654 = vrot.lane.b32.xlu0 %v10186_v61, %s8157_s20  ;;  %v10272_v61 = vadd.f32 %v10096_v37, %v9828_v38 }
 0x426   : > { %v10226_v42 = vpop.permute.xlu0 %3289  ;;  %3656 = vrot.lane.b32.xlu1 %v10198_v41, %s8157_s20  ;;  %v10264_v41 = vadd.f32 %v10088_v57, %v9828_v38  ;;  %15627 = vst [vmem:[#allocation231_spill] sm:$0xff] %v10272_v61 }
 0x428   : > { %v10234_v56 = vpop.permute.xlu1 %3291  ;;  %3137 = vrot.lane.b32.xlu0 %v10224_v1, %s8155_s17  ;;  %15626 = vst [vmem:[#allocation230_spill] sm:$0xff] %v10264_v41 }
 0x429   : > { %v10238_v46 = vpop.f32.mrb[136].mxu0 }
 0x42a   : > { %v10240_v27 = vpop.permute.xlu0 %3610  ;;  %3139 = vrot.lane.b32.xlu1 %v10232_v59, %s8155_s17  ;;  %v10244_v16 = vpop.f32.mrb[137].mxu0 }
 0x42b   : > { %15624 = vst [vmem:[#allocation228_spill] sm:$0xff] %v10240_v27  ;;  %v10246_v28 = vpop.f32.mrb[138].mxu0 }
 0x42c   : > { %v10248_v24 = vpop.permute.xlu1 %3612  ;;  %3329 = vrot.lane.b32.xlu0 %v10224_v1, %s8156_s18  ;;  %v10252_v44 = vpop.f32.mrb[139].mxu0 }
 0x42d   : > { %15625 = vst [vmem:[#allocation229_spill] sm:$0xff] %v10248_v24 }
 0x42e   : > { %v10254_v20 = vpop.permute.xlu0 %3109  ;;  %3331 = vrot.lane.b32.xlu1 %v10232_v59, %s8156_s18 }
 0x430   : > { %v10258_v27 = vpop.permute.xlu1 %3111  ;;  %3650 = vrot.lane.b32.xlu0 %v10224_v1, %s8157_s20 }
 0x432   : > { %v10266_v24 = vpop.permute.xlu0 %3301  ;;  %3652 = vrot.lane.b32.xlu1 %v10232_v59, %s8157_s20 }
 0x434   : > { %v10274_v3 = vpop.permute.xlu1 %3303  ;;  %3149 = vrot.lane.b32.xlu0 %v10264_v41, %s8155_s17 }
 0x436   : > { %v10278_v22 = vpop.permute.xlu0 %3622  ;;  %3151 = vrot.lane.b32.xlu1 %v10272_v61, %s8155_s17 }
 0x437   : > { %15628 = vst [vmem:[#allocation232_spill] sm:$0xff] %v10278_v22 }
 0x438   : > { %v10282_v57 = vpop.permute.xlu1 %3624  ;;  %3341 = vrot.lane.b32.xlu0 %v10264_v41, %s8156_s18 }
 0x439   : > { %15629 = vst [vmem:[#allocation233_spill] sm:$0xff] %v10282_v57  ;;  %v10286_v59 = vpop.f32.mrb[140].mxu0 }
 0x43a   : > { %v10288_v1 = vpop.permute.xlu0 %3105  ;;  %3343 = vrot.lane.b32.xlu1 %v10272_v61, %s8156_s18  ;;  %v10292_v37 = vpop.f32.mrb[141].mxu0 }
 0x43b   : > { %v10294_v43 = vpop.f32.mrb[142].mxu0 }
 0x43c   : > { %v10296_v22 = vpop.permute.xlu1 %3107  ;;  %3662 = vrot.lane.b32.xlu0 %v10264_v41, %s8157_s20  ;;  %v10300_v57 = vpop.f32.mrb[143].mxu0 }
 0x43d   : > { %15630 = vst [vmem:[#allocation234_spill] sm:$0xff] %v10300_v57  ;;  %v10358_v57 = vadd.f32 %v10142_v49, %v9828_v38 }
 0x43e   : > { %v10306_v30 = vpop.permute.xlu0 %3297  ;;  %3664 = vrot.lane.b32.xlu1 %v10272_v61, %s8157_s20 }
 0x43f   : > { %15643 = vst [vmem:[#allocation247_spill] sm:$0xff] %v10358_v57 }
 0x440   : > { %v10314_v0 = vpop.permute.xlu1 %3299  ;;  %3145 = vrot.lane.b32.xlu0 %v10304_v5, %s8155_s17 }
 0x441   : > { %v10318_v41 = vpop.f32.mrb[144].mxu0 }
 0x442   : > { %15633 = vst [vmem:[#allocation237_spill] sm:$0xff] %v10318_v41  ;;  %v10320_v10 = vpop.permute.xlu0 %3618  ;;  %3147 = vrot.lane.b32.xlu1 %v10312_v19, %s8155_s17  ;;  %v10324_v60 = vpop.f32.mrb[145].mxu0 }
 0x443   : > { %15634 = vst [vmem:[#allocation238_spill] sm:$0xff] %v10320_v10  ;;  %15635 = vst [vmem:[#allocation239_spill] sm:$0xff] %v10324_v60  ;;  %v10326_v48 = vpop.f32.mrb[146].mxu0 }
 0x444   : > { %15636 = vst [vmem:[#allocation240_spill] sm:$0xff] %v10326_v48  ;;  %v10328_v61 = vpop.permute.xlu1 %3620  ;;  %3337 = vrot.lane.b32.xlu0 %v10304_v5, %s8156_s18  ;;  %v10332_v18 = vpop.f32.mrb[147].mxu0 }
 0x445   : > { %15637 = vst [vmem:[#allocation241_spill] sm:$0xff] %v10328_v61  ;;  %15638 = vst [vmem:[#allocation242_spill] sm:$0xff] %v10332_v18  ;;  %v10346_v61 = vadd.f32 %v10134_v23, %v9828_v38 }
 0x446   : > { %v10334_v17 = vpop.permute.xlu0 %3117  ;;  %3339 = vrot.lane.b32.xlu1 %v10312_v19, %s8156_s18 }
 0x447   : > { %15640 = vst [vmem:[#allocation244_spill] sm:$0xff] %v10346_v61 }
 0x448   : > { %v10338_v10 = vpop.permute.xlu1 %3119  ;;  %3658 = vrot.lane.b32.xlu0 %v10304_v5, %s8157_s20 }
 0x449   : > { %v10342_v60 = vpop.f32.mrb[148].mxu0 }
 0x44a   : > { %15639 = vst [vmem:[#allocation243_spill] sm:$0xff] %v10342_v60  ;;  %v10348_v48 = vpop.permute.xlu0 %3309  ;;  %3660 = vrot.lane.b32.xlu1 %v10312_v19, %s8157_s20  ;;  %v10352_v18 = vpop.f32.mrb[149].mxu0 }
 0x44b   : > { %15641 = vst [vmem:[#allocation245_spill] sm:$0xff] %v10352_v18  ;;  %v10354_v41 = vpop.f32.mrb[150].mxu0  ;;  %v3476_v18 = vsel %vm3473_vm1, %v10104_v7, %v10115_v4  ;;  %v10399_v4 = vadd.f32 %v9828_v38, %v10140_v6  ;;  %v3475_v6 = vsel %vm3473_vm1, %v10144_v15, %v10162_v62 }
 0x44c   : > { %15642 = vst [vmem:[#allocation246_spill] sm:$0xff] %v10354_v41  ;;  %v10360_v5 = vpop.permute.xlu1 %3311  ;;  %3157 = vrot.lane.b32.xlu0 %v10346_v61, %s8155_s17  ;;  %v10364_v23 = vpop.f32.mrb[151].mxu0  ;;  %v3540_v7 = vadd.f32 %v3476_v18, %v9835_v14  ;;  %v3539_v62 = vadd.f32 %v3475_v6, %v9864_v11 }
 0x44d   : > { %15644 = vst [vmem:[#allocation248_spill] sm:$0xff] %v10364_v23  ;;  %15650 = vst [vmem:[#allocation254_spill] sm:$0xff] %v10399_v4 }
 0x44e   : > { %v10366_v60 = vpop.permute.xlu0 %3630  ;;  %3159 = vrot.lane.b32.xlu1 %v10358_v57, %s8155_s17  ;;  %7885 = vrcp.f32 %v3540_v7 }
 0x44f   : > { %15645 = vst [vmem:[#allocation249_spill] sm:$0xff] %v10366_v60 }
 0x450   : > { %v10370_v19 = vpop.permute.xlu1 %3632  ;;  %3349 = vrot.lane.b32.xlu0 %v10346_v61, %s8156_s18 }
 0x451   : > { %15646 = vst [vmem:[#allocation250_spill] sm:$0xff] %v10370_v19  ;;  %v10374_v49 = vpop.f32.mrb[152].mxu0  ;;  %v3477_v19 = vsel %vm3473_vm1, %v10108_v21, %v10122_v25  ;;  %v10411_v21 = vadd.f32 %v9828_v38, %v10148_v34 }
 0x452   : > { %15647 = vst [vmem:[#allocation251_spill] sm:$0xff] %v10374_v49  ;;  %v10379_v41 = vpop.permute.xlu0 %3113  ;;  %3351 = vrot.lane.b32.xlu1 %v10358_v57, %s8156_s18  ;;  %v10383_v60 = vpop.f32.mrb[153].mxu0  ;;  %v3541_v25 = vadd.f32 %v3477_v19, %v9838_v26 }
 0x453   : > { %15648 = vst [vmem:[#allocation252_spill] sm:$0xff] %v10383_v60  ;;  %v10385_v23 = vpop.f32.mrb[154].mxu0  ;;  %v3474_v60 = vsel %vm3473_vm1, %v10136_v31, %v10154_v58  ;;  %15651 = vst [vmem:[#allocation255_spill] sm:$0xff] %v10411_v21 }
 0x454   : > { %15649 = vst [vmem:[#allocation253_spill] sm:$0xff] %v10385_v23  ;;  %v10390_v29 = vpop.permute.xlu1 %3115  ;;  %3670 = vrot.lane.b32.xlu0 %v10346_v61, %s8157_s20  ;;  %v10394_v49 = vpop.f32.mrb[155].mxu0  ;;  %v3538_v58 = vadd.f32 %v3474_v60, %v9859_v13  ;;  %7887 = vrcp.f32 %v3541_v25  ;;  %v10499_v61 = vadd.f32 %v9828_v38, %v10192_v45  ;;  %v3479_v45 = vsel %vm3473_vm1, %v10218_v50, %v10234_v56 }
 0x456   : > { %v10404_v23 = vpop.permute.xlu0 %3305  ;;  %3672 = vrot.lane.b32.xlu1 %v10358_v57, %s8157_s20  ;;  %7889 = vrcp.f32 %v3538_v58  ;;  %15660 = vst [vmem:[#allocation264_spill] sm:$0xff] %v10499_v61 }
 0x457   : > { %7891 = vrcp.f32 %v3539_v62 }
 0x458   : > { %v10416_v18 = vpop.permute.xlu1 %3307  ;;  %3153 = vrot.lane.b32.xlu0 %v10399_v4, %s8155_s17  ;;  %v7886_v6 = vpop.eup %7885 }
 0x459   : > { %v10421_v31 = vpop.f32.mrb[156].mxu0 }
 0x45a   : > { %v10423_v14 = vpop.permute.xlu0 %3626  ;;  %3155 = vrot.lane.b32.xlu1 %v10411_v21, %s8155_s17  ;;  %v10427_v19 = vpop.f32.mrb[157].mxu0 }
 0x45b   : > { %15652 = vst [vmem:[#allocation256_spill] sm:$0xff] %v10423_v14  ;;  %v10430_v34 = vpop.f32.mrb[158].mxu0 }
 0x45c   : > { %v10432_v15 = vpop.permute.xlu1 %3628  ;;  %3345 = vrot.lane.b32.xlu0 %v10399_v4, %s8156_s18  ;;  %v10436_v60 = vpop.f32.mrb[159].mxu0 }
 0x45d   : > { %15653 = vst [vmem:[#allocation257_spill] sm:$0xff] %v10432_v15 }
 0x45e   : > { %v10438_v7 = vpop.permute.xlu0 %3125  ;;  %3347 = vrot.lane.b32.xlu1 %v10411_v21, %s8156_s18  ;;  %v7888_v58 = vpop.eup %7887 }
 0x460   : > { %v10442_v26 = vpop.permute.xlu1 %3127  ;;  %3666 = vrot.lane.b32.xlu0 %v10399_v4, %s8157_s20  ;;  %v7890_v62 = vpop.eup %7889  ;;  %v10461_v4 = vadd.f32 %v10182_v33, %v9828_v38 }
 0x461   : > { %v7892_v14 = vpop.eup %7891 }
 0x462   : > { %v10446_v25 = vpop.permute.xlu0 %3317  ;;  %3668 = vrot.lane.b32.xlu1 %v10411_v21, %s8157_s20  ;;  %15656 = vst [vmem:[#allocation260_spill] sm:$0xff] %v10461_v4 }
 0x464   : > { %v10450_v11 = vpop.permute.xlu1 %3319  ;;  %3990 = vrot.lane.b32.xlu0 %v7886_v6, %s8157_s20  ;;  %v10468_v6 = vadd.f32 %v10194_v47, %v9828_v38  ;;  %v3480_v47 = vsel %vm3473_vm1, %v10174_v35, %v10188_v8  ;;  %v3478_v8 = vsel %vm3473_vm1, %v10214_v39, %v10226_v42 }
 0x465   : > { %v3544_v57 = vadd.f32 %v3480_v47, %v9885_v51  ;;  %v3542_v42 = vadd.f32 %v3478_v8, %v9911_v9 }
 0x466   : > { %v10453_v13 = vpop.permute.xlu0 %3638  ;;  %3992 = vrot.lane.b32.xlu1 %v7888_v58, %s8157_s20  ;;  %15657 = vst [vmem:[#allocation261_spill] sm:$0xff] %v10468_v6 }
 0x467   : > { %15654 = vst [vmem:[#allocation258_spill] sm:$0xff] %v10453_v13  ;;  %7893 = vrcp.f32 %v3544_v57 }
 0x468   : > { %v10456_v15 = vpop.permute.xlu1 %3640  ;;  %3986 = vrot.lane.b32.xlu0 %v7890_v62, %s8157_s20  ;;  %v3481_v62 = vsel %vm3473_vm1, %v10178_v63, %v10200_v36  ;;  %v10511_v63 = vadd.f32 %v9828_v38, %v10204_v55  ;;  %v3543_v55 = vadd.f32 %v3479_v45, %v9916_v12  ;;  %v10553_v12 = vadd.f32 %v10238_v46, %v9828_v38 }
 0x469   : > { %15655 = vst [vmem:[#allocation259_spill] sm:$0xff] %v10456_v15  ;;  %v3545_v36 = vadd.f32 %v3481_v62, %v9890_v54 }
 0x46a   : > { %v10463_v21 = vpop.permute.xlu0 %3121  ;;  %3988 = vrot.lane.b32.xlu1 %v7892_v14, %s8157_s20  ;;  %15661 = vst [vmem:[#allocation265_spill] sm:$0xff] %v10511_v63  ;;  %15664 = vst [vmem:[#allocation268_spill] sm:$0xff] %v10553_v12 }
 0x46b   : > { %7895 = vrcp.f32 %v3545_v36 }
 0x46c   : > { %v10470_v13 = vpop.permute.xlu1 %3123  ;;  %3165 = vrot.lane.b32.xlu0 %v10461_v4, %s8155_s17  ;;  %7897 = vrcp.f32 %v3542_v42 }
 0x46d   : > { %7899 = vrcp.f32 %v3543_v55 }
 0x46e   : > { %v10474_v58 = vpop.permute.xlu0 %3313  ;;  %3167 = vrot.lane.b32.xlu1 %v10468_v6, %s8155_s17 }
 0x470   : > { %v10478_v33 = vpop.permute.xlu1 %3315  ;;  %3357 = vrot.lane.b32.xlu0 %v10461_v4, %s8156_s18 }
 0x471   : > { %v7894_v8 = vpop.eup %7893 }
 0x472   : > { %v10485_v14 = vpop.permute.xlu0 %3634  ;;  %3359 = vrot.lane.b32.xlu1 %v10468_v6, %s8156_s18 }
 0x473   : > { %15658 = vst [vmem:[#allocation262_spill] sm:$0xff] %v10485_v14 }
 0x474   : > { %v10492_v15 = vpop.permute.xlu1 %3636  ;;  %3678 = vrot.lane.b32.xlu0 %v10461_v4, %s8157_s20 }
 0x475   : > { %15659 = vst [vmem:[#allocation263_spill] sm:$0xff] %v10492_v15  ;;  %v7896_v45 = vpop.eup %7895 }
 0x476   : > { %v10504_v35 = vpop.permute.xlu0 %3133  ;;  %3680 = vrot.lane.b32.xlu1 %v10468_v6, %s8157_s20  ;;  %v7898_v55 = vpop.eup %7897  ;;  %v15706_v6 = vld [vmem:[#allocation245_spill] sm:$0xff] }
 0x477   : > { %v7900_v51 = vpop.eup %7899 }
 0x478   : > { %v10516_v47 = vpop.permute.xlu1 %3135  ;;  %3161 = vrot.lane.b32.xlu0 %v10499_v61, %s8155_s17 }
 0x47a   : > { %v10521_v39 = vpop.permute.xlu0 %3325  ;;  %3163 = vrot.lane.b32.xlu1 %v10511_v63, %s8155_s17 }
 0x47c   : > { %v10526_v62 = vpop.permute.xlu1 %3327  ;;  %3353 = vrot.lane.b32.xlu0 %v10499_v61, %s8156_s18 }
 0x47e   : > { %v10530_v56 = vpop.permute.xlu0 %3646  ;;  %3355 = vrot.lane.b32.xlu1 %v10511_v63, %s8156_s18 }
 0x47f   : > { %15662 = vst [vmem:[#allocation266_spill] sm:$0xff] %v10530_v56  ;;  %v10591_v56 = vadd.f32 %v9828_v38, %v10244_v16  ;;  %v3483_v16 = vsel %vm3473_vm1, %v10296_v22, %v10314_v0 }
 0x480   : > { %v10534_v50 = vpop.permute.xlu1 %3648  ;;  %3674 = vrot.lane.b32.xlu0 %v10499_v61, %s8157_s20 }
 0x481   : > { %15663 = vst [vmem:[#allocation267_spill] sm:$0xff] %v10534_v50  ;;  %15668 = vst [vmem:[#allocation272_spill] sm:$0xff] %v10591_v56 }
 0x482   : > { %v10538_v57 = vpop.permute.xlu0 %3129  ;;  %3676 = vrot.lane.b32.xlu1 %v10511_v63, %s8157_s20 }
 0x484   : > { %v10542_v36 = vpop.permute.xlu1 %3131  ;;  %3998 = vrot.lane.b32.xlu0 %v7894_v8, %s8157_s20  ;;  %v10560_v8 = vadd.f32 %v10246_v28, %v9828_v38  ;;  %v3484_v28 = vsel %vm3473_vm1, %v10254_v20, %v10266_v24  ;;  %v3482_v20 = vsel %vm3473_vm1, %v10288_v1, %v10306_v30 }
 0x485   : > { %v3546_v1 = vadd.f32 %v3482_v20, %v9963_v53 }
 0x486   : > { %v10545_v42 = vpop.permute.xlu0 %3321  ;;  %4000 = vrot.lane.b32.xlu1 %v7896_v45, %s8157_s20  ;;  %15666 = vst [vmem:[#allocation270_spill] sm:$0xff] %v10560_v8 }
 0x488   : > { %v10548_v54 = vpop.permute.xlu1 %3323  ;;  %3994 = vrot.lane.b32.xlu0 %v7898_v55, %s8157_s20  ;;  %v3485_v55 = vsel %vm3473_vm1, %v10258_v27, %v10274_v3  ;;  %v10603_v3 = vadd.f32 %v9828_v38, %v10252_v44  ;;  %v3547_v44 = vadd.f32 %v3483_v16, %v9968_v52  ;;  %v10645_v52 = vadd.f32 %v10286_v59, %v9828_v38 }
 0x489   : > { %v3549_v27 = vadd.f32 %v3485_v55, %v9942_v2 }
 0x48a   : > { %v10555_v9 = vpop.permute.xlu0 %3642  ;;  %3996 = vrot.lane.b32.xlu1 %v7900_v51, %s8157_s20  ;;  %15670 = vst [vmem:[#allocation274_spill] sm:$0xff] %v10603_v3  ;;  %15674 = vst [vmem:[#allocation278_spill] sm:$0xff] %v10645_v52 }
 0x48b   : > { %15665 = vst [vmem:[#allocation269_spill] sm:$0xff] %v10555_v9  ;;  %v3548_v9 = vadd.f32 %v3484_v28, %v9937_v32 }
 0x48c   : > { %v10562_v50 = vpop.permute.xlu1 %3644  ;;  %3173 = vrot.lane.b32.xlu0 %v10553_v12, %s8155_s17 }
 0x48d   : > { %15667 = vst [vmem:[#allocation271_spill] sm:$0xff] %v10562_v50  ;;  %7901 = vrcp.f32 %v3548_v9 }
 0x48e   : > { %v10566_v45 = vpop.permute.xlu0 %3141  ;;  %3175 = vrot.lane.b32.xlu1 %v10560_v8, %s8155_s17  ;;  %7903 = vrcp.f32 %v3549_v27 }
 0x48f   : > { %7905 = vrcp.f32 %v3546_v1 }
 0x490   : > { %v10570_v46 = vpop.permute.xlu1 %3143  ;;  %3365 = vrot.lane.b32.xlu0 %v10553_v12, %s8156_s18  ;;  %7907 = vrcp.f32 %v3547_v44 }
 0x492   : > { %v10577_v51 = vpop.permute.xlu0 %3333  ;;  %3367 = vrot.lane.b32.xlu1 %v10560_v8, %s8156_s18 }
 0x494   : > { %v10584_v50 = vpop.permute.xlu1 %3335  ;;  %3686 = vrot.lane.b32.xlu0 %v10553_v12, %s8157_s20 }
 0x496   : > { %v10596_v24 = vpop.permute.xlu0 %3654  ;;  %3688 = vrot.lane.b32.xlu1 %v10560_v8, %s8157_s20  ;;  %v15700_v8 = vld [vmem:[#allocation246_spill] sm:$0xff] }
 0x497   : > { %15669 = vst [vmem:[#allocation273_spill] sm:$0xff] %v10596_v24  ;;  %v7902_v20 = vpop.eup %7901 }
 0x498   : > { %v10608_v28 = vpop.permute.xlu1 %3656  ;;  %3169 = vrot.lane.b32.xlu0 %v10591_v56, %s8155_s17  ;;  %v7904_v16 = vpop.eup %7903 }
 0x499   : > { %15671 = vst [vmem:[#allocation275_spill] sm:$0xff] %v10608_v28  ;;  %v7906_v44 = vpop.eup %7905  ;;  %v15680_v28 = vld [vmem:[#allocation234_spill] sm:$0xff] }
 0x49a   : > { %v10613_v30 = vpop.permute.xlu0 %3137  ;;  %3171 = vrot.lane.b32.xlu1 %v10603_v3, %s8155_s17  ;;  %v7908_v32 = vpop.eup %7907  ;;  %v10695_v24 = vadd.f32 %v9828_v38, %v15680_v28  ;;  %v15684_v28 = vld [vmem:[#allocation199_spill] sm:$0xff] }
 0x49c   : > { %v10618_v55 = vpop.permute.xlu1 %3139  ;;  %3361 = vrot.lane.b32.xlu0 %v10591_v56, %s8156_s18  ;;  %15681 = vst [vmem:[#allocation234_spill] sm:$0xff] %v10695_v24 }
 0x49e   : > { %v10622_v22 = vpop.permute.xlu0 %3329  ;;  %3363 = vrot.lane.b32.xlu1 %v10603_v3, %s8156_s18 }
 0x4a0   : > { %v10626_v9 = vpop.permute.xlu1 %3331  ;;  %3682 = vrot.lane.b32.xlu0 %v10591_v56, %s8157_s20  ;;  %v10809_v56 = vld [vmem:[%s14853_s3 + $0x3] ss:$0 sm:$0xff] }
 0x4a1   : > { %v10813_v12 = vadd.f32 %v10809_v56, %v15700_v8  ;;  %v3492_v8 = vsel %vm3473_vm1, %v10438_v7, %v10446_v25  ;;  %v10844_v4 = vadd.f32 %v10809_v56, %v15706_v6  ;;  %v3490_v7 = vsel %vm3473_vm1, %v10463_v21, %v10474_v58  ;;  %v15711_v21 = vld [vmem:[#allocation210_spill] sm:$0xff] }
 0x4a2   : > { %v10630_v0 = vpop.permute.xlu0 %3650  ;;  %3684 = vrot.lane.b32.xlu1 %v10603_v3, %s8157_s20  ;;  %v3491_v6 = vsel %vm3473_vm1, %v10470_v13, %v10478_v33  ;;  %v3554_v58 = vadd.f32 %v3490_v7, %v15711_v21 }
 0x4a3   : > { %15672 = vst [vmem:[#allocation276_spill] sm:$0xff] %v10630_v0  ;;  %v10683_v0 = vadd.f32 %v9828_v38, %v10292_v37  ;;  %v3487_v37 = vsel %vm3473_vm1, %v10390_v29, %v10416_v18  ;;  %15701 = vst [vmem:[#allocation246_spill] sm:$0xff] %v10813_v12 }
 0x4a4   : > { %v10634_v27 = vpop.permute.xlu1 %3652  ;;  %4006 = vrot.lane.b32.xlu0 %v7902_v20, %s8157_s20  ;;  %v10652_v20 = vadd.f32 %v10294_v43, %v9828_v38  ;;  %v3488_v43 = vsel %vm3473_vm1, %v10334_v17, %v10348_v48  ;;  %v3486_v48 = vsel %vm3473_vm1, %v10379_v41, %v10404_v23  ;;  %v15682_v41 = vld [vmem:[#allocation198_spill] sm:$0xff]  ;;  %15707 = vst [vmem:[#allocation245_spill] sm:$0xff] %v10844_v4 }
 0x4a5   : > { %15673 = vst [vmem:[#allocation277_spill] sm:$0xff] %v10634_v27  ;;  %15678 = vst [vmem:[#allocation282_spill] sm:$0xff] %v10683_v0  ;;  %v3550_v23 = vadd.f32 %v3486_v48, %v15682_v41 }
 0x4a6   : > { %v10637_v1 = vpop.permute.xlu0 %3149  ;;  %4008 = vrot.lane.b32.xlu1 %v7904_v16, %s8157_s20  ;;  %15675 = vst [vmem:[#allocation279_spill] sm:$0xff] %v10652_v20 }
 0x4a8   : > { %v10640_v2 = vpop.permute.xlu1 %3151  ;;  %4002 = vrot.lane.b32.xlu0 %v7906_v44, %s8157_s20  ;;  %v3489_v44 = vsel %vm3473_vm1, %v10338_v10, %v10360_v5  ;;  %v15679_v5 = vld [vmem:[#allocation193_spill] sm:$0xff] }
 0x4a9   : > { %v3553_v10 = vadd.f32 %v3489_v44, %v15679_v5  ;;  %v3551_v44 = vadd.f32 %v3487_v37, %v15684_v28 }
 0x4aa   : > { %v10647_v53 = vpop.permute.xlu0 %3341  ;;  %4004 = vrot.lane.b32.xlu1 %v7908_v32, %s8157_s20 }
 0x4ac   : > { %v10654_v27 = vpop.permute.xlu1 %3343  ;;  %3181 = vrot.lane.b32.xlu0 %v10645_v52, %s8155_s17 }
 0x4ae   : > { %v10658_v16 = vpop.permute.xlu0 %3662  ;;  %3183 = vrot.lane.b32.xlu1 %v10652_v20, %s8155_s17 }
 0x4af   : > { %15676 = vst [vmem:[#allocation280_spill] sm:$0xff] %v10658_v16 }
 0x4b0   : > { %v10662_v59 = vpop.permute.xlu1 %3664  ;;  %3373 = vrot.lane.b32.xlu0 %v10645_v52, %s8156_s18 }
 0x4b1   : > { %15677 = vst [vmem:[#allocation281_spill] sm:$0xff] %v10662_v59  ;;  %v3552_v59 = vadd.f32 %v3488_v43, %v9989_v40 }
 0x4b2   : > { %v10669_v32 = vpop.permute.xlu0 %3145  ;;  %3375 = vrot.lane.b32.xlu1 %v10652_v20, %s8156_s18 }
 0x4b3   : > { %7909 = vrcp.f32 %v3552_v59 }
 0x4b4   : > { %v10676_v16 = vpop.permute.xlu1 %3147  ;;  %3694 = vrot.lane.b32.xlu0 %v10645_v52, %s8157_s20  ;;  %7911 = vrcp.f32 %v3553_v10 }
 0x4b5   : > { %7913 = vrcp.f32 %v3550_v23 }
 0x4b6   : > { %v10688_v17 = vpop.permute.xlu0 %3337  ;;  %3696 = vrot.lane.b32.xlu1 %v10652_v20, %s8157_s20  ;;  %7915 = vrcp.f32 %v3551_v44 }
 0x4b8   : > { %v10700_v43 = vpop.permute.xlu1 %3339  ;;  %3177 = vrot.lane.b32.xlu0 %v10683_v0, %s8155_s17 }
 0x4ba   : > { %v10705_v40 = vpop.permute.xlu0 %3658  ;;  %3179 = vrot.lane.b32.xlu1 %v10695_v24, %s8155_s17 }
 0x4bb   : > { %15683 = vst [vmem:[#allocation283_spill] sm:$0xff] %v10705_v40 }
 0x4bc   : > { %v10710_v5 = vpop.permute.xlu1 %3660  ;;  %3369 = vrot.lane.b32.xlu0 %v10683_v0, %s8156_s18 }
 0x4bd   : > { %15685 = vst [vmem:[#allocation284_spill] sm:$0xff] %v10710_v5  ;;  %v7910_v48 = vpop.eup %7909  ;;  %v15688_v5 = vld [vmem:[#allocation237_spill] sm:$0xff] }
 0x4be   : > { %v10714_v29 = vpop.permute.xlu0 %3157  ;;  %3371 = vrot.lane.b32.xlu1 %v10695_v24, %s8156_s18  ;;  %v7912_v37 = vpop.eup %7911  ;;  %v10737_v40 = vadd.f32 %v15688_v5, %v9828_v38 }
 0x4bf   : > { %v7914_v44 = vpop.eup %7913 }
 0x4c0   : > { %v10718_v18 = vpop.permute.xlu1 %3159  ;;  %3690 = vrot.lane.b32.xlu0 %v10683_v0, %s8157_s20  ;;  %v7916_v41 = vpop.eup %7915  ;;  %15689 = vst [vmem:[#allocation237_spill] sm:$0xff] %v10737_v40  ;;  %v15696_v0 = vld [vmem:[#allocation242_spill] sm:$0xff] }
 0x4c2   : > { %v10722_v59 = vpop.permute.xlu0 %3349  ;;  %3692 = vrot.lane.b32.xlu1 %v10695_v24, %s8157_s20 }
 0x4c4   : > { %v10726_v10 = vpop.permute.xlu1 %3351  ;;  %4014 = vrot.lane.b32.xlu0 %v7910_v48, %s8157_s20  ;;  %v15690_v48 = vld [vmem:[#allocation240_spill] sm:$0xff] }
 0x4c5   : > { %v10744_v14 = vadd.f32 %v15690_v48, %v9828_v38  ;;  %v15694_v48 = vld [vmem:[#allocation239_spill] sm:$0xff] }
 0x4c6   : > { %v10729_v23 = vpop.permute.xlu0 %3670  ;;  %4016 = vrot.lane.b32.xlu1 %v7912_v37, %s8157_s20 }
 0x4c7   : > { %15686 = vst [vmem:[#allocation285_spill] sm:$0xff] %v10729_v23  ;;  %15691 = vst [vmem:[#allocation240_spill] sm:$0xff] %v10744_v14 }
 0x4c8   : > { %v10732_v28 = vpop.permute.xlu1 %3672  ;;  %4010 = vrot.lane.b32.xlu0 %v7914_v44, %s8157_s20 }
 0x4c9   : > { %15687 = vst [vmem:[#allocation286_spill] sm:$0xff] %v10732_v28  ;;  %v10768_v28 = vadd.f32 %v9828_v38, %v15694_v48 }
 0x4ca   : > { %v10739_v15 = vpop.permute.xlu0 %3153  ;;  %4012 = vrot.lane.b32.xlu1 %v7916_v41, %s8157_s20 }
 0x4cb   : > { %15695 = vst [vmem:[#allocation239_spill] sm:$0xff] %v10768_v28 }
 0x4cc   : > { %v10746_v23 = vpop.permute.xlu1 %3155  ;;  %3189 = vrot.lane.b32.xlu0 %v10737_v40, %s8155_s17 }
 0x4ce   : > { %v10750_v37 = vpop.permute.xlu0 %3345  ;;  %3191 = vrot.lane.b32.xlu1 %v10744_v14, %s8155_s17 }
 0x4d0   : > { %v10754_v5 = vpop.permute.xlu1 %3347  ;;  %3381 = vrot.lane.b32.xlu0 %v10737_v40, %s8156_s18 }
 0x4d2   : > { %v10758_v41 = vpop.permute.xlu0 %3666  ;;  %3383 = vrot.lane.b32.xlu1 %v10744_v14, %s8156_s18 }
 0x4d3   : > { %15692 = vst [vmem:[#allocation287_spill] sm:$0xff] %v10758_v41  ;;  %v10776_v41 = vadd.f32 %v9828_v38, %v15696_v0 }
 0x4d4   : > { %v10762_v44 = vpop.permute.xlu1 %3668  ;;  %3702 = vrot.lane.b32.xlu0 %v10737_v40, %s8157_s20  ;;  %v15698_v40 = vld [vmem:[#allocation243_spill] sm:$0xff] }
 0x4d5   : > { %15693 = vst [vmem:[#allocation288_spill] sm:$0xff] %v10762_v44  ;;  %15697 = vst [vmem:[#allocation242_spill] sm:$0xff] %v10776_v41  ;;  %v10800_v52 = vadd.f32 %v15698_v40, %v9828_v38 }
 0x4d6   : > { %v10770_v24 = vpop.permute.xlu0 %3990  ;;  %3704 = vrot.lane.b32.xlu1 %v10744_v14, %s8157_s20 }
 0x4d7   : > { %15699 = vst [vmem:[#allocation243_spill] sm:$0xff] %v10800_v52 }
 0x4d8   : > { %v10778_v20 = vpop.permute.xlu1 %3992  ;;  %3185 = vrot.lane.b32.xlu0 %v10768_v28, %s8155_s17 }
 0x4da   : > { %v10782_v44 = vpop.permute.xlu0 %3986  ;;  %3187 = vrot.lane.b32.xlu1 %v10776_v41, %s8155_s17 }
 0x4dc   : > { %v10786_v48 = vpop.permute.xlu1 %3988  ;;  %3377 = vrot.lane.b32.xlu0 %v10768_v28, %s8156_s18 }
 0x4de   : > { %v10790_v14 = vpop.permute.xlu0 %3165  ;;  %3379 = vrot.lane.b32.xlu1 %v10776_v41, %s8156_s18 }
 0x4e0   : > { %v10794_v0 = vpop.permute.xlu1 %3167  ;;  %3698 = vrot.lane.b32.xlu0 %v10768_v28, %s8157_s20 }
 0x4e2   : > { %v10802_v3 = vpop.permute.xlu0 %3357  ;;  %3700 = vrot.lane.b32.xlu1 %v10776_v41, %s8157_s20 }
 0x4e4   : > { %v10815_v63 = vpop.permute.xlu1 %3359  ;;  %3197 = vrot.lane.b32.xlu0 %v10800_v52, %s8155_s17 }
 0x4e6   : > { %v10819_v40 = vpop.permute.xlu0 %3678  ;;  %3199 = vrot.lane.b32.xlu1 %v10813_v12, %s8155_s17 }
 0x4e7   : > { %15702 = vst [vmem:[#allocation289_spill] sm:$0xff] %v10819_v40  ;;  %v3493_v40 = vsel %vm3473_vm1, %v10442_v26, %v10450_v11  ;;  %v15708_v26 = vld [vmem:[#allocation205_spill] sm:$0xff] }
 0x4e8   : > { %v10823_v38 = vpop.permute.xlu1 %3680  ;;  %3389 = vrot.lane.b32.xlu0 %v10800_v52, %s8156_s18  ;;  %v3557_v11 = vadd.f32 %v3493_v40, %v15708_v26 }
 0x4e9   : > { %15703 = vst [vmem:[#allocation290_spill] sm:$0xff] %v10823_v38  ;;  %v15705_v38 = vld [vmem:[#allocation204_spill] sm:$0xff] }
 0x4ea   : > { %v10830_v41 = vpop.permute.xlu0 %3161  ;;  %3391 = vrot.lane.b32.xlu1 %v10813_v12, %s8156_s18  ;;  %v3556_v61 = vadd.f32 %v3492_v8, %v15705_v38 }
 0x4ec   : > { %v10837_v28 = vpop.permute.xlu1 %3163  ;;  %3710 = vrot.lane.b32.xlu0 %v10800_v52, %s8157_s20  ;;  %7917 = vrcp.f32 %v3556_v61 }
 0x4ed   : > { %15704 = vst [vmem:[#allocation291_spill] sm:$0xff] %v10837_v28  ;;  %v15709_v28 = vld [vmem:[#allocation248_spill] sm:$0xff]  ;;  %7919 = vrcp.f32 %v3557_v11 }
 0x4ee   : > { %v10849_v25 = vpop.permute.xlu0 %3353  ;;  %3712 = vrot.lane.b32.xlu1 %v10813_v12, %s8157_s20  ;;  %v10856_v52 = vadd.f32 %v10809_v56, %v15709_v28  ;;  %v15713_v28 = vld [vmem:[#allocation211_spill] sm:$0xff]  ;;  %7921 = vrcp.f32 %v3554_v58 }
 0x4ef   : > { %v3555_v40 = vadd.f32 %v3491_v6, %v15713_v28 }
 0x4f0   : > { %15710 = vst [vmem:[#allocation248_spill] sm:$0xff] %v10856_v52  ;;  %v10861_v8 = vpop.permute.xlu1 %3355  ;;  %3193 = vrot.lane.b32.xlu0 %v10844_v4, %s8155_s17 }
 0x4f1   : > { %7923 = vrcp.f32 %v3555_v40 }
 0x4f2   : > { %v10866_v38 = vpop.permute.xlu0 %3674  ;;  %3195 = vrot.lane.b32.xlu1 %v10856_v52, %s8155_s17 }
 0x4f3   : > { %15712 = vst [vmem:[#allocation292_spill] sm:$0xff] %v10866_v38 }
 0x4f4   : > { %v10871_v26 = vpop.permute.xlu1 %3676  ;;  %3385 = vrot.lane.b32.xlu0 %v10844_v4, %s8156_s18 }
 0x4f5   : > { %15714 = vst [vmem:[#allocation293_spill] sm:$0xff] %v10871_v26  ;;  %v15716_v26 = vld [vmem:[#allocation251_spill] sm:$0xff] }
 0x4f6   : > { %v10875_v13 = vpop.permute.xlu0 %3998  ;;  %3387 = vrot.lane.b32.xlu1 %v10856_v52, %s8156_s18  ;;  %v7918_v7 = vpop.eup %7917  ;;  %v10898_v38 = vadd.f32 %v10809_v56, %v15716_v26 }
 0x4f7   : > { %v7920_v6 = vpop.eup %7919 }
 0x4f8   : > { %v10879_v61 = vpop.permute.xlu1 %4000  ;;  %3706 = vrot.lane.b32.xlu0 %v10844_v4, %s8157_s20  ;;  %v7922_v40 = vpop.eup %7921  ;;  %15717 = vst [vmem:[#allocation251_spill] sm:$0xff] %v10898_v38 }
 0x4fa   : > { %v10883_v33 = vpop.permute.xlu0 %3994  ;;  %3708 = vrot.lane.b32.xlu1 %v10856_v52, %s8157_s20 }
 0x4fb   : > { %v7924_v21 = vpop.eup %7923 }
 0x4fc   : > { %v10887_v11 = vpop.permute.xlu1 %3996  ;;  %4022 = vrot.lane.b32.xlu0 %v7918_v7, %s8157_s20  ;;  %v15718_v7 = vld [vmem:[#allocation253_spill] sm:$0xff] }
 0x4fd   : > { %v10905_v4 = vadd.f32 %v10809_v56, %v15718_v7  ;;  %v15725_v7 = vld [vmem:[#allocation252_spill] sm:$0xff] }
 0x4fe   : > { %v10890_v58 = vpop.permute.xlu0 %3173  ;;  %4024 = vrot.lane.b32.xlu1 %v7920_v6, %s8157_s20 }
 0x4ff   : > { %15719 = vst [vmem:[#allocation253_spill] sm:$0xff] %v10905_v4 }
 0x500   : > { %v10893_v28 = vpop.permute.xlu1 %3175  ;;  %4018 = vrot.lane.b32.xlu0 %v7922_v40, %s8157_s20 }
 0x501   : > { %15715 = vst [vmem:[#allocation294_spill] sm:$0xff] %v10893_v28 }
 0x502   : > { %v10900_v52 = vpop.permute.xlu0 %3365  ;;  %4020 = vrot.lane.b32.xlu1 %v7924_v21, %s8157_s20 }
 0x504   : > { %v10907_v12 = vpop.permute.xlu1 %3367  ;;  %3205 = vrot.lane.b32.xlu0 %v10898_v38, %s8155_s17 }
 0x505   : > { %15720 = vst [vmem:[#allocation295_spill] sm:$0xff] %v10907_v12  ;;  %v11000_v12 = vadd.f32 %v10809_v56, %v10427_v19  ;;  %v3495_v19 = vsel %vm3473_vm1, %v10542_v36, %v10548_v54 }
 0x506   : > { %v10911_v6 = vpop.permute.xlu0 %3686  ;;  %3207 = vrot.lane.b32.xlu1 %v10905_v4, %s8155_s17 }
 0x507   : > { %15721 = vst [vmem:[#allocation296_spill] sm:$0xff] %v10911_v6  ;;  %v10929_v6 = vadd.f32 %v10809_v56, %v15725_v7  ;;  %15738 = vst [vmem:[#allocation310_spill] sm:$0xff] %v11000_v12 }
 0x508   : > { %v10915_v26 = vpop.permute.xlu1 %3688  ;;  %3397 = vrot.lane.b32.xlu0 %v10898_v38, %s8156_s18 }
 0x509   : > { %15722 = vst [vmem:[#allocation297_spill] sm:$0xff] %v10915_v26  ;;  %15726 = vst [vmem:[#allocation252_spill] sm:$0xff] %v10929_v6  ;;  %v10937_v26 = vadd.f32 %v10809_v56, %v10394_v49 }
 0x50a   : > { %v10919_v21 = vpop.permute.xlu0 %3169  ;;  %3399 = vrot.lane.b32.xlu1 %v10905_v4, %s8156_s18 }
 0x50b   : > { %15723 = vst [vmem:[#allocation298_spill] sm:$0xff] %v10919_v21  ;;  %15728 = vst [vmem:[#allocation301_spill] sm:$0xff] %v10937_v26 }
 0x50c   : > { %v10923_v40 = vpop.permute.xlu1 %3171  ;;  %3718 = vrot.lane.b32.xlu0 %v10898_v38, %s8157_s20 }
 0x50d   : > { %15724 = vst [vmem:[#allocation299_spill] sm:$0xff] %v10923_v40 }
 0x50e   : > { %v10931_v28 = vpop.permute.xlu0 %3361  ;;  %3720 = vrot.lane.b32.xlu1 %v10905_v4, %s8157_s20 }
 0x50f   : > { %15727 = vst [vmem:[#allocation300_spill] sm:$0xff] %v10931_v28 }
 0x510   : > { %v10939_v21 = vpop.permute.xlu1 %3363  ;;  %3201 = vrot.lane.b32.xlu0 %v10929_v6, %s8155_s17 }
 0x511   : > { %15729 = vst [vmem:[#allocation302_spill] sm:$0xff] %v10939_v21 }
 0x512   : > { %v10943_v40 = vpop.permute.xlu0 %3682  ;;  %3203 = vrot.lane.b32.xlu1 %v10937_v26, %s8155_s17 }
 0x513   : > { %15730 = vst [vmem:[#allocation303_spill] sm:$0xff] %v10943_v40  ;;  %v10961_v40 = vadd.f32 %v10809_v56, %v10421_v31 }
 0x514   : > { %v10947_v7 = vpop.permute.xlu1 %3684  ;;  %3393 = vrot.lane.b32.xlu0 %v10929_v6, %s8156_s18 }
 0x515   : > { %15731 = vst [vmem:[#allocation304_spill] sm:$0xff] %v10947_v7  ;;  %15732 = vst [vmem:[#allocation305_spill] sm:$0xff] %v10961_v40  ;;  %v10969_v7 = vadd.f32 %v10809_v56, %v10430_v34  ;;  %v3496_v34 = vsel %vm3473_vm1, %v10504_v35, %v10521_v39  ;;  %v3494_v35 = vsel %vm3473_vm1, %v10538_v57, %v10545_v42  ;;  %v15743_v57 = vld [vmem:[#allocation218_spill] sm:$0xff] }
 0x516   : > { %v10951_v4 = vpop.permute.xlu0 %4006  ;;  %3395 = vrot.lane.b32.xlu1 %v10937_v26, %s8156_s18  ;;  %v3558_v42 = vadd.f32 %v3494_v35, %v15743_v57  ;;  %v3508_v57 = vsel %vm3473_vm1, %v10714_v29, %v10722_v59  ;;  %v15775_v59 = vld [vmem:[#allocation244_spill] sm:$0xff] }
 0x517   : > { %15733 = vst [vmem:[#allocation306_spill] sm:$0xff] %v10969_v7 }
 0x518   : > { %v10955_v49 = vpop.permute.xlu1 %4008  ;;  %3714 = vrot.lane.b32.xlu0 %v10929_v6, %s8157_s20  ;;  %v3497_v6 = vsel %vm3473_vm1, %v10516_v47, %v10526_v62  ;;  %v15740_v47 = vld [vmem:[#allocation215_spill] sm:$0xff] }
 0x519   : > { %v3561_v62 = vadd.f32 %v3497_v6, %v15740_v47  ;;  %v3500_v6 = vsel %vm3473_vm1, %v10566_v45, %v10577_v51  ;;  %v3498_v51 = vsel %vm3473_vm1, %v10613_v30, %v10622_v22  ;;  %v3504_v22 = vsel %vm3473_vm1, %v10637_v1, %v10647_v53  ;;  %v15751_v53 = vld [vmem:[#allocation230_spill] sm:$0xff] }
 0x51a   : > { %v10963_v38 = vpop.permute.xlu0 %4002  ;;  %3716 = vrot.lane.b32.xlu1 %v10937_v26, %s8157_s20  ;;  %v3568_v1 = vadd.f32 %v3504_v22, %v15751_v53  ;;  %v15753_v22 = vld [vmem:[#allocation235_spill] sm:$0xff] }
 0x51c   : > { %v10971_v21 = vpop.permute.xlu1 %4004  ;;  %3213 = vrot.lane.b32.xlu0 %v10961_v40, %s8155_s17 }
 0x51d   : > { %15734 = vst [vmem:[#allocation307_spill] sm:$0xff] %v10971_v21 }
 0x51e   : > { %v10975_v28 = vpop.permute.xlu0 %3181  ;;  %3215 = vrot.lane.b32.xlu1 %v10969_v7, %s8155_s17 }
 0x51f   : > { %15735 = vst [vmem:[#allocation308_spill] sm:$0xff] %v10975_v28 }
 0x520   : > { %v10979_v31 = vpop.permute.xlu1 %3183  ;;  %3405 = vrot.lane.b32.xlu0 %v10961_v40, %s8156_s18 }
 0x521   : > { %15736 = vst [vmem:[#allocation309_spill] sm:$0xff] %v10979_v31  ;;  %v15737_v31 = vld [vmem:[#allocation214_spill] sm:$0xff] }
 0x522   : > { %v10986_v26 = vpop.permute.xlu0 %3373  ;;  %3407 = vrot.lane.b32.xlu1 %v10969_v7, %s8156_s18  ;;  %v3560_v21 = vadd.f32 %v3496_v34, %v15737_v31 }
 0x524   : > { %v10993_v28 = vpop.permute.xlu1 %3375  ;;  %3726 = vrot.lane.b32.xlu0 %v10961_v40, %s8157_s20  ;;  %v11012_v40 = vadd.f32 %v10809_v56, %v10436_v60  ;;  %7925 = vrcp.f32 %v3560_v21  ;;  %v15744_v60 = vld [vmem:[#allocation219_spill] sm:$0xff]  ;;  %v3501_v56 = vsel %vm3473_vm1, %v10570_v46, %v10584_v50  ;;  %v15745_v21 = vld [vmem:[#allocation222_spill] sm:$0xff]  ;;  %v3499_v46 = vsel %vm3473_vm1, %v10618_v55, %v10626_v9 }
 0x525   : > { %7927 = vrcp.f32 %v3561_v62  ;;  %v3559_v54 = vadd.f32 %v3495_v19, %v15744_v60  ;;  %v3564_v45 = vadd.f32 %v3500_v6, %v15745_v21  ;;  %v15746_v62 = vld [vmem:[#allocation223_spill] sm:$0xff] }
 0x526   : > { %v11005_v39 = vpop.permute.xlu0 %3694  ;;  %3728 = vrot.lane.b32.xlu1 %v10969_v7, %s8157_s20  ;;  %15741 = vst [vmem:[#allocation312_spill] sm:$0xff] %v11012_v40  ;;  %7929 = vrcp.f32 %v3558_v42  ;;  %v3565_v50 = vadd.f32 %v3501_v56, %v15746_v62  ;;  %v15747_v42 = vld [vmem:[#allocation226_spill] sm:$0xff]  ;;  %v15749_v55 = vld [vmem:[#allocation227_spill] sm:$0xff]  ;;  %v3505_v56 = vsel %vm3473_vm1, %v10640_v2, %v10654_v27  ;;  %v3502_v62 = vsel %vm3473_vm1, %v10669_v32, %v10688_v17 }
 0x527   : > { %15739 = vst [vmem:[#allocation311_spill] sm:$0xff] %v11005_v39  ;;  %7931 = vrcp.f32 %v3559_v54  ;;  %v3562_v30 = vadd.f32 %v3498_v51, %v15747_v42  ;;  %v3563_v9 = vadd.f32 %v3499_v46, %v15749_v55  ;;  %v15752_v46 = vld [vmem:[#allocation231_spill] sm:$0xff]  ;;  %v3503_v27 = vsel %vm3473_vm1, %v10676_v16, %v10700_v43 }
 0x528   : > { %v11017_v34 = vpop.permute.xlu1 %3696  ;;  %3209 = vrot.lane.b32.xlu0 %v11000_v12, %s8155_s17  ;;  %7933 = vrcp.f32 %v3564_v45  ;;  %v3569_v2 = vadd.f32 %v3505_v56, %v15752_v46  ;;  %v3566_v32 = vadd.f32 %v3502_v62, %v15753_v22 }
 0x529   : > { %15742 = vst [vmem:[#allocation313_spill] sm:$0xff] %v11017_v34  ;;  %7935 = vrcp.f32 %v3565_v50 }
 0x52a   : > { %v11025_v47 = vpop.permute.xlu0 %3177  ;;  %3211 = vrot.lane.b32.xlu1 %v11012_v40, %s8155_s17  ;;  %7937 = vrcp.f32 %v3562_v30 }
 0x52b   : > { %7939 = vrcp.f32 %v3563_v9  ;;  %v15754_v9 = vld [vmem:[#allocation236_spill] sm:$0xff] }
 0x52c   : > { %v11033_v36 = vpop.permute.xlu1 %3179  ;;  %3401 = vrot.lane.b32.xlu0 %v11000_v12, %s8156_s18  ;;  %7941 = vrcp.f32 %v3568_v1  ;;  %v3567_v56 = vadd.f32 %v3503_v27, %v15754_v9  ;;  %v15757_v9 = vld [vmem:[#allocation8_spill] sm:$0xff] }
 0x52d   : > { %7943 = vrcp.f32 %v3569_v2 }
 0x52e   : > { %v11041_v35 = vpop.permute.xlu0 %3369  ;;  %3403 = vrot.lane.b32.xlu1 %v11012_v40, %s8156_s18  ;;  %v7926_v54 = vpop.eup %7925  ;;  %7945 = vrcp.f32 %v3566_v32 }
 0x52f   : > { %v7928_v51 = vpop.eup %7927  ;;  %7947 = vrcp.f32 %v3567_v56  ;;  %v15758_v56 = vld [vmem:[#allocation217_spill] sm:$0xff] }
 0x530   : > { %v11049_v19 = vpop.permute.xlu1 %3371  ;;  %3722 = vrot.lane.b32.xlu0 %v11000_v12, %s8157_s20  ;;  %v7930_v50 = vpop.eup %7929  ;;  %v3797_v22 = vmul.f32 %v15758_v56, %v15757_v9 }
 0x531   : > { %v7932_v30 = vpop.eup %7931 }
 0x532   : > { %v11057_v6 = vpop.permute.xlu0 %3690  ;;  %3724 = vrot.lane.b32.xlu1 %v11012_v40, %s8157_s20 }
 0x533   : > { %15748 = vst [vmem:[#allocation314_spill] sm:$0xff] %v11057_v6 }
 0x534   : > { %v11065_v45 = vpop.permute.xlu1 %3692  ;;  %4030 = vrot.lane.b32.xlu0 %v7926_v54, %s8157_s20 }
 0x535   : > { %15750 = vst [vmem:[#allocation315_spill] sm:$0xff] %v11065_v45 }
 0x536   : > { %v11072_v21 = vpop.permute.xlu0 %4014  ;;  %4032 = vrot.lane.b32.xlu1 %v7928_v51, %s8157_s20  ;;  %v7934_v51 = vpop.eup %7933 }
 0x537   : > { %v7936_v16 = vpop.eup %7935 }
 0x538   : > { %v11079_v54 = vpop.permute.xlu1 %4016  ;;  %4026 = vrot.lane.b32.xlu0 %v7930_v50, %s8157_s20  ;;  %v7938_v1 = vpop.eup %7937 }
 0x539   : > { %v7940_v50 = vpop.eup %7939 }
 0x53a   : > { %v11083_v17 = vpop.permute.xlu0 %4010  ;;  %4028 = vrot.lane.b32.xlu1 %v7932_v30, %s8157_s20  ;;  %v7942_v27 = vpop.eup %7941  ;;  %v15755_v30 = vld [vmem:[#allocation6_spill] sm:$0xff] }
 0x53c   : > { %v11087_v46 = vpop.permute.xlu1 %4012  ;;  %4038 = vrot.lane.b32.xlu0 %v7934_v51, %s8157_s20  ;;  %v15756_v51 = vld [vmem:[#allocation216_spill] sm:$0xff] }
 0x53d   : > { %v3796_v53 = vmul.f32 %v15756_v51, %v15755_v30  ;;  %v15761_v51 = vld [vmem:[#allocation86_spill] sm:$0xff] }
 0x53e   : > { %v11090_v43 = vpop.permute.xlu0 %3189  ;;  %4040 = vrot.lane.b32.xlu1 %v7936_v16, %s8157_s20  ;;  %v7944_v16 = vpop.eup %7943 }
 0x53f   : > { %v4180_v55 = vmul.f32 %v10770_v24, %v3796_v53  ;;  %v7946_v42 = vpop.eup %7945  ;;  %v15763_v24 = vld [vmem:[#allocation87_spill] sm:$0xff] }
 0x540   : > { %v11093_v62 = vpop.permute.xlu1 %3191  ;;  %4034 = vrot.lane.b32.xlu0 %v7938_v1, %s8157_s20  ;;  %v7948_v30 = vpop.eup %7947 }
 0x542   : > { %v11096_v2 = vpop.permute.xlu0 %3381  ;;  %4036 = vrot.lane.b32.xlu1 %v7940_v50, %s8157_s20  ;;  %v4181_v50 = vmul.f32 %v10778_v20, %v3797_v22  ;;  %v15766_v22 = vld [vmem:[#allocation220_spill] sm:$0xff] }
 0x544   : > { %v11101_v32 = vpop.permute.xlu1 %3383  ;;  %4046 = vrot.lane.b32.xlu0 %v7942_v27, %s8157_s20  ;;  %v11115_v27 = vmul.f32 %v15761_v51, %v4180_v55  ;;  %v11121_v53 = vmul.f32 %v15763_v24, %v4181_v50  ;;  %v15768_v51 = vld [vmem:[#allocation221_spill] sm:$0xff] }
 0x546   : > { %v11107_v1 = vpop.permute.xlu0 %3702  ;;  %4048 = vrot.lane.b32.xlu1 %v7944_v16, %s8157_s20  ;;  %15762 = vst [vmem:[#allocation8_spill] sm:$0xff] %v11115_v27  ;;  %15764 = vst [vmem:[#allocation217_spill] sm:$0xff] %v11121_v53 }
 0x547   : > { %15759 = vst [vmem:[#allocation6_spill] sm:$0xff] %v11107_v1 }
 0x548   : > { %v11111_v31 = vpop.permute.xlu1 %3704  ;;  %4042 = vrot.lane.b32.xlu0 %v7946_v42, %s8157_s20  ;;  %v15765_v42 = vld [vmem:[#allocation2_spill] sm:$0xff] }
 0x549   : > { %15760 = vst [vmem:[#allocation216_spill] sm:$0xff] %v11111_v31  ;;  %v3794_v16 = vmul.f32 %v15766_v22, %v15765_v42  ;;  %v15769_v31 = vld [vmem:[#allocation82_spill] sm:$0xff]  ;;  %v3509_v42 = vsel %vm3473_vm1, %v10718_v18, %v10726_v10  ;;  %v15772_v22 = vld [vmem:[#allocation83_spill] sm:$0xff] }
 0x54a   : > { %v11117_v60 = vpop.permute.xlu0 %3185  ;;  %4044 = vrot.lane.b32.xlu1 %v7948_v30, %s8157_s20  ;;  %v15767_v30 = vld [vmem:[#allocation4_spill] sm:$0xff]  ;;  %v11143_v1 = vmul.f32 %v15769_v31, %v4180_v55  ;;  %v3506_v31 = vsel %vm3473_vm1, %v10739_v15, %v10750_v37  ;;  %v15776_v55 = vld [vmem:[#allocation78_spill] sm:$0xff]  ;;  %v15778_v10 = vld [vmem:[#allocation247_spill] sm:$0xff] }
 0x54b   : > { %v3795_v24 = vmul.f32 %v15768_v51, %v15767_v30  ;;  %v4178_v45 = vmul.f32 %v10782_v44, %v3794_v16  ;;  %v11154_v30 = vmul.f32 %v15772_v22, %v4181_v50  ;;  %v3572_v44 = vadd.f32 %v3508_v57, %v15775_v59  ;;  %v15781_v15 = vld [vmem:[#allocation254_spill] sm:$0xff] }
 0x54c   : > { %v11123_v9 = vpop.permute.xlu1 %3187  ;;  %4950 = vrot.lane.b32.xlu0 %v11115_v27, %s8158_s25  ;;  %15770 = vst [vmem:[#allocation86_spill] sm:$0xff] %v11143_v1  ;;  %v3507_v50 = vsel %vm3473_vm1, %v10746_v23, %v10754_v5  ;;  %v3570_v37 = vadd.f32 %v3506_v31, %v15781_v15  ;;  %v15783_v5 = vld [vmem:[#allocation74_spill] sm:$0xff]  ;;  %v15786_v31 = vld [vmem:[#allocation75_spill] sm:$0xff] }
 0x54d   : > { %15773 = vst [vmem:[#allocation2_spill] sm:$0xff] %v11154_v30  ;;  %v4179_v51 = vmul.f32 %v10786_v48, %v3795_v24  ;;  %v11166_v16 = vmul.f32 %v15776_v55, %v4178_v45  ;;  %v3573_v48 = vadd.f32 %v3509_v42, %v15778_v10  ;;  %v15779_v24 = vld [vmem:[#allocation79_spill] sm:$0xff]  ;;  %7949 = vrcp.f32 %v3572_v44 }
 0x54e   : > { %v11127_v20 = vpop.permute.xlu0 %3377  ;;  %4952 = vrot.lane.b32.xlu1 %v11121_v53, %s8158_s25  ;;  %v15782_v42 = vld [vmem:[#allocation255_spill] sm:$0xff] }
 0x54f   : > { %15777 = vst [vmem:[#allocation4_spill] sm:$0xff] %v11166_v16  ;;  %v11177_v57 = vmul.f32 %v15779_v24, %v4179_v51  ;;  %7951 = vrcp.f32 %v3573_v48  ;;  %v3571_v10 = vadd.f32 %v3507_v50, %v15782_v42  ;;  %v11194_v24 = vmul.f32 %v15783_v5, %v4178_v45  ;;  %v15790_v5 = vld [vmem:[#allocation224_spill] sm:$0xff] }
 0x550   : > { %v11133_v56 = vpop.permute.xlu1 %3379  ;;  %5142 = vrot.lane.b32.xlu0 %v11115_v27, %s8159_s26  ;;  %7953 = vrcp.f32 %v3570_v37  ;;  %v11201_v59 = vmul.f32 %v15786_v31, %v4179_v51  ;;  %v15789_v37 = vld [vmem:[#allocation14_spill] sm:$0xff]  ;;  %v15792_v31 = vld [vmem:[#allocation225_spill] sm:$0xff] }
 0x551   : > { %15780 = vst [vmem:[#allocation221_spill] sm:$0xff] %v11177_v57  ;;  %15784 = vst [vmem:[#allocation82_spill] sm:$0xff] %v11194_v24  ;;  %7955 = vrcp.f32 %v3571_v10  ;;  %v3800_v42 = vmul.f32 %v15790_v5, %v15789_v37  ;;  %v15791_v10 = vld [vmem:[#allocation16_spill] sm:$0xff]  ;;  %v15793_v5 = vld [vmem:[#allocation102_spill] sm:$0xff] }
 0x552   : > { %v11146_v6 = vpop.permute.xlu0 %3698  ;;  %5144 = vrot.lane.b32.xlu1 %v11121_v53, %s8159_s26  ;;  %15787 = vst [vmem:[#allocation78_spill] sm:$0xff] %v11201_v59  ;;  %v3801_v53 = vmul.f32 %v15792_v31, %v15791_v10 }
 0x553   : > { %15771 = vst [vmem:[#allocation87_spill] sm:$0xff] %v11146_v6  ;;  %v4184_v27 = vmul.f32 %v10875_v13, %v3800_v42  ;;  %v15796_v13 = vld [vmem:[#allocation103_spill] sm:$0xff]  ;;  %v15840_v6 = vld [vmem:[#allocation73_spill] sm:$0xff] }
 0x554   : > { %v11157_v29 = vpop.permute.xlu1 %3700  ;;  %5846 = vrot.lane.b32.xlu0 %v11143_v1, %s8158_s25 }
 0x555   : > { %15774 = vst [vmem:[#allocation220_spill] sm:$0xff] %v11157_v29 }
 0x556   : > { %v11168_v18 = vpop.permute.xlu0 %3197  ;;  %5848 = vrot.lane.b32.xlu1 %v11154_v30, %s8158_s25  ;;  %v4185_v30 = vmul.f32 %v10879_v61, %v3801_v53  ;;  %v15799_v53 = vld [vmem:[#allocation10_spill] sm:$0xff] }
 0x557   : > { %v7950_v45 = vpop.eup %7949 }
 0x558   : > { %v11179_v22 = vpop.permute.xlu1 %3199  ;;  %4946 = vrot.lane.b32.xlu0 %v11166_v16, %s8158_s25  ;;  %v11233_v42 = vmul.f32 %v15796_v13, %v4185_v30 }
 0x559   : > { %v7952_v51 = vpop.eup %7951 }
 0x55a   : > { %v11184_v55 = vpop.permute.xlu0 %3389  ;;  %4948 = vrot.lane.b32.xlu1 %v11177_v57, %s8158_s25  ;;  %15797 = vst [vmem:[#allocation14_spill] sm:$0xff] %v11233_v42 }
 0x55c   : > { %v11189_v23 = vpop.permute.xlu1 %3391  ;;  %5138 = vrot.lane.b32.xlu0 %v11166_v16, %s8159_s26  ;;  %v7954_v16 = vpop.eup %7953 }
 0x55d   : > { %v7956_v37 = vpop.eup %7955 }
 0x55e   : > { %v11196_v44 = vpop.permute.xlu0 %3710  ;;  %5140 = vrot.lane.b32.xlu1 %v11177_v57, %s8159_s26 }
 0x55f   : > { %15785 = vst [vmem:[#allocation83_spill] sm:$0xff] %v11196_v44 }
 0x560   : > { %v11203_v48 = vpop.permute.xlu1 %3712  ;;  %5842 = vrot.lane.b32.xlu0 %v11194_v24, %s8158_s25  ;;  %v3512_v24 = vsel %vm3473_vm1, %v10790_v14, %v10802_v3  ;;  %v15807_v3 = vld [vmem:[#allocation260_spill] sm:$0xff] }
 0x561   : > { %15788 = vst [vmem:[#allocation79_spill] sm:$0xff] %v11203_v48 }
 0x562   : > { %v11207_v50 = vpop.permute.xlu0 %3193  ;;  %5844 = vrot.lane.b32.xlu1 %v11201_v59, %s8158_s25 }
 0x564   : > { %v11213_v15 = vpop.permute.xlu1 %3195  ;;  %4054 = vrot.lane.b32.xlu0 %v7950_v45, %s8157_s20  ;;  %v11227_v45 = vmul.f32 %v15793_v5, %v4184_v27  ;;  %v15802_v5 = vld [vmem:[#allocation229_spill] sm:$0xff] }
 0x566   : > { %v11219_v57 = vpop.permute.xlu0 %3385  ;;  %4056 = vrot.lane.b32.xlu1 %v7952_v51, %s8157_s20  ;;  %15794 = vst [vmem:[#allocation74_spill] sm:$0xff] %v11227_v45 }
 0x568   : > { %v11223_v1 = vpop.permute.xlu1 %3387  ;;  %4050 = vrot.lane.b32.xlu0 %v7954_v16, %s8157_s20  ;;  %v15800_v16 = vld [vmem:[#allocation228_spill] sm:$0xff] }
 0x569   : > { %v3798_v51 = vmul.f32 %v15800_v16, %v15799_v53  ;;  %v3513_v53 = vsel %vm3473_vm1, %v10794_v0, %v10815_v63  ;;  %v15805_v16 = vld [vmem:[#allocation99_spill] sm:$0xff]  ;;  %v15810_v0 = vld [vmem:[#allocation261_spill] sm:$0xff] }
 0x56a   : > { %v11229_v59 = vpop.permute.xlu0 %3706  ;;  %4052 = vrot.lane.b32.xlu1 %v7956_v37, %s8157_s20  ;;  %v15801_v37 = vld [vmem:[#allocation12_spill] sm:$0xff] }
 0x56b   : > { %15795 = vst [vmem:[#allocation75_spill] sm:$0xff] %v11229_v59  ;;  %v3799_v13 = vmul.f32 %v15802_v5, %v15801_v37  ;;  %v4182_v48 = vmul.f32 %v10883_v33, %v3798_v51  ;;  %v11266_v37 = vmul.f32 %v15805_v16, %v4185_v30  ;;  %v3576_v33 = vadd.f32 %v3512_v24, %v15807_v3  ;;  %v15811_v30 = vld [vmem:[#allocation291_spill] sm:$0xff] }
 0x56c   : > { %v11235_v10 = vpop.permute.xlu1 %3708  ;;  %4958 = vrot.lane.b32.xlu0 %v11227_v45, %s8158_s25  ;;  %v15812_v16 = vld [vmem:[#allocation95_spill] sm:$0xff] }
 0x56d   : > { %15798 = vst [vmem:[#allocation224_spill] sm:$0xff] %v11235_v10  ;;  %v15803_v10 = vld [vmem:[#allocation98_spill] sm:$0xff]  ;;  %15806 = vst [vmem:[#allocation225_spill] sm:$0xff] %v11266_v37  ;;  %v4183_v5 = vmul.f32 %v10887_v11, %v3799_v13  ;;  %v3577_v11 = vadd.f32 %v3513_v53, %v15810_v0  ;;  %v3511_v13 = vsel %vm3473_vm1, %v15811_v30, %v10861_v8  ;;  %7957 = vrcp.f32 %v3576_v33  ;;  %v15815_v53 = vld [vmem:[#allocation265_spill] sm:$0xff] }
 0x56e   : > { %v11239_v61 = vpop.permute.xlu0 %4022  ;;  %4960 = vrot.lane.b32.xlu1 %v11233_v42, %s8158_s25  ;;  %v11255_v59 = vmul.f32 %v15803_v10, %v4184_v27  ;;  %v3510_v27 = vsel %vm3473_vm1, %v10830_v41, %v10849_v25  ;;  %v15808_v10 = vld [vmem:[#allocation94_spill] sm:$0xff]  ;;  %v15814_v41 = vld [vmem:[#allocation264_spill] sm:$0xff]  ;;  %v3575_v0 = vadd.f32 %v3511_v13, %v15815_v53 }
 0x56f   : > { %v11278_v51 = vmul.f32 %v15808_v10, %v4182_v48  ;;  %v11289_v24 = vmul.f32 %v15812_v16, %v4183_v5  ;;  %v3574_v25 = vadd.f32 %v3510_v27, %v15814_v41  ;;  %7959 = vrcp.f32 %v3577_v11  ;;  %v15816_v30 = vld [vmem:[#allocation90_spill] sm:$0xff]  ;;  %v15819_v27 = vld [vmem:[#allocation91_spill] sm:$0xff] }
 0x570   : > { %v11245_v31 = vpop.permute.xlu1 %4024  ;;  %5150 = vrot.lane.b32.xlu0 %v11227_v45, %s8159_s26  ;;  %15804 = vst [vmem:[#allocation16_spill] sm:$0xff] %v11255_v59  ;;  %v11306_v16 = vmul.f32 %v15816_v30, %v4182_v48  ;;  %v11313_v41 = vmul.f32 %v15819_v27, %v4183_v5  ;;  %v15823_v30 = vld [vmem:[#allocation232_spill] sm:$0xff]  ;;  %v15825_v27 = vld [vmem:[#allocation233_spill] sm:$0xff] }
 0x571   : > { %15809 = vst [vmem:[#allocation102_spill] sm:$0xff] %v11278_v51  ;;  %15813 = vst [vmem:[#allocation103_spill] sm:$0xff] %v11289_v24  ;;  %7961 = vrcp.f32 %v3574_v25  ;;  %v15822_v25 = vld [vmem:[#allocation22_spill] sm:$0xff] }
 0x572   : > { %v11258_v44 = vpop.permute.xlu0 %4018  ;;  %5152 = vrot.lane.b32.xlu1 %v11233_v42, %s8159_s26  ;;  %15817 = vst [vmem:[#allocation10_spill] sm:$0xff] %v11306_v16  ;;  %7963 = vrcp.f32 %v3575_v0  ;;  %15820 = vst [vmem:[#allocation12_spill] sm:$0xff] %v11313_v41  ;;  %v3804_v53 = vmul.f32 %v15823_v30, %v15822_v25  ;;  %v15824_v0 = vld [vmem:[#allocation24_spill] sm:$0xff]  ;;  %v15826_v30 = vld [vmem:[#allocation110_spill] sm:$0xff] }
 0x573   : > { %v3805_v45 = vmul.f32 %v15825_v27, %v15824_v0 }
 0x574   : > { %v11269_v14 = vpop.permute.xlu1 %4020  ;;  %5854 = vrot.lane.b32.xlu0 %v11255_v59, %s8158_s25 }
 0x575   : > { %v4189_v59 = vmul.f32 %v10955_v49, %v3805_v45  ;;  %v15832_v45 = vld [vmem:[#allocation18_spill] sm:$0xff] }
 0x576   : > { %v11280_v63 = vpop.permute.xlu0 %3205  ;;  %5856 = vrot.lane.b32.xlu1 %v11266_v37, %s8158_s25 }
 0x577   : > { %v7958_v48 = vpop.eup %7957 }
 0x578   : > { %v11291_v3 = vpop.permute.xlu1 %3207  ;;  %4954 = vrot.lane.b32.xlu0 %v11278_v51, %s8158_s25 }
 0x579   : > { %v7960_v5 = vpop.eup %7959 }
 0x57a   : > { %v11296_v10 = vpop.permute.xlu0 %3397  ;;  %4956 = vrot.lane.b32.xlu1 %v11289_v24, %s8158_s25 }
 0x57b   : > { %v7962_v37 = vpop.eup %7961 }
 0x57c   : > { %v11301_v8 = vpop.permute.xlu1 %3399  ;;  %5146 = vrot.lane.b32.xlu0 %v11278_v51, %s8159_s26  ;;  %v7964_v25 = vpop.eup %7963 }
 0x57e   : > { %v11308_v33 = vpop.permute.xlu0 %3718  ;;  %5148 = vrot.lane.b32.xlu1 %v11289_v24, %s8159_s26  ;;  %v4188_v24 = vmul.f32 %v10951_v4, %v3804_v53  ;;  %v15829_v4 = vld [vmem:[#allocation111_spill] sm:$0xff] }
 0x57f   : > { %15818 = vst [vmem:[#allocation228_spill] sm:$0xff] %v11308_v33  ;;  %v11345_v53 = vmul.f32 %v15829_v4, %v4189_v59 }
 0x580   : > { %v11315_v11 = vpop.permute.xlu1 %3720  ;;  %5850 = vrot.lane.b32.xlu0 %v11306_v16, %s8158_s25 }
 0x581   : > { %15821 = vst [vmem:[#allocation229_spill] sm:$0xff] %v11315_v11  ;;  %15830 = vst [vmem:[#allocation94_spill] sm:$0xff] %v11345_v53 }
 0x582   : > { %v11319_v13 = vpop.permute.xlu0 %3201  ;;  %5852 = vrot.lane.b32.xlu1 %v11313_v41, %s8158_s25 }
 0x584   : > { %v11325_v42 = vpop.permute.xlu1 %3203  ;;  %4062 = vrot.lane.b32.xlu0 %v7958_v48, %s8157_s20  ;;  %v11339_v48 = vmul.f32 %v15826_v30, %v4188_v24  ;;  %v15835_v30 = vld [vmem:[#allocation241_spill] sm:$0xff] }
 0x586   : > { %v11331_v51 = vpop.permute.xlu0 %3393  ;;  %4064 = vrot.lane.b32.xlu1 %v7960_v5, %s8157_s20  ;;  %15827 = vst [vmem:[#allocation98_spill] sm:$0xff] %v11339_v48 }
 0x588   : > { %v11335_v41 = vpop.permute.xlu1 %3395  ;;  %4058 = vrot.lane.b32.xlu0 %v7962_v37, %s8157_s20  ;;  %v15833_v37 = vld [vmem:[#allocation238_spill] sm:$0xff] }
 0x589   : > { %v3802_v5 = vmul.f32 %v15833_v37, %v15832_v45  ;;  %v15838_v45 = vld [vmem:[#allocation295_spill] sm:$0xff]  ;;  %v15839_v37 = vld [vmem:[#allocation294_spill] sm:$0xff] }
 0x58a   : > { %v11341_v16 = vpop.permute.xlu0 %3714  ;;  %4060 = vrot.lane.b32.xlu1 %v7964_v25, %s8157_s20  ;;  %v15834_v25 = vld [vmem:[#allocation20_spill] sm:$0xff] }
 0x58b   : > { %15828 = vst [vmem:[#allocation99_spill] sm:$0xff] %v11341_v16  ;;  %v3803_v4 = vmul.f32 %v15835_v30, %v15834_v25  ;;  %v15836_v16 = vld [vmem:[#allocation72_spill] sm:$0xff]  ;;  %v4186_v33 = vmul.f32 %v10963_v38, %v3802_v5  ;;  %v11378_v25 = vmul.f32 %v15840_v6, %v4189_v59  ;;  %v15842_v30 = vld [vmem:[#allocation307_spill] sm:$0xff]  ;;  %v15849_v6 = vld [vmem:[#allocation270_spill] sm:$0xff] }
 0x58c   : > { %v11347_v0 = vpop.permute.xlu1 %3716  ;;  %4966 = vrot.lane.b32.xlu0 %v11339_v48, %s8158_s25  ;;  %v11367_v11 = vmul.f32 %v15836_v16, %v4188_v24  ;;  %v15843_v38 = vld [vmem:[#allocation268_spill] sm:$0xff]  ;;  %v15845_v16 = vld [vmem:[#allocation298_spill] sm:$0xff] }
 0x58d   : > { %15831 = vst [vmem:[#allocation291_spill] sm:$0xff] %v11347_v0  ;;  %v3516_v0 = vsel %vm3473_vm1, %v10890_v58, %v10900_v52  ;;  %15841 = vst [vmem:[#allocation90_spill] sm:$0xff] %v11378_v25  ;;  %v4187_v34 = vmul.f32 %v15842_v30, %v3803_v4  ;;  %v15844_v24 = vld [vmem:[#allocation300_spill] sm:$0xff]  ;;  %v15850_v4 = vld [vmem:[#allocation302_spill] sm:$0xff] }
 0x58e   : > { %v11351_v49 = vpop.permute.xlu0 %3213  ;;  %4968 = vrot.lane.b32.xlu1 %v11345_v53, %s8158_s25  ;;  %15837 = vst [vmem:[#allocation95_spill] sm:$0xff] %v11367_v11  ;;  %v3580_v58 = vadd.f32 %v3516_v0, %v15843_v38  ;;  %v3514_v5 = vsel %vm3473_vm1, %v15845_v16, %v15844_v24 }
 0x590   : > { %5158 = vrot.lane.b32.xlu0 %v11339_v48, %s8159_s26  ;;  %v11359_v27 = vpop.permute.xlu1 %3215  ;;  %v3517_v48 = vsel %vm3473_vm1, %v15839_v37, %v15838_v45  ;;  %v15851_v37 = vld [vmem:[#allocation299_spill] sm:$0xff]  ;;  %7965 = vrcp.f32 %v3580_v58 }
 0x591   : > { %v3581_v59 = vadd.f32 %v3517_v48, %v15849_v6  ;;  %v3515_v30 = vsel %vm3473_vm1, %v15851_v37, %v15850_v4  ;;  %v15856_v48 = vld [vmem:[#allocation274_spill] sm:$0xff] }
 0x592   : > { %v11370_v29 = vpop.permute.xlu0 %3405  ;;  %5160 = vrot.lane.b32.xlu1 %v11345_v53, %s8159_s26  ;;  %v15846_v53 = vld [vmem:[#allocation60_spill] sm:$0xff]  ;;  %v3579_v6 = vadd.f32 %v3515_v30, %v15856_v48  ;;  %v15857_v4 = vld [vmem:[#allocation106_spill] sm:$0xff] }
 0x593   : > { %v11390_v39 = vmul.f32 %v15846_v53, %v4186_v33  ;;  %v15855_v53 = vld [vmem:[#allocation272_spill] sm:$0xff]  ;;  %7967 = vrcp.f32 %v3581_v59  ;;  %v11418_v37 = vmul.f32 %v15857_v4, %v4186_v33  ;;  %v15863_v4 = vld [vmem:[#allocation249_spill] sm:$0xff] }
 0x594   : > { %5862 = vrot.lane.b32.xlu0 %v11367_v11, %s8158_s25  ;;  %v11383_v52 = vpop.permute.xlu1 %3407  ;;  %v15852_v11 = vld [vmem:[#allocation62_spill] sm:$0xff]  ;;  %v3578_v16 = vadd.f32 %v3514_v5, %v15855_v53 }
 0x595   : > { %15847 = vst [vmem:[#allocation91_spill] sm:$0xff] %v11390_v39  ;;  %v11401_v0 = vmul.f32 %v15852_v11, %v4187_v34  ;;  %15858 = vst [vmem:[#allocation233_spill] sm:$0xff] %v11418_v37  ;;  %v15859_v5 = vld [vmem:[#allocation58_spill] sm:$0xff] }
 0x596   : > { %v11392_v45 = vpop.permute.xlu0 %3726  ;;  %5864 = vrot.lane.b32.xlu1 %v11378_v25, %s8158_s25  ;;  %7969 = vrcp.f32 %v3578_v16  ;;  %v11425_v53 = vmul.f32 %v15859_v5, %v4187_v34  ;;  %v15862_v16 = vld [vmem:[#allocation30_spill] sm:$0xff]  ;;  %v15865_v5 = vld [vmem:[#allocation32_spill] sm:$0xff] }
 0x597   : > { %15848 = vst [vmem:[#allocation22_spill] sm:$0xff] %v11392_v45  ;;  %15853 = vst [vmem:[#allocation232_spill] sm:$0xff] %v11401_v0  ;;  %7971 = vrcp.f32 %v3579_v6  ;;  %v3808_v48 = vmul.f32 %v15863_v4, %v15862_v16  ;;  %v15869_v4 = vld [vmem:[#allocation308_spill] sm:$0xff] }
 0x598   : > { %4962 = vrot.lane.b32.xlu0 %v11390_v39, %s8158_s25  ;;  %v11405_v24 = vpop.permute.xlu1 %3728  ;;  %15860 = vst [vmem:[#allocation110_spill] sm:$0xff] %v11425_v53 }
 0x599   : > { %15854 = vst [vmem:[#allocation24_spill] sm:$0xff] %v11405_v24  ;;  %v11443_v25 = vmul.f32 %v11072_v21, %v3808_v48  ;;  %v15870_v21 = vld [vmem:[#allocation126_spill] sm:$0xff]  ;;  %v15875_v24 = vld [vmem:[#allocation127_spill] sm:$0xff] }
 0x59a   : > { %v11408_v38 = vpop.permute.xlu0 %3209  ;;  %4964 = vrot.lane.b32.xlu1 %v11401_v0, %s8158_s25  ;;  %v7966_v33 = vpop.eup %7965 }
 0x59b   : > { %15867 = vst [vmem:[#allocation238_spill] sm:$0xff] %v11443_v25  ;;  %v11459_v48 = vmul.f32 %v15870_v21, %v11443_v25  ;;  %v15878_v25 = vld [vmem:[#allocation28_spill] sm:$0xff] }
 0x59c   : > { %5154 = vrot.lane.b32.xlu0 %v11390_v39, %s8159_s26  ;;  %v11415_v11 = vpop.permute.xlu1 %3211 }
 0x59d   : > { %v7968_v34 = vpop.eup %7967  ;;  %15871 = vst [vmem:[#allocation241_spill] sm:$0xff] %v11459_v48 }
 0x59e   : > { %v11420_v58 = vpop.permute.xlu0 %3401  ;;  %5156 = vrot.lane.b32.xlu1 %v11401_v0, %s8159_s26  ;;  %v15866_v0 = vld [vmem:[#allocation250_spill] sm:$0xff] }
 0x59f   : > { %v3809_v39 = vmul.f32 %v15866_v0, %v15865_v5  ;;  %v3520_v0 = vsel %vm3473_vm1, %v15869_v4, %v10986_v26  ;;  %v15877_v4 = vld [vmem:[#allocation278_spill] sm:$0xff] }
 0x5a0   : > { %5858 = vrot.lane.b32.xlu0 %v11418_v37, %s8158_s25  ;;  %v11429_v59 = vpop.permute.xlu1 %3403  ;;  %v3584_v21 = vadd.f32 %v3520_v0, %v15877_v4  ;;  %v3519_v0 = vsel %vm3473_vm1, %v11033_v36, %v11049_v19  ;;  %v15885_v19 = vld [vmem:[#allocation119_spill] sm:$0xff] }
 0x5a2   : > { %v11431_v30 = vpop.permute.xlu0 %3722  ;;  %5860 = vrot.lane.b32.xlu1 %v11425_v53, %s8158_s25  ;;  %v7970_v53 = vpop.eup %7969  ;;  %7973 = vrcp.f32 %v3584_v21 }
 0x5a3   : > { %15861 = vst [vmem:[#allocation111_spill] sm:$0xff] %v11431_v30  ;;  %v11449_v30 = vmul.f32 %v11079_v54, %v3809_v39  ;;  %v7972_v16 = vpop.eup %7971  ;;  %v15873_v39 = vld [vmem:[#allocation256_spill] sm:$0xff] }
 0x5a4   : > { %4070 = vrot.lane.b32.xlu0 %v7966_v33, %s8157_s20  ;;  %v11438_v6 = vpop.permute.xlu1 %3724 }
 0x5a5   : > { %15864 = vst [vmem:[#allocation18_spill] sm:$0xff] %v11438_v6  ;;  %15868 = vst [vmem:[#allocation20_spill] sm:$0xff] %v11449_v30  ;;  %v11471_v45 = vmul.f32 %v15875_v24, %v11449_v30  ;;  %v15880_v24 = vld [vmem:[#allocation279_spill] sm:$0xff] }
 0x5a6   : > { %v11445_v37 = vpop.permute.xlu0 %4030  ;;  %4072 = vrot.lane.b32.xlu1 %v7968_v34, %s8157_s20  ;;  %v15872_v34 = vld [vmem:[#allocation26_spill] sm:$0xff] }
 0x5a7   : > { %v3806_v54 = vmul.f32 %v15873_v39, %v15872_v34  ;;  %15876 = vst [vmem:[#allocation72_spill] sm:$0xff] %v11471_v45  ;;  %v3518_v34 = vsel %vm3473_vm1, %v11025_v47, %v11041_v35  ;;  %v15881_v35 = vld [vmem:[#allocation282_spill] sm:$0xff] }
 0x5a8   : > { %4066 = vrot.lane.b32.xlu0 %v7970_v53, %s8157_s20  ;;  %v11452_v33 = vpop.permute.xlu1 %4032  ;;  %v15874_v53 = vld [vmem:[#allocation309_spill] sm:$0xff] }
 0x5a9   : > { %v3521_v6 = vsel %vm3473_vm1, %v15874_v53, %v10993_v28  ;;  %v11484_v28 = vmul.f32 %v11083_v17, %v3806_v54  ;;  %v3582_v17 = vadd.f32 %v3518_v34, %v15881_v35  ;;  %v15882_v54 = vld [vmem:[#allocation118_spill] sm:$0xff] }
 0x5aa   : > { %v11461_v5 = vpop.permute.xlu0 %4026  ;;  %4068 = vrot.lane.b32.xlu1 %v7972_v16, %s8157_s20  ;;  %v15879_v16 = vld [vmem:[#allocation257_spill] sm:$0xff]  ;;  %v3585_v53 = vadd.f32 %v3521_v6, %v15880_v24  ;;  %v15888_v24 = vld [vmem:[#allocation258_spill] sm:$0xff] }
 0x5ab   : > { %v3807_v40 = vmul.f32 %v15879_v16, %v15878_v25  ;;  %v11504_v16 = vmul.f32 %v15882_v54, %v11484_v28 }
 0x5ac   : > { %4974 = vrot.lane.b32.xlu0 %v11459_v48, %s8158_s25  ;;  %v11475_v26 = vpop.permute.xlu1 %4028  ;;  %7975 = vrcp.f32 %v3585_v53 }
 0x5ad   : > { %v11495_v25 = vmul.f32 %v11087_v46, %v3807_v40  ;;  %15883 = vst [vmem:[#allocation295_spill] sm:$0xff] %v11504_v16  ;;  %v15884_v40 = vld [vmem:[#allocation234_spill] sm:$0xff]  ;;  %7977 = vrcp.f32 %v3582_v17  ;;  %v7974_v17 = vpop.eup %7973 }
 0x5ae   : > { %v11486_v39 = vpop.permute.xlu0 %4038  ;;  %4976 = vrot.lane.b32.xlu1 %v11471_v45, %s8158_s25  ;;  %v3583_v36 = vadd.f32 %v3519_v0, %v15884_v40  ;;  %v3524_v0 = vsel %vm3473_vm1, %v11090_v43, %v11096_v2  ;;  %v15890_v2 = vld [vmem:[#allocation37_spill] sm:$0xff] }
 0x5af   : > { %v11513_v46 = vmul.f32 %v15885_v19, %v11495_v25  ;;  %v15887_v19 = vld [vmem:[#allocation36_spill] sm:$0xff] }
 0x5b0   : > { %5166 = vrot.lane.b32.xlu0 %v11459_v48, %s8159_s26  ;;  %v11499_v47 = vpop.permute.xlu1 %4040  ;;  %7979 = vrcp.f32 %v3583_v36  ;;  %v3812_v4 = vmul.f32 %v15888_v24, %v15887_v19  ;;  %v3525_v36 = vsel %vm3473_vm1, %v11093_v62, %v11101_v32  ;;  %v15891_v48 = vld [vmem:[#allocation259_spill] sm:$0xff]  ;;  %v15892_v19 = vld [vmem:[#allocation240_spill] sm:$0xff] }
 0x5b1   : > { %15886 = vst [vmem:[#allocation294_spill] sm:$0xff] %v11513_v46  ;;  %v3589_v62 = vadd.f32 %v3525_v36, %v15892_v19 }
 0x5b2   : > { %v11506_v6 = vpop.permute.xlu0 %4034  ;;  %5168 = vrot.lane.b32.xlu1 %v11471_v45, %s8159_s26  ;;  %v15889_v45 = vld [vmem:[#allocation237_spill] sm:$0xff] }
 0x5b3   : > { %v3588_v43 = vadd.f32 %v3524_v0, %v15889_v45 }
 0x5b4   : > { %4970 = vrot.lane.b32.xlu0 %v11504_v16, %s8158_s25  ;;  %v11517_v21 = vpop.permute.xlu1 %4036 }
 0x5b5   : > { %7981 = vrcp.f32 %v3588_v43 }
 0x5b6   : > { %v11519_v34 = vpop.permute.xlu0 %4046  ;;  %4972 = vrot.lane.b32.xlu1 %v11513_v46, %s8158_s25  ;;  %v7976_v35 = vpop.eup %7975  ;;  %7983 = vrcp.f32 %v3589_v62 }
 0x5b7   : > { %v7978_v24 = vpop.eup %7977 }
 0x5b8   : > { %5162 = vrot.lane.b32.xlu0 %v11504_v16, %s8159_s26  ;;  %v11525_v53 = vpop.permute.xlu1 %4048  ;;  %v3813_v16 = vmul.f32 %v15891_v48, %v15890_v2  ;;  %v15893_v48 = vld [vmem:[#allocation136_spill] sm:$0xff]  ;;  %v15898_v2 = vld [vmem:[#allocation34_spill] sm:$0xff] }
 0x5ba   : > { %v11530_v54 = vpop.permute.xlu0 %4042  ;;  %5164 = vrot.lane.b32.xlu1 %v11513_v46, %s8159_s26  ;;  %v11546_v46 = vmul.f32 %v11239_v61, %v3812_v4  ;;  %v11553_v32 = vmul.f32 %v11245_v31, %v3813_v16  ;;  %v7980_v0 = vpop.eup %7979  ;;  %v3522_v16 = vsel %vm3473_vm1, %v11117_v60, %v11127_v20  ;;  %v15902_v60 = vld [vmem:[#allocation35_spill] sm:$0xff] }
 0x5bb   : > { %v15903_v20 = vld [vmem:[#allocation263_spill] sm:$0xff] }
 0x5bc   : > { %4078 = vrot.lane.b32.xlu0 %v7974_v17, %s8157_s20  ;;  %v11540_v40 = vpop.permute.xlu1 %4044  ;;  %v11560_v61 = vmul.f32 %v15893_v48, %v11546_v46  ;;  %v3811_v45 = vmul.f32 %v15903_v20, %v15902_v60  ;;  %v3526_v20 = vsel %vm3473_vm1, %v11207_v50, %v11219_v57  ;;  %v15911_v50 = vld [vmem:[#allocation245_spill] sm:$0xff] }
 0x5be   : > { %v11548_v30 = vpop.permute.xlu0 %4950  ;;  %4080 = vrot.lane.b32.xlu1 %v7976_v35, %s8157_s20  ;;  %15894 = vst [vmem:[#allocation73_spill] sm:$0xff] %v11560_v61  ;;  %v15895_v35 = vld [vmem:[#allocation137_spill] sm:$0xff]  ;;  %v11607_v60 = vmul.f32 %v11269_v14, %v3811_v45  ;;  %v3527_v45 = vsel %vm3473_vm1, %v11213_v15, %v11223_v1 }
 0x5bf   : > { %v11567_v36 = vmul.f32 %v15895_v35, %v11553_v32  ;;  %v15901_v35 = vld [vmem:[#allocation239_spill] sm:$0xff] }
 0x5c0   : > { %4074 = vrot.lane.b32.xlu0 %v7978_v24, %s8157_s20  ;;  %v11556_v17 = vpop.permute.xlu1 %4952  ;;  %v15899_v24 = vld [vmem:[#allocation262_spill] sm:$0xff]  ;;  %v3586_v19 = vadd.f32 %v3522_v16, %v15901_v35  ;;  %v3529_v16 = vsel %vm3473_vm1, %v11179_v22, %v11189_v23 }
 0x5c1   : > { %15896 = vst [vmem:[#allocation307_spill] sm:$0xff] %v11567_v36  ;;  %v3810_v62 = vmul.f32 %v15899_v24, %v15898_v2  ;;  %v15908_v23 = vld [vmem:[#allocation246_spill] sm:$0xff] }
 0x5c2   : > { %v11562_v4 = vpop.permute.xlu0 %5142  ;;  %4076 = vrot.lane.b32.xlu1 %v7980_v0, %s8157_s20  ;;  %v3523_v0 = vsel %vm3473_vm1, %v11123_v9, %v11133_v56  ;;  %v7982_v9 = vpop.eup %7981  ;;  %v15904_v56 = vld [vmem:[#allocation242_spill] sm:$0xff]  ;;  %7985 = vrcp.f32 %v3586_v19  ;;  %v3593_v14 = vadd.f32 %v3529_v16, %v15908_v23  ;;  %v15909_v19 = vld [vmem:[#allocation133_spill] sm:$0xff] }
 0x5c3   : > { %v11596_v2 = vmul.f32 %v11258_v44, %v3810_v62  ;;  %v15905_v44 = vld [vmem:[#allocation243_spill] sm:$0xff]  ;;  %v15916_v23 = vld [vmem:[#allocation266_spill] sm:$0xff] }
 0x5c4   : > { %4982 = vrot.lane.b32.xlu0 %v11560_v61, %s8158_s25  ;;  %v11571_v31 = vpop.permute.xlu1 %5144 }
 0x5c6   : > { %v11576_v43 = vpop.permute.xlu0 %5846  ;;  %4984 = vrot.lane.b32.xlu1 %v11567_v36, %s8158_s25 }
 0x5c7   : > { %15897 = vst [vmem:[#allocation300_spill] sm:$0xff] %v11576_v43  ;;  %v3528_v43 = vsel %vm3473_vm1, %v11168_v18, %v11184_v55  ;;  %v7984_v55 = vpop.eup %7983 }
 0x5c8   : > { %5174 = vrot.lane.b32.xlu0 %v11560_v61, %s8159_s26  ;;  %v11587_v48 = vpop.permute.xlu1 %5848  ;;  %v3592_v62 = vadd.f32 %v3528_v43, %v15905_v44  ;;  %v11629_v43 = vmul.f32 %v15909_v19, %v11607_v60 }
 0x5c9   : > { %15900 = vst [vmem:[#allocation298_spill] sm:$0xff] %v11587_v48  ;;  %v3587_v48 = vadd.f32 %v3523_v0, %v15904_v56  ;;  %v15906_v0 = vld [vmem:[#allocation132_spill] sm:$0xff] }
 0x5ca   : > { %v11598_v24 = vpop.permute.xlu0 %4946  ;;  %5176 = vrot.lane.b32.xlu1 %v11567_v36, %s8159_s26  ;;  %v11618_v56 = vmul.f32 %v15906_v0, %v11596_v2  ;;  %15910 = vst [vmem:[#allocation302_spill] sm:$0xff] %v11629_v43  ;;  %v15973_v36 = vld [vmem:[#allocation47_spill] sm:$0xff] }
 0x5cb   : > { %7987 = vrcp.f32 %v3587_v48  ;;  %v15913_v48 = vld [vmem:[#allocation248_spill] sm:$0xff] }
 0x5cc   : > { %4086 = vrot.lane.b32.xlu0 %v7982_v9, %s8157_s20  ;;  %v11610_v18 = vpop.permute.xlu1 %4948  ;;  %15907 = vst [vmem:[#allocation60_spill] sm:$0xff] %v11618_v56  ;;  %7989 = vrcp.f32 %v3592_v62  ;;  %v3590_v9 = vadd.f32 %v3526_v20, %v15911_v50  ;;  %v3591_v1 = vadd.f32 %v3527_v45, %v15913_v48  ;;  %v7986_v62 = vpop.eup %7985  ;;  %v15917_v50 = vld [vmem:[#allocation251_spill] sm:$0xff] }
 0x5cd   : > { %7991 = vrcp.f32 %v3593_v14  ;;  %v3532_v14 = vsel %vm3473_vm1, %v11280_v63, %v11296_v10  ;;  %v15918_v63 = vld [vmem:[#allocation41_spill] sm:$0xff]  ;;  %v15919_v10 = vld [vmem:[#allocation267_spill] sm:$0xff] }
 0x5ce   : > { %v11620_v22 = vpop.permute.xlu0 %5138  ;;  %4088 = vrot.lane.b32.xlu1 %v7984_v55, %s8157_s20  ;;  %7993 = vrcp.f32 %v3590_v9  ;;  %v15915_v9 = vld [vmem:[#allocation40_spill] sm:$0xff]  ;;  %v3596_v35 = vadd.f32 %v3532_v14, %v15917_v50 }
 0x5cf   : > { %7995 = vrcp.f32 %v3591_v1  ;;  %v3816_v44 = vmul.f32 %v15916_v23, %v15915_v9  ;;  %v3533_v1 = vsel %vm3473_vm1, %v11291_v3, %v11301_v8  ;;  %v15920_v9 = vld [vmem:[#allocation253_spill] sm:$0xff] }
 0x5d0   : > { %4978 = vrot.lane.b32.xlu0 %v11618_v56, %s8158_s25  ;;  %v11633_v57 = vpop.permute.xlu1 %5140  ;;  %v3597_v3 = vadd.f32 %v3533_v1, %v15920_v9  ;;  %7997 = vrcp.f32 %v3596_v35  ;;  %v3530_v35 = vsel %vm3473_vm1, %v11319_v13, %v11331_v51  ;;  %v15930_v51 = vld [vmem:[#allocation39_spill] sm:$0xff] }
 0x5d1   : > { %v15931_v13 = vld [vmem:[#allocation271_spill] sm:$0xff] }
 0x5d2   : > { %v11636_v55 = vpop.permute.xlu0 %5842  ;;  %4980 = vrot.lane.b32.xlu1 %v11629_v43, %s8158_s25  ;;  %7999 = vrcp.f32 %v3597_v3  ;;  %v3815_v50 = vmul.f32 %v15931_v13, %v15930_v51  ;;  %v3534_v13 = vsel %vm3473_vm1, %v11408_v38, %v11420_v58 }
 0x5d3   : > { %15912 = vst [vmem:[#allocation299_spill] sm:$0xff] %v11636_v55  ;;  %v3598_v58 = vadd.f32 %v3534_v13, %v11000_v12 }
 0x5d4   : > { %5170 = vrot.lane.b32.xlu0 %v11618_v56, %s8159_s26  ;;  %v11643_v15 = vpop.permute.xlu1 %5844  ;;  %v11731_v51 = vmul.f32 %v11475_v26, %v3815_v50  ;;  %v3535_v26 = vsel %vm3473_vm1, %v11415_v11, %v11429_v59  ;;  %v15936_v50 = vld [vmem:[#allocation141_spill] sm:$0xff] }
 0x5d5   : > { %15914 = vst [vmem:[#allocation62_spill] sm:$0xff] %v11643_v15  ;;  %v7988_v0 = vpop.eup %7987  ;;  %v3817_v15 = vmul.f32 %v15919_v10, %v15918_v63  ;;  %v15921_v63 = vld [vmem:[#allocation144_spill] sm:$0xff]  ;;  %v15926_v10 = vld [vmem:[#allocation38_spill] sm:$0xff] }
 0x5d6   : > { %v11645_v16 = vpop.permute.xlu0 %4054  ;;  %5172 = vrot.lane.b32.xlu1 %v11629_v43, %s8159_s26  ;;  %v7990_v19 = vpop.eup %7989 }
 0x5d7   : > { %v7992_v48 = vpop.eup %7991  ;;  %v11677_v8 = vmul.f32 %v11452_v33, %v3817_v15 }
 0x5d8   : > { %4082 = vrot.lane.b32.xlu0 %v7986_v62, %s8157_s20  ;;  %v11650_v20 = vpop.permute.xlu1 %4056  ;;  %v7994_v23 = vpop.eup %7993 }
 0x5d9   : > { %v7996_v14 = vpop.eup %7995 }
 0x5da   : > { %v11655_v45 = vpop.permute.xlu0 %4050  ;;  %4084 = vrot.lane.b32.xlu1 %v7988_v0, %s8157_s20  ;;  %v11670_v0 = vmul.f32 %v11445_v37, %v3816_v44 }
 0x5dc   : > { %4094 = vrot.lane.b32.xlu0 %v7990_v19, %s8157_s20  ;;  %v11664_v62 = vpop.permute.xlu1 %4052  ;;  %v11684_v37 = vmul.f32 %v15921_v63, %v11670_v0 }
 0x5de   : > { %v11672_v55 = vpop.permute.xlu0 %4958  ;;  %4096 = vrot.lane.b32.xlu1 %v7992_v48, %s8157_s20  ;;  %15922 = vst [vmem:[#allocation106_spill] sm:$0xff] %v11684_v37  ;;  %v15923_v48 = vld [vmem:[#allocation145_spill] sm:$0xff] }
 0x5df   : > { %v11691_v1 = vmul.f32 %v15923_v48, %v11677_v8  ;;  %v15929_v48 = vld [vmem:[#allocation252_spill] sm:$0xff] }
 0x5e0   : > { %4090 = vrot.lane.b32.xlu0 %v7994_v23, %s8157_s20  ;;  %v11680_v19 = vpop.permute.xlu1 %4960  ;;  %v15927_v23 = vld [vmem:[#allocation269_spill] sm:$0xff]  ;;  %v3594_v9 = vadd.f32 %v3530_v35, %v15929_v48  ;;  %v3537_v35 = vsel %vm3473_vm1, %v11359_v27, %v11383_v52 }
 0x5e1   : > { %15924 = vst [vmem:[#allocation58_spill] sm:$0xff] %v11691_v1  ;;  %v3814_v3 = vmul.f32 %v15927_v23, %v15926_v10  ;;  %v3601_v52 = vadd.f32 %v3537_v35, %v10969_v7 }
 0x5e2   : > { %v11686_v44 = vpop.permute.xlu0 %5150  ;;  %4092 = vrot.lane.b32.xlu1 %v7996_v14, %s8157_s20  ;;  %v3531_v14 = vsel %vm3473_vm1, %v11325_v42, %v11335_v41  ;;  %v7998_v42 = vpop.eup %7997  ;;  %v15932_v41 = vld [vmem:[#allocation301_spill] sm:$0xff]  ;;  %8001 = vrcp.f32 %v3594_v9  ;;  %v11753_v9 = vmul.f32 %v15936_v50, %v11731_v51 }
 0x5e3   : > { %v11720_v10 = vmul.f32 %v11461_v5, %v3814_v3  ;;  %v15933_v5 = vld [vmem:[#allocation305_spill] sm:$0xff] }
 0x5e4   : > { %4990 = vrot.lane.b32.xlu0 %v11684_v37, %s8158_s25  ;;  %v11695_v33 = vpop.permute.xlu1 %5152  ;;  %15937 = vst [vmem:[#allocation250_spill] sm:$0xff] %v11753_v9 }
 0x5e6   : > { %v11700_v15 = vpop.permute.xlu0 %5854  ;;  %4992 = vrot.lane.b32.xlu1 %v11691_v1, %s8158_s25 }
 0x5e7   : > { %15925 = vst [vmem:[#allocation30_spill] sm:$0xff] %v11700_v15  ;;  %v3536_v15 = vsel %vm3473_vm1, %v11351_v49, %v11370_v29  ;;  %v8000_v49 = vpop.eup %7999 }
 0x5e8   : > { %5182 = vrot.lane.b32.xlu0 %v11684_v37, %s8159_s26  ;;  %v11711_v63 = vpop.permute.xlu1 %5856  ;;  %v3600_v3 = vadd.f32 %v3536_v15, %v15933_v5  ;;  %v15943_v5 = vld [vmem:[#allocation45_spill] sm:$0xff] }
 0x5e9   : > { %15928 = vst [vmem:[#allocation249_spill] sm:$0xff] %v11711_v63  ;;  %v3595_v63 = vadd.f32 %v3531_v14, %v15932_v41  ;;  %v15934_v14 = vld [vmem:[#allocation140_spill] sm:$0xff] }
 0x5ea   : > { %v11722_v23 = vpop.permute.xlu0 %4954  ;;  %5184 = vrot.lane.b32.xlu1 %v11691_v1, %s8159_s26  ;;  %v11742_v41 = vmul.f32 %v15934_v14, %v11720_v10 }
 0x5eb   : > { %8003 = vrcp.f32 %v3595_v63  ;;  %v15939_v63 = vld [vmem:[#allocation312_spill] sm:$0xff] }
 0x5ec   : > { %4102 = vrot.lane.b32.xlu0 %v7998_v42, %s8157_s20  ;;  %v11734_v29 = vpop.permute.xlu1 %4956  ;;  %15935 = vst [vmem:[#allocation32_spill] sm:$0xff] %v11742_v41  ;;  %8005 = vrcp.f32 %v3600_v3  ;;  %v3599_v11 = vadd.f32 %v3535_v26, %v15939_v63  ;;  %v8002_v35 = vpop.eup %8001  ;;  %v15942_v26 = vld [vmem:[#allocation273_spill] sm:$0xff] }
 0x5ed   : > { %8007 = vrcp.f32 %v3601_v52  ;;  %v15941_v52 = vld [vmem:[#allocation44_spill] sm:$0xff] }
 0x5ee   : > { %v11744_v27 = vpop.permute.xlu0 %5146  ;;  %4104 = vrot.lane.b32.xlu1 %v8000_v49, %s8157_s20  ;;  %8009 = vrcp.f32 %v3598_v58  ;;  %v3820_v50 = vmul.f32 %v15942_v26, %v15941_v52  ;;  %v15945_v26 = vld [vmem:[#allocation152_spill] sm:$0xff] }
 0x5ef   : > { %8011 = vrcp.f32 %v3599_v11  ;;  %v15944_v11 = vld [vmem:[#allocation275_spill] sm:$0xff] }
 0x5f0   : > { %4986 = vrot.lane.b32.xlu0 %v11742_v41, %s8158_s25  ;;  %v11757_v38 = vpop.permute.xlu1 %5148  ;;  %v3821_v63 = vmul.f32 %v15944_v11, %v15943_v5  ;;  %v15949_v11 = vld [vmem:[#allocation153_spill] sm:$0xff] }
 0x5f2   : > { %v11760_v15 = vpop.permute.xlu0 %5850  ;;  %4988 = vrot.lane.b32.xlu1 %v11753_v9, %s8158_s25  ;;  %v11793_v48 = vmul.f32 %v11499_v47, %v3821_v63 }
 0x5f3   : > { %15938 = vst [vmem:[#allocation308_spill] sm:$0xff] %v11760_v15  ;;  %v15952_v15 = vld [vmem:[#allocation277_spill] sm:$0xff] }
 0x5f4   : > { %5178 = vrot.lane.b32.xlu0 %v11742_v41, %s8159_s26  ;;  %v11767_v59 = vpop.permute.xlu1 %5852  ;;  %v11809_v47 = vmul.f32 %v15949_v11, %v11793_v48 }
 0x5f5   : > { %15940 = vst [vmem:[#allocation126_spill] sm:$0xff] %v11767_v59  ;;  %v8004_v3 = vpop.eup %8003 }
 0x5f6   : > { %v11769_v42 = vpop.permute.xlu0 %4062  ;;  %5180 = vrot.lane.b32.xlu1 %v11753_v9, %s8159_s26  ;;  %v8006_v14 = vpop.eup %8005  ;;  %15950 = vst [vmem:[#allocation256_spill] sm:$0xff] %v11809_v47 }
 0x5f7   : > { %v8008_v7 = vpop.eup %8007 }
 0x5f8   : > { %4098 = vrot.lane.b32.xlu0 %v8002_v35, %s8157_s20  ;;  %v11774_v49 = vpop.permute.xlu1 %4064  ;;  %v11787_v35 = vmul.f32 %v11486_v39, %v3820_v50  ;;  %v15947_v39 = vld [vmem:[#allocation42_spill] sm:$0xff]  ;;  %v15948_v50 = vld [vmem:[#allocation276_spill] sm:$0xff] }
 0x5fa   : > { %v11776_v13 = vpop.permute.xlu0 %4058  ;;  %4100 = vrot.lane.b32.xlu1 %v8004_v3, %s8157_s20  ;;  %v8010_v3 = vpop.eup %8009  ;;  %v11800_v59 = vmul.f32 %v15945_v26, %v11787_v35 }
 0x5fb   : > { %v8012_v52 = vpop.eup %8011 }
 0x5fc   : > { %4110 = vrot.lane.b32.xlu0 %v8006_v14, %s8157_s20  ;;  %v11782_v58 = vpop.permute.xlu1 %4060  ;;  %15946 = vst [vmem:[#allocation26_spill] sm:$0xff] %v11800_v59 }
 0x5fe   : > { %v11789_v12 = vpop.permute.xlu0 %4966  ;;  %4112 = vrot.lane.b32.xlu1 %v8008_v7, %s8157_s20  ;;  %v3818_v7 = vmul.f32 %v15948_v50, %v15947_v39  ;;  %v15955_v50 = vld [vmem:[#allocation148_spill] sm:$0xff] }
 0x600   : > { %4106 = vrot.lane.b32.xlu0 %v8010_v3, %s8157_s20  ;;  %v11796_v14 = vpop.permute.xlu1 %4968  ;;  %v15951_v3 = vld [vmem:[#allocation43_spill] sm:$0xff]  ;;  %v11818_v1 = vmul.f32 %v11506_v6, %v3818_v7  ;;  %v15957_v6 = vld [vmem:[#allocation48_spill] sm:$0xff] }
 0x601   : > { %v3819_v26 = vmul.f32 %v15952_v15, %v15951_v3  ;;  %v15958_v7 = vld [vmem:[#allocation280_spill] sm:$0xff] }
 0x602   : > { %v11802_v5 = vpop.permute.xlu0 %5158  ;;  %4108 = vrot.lane.b32.xlu1 %v8012_v52, %s8157_s20  ;;  %v11833_v11 = vmul.f32 %v15955_v50, %v11818_v1  ;;  %v3824_v3 = vmul.f32 %v15958_v7, %v15957_v6  ;;  %v15962_v50 = vld [vmem:[#allocation281_spill] sm:$0xff] }
 0x603   : > { %v11825_v52 = vmul.f32 %v11517_v21, %v3819_v26  ;;  %v15959_v21 = vld [vmem:[#allocation149_spill] sm:$0xff] }
 0x604   : > { %4998 = vrot.lane.b32.xlu0 %v11800_v59, %s8158_s25  ;;  %v11813_v63 = vpop.permute.xlu1 %5160  ;;  %15956 = vst [vmem:[#allocation28_spill] sm:$0xff] %v11833_v11  ;;  %v11852_v9 = vmul.f32 %v11519_v34, %v3824_v3  ;;  %v15968_v34 = vld [vmem:[#allocation46_spill] sm:$0xff]  ;;  %v15969_v3 = vld [vmem:[#allocation283_spill] sm:$0xff] }
 0x605   : > { %v11843_v26 = vmul.f32 %v15959_v21, %v11825_v52  ;;  %v15965_v21 = vld [vmem:[#allocation164_spill] sm:$0xff] }
 0x606   : > { %v11820_v37 = vpop.permute.xlu0 %5862  ;;  %5000 = vrot.lane.b32.xlu1 %v11809_v47, %s8158_s25  ;;  %15963 = vst [vmem:[#allocation118_spill] sm:$0xff] %v11852_v9 }
 0x607   : > { %15953 = vst [vmem:[#allocation309_spill] sm:$0xff] %v11820_v37  ;;  %15960 = vst [vmem:[#allocation257_spill] sm:$0xff] %v11843_v26  ;;  %v15961_v37 = vld [vmem:[#allocation49_spill] sm:$0xff] }
 0x608   : > { %5190 = vrot.lane.b32.xlu0 %v11800_v59, %s8159_s26  ;;  %v11829_v39 = vpop.permute.xlu1 %5864  ;;  %v3825_v59 = vmul.f32 %v15962_v50, %v15961_v37  ;;  %v3822_v50 = vmul.f32 %v15969_v3, %v15968_v34 }
 0x609   : > { %15954 = vst [vmem:[#allocation127_spill] sm:$0xff] %v11829_v39 }
 0x60a   : > { %v11835_v15 = vpop.permute.xlu0 %4962  ;;  %5192 = vrot.lane.b32.xlu1 %v11809_v47, %s8159_s26  ;;  %v11859_v6 = vmul.f32 %v11525_v53, %v3825_v59  ;;  %v11867_v47 = vmul.f32 %v15965_v21, %v11852_v9  ;;  %v15970_v53 = vld [vmem:[#allocation165_spill] sm:$0xff]  ;;  %v15974_v21 = vld [vmem:[#allocation284_spill] sm:$0xff] }
 0x60b   : > { %v3823_v61 = vmul.f32 %v15974_v21, %v15973_v36 }
 0x60c   : > { %4994 = vrot.lane.b32.xlu0 %v11833_v11, %s8158_s25  ;;  %v11847_v39 = vpop.permute.xlu1 %4964  ;;  %15964 = vst [vmem:[#allocation119_spill] sm:$0xff] %v11859_v6  ;;  %15966 = vst [vmem:[#allocation36_spill] sm:$0xff] %v11867_v47  ;;  %v11877_v59 = vmul.f32 %v15970_v53, %v11859_v6  ;;  %v15976_v53 = vld [vmem:[#allocation158_spill] sm:$0xff]  ;;  %v15984_v6 = vld [vmem:[#allocation53_spill] sm:$0xff] }
 0x60d   : > { %v11893_v34 = vmul.f32 %v11540_v40, %v3823_v61 }
 0x60e   : > { %v11854_v41 = vpop.permute.xlu0 %5154  ;;  %4996 = vrot.lane.b32.xlu1 %v11843_v26, %s8158_s25  ;;  %15971 = vst [vmem:[#allocation37_spill] sm:$0xff] %v11877_v59 }
 0x60f   : > { %15975 = vst [vmem:[#allocation136_spill] sm:$0xff] %v11893_v34 }
 0x610   : > { %5186 = vrot.lane.b32.xlu0 %v11833_v11, %s8159_s26  ;;  %v11863_v7 = vpop.permute.xlu1 %5156 }
 0x612   : > { %v11869_v37 = vpop.permute.xlu0 %5858  ;;  %5188 = vrot.lane.b32.xlu1 %v11843_v26, %s8159_s26 }
 0x613   : > { %15967 = vst [vmem:[#allocation258_spill] sm:$0xff] %v11869_v37  ;;  %v11886_v37 = vmul.f32 %v11530_v54, %v3822_v50  ;;  %v15978_v54 = vld [vmem:[#allocation159_spill] sm:$0xff] }
 0x614   : > { %5006 = vrot.lane.b32.xlu0 %v11867_v47, %s8158_s25  ;;  %v11881_v11 = vpop.permute.xlu1 %5860  ;;  %v11909_v50 = vmul.f32 %v15978_v54, %v11893_v34  ;;  %v11930_v54 = vsel %vm3473_vm1, %v11548_v30, %v11562_v4  ;;  %v11955_v4 = vsel %vm3473_vm1, %v11598_v24, %v11620_v22  ;;  %v15992_v24 = vld [vmem:[#allocation50_spill] sm:$0xff]  ;;  %v15993_v22 = vld [vmem:[#allocation287_spill] sm:$0xff] }
 0x615   : > { %15972 = vst [vmem:[#allocation259_spill] sm:$0xff] %v11881_v11  ;;  %v11901_v11 = vmul.f32 %v15976_v53, %v11886_v37  ;;  %15980 = vst [vmem:[#allocation262_spill] sm:$0xff] %v11930_v54 }
 0x616   : > { %v11888_v43 = vpop.permute.xlu0 %4070  ;;  %5008 = vrot.lane.b32.xlu1 %v11877_v59, %s8158_s25  ;;  %15979 = vst [vmem:[#allocation34_spill] sm:$0xff] %v11909_v50  ;;  %15987 = vst [vmem:[#allocation132_spill] sm:$0xff] %v11955_v4 }
 0x617   : > { %15977 = vst [vmem:[#allocation137_spill] sm:$0xff] %v11901_v11 }
 0x618   : > { %5198 = vrot.lane.b32.xlu0 %v11867_v47, %s8159_s26  ;;  %v11897_v3 = vpop.permute.xlu1 %4072  ;;  %v15982_v47 = vld [vmem:[#allocation285_spill] sm:$0xff] }
 0x61a   : > { %v11903_v36 = vpop.permute.xlu0 %4066  ;;  %5200 = vrot.lane.b32.xlu1 %v11877_v59, %s8159_s26  ;;  %v15981_v59 = vld [vmem:[#allocation52_spill] sm:$0xff] }
 0x61b   : > { %v3828_v26 = vmul.f32 %v15982_v47, %v15981_v59 }
 0x61c   : > { %5002 = vrot.lane.b32.xlu0 %v11901_v11, %s8158_s25  ;;  %v11913_v40 = vpop.permute.xlu1 %4068 }
 0x61d   : > { %v11946_v34 = vmul.f32 %v11645_v16, %v3828_v26  ;;  %v15990_v16 = vld [vmem:[#allocation176_spill] sm:$0xff] }
 0x61e   : > { %v11915_v61 = vpop.permute.xlu0 %4974  ;;  %5004 = vrot.lane.b32.xlu1 %v11909_v50, %s8158_s25 }
 0x61f   : > { %15986 = vst [vmem:[#allocation263_spill] sm:$0xff] %v11946_v34  ;;  %v11971_v26 = vmul.f32 %v15990_v16, %v11946_v34  ;;  %v16008_v34 = vld [vmem:[#allocation57_spill] sm:$0xff] }
 0x620   : > { %5194 = vrot.lane.b32.xlu0 %v11901_v11, %s8159_s26  ;;  %v11921_v21 = vpop.permute.xlu1 %4976  ;;  %v11941_v11 = vsel %vm3473_vm1, %v11556_v17, %v11571_v31  ;;  %v11967_v31 = vsel %vm3473_vm1, %v11610_v18, %v11633_v57  ;;  %v15996_v57 = vld [vmem:[#allocation51_spill] sm:$0xff] }
 0x621   : > { %15983 = vst [vmem:[#allocation35_spill] sm:$0xff] %v11941_v11  ;;  %15989 = vst [vmem:[#allocation40_spill] sm:$0xff] %v11967_v31 }
 0x622   : > { %v11923_v53 = vpop.permute.xlu0 %5166  ;;  %5196 = vrot.lane.b32.xlu1 %v11909_v50, %s8159_s26  ;;  %v15985_v50 = vld [vmem:[#allocation286_spill] sm:$0xff]  ;;  %15991 = vst [vmem:[#allocation266_spill] sm:$0xff] %v11971_v26 }
 0x623   : > { %v3829_v9 = vmul.f32 %v15985_v50, %v15984_v6  ;;  %v15997_v50 = vld [vmem:[#allocation288_spill] sm:$0xff] }
 0x624   : > { %5462 = vrot.lane.b32.xlu0 %v11930_v54, %s8157_s20  ;;  %v11936_v56 = vpop.permute.xlu1 %5168  ;;  %v3827_v16 = vmul.f32 %v15997_v50, %v15996_v57 }
 0x625   : > { %v11958_v47 = vmul.f32 %v11650_v20, %v3829_v9  ;;  %v3826_v20 = vmul.f32 %v15993_v22, %v15992_v24  ;;  %v15994_v9 = vld [vmem:[#allocation177_spill] sm:$0xff] }
 0x626   : > { %v11948_v30 = vpop.permute.xlu0 %4970  ;;  %5464 = vrot.lane.b32.xlu1 %v11941_v11, %s8157_s20  ;;  %v11997_v24 = vmul.f32 %v11664_v62, %v3827_v16 }
 0x627   : > { %15988 = vst [vmem:[#allocation133_spill] sm:$0xff] %v11958_v47  ;;  %v11981_v59 = vmul.f32 %v15994_v9, %v11958_v47  ;;  %v11990_v11 = vmul.f32 %v11655_v45, %v3826_v20  ;;  %v16000_v9 = vld [vmem:[#allocation170_spill] sm:$0xff]  ;;  %v16002_v45 = vld [vmem:[#allocation171_spill] sm:$0xff] }
 0x628   : > { %5458 = vrot.lane.b32.xlu0 %v11955_v4, %s8157_s20  ;;  %v11962_v17 = vpop.permute.xlu1 %4972  ;;  %15999 = vst [vmem:[#allocation144_spill] sm:$0xff] %v11997_v24  ;;  %v12013_v20 = vmul.f32 %v16002_v45, %v11997_v24  ;;  %v12034_v45 = vsel %vm3473_vm1, %v11672_v55, %v11686_v44  ;;  %v16005_v4 = vld [vmem:[#allocation56_spill] sm:$0xff]  ;;  %v12059_v44 = vsel %vm3473_vm1, %v11722_v23, %v11744_v27  ;;  %v16016_v23 = vld [vmem:[#allocation54_spill] sm:$0xff] }
 0x629   : > { %15995 = vst [vmem:[#allocation41_spill] sm:$0xff] %v11981_v59  ;;  %15998 = vst [vmem:[#allocation267_spill] sm:$0xff] %v11990_v11  ;;  %v16017_v27 = vld [vmem:[#allocation292_spill] sm:$0xff] }
 0x62a   : > { %v11973_v6 = vpop.permute.xlu0 %5162  ;;  %5460 = vrot.lane.b32.xlu1 %v11967_v31, %s8157_s20  ;;  %v12005_v31 = vmul.f32 %v16000_v9, %v11990_v11  ;;  %16003 = vst [vmem:[#allocation38_spill] sm:$0xff] %v12013_v20  ;;  %16004 = vst [vmem:[#allocation269_spill] sm:$0xff] %v12034_v45 }
 0x62b   : > { %16011 = vst [vmem:[#allocation140_spill] sm:$0xff] %v12059_v44 }
 0x62c   : > { %5014 = vrot.lane.b32.xlu0 %v11971_v26, %s8158_s25  ;;  %v11985_v18 = vpop.permute.xlu1 %5164  ;;  %16001 = vst [vmem:[#allocation145_spill] sm:$0xff] %v12005_v31 }
 0x62e   : > { %v11992_v54 = vpop.permute.xlu0 %4078  ;;  %5016 = vrot.lane.b32.xlu1 %v11981_v59, %s8158_s25 }
 0x630   : > { %5206 = vrot.lane.b32.xlu0 %v11971_v26, %s8159_s26  ;;  %v12001_v22 = vpop.permute.xlu1 %4080 }
 0x632   : > { %v12007_v57 = vpop.permute.xlu0 %4074  ;;  %5208 = vrot.lane.b32.xlu1 %v11981_v59, %s8159_s26  ;;  %v16006_v59 = vld [vmem:[#allocation289_spill] sm:$0xff] }
 0x633   : > { %v3832_v26 = vmul.f32 %v16006_v59, %v16005_v4  ;;  %v16018_v59 = vld [vmem:[#allocation189_spill] sm:$0xff] }
 0x634   : > { %5010 = vrot.lane.b32.xlu0 %v12005_v31, %s8158_s25  ;;  %v12017_v62 = vpop.permute.xlu1 %4076 }
 0x635   : > { %v12050_v11 = vmul.f32 %v11769_v42, %v3832_v26  ;;  %v16014_v42 = vld [vmem:[#allocation188_spill] sm:$0xff] }
 0x636   : > { %v12019_v50 = vpop.permute.xlu0 %4982  ;;  %5012 = vrot.lane.b32.xlu1 %v12013_v20, %s8158_s25 }
 0x637   : > { %16010 = vst [vmem:[#allocation271_spill] sm:$0xff] %v12050_v11 }
 0x638   : > { %5202 = vrot.lane.b32.xlu0 %v12005_v31, %s8159_s26  ;;  %v12025_v16 = vpop.permute.xlu1 %4984  ;;  %v12045_v31 = vsel %vm3473_vm1, %v11680_v19, %v11695_v33  ;;  %v12071_v33 = vsel %vm3473_vm1, %v11734_v29, %v11757_v38  ;;  %v16020_v38 = vld [vmem:[#allocation55_spill] sm:$0xff] }
 0x639   : > { %16007 = vst [vmem:[#allocation39_spill] sm:$0xff] %v12045_v31  ;;  %16013 = vst [vmem:[#allocation44_spill] sm:$0xff] %v12071_v33 }
 0x63a   : > { %v12027_v9 = vpop.permute.xlu0 %5174  ;;  %5204 = vrot.lane.b32.xlu1 %v12013_v20, %s8159_s26  ;;  %v16009_v20 = vld [vmem:[#allocation290_spill] sm:$0xff] }
 0x63b   : > { %v3833_v24 = vmul.f32 %v16009_v20, %v16008_v34  ;;  %v12075_v34 = vmul.f32 %v16014_v42, %v12050_v11  ;;  %v16021_v20 = vld [vmem:[#allocation293_spill] sm:$0xff] }
 0x63c   : > { %5470 = vrot.lane.b32.xlu0 %v12034_v45, %s8157_s20  ;;  %v12040_v47 = vpop.permute.xlu1 %5176  ;;  %v3831_v42 = vmul.f32 %v16021_v20, %v16020_v38  ;;  %v16032_v11 = vld [vmem:[#allocation65_spill] sm:$0xff] }
 0x63d   : > { %v12062_v4 = vmul.f32 %v11774_v49, %v3833_v24  ;;  %16015 = vst [vmem:[#allocation273_spill] sm:$0xff] %v12075_v34  ;;  %v3830_v49 = vmul.f32 %v16017_v27, %v16016_v23 }
 0x63e   : > { %v12052_v55 = vpop.permute.xlu0 %4086  ;;  %5472 = vrot.lane.b32.xlu1 %v12045_v31, %s8157_s20  ;;  %v12101_v23 = vmul.f32 %v11782_v58, %v3831_v42 }
 0x63f   : > { %16012 = vst [vmem:[#allocation141_spill] sm:$0xff] %v12062_v4  ;;  %v12085_v24 = vmul.f32 %v16018_v59, %v12062_v4  ;;  %v12094_v31 = vmul.f32 %v11776_v13, %v3830_v49  ;;  %v16024_v59 = vld [vmem:[#allocation182_spill] sm:$0xff]  ;;  %v16026_v13 = vld [vmem:[#allocation183_spill] sm:$0xff] }
 0x640   : > { %5466 = vrot.lane.b32.xlu0 %v12059_v44, %s8157_s20  ;;  %v12066_v19 = vpop.permute.xlu1 %4088  ;;  %16023 = vst [vmem:[#allocation152_spill] sm:$0xff] %v12101_v23  ;;  %v12117_v49 = vmul.f32 %v16026_v13, %v12101_v23  ;;  %v12138_v13 = vsel %vm3473_vm1, %v11789_v12, %v11802_v5  ;;  %v16029_v44 = vld [vmem:[#allocation64_spill] sm:$0xff]  ;;  %v12163_v5 = vsel %vm3473_vm1, %v11835_v15, %v11854_v41  ;;  %v16040_v41 = vld [vmem:[#allocation59_spill] sm:$0xff] }
 0x641   : > { %16019 = vst [vmem:[#allocation45_spill] sm:$0xff] %v12085_v24  ;;  %16022 = vst [vmem:[#allocation275_spill] sm:$0xff] %v12094_v31  ;;  %v16041_v15 = vld [vmem:[#allocation303_spill] sm:$0xff] }
 0x642   : > { %v12077_v26 = vpop.permute.xlu0 %4978  ;;  %5468 = vrot.lane.b32.xlu1 %v12071_v33, %s8157_s20  ;;  %v12109_v33 = vmul.f32 %v16024_v59, %v12094_v31  ;;  %16027 = vst [vmem:[#allocation276_spill] sm:$0xff] %v12117_v49  ;;  %16028 = vst [vmem:[#allocation153_spill] sm:$0xff] %v12138_v13 }
 0x643   : > { %16035 = vst [vmem:[#allocation148_spill] sm:$0xff] %v12163_v5 }
 0x644   : > { %5022 = vrot.lane.b32.xlu0 %v12075_v34, %s8158_s25  ;;  %v12089_v29 = vpop.permute.xlu1 %4980  ;;  %16025 = vst [vmem:[#allocation42_spill] sm:$0xff] %v12109_v33 }
 0x646   : > { %v12096_v45 = vpop.permute.xlu0 %5170  ;;  %5024 = vrot.lane.b32.xlu1 %v12085_v24, %s8158_s25 }
 0x648   : > { %5214 = vrot.lane.b32.xlu0 %v12075_v34, %s8159_s26  ;;  %v12105_v27 = vpop.permute.xlu1 %5172 }
 0x64a   : > { %v12111_v38 = vpop.permute.xlu0 %4082  ;;  %5216 = vrot.lane.b32.xlu1 %v12085_v24, %s8159_s26  ;;  %v16030_v24 = vld [vmem:[#allocation296_spill] sm:$0xff] }
 0x64b   : > { %v3836_v34 = vmul.f32 %v16030_v24, %v16029_v44  ;;  %v16042_v24 = vld [vmem:[#allocation201_spill] sm:$0xff] }
 0x64c   : > { %5018 = vrot.lane.b32.xlu0 %v12109_v33, %s8158_s25  ;;  %v12121_v58 = vpop.permute.xlu1 %4084 }
 0x64d   : > { %v12154_v31 = vmul.f32 %v11888_v43, %v3836_v34  ;;  %v12175_v43 = vsel %vm3473_vm1, %v11847_v39, %v11863_v7  ;;  %v16044_v7 = vld [vmem:[#allocation61_spill] sm:$0xff] }
 0x64e   : > { %v12123_v20 = vpop.permute.xlu0 %4094  ;;  %5020 = vrot.lane.b32.xlu1 %v12117_v49, %s8158_s25  ;;  %16037 = vst [vmem:[#allocation280_spill] sm:$0xff] %v12175_v43 }
 0x64f   : > { %16034 = vst [vmem:[#allocation277_spill] sm:$0xff] %v12154_v31 }
 0x650   : > { %5210 = vrot.lane.b32.xlu0 %v12109_v33, %s8159_s26  ;;  %v12129_v42 = vpop.permute.xlu1 %4096  ;;  %v12149_v33 = vsel %vm3473_vm1, %v11796_v14, %v11813_v63  ;;  %v16038_v63 = vld [vmem:[#allocation200_spill] sm:$0xff] }
 0x651   : > { %16031 = vst [vmem:[#allocation43_spill] sm:$0xff] %v12149_v33 }
 0x652   : > { %v12131_v59 = vpop.permute.xlu0 %4090  ;;  %5212 = vrot.lane.b32.xlu1 %v12117_v49, %s8159_s26  ;;  %v16033_v49 = vld [vmem:[#allocation297_spill] sm:$0xff] }
 0x653   : > { %v3837_v23 = vmul.f32 %v16033_v49, %v16032_v11  ;;  %v12179_v11 = vmul.f32 %v16038_v63, %v12154_v31  ;;  %v16045_v49 = vld [vmem:[#allocation304_spill] sm:$0xff]  ;;  %v16056_v31 = vld [vmem:[#allocation71_spill] sm:$0xff] }
 0x654   : > { %5478 = vrot.lane.b32.xlu0 %v12138_v13, %s8157_s20  ;;  %v12144_v4 = vpop.permute.xlu1 %4092  ;;  %v3835_v63 = vmul.f32 %v16045_v49, %v16044_v7 }
 0x655   : > { %v12166_v44 = vmul.f32 %v11897_v3, %v3837_v23  ;;  %16039 = vst [vmem:[#allocation149_spill] sm:$0xff] %v12179_v11  ;;  %v3834_v3 = vmul.f32 %v16041_v15, %v16040_v41 }
 0x656   : > { %v12156_v12 = vpop.permute.xlu0 %4990  ;;  %5480 = vrot.lane.b32.xlu1 %v12149_v33, %s8157_s20  ;;  %v12205_v41 = vmul.f32 %v11913_v40, %v3835_v63 }
 0x657   : > { %16036 = vst [vmem:[#allocation48_spill] sm:$0xff] %v12166_v44  ;;  %v12189_v23 = vmul.f32 %v16042_v24, %v12166_v44  ;;  %v12198_v33 = vmul.f32 %v11903_v36, %v3834_v3  ;;  %v16048_v24 = vld [vmem:[#allocation194_spill] sm:$0xff]  ;;  %v16050_v36 = vld [vmem:[#allocation195_spill] sm:$0xff] }
 0x658   : > { %5474 = vrot.lane.b32.xlu0 %v12163_v5, %s8157_s20  ;;  %v12170_v14 = vpop.permute.xlu1 %4992  ;;  %16047 = vst [vmem:[#allocation164_spill] sm:$0xff] %v12205_v41  ;;  %v12221_v3 = vmul.f32 %v16050_v36, %v12205_v41  ;;  %v12242_v36 = vsel %vm3473_vm1, %v11915_v61, %v11923_v53  ;;  %v16053_v5 = vld [vmem:[#allocation70_spill] sm:$0xff]  ;;  %v12267_v53 = vsel %vm3473_vm1, %v11948_v30, %v11973_v6  ;;  %v16064_v30 = vld [vmem:[#allocation67_spill] sm:$0xff] }
 0x659   : > { %16043 = vst [vmem:[#allocation49_spill] sm:$0xff] %v12189_v23  ;;  %16046 = vst [vmem:[#allocation281_spill] sm:$0xff] %v12198_v33  ;;  %v16065_v6 = vld [vmem:[#allocation314_spill] sm:$0xff] }
 0x65a   : > { %v12181_v34 = vpop.permute.xlu0 %5182  ;;  %5476 = vrot.lane.b32.xlu1 %v12175_v43, %s8157_s20  ;;  %v12213_v43 = vmul.f32 %v16048_v24, %v12198_v33  ;;  %16051 = vst [vmem:[#allocation283_spill] sm:$0xff] %v12221_v3  ;;  %16052 = vst [vmem:[#allocation165_spill] sm:$0xff] %v12242_v36 }
 0x65b   : > { %16059 = vst [vmem:[#allocation158_spill] sm:$0xff] %v12267_v53 }
 0x65c   : > { %5030 = vrot.lane.b32.xlu0 %v12179_v11, %s8158_s25  ;;  %v12193_v39 = vpop.permute.xlu1 %5184  ;;  %16049 = vst [vmem:[#allocation46_spill] sm:$0xff] %v12213_v43 }
 0x65e   : > { %v12200_v13 = vpop.permute.xlu0 %4102  ;;  %5032 = vrot.lane.b32.xlu1 %v12189_v23, %s8158_s25 }
 0x660   : > { %5222 = vrot.lane.b32.xlu0 %v12179_v11, %s8159_s26  ;;  %v12209_v15 = vpop.permute.xlu1 %4104 }
 0x662   : > { %v12215_v7 = vpop.permute.xlu0 %4986  ;;  %5224 = vrot.lane.b32.xlu1 %v12189_v23, %s8159_s26  ;;  %v16054_v23 = vld [vmem:[#allocation311_spill] sm:$0xff] }
 0x663   : > { %v3840_v11 = vmul.f32 %v16054_v23, %v16053_v5  ;;  %v16066_v23 = vld [vmem:[#allocation213_spill] sm:$0xff] }
 0x664   : > { %5026 = vrot.lane.b32.xlu0 %v12213_v43, %s8158_s25  ;;  %v12225_v40 = vpop.permute.xlu1 %4988 }
 0x665   : > { %v12258_v33 = vmul.f32 %v11992_v54, %v3840_v11  ;;  %v16062_v54 = vld [vmem:[#allocation212_spill] sm:$0xff] }
 0x666   : > { %v12227_v49 = vpop.permute.xlu0 %5178  ;;  %5028 = vrot.lane.b32.xlu1 %v12221_v3, %s8158_s25 }
 0x667   : > { %16058 = vst [vmem:[#allocation284_spill] sm:$0xff] %v12258_v33 }
 0x668   : > { %5218 = vrot.lane.b32.xlu0 %v12213_v43, %s8159_s26  ;;  %v12233_v63 = vpop.permute.xlu1 %5180  ;;  %v12253_v43 = vsel %vm3473_vm1, %v11921_v21, %v11936_v56  ;;  %v12279_v21 = vsel %vm3473_vm1, %v11962_v17, %v11985_v18  ;;  %v16068_v18 = vld [vmem:[#allocation68_spill] sm:$0xff] }
 0x669   : > { %16055 = vst [vmem:[#allocation47_spill] sm:$0xff] %v12253_v43  ;;  %16061 = vst [vmem:[#allocation52_spill] sm:$0xff] %v12279_v21 }
 0x66a   : > { %v12235_v24 = vpop.permute.xlu0 %4098  ;;  %5220 = vrot.lane.b32.xlu1 %v12221_v3, %s8159_s26  ;;  %v16057_v3 = vld [vmem:[#allocation313_spill] sm:$0xff] }
 0x66b   : > { %v3841_v41 = vmul.f32 %v16057_v3, %v16056_v31  ;;  %v12283_v31 = vmul.f32 %v16062_v54, %v12258_v33  ;;  %v16069_v3 = vld [vmem:[#allocation315_spill] sm:$0xff]  ;;  %v16080_v33 = vld [vmem:[#allocation9_spill] sm:$0xff] }
 0x66c   : > { %5486 = vrot.lane.b32.xlu0 %v12242_v36, %s8157_s20  ;;  %v12248_v44 = vpop.permute.xlu1 %4100  ;;  %v3839_v54 = vmul.f32 %v16069_v3, %v16068_v18 }
 0x66d   : > { %v12270_v5 = vmul.f32 %v12001_v22, %v3841_v41  ;;  %16063 = vst [vmem:[#allocation285_spill] sm:$0xff] %v12283_v31  ;;  %v3838_v22 = vmul.f32 %v16065_v6, %v16064_v30 }
 0x66e   : > { %v12260_v61 = vpop.permute.xlu0 %4110  ;;  %5488 = vrot.lane.b32.xlu1 %v12253_v43, %s8157_s20  ;;  %v12309_v30 = vmul.f32 %v12017_v62, %v3839_v54 }
 0x66f   : > { %16060 = vst [vmem:[#allocation159_spill] sm:$0xff] %v12270_v5  ;;  %v12293_v41 = vmul.f32 %v16066_v23, %v12270_v5  ;;  %v12302_v43 = vmul.f32 %v12007_v57, %v3838_v22  ;;  %v16072_v23 = vld [vmem:[#allocation206_spill] sm:$0xff]  ;;  %v16074_v57 = vld [vmem:[#allocation207_spill] sm:$0xff] }
 0x670   : > { %5482 = vrot.lane.b32.xlu0 %v12267_v53, %s8157_s20  ;;  %v12274_v56 = vpop.permute.xlu1 %4112  ;;  %16071 = vst [vmem:[#allocation176_spill] sm:$0xff] %v12309_v30  ;;  %v12325_v22 = vmul.f32 %v16074_v57, %v12309_v30  ;;  %v12346_v57 = vsel %vm3473_vm1, %v12019_v50, %v12027_v9  ;;  %v16077_v53 = vld [vmem:[#allocation7_spill] sm:$0xff]  ;;  %v12371_v9 = vsel %vm3473_vm1, %v12077_v26, %v12096_v45 }
 0x671   : > { %16067 = vst [vmem:[#allocation53_spill] sm:$0xff] %v12293_v41  ;;  %16070 = vst [vmem:[#allocation286_spill] sm:$0xff] %v12302_v43  ;;  %v16088_v45 = vld [vmem:[#allocation3_spill] sm:$0xff] }
 0x672   : > { %v12285_v11 = vpop.permute.xlu0 %4106  ;;  %5484 = vrot.lane.b32.xlu1 %v12279_v21, %s8157_s20  ;;  %v12317_v21 = vmul.f32 %v16072_v23, %v12302_v43  ;;  %16075 = vst [vmem:[#allocation287_spill] sm:$0xff] %v12325_v22  ;;  %16076 = vst [vmem:[#allocation177_spill] sm:$0xff] %v12346_v57 }
 0x673   : > { %16083 = vst [vmem:[#allocation170_spill] sm:$0xff] %v12371_v9 }
 0x674   : > { %5038 = vrot.lane.b32.xlu0 %v12283_v31, %s8158_s25  ;;  %v12297_v17 = vpop.permute.xlu1 %4108  ;;  %16073 = vst [vmem:[#allocation50_spill] sm:$0xff] %v12317_v21 }
 0x676   : > { %v12304_v36 = vpop.permute.xlu0 %4998  ;;  %5040 = vrot.lane.b32.xlu1 %v12293_v41, %s8158_s25 }
 0x678   : > { %5230 = vrot.lane.b32.xlu0 %v12283_v31, %s8159_s26  ;;  %v12313_v6 = vpop.permute.xlu1 %5000 }
 0x67a   : > { %v12319_v18 = vpop.permute.xlu0 %5190  ;;  %5232 = vrot.lane.b32.xlu1 %v12293_v41, %s8159_s26  ;;  %v16078_v41 = vld [vmem:[#allocation6_spill] sm:$0xff] }
 0x67b   : > { %v3844_v31 = vmul.f32 %v16078_v41, %v16077_v53  ;;  %v16090_v41 = vld [vmem:[#allocation89_spill] sm:$0xff] }
 0x67c   : > { %5034 = vrot.lane.b32.xlu0 %v12317_v21, %s8158_s25  ;;  %v12329_v62 = vpop.permute.xlu1 %5192 }
 0x67d   : > { %v12362_v43 = vmul.f32 %v12052_v55, %v3844_v31  ;;  %v16086_v55 = vld [vmem:[#allocation88_spill] sm:$0xff] }
 0x67e   : > { %v12331_v3 = vpop.permute.xlu0 %4994  ;;  %5036 = vrot.lane.b32.xlu1 %v12325_v22, %s8158_s25 }
 0x67f   : > { %16082 = vst [vmem:[#allocation288_spill] sm:$0xff] %v12362_v43 }
 0x680   : > { %5226 = vrot.lane.b32.xlu0 %v12317_v21, %s8159_s26  ;;  %v12337_v54 = vpop.permute.xlu1 %4996  ;;  %v12357_v21 = vsel %vm3473_vm1, %v12025_v16, %v12040_v47  ;;  %v12383_v16 = vsel %vm3473_vm1, %v12089_v29, %v12105_v27  ;;  %v16092_v27 = vld [vmem:[#allocation5_spill] sm:$0xff] }
 0x681   : > { %16079 = vst [vmem:[#allocation51_spill] sm:$0xff] %v12357_v21  ;;  %16085 = vst [vmem:[#allocation56_spill] sm:$0xff] %v12383_v16 }
 0x682   : > { %v12339_v23 = vpop.permute.xlu0 %5186  ;;  %5228 = vrot.lane.b32.xlu1 %v12325_v22, %s8159_s26  ;;  %v16081_v22 = vld [vmem:[#allocation216_spill] sm:$0xff] }
 0x683   : > { %v3845_v30 = vmul.f32 %v16081_v22, %v16080_v33  ;;  %v12387_v33 = vmul.f32 %v16086_v55, %v12362_v43  ;;  %v16093_v22 = vld [vmem:[#allocation220_spill] sm:$0xff] }
 0x684   : > { %5494 = vrot.lane.b32.xlu0 %v12346_v57, %s8157_s20  ;;  %v12352_v5 = vpop.permute.xlu1 %5188  ;;  %v3843_v55 = vmul.f32 %v16093_v22, %v16092_v27 }
 0x685   : > { %v12374_v53 = vmul.f32 %v12066_v19, %v3845_v30  ;;  %16087 = vst [vmem:[#allocation289_spill] sm:$0xff] %v12387_v33  ;;  %v16089_v19 = vld [vmem:[#allocation87_spill] sm:$0xff] }
 0x686   : > { %v12364_v50 = vpop.permute.xlu0 %5006  ;;  %5496 = vrot.lane.b32.xlu1 %v12357_v21, %s8157_s20  ;;  %v3842_v26 = vmul.f32 %v16089_v19, %v16088_v45  ;;  %v12413_v45 = vmul.f32 %v12121_v58, %v3843_v55  ;;  %v16100_v58 = vld [vmem:[#allocation81_spill] sm:$0xff] }
 0x687   : > { %16084 = vst [vmem:[#allocation171_spill] sm:$0xff] %v12374_v53  ;;  %v12397_v30 = vmul.f32 %v16090_v41, %v12374_v53  ;;  %v16096_v41 = vld [vmem:[#allocation80_spill] sm:$0xff] }
 0x688   : > { %5490 = vrot.lane.b32.xlu0 %v12371_v9, %s8157_s20  ;;  %v12378_v47 = vpop.permute.xlu1 %5008  ;;  %v12406_v21 = vmul.f32 %v12111_v38, %v3842_v26  ;;  %16095 = vst [vmem:[#allocation188_spill] sm:$0xff] %v12413_v45  ;;  %v16098_v38 = vld [vmem:[#allocation15_spill] sm:$0xff]  ;;  %v12431_v55 = vmul.f32 %v16100_v58, %v12413_v45  ;;  %v16108_v58 = vld [vmem:[#allocation104_spill] sm:$0xff] }
 0x689   : > { %16091 = vst [vmem:[#allocation57_spill] sm:$0xff] %v12397_v30  ;;  %v16099_v26 = vld [vmem:[#allocation83_spill] sm:$0xff] }
 0x68a   : > { %v12389_v31 = vpop.permute.xlu0 %5198  ;;  %5492 = vrot.lane.b32.xlu1 %v12383_v16, %s8157_s20  ;;  %16094 = vst [vmem:[#allocation290_spill] sm:$0xff] %v12406_v21  ;;  %v12421_v16 = vmul.f32 %v16096_v41, %v12406_v21  ;;  %v3848_v22 = vmul.f32 %v16099_v26, %v16098_v38  ;;  %16101 = vst [vmem:[#allocation292_spill] sm:$0xff] %v12431_v55  ;;  %v16103_v41 = vld [vmem:[#allocation79_spill] sm:$0xff] }
 0x68c   : > { %5046 = vrot.lane.b32.xlu0 %v12387_v33, %s8158_s25  ;;  %v12401_v29 = vpop.permute.xlu1 %5200  ;;  %16097 = vst [vmem:[#allocation54_spill] sm:$0xff] %v12421_v16  ;;  %v12440_v43 = vmul.f32 %v12123_v20, %v3848_v22  ;;  %v16111_v20 = vld [vmem:[#allocation11_spill] sm:$0xff] }
 0x68d   : > { %v16112_v22 = vld [vmem:[#allocation75_spill] sm:$0xff] }
 0x68e   : > { %v12408_v57 = vpop.permute.xlu0 %5002  ;;  %5048 = vrot.lane.b32.xlu1 %v12397_v30, %s8158_s25  ;;  %16104 = vst [vmem:[#allocation189_spill] sm:$0xff] %v12440_v43 }
 0x690   : > { %5238 = vrot.lane.b32.xlu0 %v12387_v33, %s8159_s26  ;;  %v12417_v19 = vpop.permute.xlu1 %5004  ;;  %v16102_v33 = vld [vmem:[#allocation17_spill] sm:$0xff] }
 0x691   : > { %v3849_v53 = vmul.f32 %v16103_v41, %v16102_v33  ;;  %v3846_v41 = vmul.f32 %v16112_v22, %v16111_v20 }
 0x692   : > { %v12423_v27 = vpop.permute.xlu0 %5194  ;;  %5240 = vrot.lane.b32.xlu1 %v12397_v30, %s8159_s26  ;;  %v12455_v30 = vmul.f32 %v16108_v58, %v12440_v43  ;;  %v16117_v58 = vld [vmem:[#allocation224_spill] sm:$0xff] }
 0x693   : > { %v12447_v38 = vmul.f32 %v12129_v42, %v3849_v53  ;;  %v16113_v42 = vld [vmem:[#allocation105_spill] sm:$0xff] }
 0x694   : > { %5042 = vrot.lane.b32.xlu0 %v12421_v16, %s8158_s25  ;;  %v12435_v9 = vpop.permute.xlu1 %5196  ;;  %16109 = vst [vmem:[#allocation183_spill] sm:$0xff] %v12455_v30 }
 0x695   : > { %16106 = vst [vmem:[#allocation293_spill] sm:$0xff] %v12447_v38  ;;  %v12465_v53 = vmul.f32 %v16113_v42, %v12447_v38  ;;  %v16120_v42 = vld [vmem:[#allocation96_spill] sm:$0xff] }
 0x696   : > { %v12442_v21 = vpop.permute.xlu0 %5462  ;;  %5044 = vrot.lane.b32.xlu1 %v12431_v55, %s8158_s25 }
 0x697   : > { %16105 = vst [vmem:[#allocation55_spill] sm:$0xff] %v12442_v21  ;;  %16114 = vst [vmem:[#allocation296_spill] sm:$0xff] %v12465_v53 }
 0x698   : > { %5234 = vrot.lane.b32.xlu0 %v12421_v16, %s8159_s26  ;;  %v12451_v26 = vpop.permute.xlu1 %5464 }
 0x699   : > { %16107 = vst [vmem:[#allocation182_spill] sm:$0xff] %v12451_v26  ;;  %v16116_v26 = vld [vmem:[#allocation13_spill] sm:$0xff] }
 0x69a   : > { %v12457_v33 = vpop.permute.xlu0 %5458  ;;  %5236 = vrot.lane.b32.xlu1 %v12431_v55, %s8159_s26  ;;  %v3847_v21 = vmul.f32 %v16117_v58, %v16116_v26 }
 0x69b   : > { %16110 = vst [vmem:[#allocation64_spill] sm:$0xff] %v12457_v33  ;;  %v12474_v33 = vmul.f32 %v12131_v59, %v3846_v41  ;;  %v16122_v59 = vld [vmem:[#allocation97_spill] sm:$0xff] }
 0x69c   : > { %5054 = vrot.lane.b32.xlu0 %v12455_v30, %s8158_s25  ;;  %v12469_v16 = vpop.permute.xlu1 %5460  ;;  %v12481_v20 = vmul.f32 %v12144_v4, %v3847_v21 }
 0x69d   : > { %16115 = vst [vmem:[#allocation65_spill] sm:$0xff] %v12469_v16  ;;  %16118 = vst [vmem:[#allocation297_spill] sm:$0xff] %v12474_v33  ;;  %v12489_v55 = vmul.f32 %v16120_v42, %v12474_v33 }
 0x69e   : > { %v12476_v43 = vpop.permute.xlu0 %5014  ;;  %5056 = vrot.lane.b32.xlu1 %v12465_v53, %s8158_s25  ;;  %16119 = vst [vmem:[#allocation200_spill] sm:$0xff] %v12481_v20  ;;  %v12497_v41 = vmul.f32 %v16122_v59, %v12481_v20  ;;  %v12518_v59 = vsel %vm3473_vm1, %v12156_v12, %v12181_v34  ;;  %v16128_v20 = vld [vmem:[#allocation25_spill] sm:$0xff]  ;;  %v12543_v34 = vsel %vm3473_vm1, %v12215_v7, %v12227_v49  ;;  %v16140_v7 = vld [vmem:[#allocation99_spill] sm:$0xff] }
 0x69f   : > { %16121 = vst [vmem:[#allocation59_spill] sm:$0xff] %v12489_v55  ;;  %16124 = vst [vmem:[#allocation201_spill] sm:$0xff] %v12518_v59 }
 0x6a0   : > { %5246 = vrot.lane.b32.xlu0 %v12455_v30, %s8159_s26  ;;  %v12485_v22 = vpop.permute.xlu1 %5016  ;;  %16123 = vst [vmem:[#allocation303_spill] sm:$0xff] %v12497_v41  ;;  %v16126_v30 = vld [vmem:[#allocation228_spill] sm:$0xff]  ;;  %16132 = vst [vmem:[#allocation195_spill] sm:$0xff] %v12543_v34 }
 0x6a2   : > { %v12491_v26 = vpop.permute.xlu0 %5206  ;;  %5248 = vrot.lane.b32.xlu1 %v12465_v53, %s8159_s26  ;;  %v16125_v53 = vld [vmem:[#allocation23_spill] sm:$0xff] }
 0x6a3   : > { %v3852_v16 = vmul.f32 %v16126_v30, %v16125_v53 }
 0x6a4   : > { %5050 = vrot.lane.b32.xlu0 %v12489_v55, %s8158_s25  ;;  %v12501_v4 = vpop.permute.xlu1 %5208 }
 0x6a5   : > { %v12534_v45 = vmul.f32 %v12200_v13, %v3852_v16  ;;  %v12555_v13 = vsel %vm3473_vm1, %v12225_v40, %v12233_v63  ;;  %v16144_v63 = vld [vmem:[#allocation21_spill] sm:$0xff] }
 0x6a6   : > { %v12503_v21 = vpop.permute.xlu0 %5010  ;;  %5052 = vrot.lane.b32.xlu1 %v12497_v41, %s8158_s25  ;;  %16135 = vst [vmem:[#allocation71_spill] sm:$0xff] %v12555_v13 }
 0x6a7   : > { %16130 = vst [vmem:[#allocation304_spill] sm:$0xff] %v12534_v45 }
 0x6a8   : > { %5242 = vrot.lane.b32.xlu0 %v12489_v55, %s8159_s26  ;;  %v12509_v58 = vpop.permute.xlu1 %5012  ;;  %v12529_v55 = vsel %vm3473_vm1, %v12170_v14, %v12193_v39  ;;  %v16136_v39 = vld [vmem:[#allocation112_spill] sm:$0xff] }
 0x6a9   : > { %16127 = vst [vmem:[#allocation61_spill] sm:$0xff] %v12529_v55  ;;  %v12559_v16 = vmul.f32 %v16136_v39, %v12534_v45 }
 0x6aa   : > { %v12511_v42 = vpop.permute.xlu0 %5202  ;;  %5244 = vrot.lane.b32.xlu1 %v12497_v41, %s8159_s26  ;;  %v16129_v41 = vld [vmem:[#allocation229_spill] sm:$0xff] }
 0x6ab   : > { %v3853_v33 = vmul.f32 %v16129_v41, %v16128_v20  ;;  %16137 = vst [vmem:[#allocation313_spill] sm:$0xff] %v12559_v16  ;;  %v16145_v41 = vld [vmem:[#allocation291_spill] sm:$0xff] }
 0x6ac   : > { %5502 = vrot.lane.b32.xlu0 %v12518_v59, %s8157_s20  ;;  %v12524_v38 = vpop.permute.xlu1 %5204  ;;  %v3851_v39 = vmul.f32 %v16145_v41, %v16144_v63 }
 0x6ad   : > { %v12546_v30 = vmul.f32 %v12209_v15, %v3853_v33  ;;  %v16139_v15 = vld [vmem:[#allocation19_spill] sm:$0xff]  ;;  %v16141_v33 = vld [vmem:[#allocation113_spill] sm:$0xff] }
 0x6ae   : > { %v12536_v12 = vpop.permute.xlu0 %5470  ;;  %5504 = vrot.lane.b32.xlu1 %v12529_v55, %s8157_s20  ;;  %v3850_v49 = vmul.f32 %v16140_v7, %v16139_v15  ;;  %v12585_v15 = vmul.f32 %v12248_v44, %v3851_v39  ;;  %v16150_v44 = vld [vmem:[#allocation109_spill] sm:$0xff] }
 0x6af   : > { %16131 = vst [vmem:[#allocation194_spill] sm:$0xff] %v12536_v12  ;;  %16133 = vst [vmem:[#allocation70_spill] sm:$0xff] %v12546_v30  ;;  %v12569_v20 = vmul.f32 %v16141_v33, %v12546_v30  ;;  %v16146_v33 = vld [vmem:[#allocation108_spill] sm:$0xff] }
 0x6b0   : > { %5498 = vrot.lane.b32.xlu0 %v12543_v34, %s8157_s20  ;;  %v12550_v14 = vpop.permute.xlu1 %5472  ;;  %v12578_v55 = vmul.f32 %v12235_v24, %v3850_v49  ;;  %v16148_v24 = vld [vmem:[#allocation31_spill] sm:$0xff]  ;;  %v16149_v49 = vld [vmem:[#allocation22_spill] sm:$0xff]  ;;  %v12603_v39 = vmul.f32 %v16150_v44, %v12585_v15  ;;  %v16155_v44 = vld [vmem:[#allocation128_spill] sm:$0xff] }
 0x6b1   : > { %16134 = vst [vmem:[#allocation311_spill] sm:$0xff] %v12550_v14  ;;  %16142 = vst [vmem:[#allocation67_spill] sm:$0xff] %v12569_v20  ;;  %v3856_v41 = vmul.f32 %v16149_v49, %v16148_v24 }
 0x6b2   : > { %v12561_v53 = vpop.permute.xlu0 %5466  ;;  %5500 = vrot.lane.b32.xlu1 %v12555_v13, %s8157_s20  ;;  %v12593_v13 = vmul.f32 %v16146_v33, %v12578_v55  ;;  %16151 = vst [vmem:[#allocation68_spill] sm:$0xff] %v12603_v39  ;;  %v16153_v33 = vld [vmem:[#allocation24_spill] sm:$0xff] }
 0x6b3   : > { %16138 = vst [vmem:[#allocation212_spill] sm:$0xff] %v12561_v53  ;;  %v12612_v12 = vmul.f32 %v12260_v61, %v3856_v41  ;;  %v16157_v61 = vld [vmem:[#allocation27_spill] sm:$0xff]  ;;  %v16161_v53 = vld [vmem:[#allocation29_spill] sm:$0xff] }
 0x6b4   : > { %5062 = vrot.lane.b32.xlu0 %v12559_v16, %s8158_s25  ;;  %v12573_v40 = vpop.permute.xlu1 %5468  ;;  %16147 = vst [vmem:[#allocation213_spill] sm:$0xff] %v12593_v13  ;;  %v16158_v41 = vld [vmem:[#allocation111_spill] sm:$0xff] }
 0x6b5   : > { %16143 = vst [vmem:[#allocation314_spill] sm:$0xff] %v12573_v40  ;;  %16154 = vst [vmem:[#allocation315_spill] sm:$0xff] %v12612_v12 }
 0x6b6   : > { %v12580_v59 = vpop.permute.xlu0 %5022  ;;  %5064 = vrot.lane.b32.xlu1 %v12569_v20, %s8158_s25 }
 0x6b8   : > { %5254 = vrot.lane.b32.xlu0 %v12559_v16, %s8159_s26  ;;  %v12589_v7 = vpop.permute.xlu1 %5024  ;;  %v16152_v16 = vld [vmem:[#allocation33_spill] sm:$0xff] }
 0x6b9   : > { %v3857_v14 = vmul.f32 %v16153_v33, %v16152_v16  ;;  %v3854_v33 = vmul.f32 %v16158_v41, %v16157_v61 }
 0x6ba   : > { %v12595_v63 = vpop.permute.xlu0 %5214  ;;  %5256 = vrot.lane.b32.xlu1 %v12569_v20, %s8159_s26  ;;  %v12627_v20 = vmul.f32 %v16155_v44, %v12612_v12  ;;  %v16162_v44 = vld [vmem:[#allocation18_spill] sm:$0xff] }
 0x6bb   : > { %v12619_v24 = vmul.f32 %v12274_v56, %v3857_v14  ;;  %v16159_v56 = vld [vmem:[#allocation129_spill] sm:$0xff]  ;;  %v3855_v12 = vmul.f32 %v16162_v44, %v16161_v53  ;;  %v12646_v30 = vmul.f32 %v12285_v11, %v3854_v33 }
 0x6bc   : > { %5058 = vrot.lane.b32.xlu0 %v12593_v13, %s8158_s25  ;;  %v12607_v34 = vpop.permute.xlu1 %5216  ;;  %16156 = vst [vmem:[#allocation206_spill] sm:$0xff] %v12627_v20  ;;  %v16168_v11 = vld [vmem:[#allocation121_spill] sm:$0xff] }
 0x6bd   : > { %v12637_v14 = vmul.f32 %v16159_v56, %v12619_v24  ;;  %v12653_v61 = vmul.f32 %v12297_v17, %v3855_v12  ;;  %v16165_v56 = vld [vmem:[#allocation120_spill] sm:$0xff] }
 0x6be   : > { %v12614_v40 = vpop.permute.xlu0 %5018  ;;  %5060 = vrot.lane.b32.xlu1 %v12603_v39, %s8158_s25 }
 0x6bf   : > { %16160 = vst [vmem:[#allocation207_spill] sm:$0xff] %v12637_v14  ;;  %v12669_v33 = vmul.f32 %v16168_v11, %v12653_v61  ;;  %v12690_v11 = vsel %vm3473_vm1, %v12304_v36, %v12319_v18  ;;  %v12708_v36 = vsel %vm3473_vm1, %v12331_v3, %v12339_v23  ;;  %v16176_v3 = vld [vmem:[#allocation115_spill] sm:$0xff] }
 0x6c0   : > { %5250 = vrot.lane.b32.xlu0 %v12593_v13, %s8159_s26  ;;  %v12623_v49 = vpop.permute.xlu1 %5020  ;;  %16171 = vst [vmem:[#allocation87_spill] sm:$0xff] %v12690_v11  ;;  %16173 = vst [vmem:[#allocation5_spill] sm:$0xff] %v12708_v36  ;;  %v12729_v23 = vmul.f32 %v16176_v3, %v11495_v25 }
 0x6c1   : > { %16169 = vst [vmem:[#allocation88_spill] sm:$0xff] %v12669_v33 }
 0x6c2   : > { %v12629_v16 = vpop.permute.xlu0 %5210  ;;  %5252 = vrot.lane.b32.xlu1 %v12603_v39, %s8159_s26  ;;  %v12661_v39 = vmul.f32 %v16165_v56, %v12646_v30 }
 0x6c4   : > { %5070 = vrot.lane.b32.xlu0 %v12627_v20, %s8158_s25  ;;  %v12641_v13 = vpop.permute.xlu1 %5212  ;;  %16166 = vst [vmem:[#allocation9_spill] sm:$0xff] %v12661_v39 }
 0x6c6   : > { %v12648_v45 = vpop.permute.xlu0 %5478  ;;  %5072 = vrot.lane.b32.xlu1 %v12637_v14, %s8158_s25 }
 0x6c7   : > { %16163 = vst [vmem:[#allocation7_spill] sm:$0xff] %v12648_v45 }
 0x6c8   : > { %5262 = vrot.lane.b32.xlu0 %v12627_v20, %s8159_s26  ;;  %v12657_v41 = vpop.permute.xlu1 %5480  ;;  %v12699_v20 = vsel %vm3473_vm1, %v12313_v6, %v12329_v62  ;;  %v12717_v6 = vsel %vm3473_vm1, %v12337_v54, %v12352_v5  ;;  %v16175_v62 = vld [vmem:[#allocation114_spill] sm:$0xff] }
 0x6c9   : > { %16164 = vst [vmem:[#allocation6_spill] sm:$0xff] %v12657_v41  ;;  %16172 = vst [vmem:[#allocation89_spill] sm:$0xff] %v12699_v20  ;;  %v16177_v5 = vld [vmem:[#allocation238_spill] sm:$0xff] }
 0x6ca   : > { %v12663_v53 = vpop.permute.xlu0 %5474  ;;  %5264 = vrot.lane.b32.xlu1 %v12637_v14, %s8159_s26  ;;  %16174 = vst [vmem:[#allocation220_spill] sm:$0xff] %v12717_v6  ;;  %v16178_v54 = vld [vmem:[#allocation122_spill] sm:$0xff] }
 0x6cb   : > { %16167 = vst [vmem:[#allocation216_spill] sm:$0xff] %v12663_v53 }
 0x6cc   : > { %5066 = vrot.lane.b32.xlu0 %v12661_v39, %s8158_s25  ;;  %v12673_v17 = vpop.permute.xlu1 %5476 }
 0x6cd   : > { %16170 = vst [vmem:[#allocation3_spill] sm:$0xff] %v12673_v17  ;;  %v16355_v17 = vld [vmem:[#allocation16_spill] sm:$0xff] }
 0x6ce   : > { %v12675_v12 = vpop.permute.xlu0 %5030  ;;  %5068 = vrot.lane.b32.xlu1 %v12669_v33, %s8158_s25 }
 0x6d0   : > { %5258 = vrot.lane.b32.xlu0 %v12661_v39, %s8159_s26  ;;  %v12681_v44 = vpop.permute.xlu1 %5032 }
 0x6d2   : > { %v12683_v56 = vpop.permute.xlu0 %5222  ;;  %5260 = vrot.lane.b32.xlu1 %v12669_v33, %s8159_s26  ;;  %v12737_v33 = vmul.f32 %v16178_v54, %v16177_v5  ;;  %v12758_v5 = vsel %vm3473_vm1, %v12364_v50, %v12389_v31  ;;  %v12767_v54 = vsel %vm3473_vm1, %v12378_v47, %v12401_v29  ;;  %v12776_v50 = vsel %vm3473_vm1, %v12408_v57, %v12423_v27  ;;  %v16189_v29 = vld [vmem:[#allocation130_spill] sm:$0xff]  ;;  %v16190_v57 = vld [vmem:[#allocation131_spill] sm:$0xff] }
 0x6d3   : > { %16184 = vst [vmem:[#allocation81_spill] sm:$0xff] %v12758_v5  ;;  %16186 = vst [vmem:[#allocation79_spill] sm:$0xff] %v12767_v54  ;;  %v12785_v47 = vsel %vm3473_vm1, %v12417_v19, %v12435_v9  ;;  %v12797_v27 = vmul.f32 %v16190_v57, %v11607_v60  ;;  %v16191_v9 = vld [vmem:[#allocation134_spill] sm:$0xff] }
 0x6d4   : > { %5510 = vrot.lane.b32.xlu0 %v12690_v11, %s8157_s20  ;;  %v12694_v14 = vpop.permute.xlu1 %5224  ;;  %v12721_v11 = vmul.f32 %v16175_v62, %v11484_v28  ;;  %v16180_v62 = vld [vmem:[#allocation20_spill] sm:$0xff]  ;;  %16187 = vst [vmem:[#allocation104_spill] sm:$0xff] %v12776_v50  ;;  %16188 = vst [vmem:[#allocation11_spill] sm:$0xff] %v12785_v47  ;;  %v12805_v19 = vmul.f32 %v16191_v9, %v11546_v46  ;;  %v12826_v46 = vsel %vm3473_vm1, %v12476_v43, %v12491_v26 }
 0x6d5   : > { %16193 = vst [vmem:[#allocation75_spill] sm:$0xff] %v12826_v46  ;;  %v12835_v9 = vsel %vm3473_vm1, %v12485_v22, %v12501_v4  ;;  %v12844_v43 = vsel %vm3473_vm1, %v12503_v21, %v12511_v42  ;;  %v12853_v22 = vsel %vm3473_vm1, %v12509_v58, %v12524_v38  ;;  %v16199_v4 = vld [vmem:[#allocation138_spill] sm:$0xff]  ;;  %v16201_v21 = vld [vmem:[#allocation139_spill] sm:$0xff] }
 0x6d6   : > { %v12701_v39 = vpop.permute.xlu0 %5026  ;;  %5512 = vrot.lane.b32.xlu1 %v12699_v20, %s8157_s20  ;;  %16194 = vst [vmem:[#allocation105_spill] sm:$0xff] %v12835_v9  ;;  %16196 = vst [vmem:[#allocation224_spill] sm:$0xff] %v12844_v43  ;;  %v12865_v42 = vmul.f32 %v16201_v21, %v11731_v51  ;;  %v16203_v38 = vld [vmem:[#allocation142_spill] sm:$0xff] }
 0x6d7   : > { %16198 = vst [vmem:[#allocation97_spill] sm:$0xff] %v12853_v22  ;;  %v12873_v58 = vmul.f32 %v16203_v38, %v11670_v0  ;;  %v12894_v0 = vsel %vm3473_vm1, %v12580_v59, %v12595_v63  ;;  %v12901_v38 = vsel %vm3473_vm1, %v12589_v7, %v12607_v34  ;;  %v12917_v63 = vsel %vm3473_vm1, %v12623_v49, %v12641_v13  ;;  %v16209_v34 = vld [vmem:[#allocation146_spill] sm:$0xff] }
 0x6d8   : > { %5506 = vrot.lane.b32.xlu0 %v12708_v36, %s8157_s20  ;;  %v12712_v18 = vpop.permute.xlu1 %5028  ;;  %16205 = vst [vmem:[#allocation25_spill] sm:$0xff] %v12894_v0  ;;  %16206 = vst [vmem:[#allocation229_spill] sm:$0xff] %v12901_v38  ;;  %v12921_v7 = vmul.f32 %v16209_v34, %v11818_v1  ;;  %v16212_v1 = vld [vmem:[#allocation151_spill] sm:$0xff] }
 0x6d9   : > { %16208 = vst [vmem:[#allocation19_spill] sm:$0xff] %v12917_v63  ;;  %v12939_v34 = vmul.f32 %v16212_v1, %v11793_v48  ;;  %v12955_v48 = vsel %vm3473_vm1, %v12681_v44, %v12694_v14  ;;  %v16217_v14 = vld [vmem:[#allocation154_spill] sm:$0xff] }
 0x6da   : > { %v12723_v20 = vpop.permute.xlu0 %5218  ;;  %5508 = vrot.lane.b32.xlu1 %v12717_v6, %s8157_s20  ;;  %v16181_v6 = vld [vmem:[#allocation123_spill] sm:$0xff]  ;;  %16214 = vst [vmem:[#allocation113_spill] sm:$0xff] %v12955_v48  ;;  %v12973_v44 = vmul.f32 %v16217_v14, %v11886_v37  ;;  %v16224_v14 = vld [vmem:[#allocation161_spill] sm:$0xff] }
 0x6db   : > { %v12745_v41 = vmul.f32 %v16181_v6, %v16180_v62  ;;  %v16223_v37 = vld [vmem:[#allocation119_spill] sm:$0xff] }
 0x6dc   : > { %5866 = vrot.lane.b32.xlu0 %v12721_v11, %s8158_s25  ;;  %v12733_v36 = vpop.permute.xlu1 %5220 }
 0x6de   : > { %v12739_v28 = vpop.permute.xlu0 %5486  ;;  %5868 = vrot.lane.b32.xlu1 %v12729_v23, %s8158_s25 }
 0x6df   : > { %16179 = vst [vmem:[#allocation80_spill] sm:$0xff] %v12739_v28 }
 0x6e0   : > { %5870 = vrot.lane.b32.xlu0 %v12737_v33, %s8158_s25  ;;  %v12749_v25 = vpop.permute.xlu1 %5488 }
 0x6e1   : > { %16182 = vst [vmem:[#allocation15_spill] sm:$0xff] %v12749_v25 }
 0x6e2   : > { %v12751_v3 = vpop.permute.xlu0 %5482  ;;  %5872 = vrot.lane.b32.xlu1 %v12745_v41, %s8158_s25 }
 0x6e3   : > { %16183 = vst [vmem:[#allocation83_spill] sm:$0xff] %v12751_v3  ;;  %v16351_v3 = vld [vmem:[#allocation10_spill] sm:$0xff] }
 0x6e4   : > { %5518 = vrot.lane.b32.xlu0 %v12758_v5, %s8157_s20  ;;  %v12762_v6 = vpop.permute.xlu1 %5484  ;;  %v12789_v5 = vmul.f32 %v16189_v29, %v11596_v2  ;;  %v16192_v29 = vld [vmem:[#allocation135_spill] sm:$0xff] }
 0x6e5   : > { %16185 = vst [vmem:[#allocation17_spill] sm:$0xff] %v12762_v6 }
 0x6e6   : > { %v12769_v62 = vpop.permute.xlu0 %5038  ;;  %5520 = vrot.lane.b32.xlu1 %v12767_v54, %s8157_s20 }
 0x6e8   : > { %5514 = vrot.lane.b32.xlu0 %v12776_v50, %s8157_s20  ;;  %v12780_v31 = vpop.permute.xlu1 %5040 }
 0x6ea   : > { %v12791_v54 = vpop.permute.xlu0 %5230  ;;  %5516 = vrot.lane.b32.xlu1 %v12785_v47, %s8157_s20  ;;  %v12813_v47 = vmul.f32 %v16192_v29, %v11553_v32 }
 0x6ec   : > { %5874 = vrot.lane.b32.xlu0 %v12789_v5, %s8158_s25  ;;  %v12801_v50 = vpop.permute.xlu1 %5232 }
 0x6ee   : > { %v12807_v2 = vpop.permute.xlu0 %5034  ;;  %5876 = vrot.lane.b32.xlu1 %v12797_v27, %s8158_s25 }
 0x6f0   : > { %5878 = vrot.lane.b32.xlu0 %v12805_v19, %s8158_s25  ;;  %v12817_v60 = vpop.permute.xlu1 %5036 }
 0x6f2   : > { %v12819_v57 = vpop.permute.xlu0 %5226  ;;  %5880 = vrot.lane.b32.xlu1 %v12813_v47, %s8158_s25 }
 0x6f4   : > { %5526 = vrot.lane.b32.xlu0 %v12826_v46, %s8157_s20  ;;  %v12830_v32 = vpop.permute.xlu1 %5228  ;;  %v12857_v46 = vmul.f32 %v16199_v4, %v11720_v10  ;;  %v16204_v4 = vld [vmem:[#allocation143_spill] sm:$0xff] }
 0x6f6   : > { %v12837_v29 = vpop.permute.xlu0 %5494  ;;  %5528 = vrot.lane.b32.xlu1 %v12835_v9, %s8157_s20 }
 0x6f7   : > { %16195 = vst [vmem:[#allocation13_spill] sm:$0xff] %v12837_v29  ;;  %v16220_v29 = vld [vmem:[#allocation118_spill] sm:$0xff] }
 0x6f8   : > { %5522 = vrot.lane.b32.xlu0 %v12844_v43, %s8157_s20  ;;  %v12848_v26 = vpop.permute.xlu1 %5496 }
 0x6f9   : > { %16197 = vst [vmem:[#allocation96_spill] sm:$0xff] %v12848_v26  ;;  %v12910_v26 = vsel %vm3473_vm1, %v12614_v40, %v12629_v16  ;;  %v16210_v40 = vld [vmem:[#allocation147_spill] sm:$0xff] }
 0x6fa   : > { %v12859_v9 = vpop.permute.xlu0 %5490  ;;  %5524 = vrot.lane.b32.xlu1 %v12853_v22, %s8157_s20  ;;  %v12881_v22 = vmul.f32 %v16204_v4, %v11677_v8  ;;  %16207 = vst [vmem:[#allocation112_spill] sm:$0xff] %v12910_v26  ;;  %v12927_v16 = vmul.f32 %v16210_v40, %v11825_v52 }
 0x6fb   : > { %16200 = vst [vmem:[#allocation23_spill] sm:$0xff] %v12859_v9 }
 0x6fc   : > { %5882 = vrot.lane.b32.xlu0 %v12857_v46, %s8158_s25  ;;  %v12869_v43 = vpop.permute.xlu1 %5492 }
 0x6fd   : > { %16202 = vst [vmem:[#allocation228_spill] sm:$0xff] %v12869_v43  ;;  %v16221_v43 = vld [vmem:[#allocation160_spill] sm:$0xff] }
 0x6fe   : > { %v12875_v10 = vpop.permute.xlu0 %5046  ;;  %5884 = vrot.lane.b32.xlu1 %v12865_v42, %s8158_s25 }
 0x700   : > { %5886 = vrot.lane.b32.xlu0 %v12873_v58, %s8158_s25  ;;  %v12885_v51 = vpop.permute.xlu1 %5048 }
 0x702   : > { %v12887_v21 = vpop.permute.xlu0 %5238  ;;  %5888 = vrot.lane.b32.xlu1 %v12881_v22, %s8158_s25 }
 0x704   : > { %5534 = vrot.lane.b32.xlu0 %v12894_v0, %s8157_s20  ;;  %v5241_v8 = vpop.permute.xlu1 %5240 }
 0x706   : > { %v12903_v4 = vpop.permute.xlu0 %5042  ;;  %5536 = vrot.lane.b32.xlu1 %v12901_v38, %s8157_s20 }
 0x708   : > { %5530 = vrot.lane.b32.xlu0 %v12910_v26, %s8157_s20  ;;  %v5045_v59 = vpop.permute.xlu1 %5044  ;;  %v16211_v26 = vld [vmem:[#allocation150_spill] sm:$0xff] }
 0x709   : > { %v12933_v13 = vmul.f32 %v16211_v26, %v11787_v35  ;;  %v12948_v35 = vsel %vm3473_vm1, %v12675_v12, %v12683_v56  ;;  %v12969_v56 = vsel %vm3473_vm1, %v12712_v18, %v12733_v36  ;;  %v12985_v36 = vmul.f32 %v16221_v43, %v16220_v29 }
 0x70a   : > { %v5235_v0 = vpop.permute.xlu0 %5234  ;;  %5532 = vrot.lane.b32.xlu1 %v12917_v63, %s8157_s20  ;;  %16213 = vst [vmem:[#allocation99_spill] sm:$0xff] %v12948_v35  ;;  %v12962_v63 = vsel %vm3473_vm1, %v12701_v39, %v12723_v20  ;;  %16216 = vst [vmem:[#allocation291_spill] sm:$0xff] %v12969_v56  ;;  %v16219_v20 = vld [vmem:[#allocation155_spill] sm:$0xff]  ;;  %v13006_v29 = vsel %vm3473_vm1, %v12769_v62, %v12791_v54  ;;  %v13029_v62 = vsel %vm3473_vm1, %v12817_v60, %v12830_v32 }
 0x70b   : > { %16215 = vst [vmem:[#allocation21_spill] sm:$0xff] %v12962_v63  ;;  %16227 = vst [vmem:[#allocation109_spill] sm:$0xff] %v13006_v29  ;;  %v13048_v60 = vsel %vm3473_vm1, %v12903_v4, %v5235_v0 }
 0x70c   : > { %5890 = vrot.lane.b32.xlu0 %v12921_v7, %s8158_s25  ;;  %v5237_v38 = vpop.permute.xlu1 %5236  ;;  %16231 = vst [vmem:[#allocation27_spill] sm:$0xff] %v13029_v62  ;;  %16234 = vst [vmem:[#allocation29_spill] sm:$0xff] %v13048_v60 }
 0x70e   : > { %v5055_v49 = vpop.permute.xlu0 %5054  ;;  %5892 = vrot.lane.b32.xlu1 %v12927_v16, %s8158_s25 }
 0x710   : > { %5894 = vrot.lane.b32.xlu0 %v12933_v13, %s8158_s25  ;;  %v5057_v52 = vpop.permute.xlu1 %5056 }
 0x712   : > { %v5247_v40 = vpop.permute.xlu0 %5246  ;;  %5896 = vrot.lane.b32.xlu1 %v12939_v34, %s8158_s25 }
 0x714   : > { %5542 = vrot.lane.b32.xlu0 %v12948_v35, %s8157_s20  ;;  %v5249_v26 = vpop.permute.xlu1 %5248 }
 0x715   : > { %v13063_v0 = vsel %vm3473_vm1, %v5057_v52, %v5249_v26 }
 0x716   : > { %v5051_v1 = vpop.permute.xlu0 %5050  ;;  %5544 = vrot.lane.b32.xlu1 %v12955_v48, %s8157_s20  ;;  %v16218_v48 = vld [vmem:[#allocation136_spill] sm:$0xff]  ;;  %16237 = vst [vmem:[#allocation121_spill] sm:$0xff] %v13063_v0 }
 0x717   : > { %v12979_v39 = vmul.f32 %v16219_v20, %v16218_v48 }
 0x718   : > { %5538 = vrot.lane.b32.xlu0 %v12962_v63, %s8157_s20  ;;  %v5053_v12 = vpop.permute.xlu1 %5052 }
 0x71a   : > { %v5243_v35 = vpop.permute.xlu0 %5242  ;;  %5540 = vrot.lane.b32.xlu1 %v12969_v56, %s8157_s20  ;;  %v12993_v56 = vmul.f32 %v16224_v14, %v16223_v37  ;;  %v13015_v37 = vsel %vm3473_vm1, %v12780_v31, %v12801_v50  ;;  %v13036_v31 = vsel %vm3473_vm1, %v12875_v10, %v12887_v21  ;;  %v13053_v10 = vsel %vm3473_vm1, %v5045_v59, %v5237_v38 }
 0x71b   : > { %16229 = vst [vmem:[#allocation24_spill] sm:$0xff] %v13015_v37  ;;  %16232 = vst [vmem:[#allocation111_spill] sm:$0xff] %v13036_v31  ;;  %v13068_v38 = vsel %vm3473_vm1, %v5051_v1, %v5243_v35 }
 0x71c   : > { %5898 = vrot.lane.b32.xlu0 %v12973_v44, %s8158_s25  ;;  %v5245_v63 = vpop.permute.xlu1 %5244  ;;  %16235 = vst [vmem:[#allocation18_spill] sm:$0xff] %v13053_v10  ;;  %16238 = vst [vmem:[#allocation114_spill] sm:$0xff] %v13068_v38 }
 0x71e   : > { %v12987_v18 = vpop.permute.xlu0 %5502  ;;  %5900 = vrot.lane.b32.xlu1 %v12979_v39, %s8158_s25 }
 0x71f   : > { %16222 = vst [vmem:[#allocation108_spill] sm:$0xff] %v12987_v18 }
 0x720   : > { %5902 = vrot.lane.b32.xlu0 %v12985_v36, %s8158_s25  ;;  %v12997_v48 = vpop.permute.xlu1 %5504 }
 0x721   : > { %16225 = vst [vmem:[#allocation31_spill] sm:$0xff] %v12997_v48  ;;  %v13022_v48 = vsel %vm3473_vm1, %v12807_v2, %v12819_v57  ;;  %v13042_v57 = vsel %vm3473_vm1, %v12885_v51, %v5241_v8  ;;  %v13058_v51 = vsel %vm3473_vm1, %v5055_v49, %v5247_v40  ;;  %v13073_v49 = vsel %vm3473_vm1, %v5053_v12, %v5245_v63 }
 0x722   : > { %v12999_v20 = vpop.permute.xlu0 %5498  ;;  %5904 = vrot.lane.b32.xlu1 %v12993_v56, %s8158_s25  ;;  %16230 = vst [vmem:[#allocation128_spill] sm:$0xff] %v13022_v48  ;;  %16233 = vst [vmem:[#allocation129_spill] sm:$0xff] %v13042_v57 }
 0x723   : > { %16226 = vst [vmem:[#allocation22_spill] sm:$0xff] %v12999_v20  ;;  %16236 = vst [vmem:[#allocation120_spill] sm:$0xff] %v13058_v51 }
 0x724   : > { %5550 = vrot.lane.b32.xlu0 %v13006_v29, %s8157_s20  ;;  %v13010_v43 = vpop.permute.xlu1 %5500  ;;  %16239 = vst [vmem:[#allocation115_spill] sm:$0xff] %v13073_v49  ;;  %v16278_v29 = vld [vmem:[#allocation191_spill] sm:$0xff] }
 0x725   : > { %16228 = vst [vmem:[#allocation33_spill] sm:$0xff] %v13010_v43 }
 0x726   : > { %v5063_v14 = vpop.permute.xlu0 %5062  ;;  %5552 = vrot.lane.b32.xlu1 %v13015_v37, %s8157_s20 }
 0x728   : > { %5546 = vrot.lane.b32.xlu0 %v13022_v48, %s8157_s20  ;;  %v5065_v54 = vpop.permute.xlu1 %5064  ;;  %v16281_v48 = vld [vmem:[#allocation196_spill] sm:$0xff] }
 0x72a   : > { %v5255_v50 = vpop.permute.xlu0 %5254  ;;  %5548 = vrot.lane.b32.xlu1 %v13029_v62, %s8157_s20 }
 0x72b   : > { %v13078_v52 = vsel %vm3473_vm1, %v5063_v14, %v5255_v50 }
 0x72c   : > { %5558 = vrot.lane.b32.xlu0 %v13036_v31, %s8157_s20  ;;  %v5257_v2 = vpop.permute.xlu1 %5256  ;;  %16240 = vst [vmem:[#allocation238_spill] sm:$0xff] %v13078_v52 }
 0x72d   : > { %v13083_v35 = vsel %vm3473_vm1, %v5065_v54, %v5257_v2 }
 0x72e   : > { %v5059_v37 = vpop.permute.xlu0 %5058  ;;  %5560 = vrot.lane.b32.xlu1 %v13042_v57, %s8157_s20  ;;  %16241 = vst [vmem:[#allocation122_spill] sm:$0xff] %v13083_v35  ;;  %v16272_v57 = vld [vmem:[#allocation185_spill] sm:$0xff] }
 0x730   : > { %5554 = vrot.lane.b32.xlu0 %v13048_v60, %s8157_s20  ;;  %v5061_v32 = vpop.permute.xlu1 %5060 }
 0x732   : > { %v5251_v21 = vpop.permute.xlu0 %5250  ;;  %5556 = vrot.lane.b32.xlu1 %v13053_v10, %s8157_s20  ;;  %v16275_v10 = vld [vmem:[#allocation190_spill] sm:$0xff] }
 0x733   : > { %v13088_v63 = vsel %vm3473_vm1, %v5059_v37, %v5251_v21 }
 0x734   : > { %5566 = vrot.lane.b32.xlu0 %v13058_v51, %s8157_s20  ;;  %v5253_v8 = vpop.permute.xlu1 %5252  ;;  %16242 = vst [vmem:[#allocation20_spill] sm:$0xff] %v13088_v63 }
 0x735   : > { %v13093_v14 = vsel %vm3473_vm1, %v5061_v32, %v5253_v8 }
 0x736   : > { %v5071_v4 = vpop.permute.xlu0 %5070  ;;  %5568 = vrot.lane.b32.xlu1 %v13063_v0, %s8157_s20  ;;  %16243 = vst [vmem:[#allocation123_spill] sm:$0xff] %v13093_v14  ;;  %v16266_v0 = vld [vmem:[#allocation179_spill] sm:$0xff] }
 0x738   : > { %5562 = vrot.lane.b32.xlu0 %v13068_v38, %s8157_s20  ;;  %v5073_v59 = vpop.permute.xlu1 %5072 }
 0x73a   : > { %v5263_v40 = vpop.permute.xlu0 %5262  ;;  %5564 = vrot.lane.b32.xlu1 %v13073_v49, %s8157_s20  ;;  %v16269_v49 = vld [vmem:[#allocation184_spill] sm:$0xff] }
 0x73b   : > { %v13098_v54 = vsel %vm3473_vm1, %v5071_v4, %v5263_v40  ;;  %v16250_v40 = vld [vmem:[#allocation267_spill] sm:$0xff] }
 0x73c   : > { %5574 = vrot.lane.b32.xlu0 %v13078_v52, %s8157_s20  ;;  %v5265_v26 = vpop.permute.xlu1 %5264  ;;  %16244 = vst [vmem:[#allocation130_spill] sm:$0xff] %v13098_v54 }
 0x73d   : > { %v13103_v37 = vsel %vm3473_vm1, %v5073_v59, %v5265_v26 }
 0x73e   : > { %v5067_v1 = vpop.permute.xlu0 %5066  ;;  %5576 = vrot.lane.b32.xlu1 %v13083_v35, %s8157_s20  ;;  %16245 = vst [vmem:[#allocation131_spill] sm:$0xff] %v13103_v37 }
 0x740   : > { %5570 = vrot.lane.b32.xlu0 %v13088_v63, %s8157_s20  ;;  %v5069_v12 = vpop.permute.xlu1 %5068 }
 0x742   : > { %v5259_v50 = vpop.permute.xlu0 %5258  ;;  %5572 = vrot.lane.b32.xlu1 %v13093_v14, %s8157_s20  ;;  %v16263_v14 = vld [vmem:[#allocation178_spill] sm:$0xff] }
 0x743   : > { %v13110_v32 = vsel %vm3473_vm1, %v5067_v1, %v5259_v50  ;;  %v16254_v1 = vld [vmem:[#allocation167_spill] sm:$0xff] }
 0x744   : > { %5582 = vrot.lane.b32.xlu0 %v13098_v54, %s8157_s20  ;;  %v5261_v2 = vpop.permute.xlu1 %5260  ;;  %16247 = vst [vmem:[#allocation135_spill] sm:$0xff] %v13110_v32  ;;  %v16251_v54 = vld [vmem:[#allocation166_spill] sm:$0xff] }
 0x745   : > { %v13117_v4 = vsel %vm3473_vm1, %v5069_v12, %v5261_v2  ;;  %v13121_v59 = vmul.f32 %v16251_v54, %v16250_v40  ;;  %v16256_v12 = vld [vmem:[#allocation263_spill] sm:$0xff]  ;;  %v16257_v2 = vld [vmem:[#allocation172_spill] sm:$0xff]  ;;  %v16259_v40 = vld [vmem:[#allocation133_spill] sm:$0xff] }
 0x746   : > { %v13105_v21 = vpop.permute.xlu0 %5510  ;;  %5584 = vrot.lane.b32.xlu1 %v13103_v37, %s8157_s20  ;;  %16249 = vst [vmem:[#allocation139_spill] sm:$0xff] %v13117_v4  ;;  %v16253_v37 = vld [vmem:[#allocation144_spill] sm:$0xff]  ;;  %v13137_v35 = vmul.f32 %v16257_v2, %v16256_v12 }
 0x747   : > { %16246 = vst [vmem:[#allocation134_spill] sm:$0xff] %v13105_v21  ;;  %v13129_v50 = vmul.f32 %v16254_v1, %v16253_v37  ;;  %v16262_v1 = vld [vmem:[#allocation275_spill] sm:$0xff]  ;;  %v16265_v2 = vld [vmem:[#allocation152_spill] sm:$0xff] }
 0x748   : > { %5578 = vrot.lane.b32.xlu0 %v13110_v32, %s8157_s20  ;;  %v13114_v8 = vpop.permute.xlu1 %5512  ;;  %v13153_v63 = vmul.f32 %v16263_v14, %v16262_v1  ;;  %v13161_v51 = vmul.f32 %v16266_v0, %v16265_v2  ;;  %v16271_v1 = vld [vmem:[#allocation141_spill] sm:$0xff] }
 0x749   : > { %16248 = vst [vmem:[#allocation138_spill] sm:$0xff] %v13114_v8  ;;  %v13177_v31 = vmul.f32 %v16272_v57, %v16271_v1  ;;  %v16274_v2 = vld [vmem:[#allocation281_spill] sm:$0xff] }
 0x74a   : > { %v13123_v26 = vpop.permute.xlu0 %5506  ;;  %5580 = vrot.lane.b32.xlu1 %v13117_v4, %s8157_s20  ;;  %v16260_v4 = vld [vmem:[#allocation173_spill] sm:$0xff]  ;;  %v13185_v60 = vmul.f32 %v16275_v10, %v16274_v2  ;;  %v16283_v2 = vld [vmem:[#allocation48_spill] sm:$0xff] }
 0x74b   : > { %16252 = vst [vmem:[#allocation142_spill] sm:$0xff] %v13123_v26  ;;  %v13145_v52 = vmul.f32 %v16260_v4, %v16259_v40  ;;  %v16268_v40 = vld [vmem:[#allocation271_spill] sm:$0xff]  ;;  %v16280_v1 = vld [vmem:[#allocation277_spill] sm:$0xff] }
 0x74c   : > { %5906 = vrot.lane.b32.xlu0 %v13121_v59, %s8158_s25  ;;  %v13133_v32 = vpop.permute.xlu1 %5508  ;;  %v13169_v38 = vmul.f32 %v16269_v49, %v16268_v40  ;;  %v16277_v40 = vld [vmem:[#allocation164_spill] sm:$0xff] }
 0x74d   : > { %16255 = vst [vmem:[#allocation143_spill] sm:$0xff] %v13133_v32  ;;  %v13193_v62 = vmul.f32 %v16278_v29, %v16277_v40  ;;  %v16286_v40 = vld [vmem:[#allocation286_spill] sm:$0xff] }
 0x74e   : > { %v13139_v54 = vpop.permute.xlu0 %5866  ;;  %5908 = vrot.lane.b32.xlu1 %v13129_v50, %s8158_s25 }
 0x74f   : > { %16258 = vst [vmem:[#allocation146_spill] sm:$0xff] %v13139_v54  ;;  %v16287_v54 = vld [vmem:[#allocation202_spill] sm:$0xff] }
 0x750   : > { %5910 = vrot.lane.b32.xlu0 %v13137_v35, %s8158_s25  ;;  %v13149_v37 = vpop.permute.xlu1 %5868 }
 0x751   : > { %16261 = vst [vmem:[#allocation147_spill] sm:$0xff] %v13149_v37 }
 0x752   : > { %v13155_v12 = vpop.permute.xlu0 %5870  ;;  %5912 = vrot.lane.b32.xlu1 %v13145_v52, %s8158_s25 }
 0x753   : > { %16264 = vst [vmem:[#allocation150_spill] sm:$0xff] %v13155_v12  ;;  %v16284_v12 = vld [vmem:[#allocation197_spill] sm:$0xff] }
 0x754   : > { %5914 = vrot.lane.b32.xlu0 %v13153_v63, %s8158_s25  ;;  %v13165_v4 = vpop.permute.xlu1 %5872  ;;  %v13209_v37 = vmul.f32 %v16284_v12, %v16283_v2  ;;  %v16292_v2 = vld [vmem:[#allocation284_spill] sm:$0xff] }
 0x755   : > { %16267 = vst [vmem:[#allocation151_spill] sm:$0xff] %v13165_v4  ;;  %v13201_v4 = vmul.f32 %v16281_v48, %v16280_v1  ;;  %v16289_v1 = vld [vmem:[#allocation176_spill] sm:$0xff] }
 0x756   : > { %v13171_v14 = vpop.permute.xlu0 %5518  ;;  %5916 = vrot.lane.b32.xlu1 %v13161_v51, %s8158_s25 }
 0x757   : > { %16270 = vst [vmem:[#allocation154_spill] sm:$0xff] %v13171_v14 }
 0x758   : > { %5918 = vrot.lane.b32.xlu0 %v13169_v38, %s8158_s25  ;;  %v13181_v0 = vpop.permute.xlu1 %5520 }
 0x759   : > { %16273 = vst [vmem:[#allocation136_spill] sm:$0xff] %v13181_v0  ;;  %v13217_v0 = vmul.f32 %v16287_v54, %v16286_v40  ;;  %v16295_v40 = vld [vmem:[#allocation159_spill] sm:$0xff] }
 0x75a   : > { %v13187_v49 = vpop.permute.xlu0 %5514  ;;  %5920 = vrot.lane.b32.xlu1 %v13177_v31, %s8158_s25 }
 0x75b   : > { %16276 = vst [vmem:[#allocation155_spill] sm:$0xff] %v13187_v49 }
 0x75c   : > { %5922 = vrot.lane.b32.xlu0 %v13185_v60, %s8158_s25  ;;  %v13197_v57 = vpop.permute.xlu1 %5516 }
 0x75d   : > { %16279 = vst [vmem:[#allocation118_spill] sm:$0xff] %v13197_v57 }
 0x75e   : > { %v13203_v10 = vpop.permute.xlu0 %5874  ;;  %5924 = vrot.lane.b32.xlu1 %v13193_v62, %s8158_s25 }
 0x75f   : > { %16282 = vst [vmem:[#allocation160_spill] sm:$0xff] %v13203_v10  ;;  %v16290_v10 = vld [vmem:[#allocation203_spill] sm:$0xff] }
 0x760   : > { %5926 = vrot.lane.b32.xlu0 %v13201_v4, %s8158_s25  ;;  %v13213_v29 = vpop.permute.xlu1 %5876  ;;  %v13225_v14 = vmul.f32 %v16290_v10, %v16289_v1  ;;  %v16298_v1 = vld [vmem:[#allocation290_spill] sm:$0xff] }
 0x761   : > { %16285 = vst [vmem:[#allocation119_spill] sm:$0xff] %v13213_v29  ;;  %v16293_v29 = vld [vmem:[#allocation208_spill] sm:$0xff] }
 0x762   : > { %v13219_v48 = vpop.permute.xlu0 %5878  ;;  %5928 = vrot.lane.b32.xlu1 %v13209_v37, %s8158_s25  ;;  %v13233_v57 = vmul.f32 %v16293_v29, %v16292_v2  ;;  %v16301_v2 = vld [vmem:[#allocation188_spill] sm:$0xff] }
 0x763   : > { %16288 = vst [vmem:[#allocation161_spill] sm:$0xff] %v13219_v48  ;;  %v16296_v48 = vld [vmem:[#allocation209_spill] sm:$0xff] }
 0x764   : > { %5930 = vrot.lane.b32.xlu0 %v13217_v0, %s8158_s25  ;;  %v13229_v12 = vpop.permute.xlu1 %5880  ;;  %v13241_v49 = vmul.f32 %v16296_v48, %v16295_v40  ;;  %v16304_v40 = vld [vmem:[#allocation288_spill] sm:$0xff] }
 0x765   : > { %16291 = vst [vmem:[#allocation267_spill] sm:$0xff] %v13229_v12  ;;  %v16299_v12 = vld [vmem:[#allocation76_spill] sm:$0xff] }
 0x766   : > { %v13235_v54 = vpop.permute.xlu0 %5526  ;;  %5932 = vrot.lane.b32.xlu1 %v13225_v14, %s8158_s25  ;;  %v13249_v8 = vmul.f32 %v16299_v12, %v16298_v1  ;;  %v16307_v1 = vld [vmem:[#allocation171_spill] sm:$0xff] }
 0x767   : > { %16294 = vst [vmem:[#allocation166_spill] sm:$0xff] %v13235_v54  ;;  %v16302_v54 = vld [vmem:[#allocation77_spill] sm:$0xff] }
 0x768   : > { %5934 = vrot.lane.b32.xlu0 %v13233_v57, %s8158_s25  ;;  %v13245_v10 = vpop.permute.xlu1 %5528  ;;  %v13257_v21 = vmul.f32 %v16302_v54, %v16301_v2  ;;  %v16310_v2 = vld [vmem:[#allocation297_spill] sm:$0xff] }
 0x769   : > { %16297 = vst [vmem:[#allocation144_spill] sm:$0xff] %v13245_v10  ;;  %v16305_v10 = vld [vmem:[#allocation84_spill] sm:$0xff] }
 0x76a   : > { %v13251_v29 = vpop.permute.xlu0 %5522  ;;  %5936 = vrot.lane.b32.xlu1 %v13241_v49, %s8158_s25  ;;  %v13265_v32 = vmul.f32 %v16305_v10, %v16304_v40  ;;  %v16313_v40 = vld [vmem:[#allocation200_spill] sm:$0xff] }
 0x76b   : > { %16300 = vst [vmem:[#allocation167_spill] sm:$0xff] %v13251_v29  ;;  %v16308_v29 = vld [vmem:[#allocation85_spill] sm:$0xff] }
 0x76c   : > { %5938 = vrot.lane.b32.xlu0 %v13249_v8, %s8158_s25  ;;  %v13261_v48 = vpop.permute.xlu1 %5524  ;;  %v13273_v26 = vmul.f32 %v16308_v29, %v16307_v1  ;;  %v16316_v1 = vld [vmem:[#allocation189_spill] sm:$0xff] }
 0x76d   : > { %16303 = vst [vmem:[#allocation263_spill] sm:$0xff] %v13261_v48  ;;  %v16311_v48 = vld [vmem:[#allocation92_spill] sm:$0xff] }
 0x76e   : > { %v13267_v12 = vpop.permute.xlu0 %5882  ;;  %5940 = vrot.lane.b32.xlu1 %v13257_v21, %s8158_s25  ;;  %v13281_v18 = vmul.f32 %v16311_v48, %v16310_v2  ;;  %v16319_v2 = vld [vmem:[#allocation293_spill] sm:$0xff] }
 0x76f   : > { %16306 = vst [vmem:[#allocation172_spill] sm:$0xff] %v13267_v12  ;;  %v16314_v12 = vld [vmem:[#allocation93_spill] sm:$0xff] }
 0x770   : > { %5942 = vrot.lane.b32.xlu0 %v13265_v32, %s8158_s25  ;;  %v13277_v54 = vpop.permute.xlu1 %5884  ;;  %v13289_v43 = vmul.f32 %v16314_v12, %v16313_v40  ;;  %v16322_v40 = vld [vmem:[#allocation63_spill] sm:$0xff] }
 0x771   : > { %16309 = vst [vmem:[#allocation133_spill] sm:$0xff] %v13277_v54  ;;  %v16317_v54 = vld [vmem:[#allocation100_spill] sm:$0xff] }
 0x772   : > { %v13283_v10 = vpop.permute.xlu0 %5886  ;;  %5944 = vrot.lane.b32.xlu1 %v13273_v26, %s8158_s25  ;;  %v13297_v20 = vmul.f32 %v16317_v54, %v16316_v1  ;;  %v16324_v1 = vld [vmem:[#allocation107_spill] sm:$0xff] }
 0x773   : > { %16312 = vst [vmem:[#allocation173_spill] sm:$0xff] %v13283_v10  ;;  %v16320_v10 = vld [vmem:[#allocation101_spill] sm:$0xff] }
 0x774   : > { %5946 = vrot.lane.b32.xlu0 %v13281_v18, %s8158_s25  ;;  %v13293_v29 = vpop.permute.xlu1 %5888  ;;  %v13305_v9 = vmul.f32 %v16320_v10, %v16319_v2  ;;  %v16326_v2 = vld [vmem:[#allocation304_spill] sm:$0xff] }
 0x775   : > { %16315 = vst [vmem:[#allocation275_spill] sm:$0xff] %v13293_v29  ;;  %v13313_v29 = vmul.f32 %v16322_v40, %v12578_v55  ;;  %v16329_v40 = vld [vmem:[#allocation70_spill] sm:$0xff] }
 0x776   : > { %v13299_v48 = vpop.permute.xlu0 %5534  ;;  %5948 = vrot.lane.b32.xlu1 %v13289_v43, %s8158_s25 }
 0x777   : > { %16318 = vst [vmem:[#allocation178_spill] sm:$0xff] %v13299_v48  ;;  %v13321_v48 = vmul.f32 %v16324_v1, %v12585_v15  ;;  %v16332_v1 = vld [vmem:[#allocation116_spill] sm:$0xff] }
 0x778   : > { %5950 = vrot.lane.b32.xlu0 %v13297_v20, %s8158_s25  ;;  %v13309_v12 = vpop.permute.xlu1 %5536 }
 0x779   : > { %16321 = vst [vmem:[#allocation152_spill] sm:$0xff] %v13309_v12  ;;  %v16327_v12 = vld [vmem:[#allocation66_spill] sm:$0xff] }
 0x77a   : > { %v13315_v54 = vpop.permute.xlu0 %5530  ;;  %5952 = vrot.lane.b32.xlu1 %v13305_v9, %s8158_s25  ;;  %v13329_v25 = vmul.f32 %v16327_v12, %v16326_v2  ;;  %v16334_v2 = vld [vmem:[#allocation117_spill] sm:$0xff] }
 0x77b   : > { %16323 = vst [vmem:[#allocation179_spill] sm:$0xff] %v13315_v54  ;;  %v16330_v54 = vld [vmem:[#allocation69_spill] sm:$0xff] }
 0x77c   : > { %5954 = vrot.lane.b32.xlu0 %v13313_v29, %s8158_s25  ;;  %v13325_v10 = vpop.permute.xlu1 %5532  ;;  %v13337_v28 = vmul.f32 %v16330_v54, %v16329_v40  ;;  %v16336_v40 = vld [vmem:[#allocation315_spill] sm:$0xff] }
 0x77d   : > { %16325 = vst [vmem:[#allocation271_spill] sm:$0xff] %v13325_v10  ;;  %v13345_v10 = vmul.f32 %v16332_v1, %v12646_v30  ;;  %v16339_v1 = vld [vmem:[#allocation125_spill] sm:$0xff] }
 0x77e   : > { %v13331_v55 = vpop.permute.xlu0 %5890  ;;  %5956 = vrot.lane.b32.xlu1 %v13321_v48, %s8158_s25 }
 0x77f   : > { %16328 = vst [vmem:[#allocation184_spill] sm:$0xff] %v13331_v55  ;;  %v13353_v55 = vmul.f32 %v16334_v2, %v12653_v61 }
 0x780   : > { %5958 = vrot.lane.b32.xlu0 %v13329_v25, %s8158_s25  ;;  %v13341_v15 = vpop.permute.xlu1 %5892 }
 0x781   : > { %16331 = vst [vmem:[#allocation141_spill] sm:$0xff] %v13341_v15  ;;  %v16337_v15 = vld [vmem:[#allocation124_spill] sm:$0xff] }
 0x782   : > { %v13347_v12 = vpop.permute.xlu0 %5894  ;;  %5960 = vrot.lane.b32.xlu1 %v13337_v28, %s8158_s25  ;;  %v13361_v6 = vmul.f32 %v16337_v15, %v16336_v40  ;;  %v16343_v15 = vld [vmem:[#allocation82_spill] sm:$0xff] }
 0x783   : > { %16333 = vst [vmem:[#allocation185_spill] sm:$0xff] %v13347_v12  ;;  %v13369_v12 = vmul.f32 %v16339_v1, %v12619_v24  ;;  %v16346_v24 = vld [vmem:[#allocation78_spill] sm:$0xff] }
 0x784   : > { %5962 = vrot.lane.b32.xlu0 %v13345_v10, %s8158_s25  ;;  %v13357_v54 = vpop.permute.xlu1 %5896  ;;  %v16347_v1 = vld [vmem:[#allocation86_spill] sm:$0xff] }
 0x785   : > { %16335 = vst [vmem:[#allocation281_spill] sm:$0xff] %v13357_v54  ;;  %16340 = vst [vmem:[#allocation164_spill] sm:$0xff] %v13369_v12 }
 0x786   : > { %v13363_v30 = vpop.permute.xlu0 %5542  ;;  %5964 = vrot.lane.b32.xlu1 %v13353_v55, %s8158_s25 }
 0x787   : > { %16338 = vst [vmem:[#allocation190_spill] sm:$0xff] %v13363_v30 }
 0x788   : > { %5966 = vrot.lane.b32.xlu0 %v13361_v6, %s8158_s25  ;;  %v13373_v61 = vpop.permute.xlu1 %5544 }
 0x789   : > { %16341 = vst [vmem:[#allocation191_spill] sm:$0xff] %v13373_v61 }
 0x78a   : > { %v13375_v2 = vpop.permute.xlu0 %5538  ;;  %5968 = vrot.lane.b32.xlu1 %v13369_v12, %s8158_s25 }
 0x78b   : > { %16342 = vst [vmem:[#allocation277_spill] sm:$0xff] %v13375_v2  ;;  %v16350_v2 = vld [vmem:[#allocation2_spill] sm:$0xff] }
 0x78c   : > { %6034 = vrot.lane.b32.xlu0 %v16343_v15, %s8159_s26  ;;  %v13381_v40 = vpop.permute.xlu1 %5540 }
 0x78d   : > { %16344 = vst [vmem:[#allocation196_spill] sm:$0xff] %v13381_v40 }
 0x78e   : > { %v13383_v54 = vpop.permute.xlu0 %5898  ;;  %6036 = vrot.lane.b32.xlu1 %v16346_v24, %s8159_s26 }
 0x78f   : > { %16345 = vst [vmem:[#allocation48_spill] sm:$0xff] %v13383_v54  ;;  %v16354_v54 = vld [vmem:[#allocation12_spill] sm:$0xff] }
 0x790   : > { %6038 = vrot.lane.b32.xlu0 %v16347_v1, %s8159_s26  ;;  %v13389_v30 = vpop.permute.xlu1 %5900 }
 0x791   : > { %16348 = vst [vmem:[#allocation197_spill] sm:$0xff] %v13389_v30 }
 0x792   : > { %v13391_v61 = vpop.permute.xlu0 %5902  ;;  %6040 = vrot.lane.b32.xlu1 %v16350_v2, %s8159_s26  ;;  %v16359_v2 = vld [vmem:[#allocation233_spill] sm:$0xff] }
 0x793   : > { %16349 = vst [vmem:[#allocation286_spill] sm:$0xff] %v13391_v61  ;;  %v16358_v61 = vld [vmem:[#allocation225_spill] sm:$0xff] }
 0x794   : > { %6042 = vrot.lane.b32.xlu0 %v16351_v3, %s8159_s26  ;;  %v13397_v45 = vpop.permute.xlu1 %5904 }
 0x795   : > { %16352 = vst [vmem:[#allocation202_spill] sm:$0xff] %v13397_v45 }
 0x796   : > { %v13399_v40 = vpop.permute.xlu0 %5550  ;;  %6044 = vrot.lane.b32.xlu1 %v16354_v54, %s8159_s26  ;;  %v16363_v54 = vld [vmem:[#allocation95_spill] sm:$0xff] }
 0x797   : > { %16353 = vst [vmem:[#allocation176_spill] sm:$0xff] %v13399_v40  ;;  %v16362_v40 = vld [vmem:[#allocation110_spill] sm:$0xff] }
 0x798   : > { %6046 = vrot.lane.b32.xlu0 %v16355_v17, %s8159_s26  ;;  %v13405_v53 = vpop.permute.xlu1 %5552 }
 0x799   : > { %16356 = vst [vmem:[#allocation203_spill] sm:$0xff] %v13405_v53 }
 0x79a   : > { %v13407_v30 = vpop.permute.xlu0 %5546  ;;  %6048 = vrot.lane.b32.xlu1 %v16358_v61, %s8159_s26 }
 0x79b   : > { %16357 = vst [vmem:[#allocation284_spill] sm:$0xff] %v13407_v30  ;;  %v16366_v30 = vld [vmem:[#allocation90_spill] sm:$0xff] }
 0x79c   : > { %6050 = vrot.lane.b32.xlu0 %v16359_v2, %s8159_s26  ;;  %v13413_v3 = vpop.permute.xlu1 %5548 }
 0x79d   : > { %16360 = vst [vmem:[#allocation208_spill] sm:$0xff] %v13413_v3 }
 0x79e   : > { %v13415_v45 = vpop.permute.xlu0 %5558  ;;  %6052 = vrot.lane.b32.xlu1 %v16362_v40, %s8159_s26 }
 0x79f   : > { %16361 = vst [vmem:[#allocation159_spill] sm:$0xff] %v13415_v45 }
 0x7a0   : > { %6054 = vrot.lane.b32.xlu0 %v16363_v54, %s8159_s26  ;;  %v13421_v17 = vpop.permute.xlu1 %5560 }
 0x7a1   : > { %16364 = vst [vmem:[#allocation209_spill] sm:$0xff] %v13421_v17 }
 0x7a2   : > { %v13423_v53 = vpop.permute.xlu0 %5554  ;;  %6056 = vrot.lane.b32.xlu1 %v16366_v30, %s8159_s26 }
 0x7a3   : > { %16365 = vst [vmem:[#allocation290_spill] sm:$0xff] %v13423_v53 }
 0x7a4   : > { %6058 = vrot.lane.b32.xlu0 %v12721_v11, %s8159_s26  ;;  %v13429_v2 = vpop.permute.xlu1 %5556 }
 0x7a5   : > { %16367 = vst [vmem:[#allocation76_spill] sm:$0xff] %v13429_v2 }
 0x7a6   : > { %v13431_v3 = vpop.permute.xlu0 %5566  ;;  %6060 = vrot.lane.b32.xlu1 %v12729_v23, %s8159_s26 }
 0x7a7   : > { %16368 = vst [vmem:[#allocation188_spill] sm:$0xff] %v13431_v3 }
 0x7a8   : > { %6062 = vrot.lane.b32.xlu0 %v12737_v33, %s8159_s26  ;;  %v13437_v45 = vpop.permute.xlu1 %5568 }
 0x7a9   : > { %16369 = vst [vmem:[#allocation77_spill] sm:$0xff] %v13437_v45 }
 0x7aa   : > { %v13439_v17 = vpop.permute.xlu0 %5562  ;;  %6064 = vrot.lane.b32.xlu1 %v12745_v41, %s8159_s26 }
 0x7ab   : > { %16370 = vst [vmem:[#allocation288_spill] sm:$0xff] %v13439_v17 }
 0x7ac   : > { %6066 = vrot.lane.b32.xlu0 %v12789_v5, %s8159_s26  ;;  %v13445_v53 = vpop.permute.xlu1 %5564 }
 0x7ad   : > { %16371 = vst [vmem:[#allocation84_spill] sm:$0xff] %v13445_v53 }
 0x7ae   : > { %v13447_v2 = vpop.permute.xlu0 %5574  ;;  %6068 = vrot.lane.b32.xlu1 %v12797_v27, %s8159_s26 }
 0x7af   : > { %16372 = vst [vmem:[#allocation171_spill] sm:$0xff] %v13447_v2 }
 0x7b0   : > { %6070 = vrot.lane.b32.xlu0 %v12805_v19, %s8159_s26  ;;  %v13453_v3 = vpop.permute.xlu1 %5576 }
 0x7b1   : > { %16373 = vst [vmem:[#allocation85_spill] sm:$0xff] %v13453_v3 }
 0x7b2   : > { %v13455_v45 = vpop.permute.xlu0 %5570  ;;  %6072 = vrot.lane.b32.xlu1 %v12813_v47, %s8159_s26 }
 0x7b3   : > { %16374 = vst [vmem:[#allocation297_spill] sm:$0xff] %v13455_v45 }
 0x7b4   : > { %6074 = vrot.lane.b32.xlu0 %v12857_v46, %s8159_s26  ;;  %v13461_v17 = vpop.permute.xlu1 %5572 }
 0x7b5   : > { %16375 = vst [vmem:[#allocation92_spill] sm:$0xff] %v13461_v17 }
 0x7b6   : > { %v13463_v53 = vpop.permute.xlu0 %5582  ;;  %6076 = vrot.lane.b32.xlu1 %v12865_v42, %s8159_s26 }
 0x7b7   : > { %16376 = vst [vmem:[#allocation200_spill] sm:$0xff] %v13463_v53 }
 0x7b8   : > { %6078 = vrot.lane.b32.xlu0 %v12873_v58, %s8159_s26  ;;  %v13469_v2 = vpop.permute.xlu1 %5584 }
 0x7b9   : > { %16377 = vst [vmem:[#allocation93_spill] sm:$0xff] %v13469_v2 }
 0x7ba   : > { %v13471_v3 = vpop.permute.xlu0 %5578  ;;  %6080 = vrot.lane.b32.xlu1 %v12881_v22, %s8159_s26 }
 0x7bb   : > { %16378 = vst [vmem:[#allocation189_spill] sm:$0xff] %v13471_v3 }
 0x7bc   : > { %6082 = vrot.lane.b32.xlu0 %v12921_v7, %s8159_s26  ;;  %v13477_v45 = vpop.permute.xlu1 %5580 }
 0x7bd   : > { %16379 = vst [vmem:[#allocation100_spill] sm:$0xff] %v13477_v45 }
 0x7be   : > { %v13479_v17 = vpop.permute.xlu0 %5906  ;;  %6084 = vrot.lane.b32.xlu1 %v12927_v16, %s8159_s26 }
 0x7bf   : > { %16380 = vst [vmem:[#allocation293_spill] sm:$0xff] %v13479_v17 }
 0x7c0   : > { %6086 = vrot.lane.b32.xlu0 %v12933_v13, %s8159_s26  ;;  %v13485_v53 = vpop.permute.xlu1 %5908 }
 0x7c1   : > { %16381 = vst [vmem:[#allocation101_spill] sm:$0xff] %v13485_v53 }
 0x7c2   : > { %v13487_v2 = vpop.permute.xlu0 %5910  ;;  %6088 = vrot.lane.b32.xlu1 %v12939_v34, %s8159_s26 }
 0x7c3   : > { %16382 = vst [vmem:[#allocation63_spill] sm:$0xff] %v13487_v2 }
 0x7c4   : > { %6090 = vrot.lane.b32.xlu0 %v12973_v44, %s8159_s26  ;;  %v13493_v3 = vpop.permute.xlu1 %5912 }
 0x7c5   : > { %16383 = vst [vmem:[#allocation107_spill] sm:$0xff] %v13493_v3 }
 0x7c6   : > { %v13495_v45 = vpop.permute.xlu0 %5914  ;;  %6092 = vrot.lane.b32.xlu1 %v12979_v39, %s8159_s26 }
 0x7c7   : > { %16384 = vst [vmem:[#allocation304_spill] sm:$0xff] %v13495_v45 }
 0x7c8   : > { %6094 = vrot.lane.b32.xlu0 %v12985_v36, %s8159_s26  ;;  %v13501_v17 = vpop.permute.xlu1 %5916 }
 0x7c9   : > { %16385 = vst [vmem:[#allocation66_spill] sm:$0xff] %v13501_v17 }
 0x7ca   : > { %v13503_v53 = vpop.permute.xlu0 %5918  ;;  %6096 = vrot.lane.b32.xlu1 %v12993_v56, %s8159_s26 }
 0x7cb   : > { %16386 = vst [vmem:[#allocation70_spill] sm:$0xff] %v13503_v53 }
 0x7cc   : > { %6098 = vrot.lane.b32.xlu0 %v13121_v59, %s8159_s26  ;;  %v13509_v2 = vpop.permute.xlu1 %5920 }
 0x7cd   : > { %16387 = vst [vmem:[#allocation69_spill] sm:$0xff] %v13509_v2 }
 0x7ce   : > { %v13511_v3 = vpop.permute.xlu0 %5922  ;;  %6100 = vrot.lane.b32.xlu1 %v13129_v50, %s8159_s26 }
 0x7cf   : > { %16388 = vst [vmem:[#allocation116_spill] sm:$0xff] %v13511_v3 }
 0x7d0   : > { %6102 = vrot.lane.b32.xlu0 %v13137_v35, %s8159_s26  ;;  %v13517_v45 = vpop.permute.xlu1 %5924 }
 0x7d1   : > { %16389 = vst [vmem:[#allocation117_spill] sm:$0xff] %v13517_v45 }
 0x7d2   : > { %v13519_v17 = vpop.permute.xlu0 %5926  ;;  %6104 = vrot.lane.b32.xlu1 %v13145_v52, %s8159_s26 }
 0x7d3   : > { %16390 = vst [vmem:[#allocation315_spill] sm:$0xff] %v13519_v17 }
 0x7d4   : > { %6106 = vrot.lane.b32.xlu0 %v13153_v63, %s8159_s26  ;;  %v13525_v53 = vpop.permute.xlu1 %5928 }
 0x7d5   : > { %16391 = vst [vmem:[#allocation124_spill] sm:$0xff] %v13525_v53 }
 0x7d6   : > { %v13527_v2 = vpop.permute.xlu0 %5930  ;;  %6108 = vrot.lane.b32.xlu1 %v13161_v51, %s8159_s26 }
 0x7d7   : > { %16392 = vst [vmem:[#allocation125_spill] sm:$0xff] %v13527_v2 }
 0x7d8   : > { %6110 = vrot.lane.b32.xlu0 %v13169_v38, %s8159_s26  ;;  %v13533_v3 = vpop.permute.xlu1 %5932 }
 0x7d9   : > { %16393 = vst [vmem:[#allocation82_spill] sm:$0xff] %v13533_v3 }
 0x7da   : > { %v13535_v45 = vpop.permute.xlu0 %5934  ;;  %6112 = vrot.lane.b32.xlu1 %v13177_v31, %s8159_s26 }
 0x7db   : > { %16394 = vst [vmem:[#allocation78_spill] sm:$0xff] %v13535_v45 }
 0x7dc   : > { %6114 = vrot.lane.b32.xlu0 %v13185_v60, %s8159_s26  ;;  %v13541_v17 = vpop.permute.xlu1 %5936 }
 0x7dd   : > { %16395 = vst [vmem:[#allocation86_spill] sm:$0xff] %v13541_v17 }
 0x7de   : > { %v13543_v53 = vpop.permute.xlu0 %5938  ;;  %6116 = vrot.lane.b32.xlu1 %v13193_v62, %s8159_s26 }
 0x7df   : > { %16396 = vst [vmem:[#allocation225_spill] sm:$0xff] %v13543_v53 }
 0x7e0   : > { %6118 = vrot.lane.b32.xlu0 %v13201_v4, %s8159_s26  ;;  %v13549_v2 = vpop.permute.xlu1 %5940 }
 0x7e1   : > { %16397 = vst [vmem:[#allocation110_spill] sm:$0xff] %v13549_v2 }
 0x7e2   : > { %v13551_v3 = vpop.permute.xlu0 %5942  ;;  %6120 = vrot.lane.b32.xlu1 %v13209_v37, %s8159_s26 }
 0x7e3   : > { %16398 = vst [vmem:[#allocation95_spill] sm:$0xff] %v13551_v3 }
 0x7e4   : > { %6122 = vrot.lane.b32.xlu0 %v13217_v0, %s8159_s26  ;;  %v13557_v45 = vpop.permute.xlu1 %5944 }
 0x7e5   : > { %16399 = vst [vmem:[#allocation90_spill] sm:$0xff] %v13557_v45 }
 0x7e6   : > { %v13559_v17 = vpop.permute.xlu0 %5946  ;;  %6124 = vrot.lane.b32.xlu1 %v13225_v14, %s8159_s26 }
 0x7e7   : > { %16400 = vst [vmem:[#allocation316_spill] sm:$0xff] %v13559_v17 }
 0x7e8   : > { %6126 = vrot.lane.b32.xlu0 %v13233_v57, %s8159_s26  ;;  %v13565_v53 = vpop.permute.xlu1 %5948 }
 0x7e9   : > { %16401 = vst [vmem:[#allocation317_spill] sm:$0xff] %v13565_v53 }
 0x7ea   : > { %v13567_v2 = vpop.permute.xlu0 %5950  ;;  %6128 = vrot.lane.b32.xlu1 %v13241_v49, %s8159_s26 }
 0x7eb   : > { %16402 = vst [vmem:[#allocation318_spill] sm:$0xff] %v13567_v2 }
 0x7ec   : > { %6130 = vrot.lane.b32.xlu0 %v13249_v8, %s8159_s26  ;;  %v13573_v3 = vpop.permute.xlu1 %5952 }
 0x7ed   : > { %16403 = vst [vmem:[#allocation319_spill] sm:$0xff] %v13573_v3 }
 0x7ee   : > { %v13575_v45 = vpop.permute.xlu0 %5954  ;;  %6132 = vrot.lane.b32.xlu1 %v13257_v21, %s8159_s26 }
 0x7ef   : > { %16404 = vst [vmem:[#allocation320_spill] sm:$0xff] %v13575_v45 }
 0x7f0   : > { %6134 = vrot.lane.b32.xlu0 %v13265_v32, %s8159_s26  ;;  %v13581_v17 = vpop.permute.xlu1 %5956 }
 0x7f1   : > { %16405 = vst [vmem:[#allocation321_spill] sm:$0xff] %v13581_v17 }
 0x7f2   : > { %v13583_v53 = vpop.permute.xlu0 %5958  ;;  %6136 = vrot.lane.b32.xlu1 %v13273_v26, %s8159_s26 }
 0x7f3   : > { %16406 = vst [vmem:[#allocation322_spill] sm:$0xff] %v13583_v53 }
 0x7f4   : > { %6138 = vrot.lane.b32.xlu0 %v13281_v18, %s8159_s26  ;;  %v13589_v2 = vpop.permute.xlu1 %5960 }
 0x7f5   : > { %16407 = vst [vmem:[#allocation323_spill] sm:$0xff] %v13589_v2 }
 0x7f6   : > { %v13591_v3 = vpop.permute.xlu0 %5962  ;;  %6140 = vrot.lane.b32.xlu1 %v13289_v43, %s8159_s26 }
 0x7f7   : > { %16408 = vst [vmem:[#allocation324_spill] sm:$0xff] %v13591_v3 }
 0x7f8   : > { %6142 = vrot.lane.b32.xlu0 %v13297_v20, %s8159_s26  ;;  %v13597_v45 = vpop.permute.xlu1 %5964 }
 0x7f9   : > { %16409 = vst [vmem:[#allocation325_spill] sm:$0xff] %v13597_v45 }
 0x7fa   : > { %v13599_v17 = vpop.permute.xlu0 %5966  ;;  %6144 = vrot.lane.b32.xlu1 %v13305_v9, %s8159_s26 }
 0x7fb   : > { %16410 = vst [vmem:[#allocation326_spill] sm:$0xff] %v13599_v17 }
 0x7fc   : > { %6146 = vrot.lane.b32.xlu0 %v13313_v29, %s8159_s26  ;;  %v13605_v53 = vpop.permute.xlu1 %5968 }
 0x7fd   : > { %16411 = vst [vmem:[#allocation327_spill] sm:$0xff] %v13605_v53 }
 0x7fe   : > { %v13607_v2 = vpop.permute.xlu0 %6034  ;;  %6148 = vrot.lane.b32.xlu1 %v13321_v48, %s8159_s26 }
 0x7ff   : > { %16412 = vst [vmem:[#allocation328_spill] sm:$0xff] %v13607_v2 }
 0x800   : > { %6150 = vrot.lane.b32.xlu0 %v13329_v25, %s8159_s26  ;;  %v13613_v3 = vpop.permute.xlu1 %6036 }
 0x801   : > { %16413 = vst [vmem:[#allocation329_spill] sm:$0xff] %v13613_v3 }
 0x802   : > { %v13615_v45 = vpop.permute.xlu0 %6038  ;;  %6152 = vrot.lane.b32.xlu1 %v13337_v28, %s8159_s26 }
 0x803   : > { %16414 = vst [vmem:[#allocation330_spill] sm:$0xff] %v13615_v45  ;;  %v16422_v45 = vld [vmem:[#allocation2_spill] sm:$0xff] }
 0x804   : > { %6154 = vrot.lane.b32.xlu0 %v13345_v10, %s8159_s26  ;;  %v13621_v17 = vpop.permute.xlu1 %6040 }
 0x805   : > { %16415 = vst [vmem:[#allocation331_spill] sm:$0xff] %v13621_v17 }
 0x806   : > { %v13623_v53 = vpop.permute.xlu0 %6042  ;;  %6156 = vrot.lane.b32.xlu1 %v13353_v55, %s8159_s26 }
 0x807   : > { %16416 = vst [vmem:[#allocation332_spill] sm:$0xff] %v13623_v53 }
 0x808   : > { %6158 = vrot.lane.b32.xlu0 %v13361_v6, %s8159_s26  ;;  %v13629_v2 = vpop.permute.xlu1 %6044 }
 0x809   : > { %16417 = vst [vmem:[#allocation333_spill] sm:$0xff] %v13629_v2 }
 0x80a   : > { %v13631_v3 = vpop.permute.xlu0 %6046  ;;  %6160 = vrot.lane.b32.xlu1 %v13369_v12, %s8159_s26  ;;  %v16423_v12 = vld [vmem:[#allocation10_spill] sm:$0xff] }
 0x80b   : > { %16418 = vst [vmem:[#allocation334_spill] sm:$0xff] %v13631_v3 }
 0x80c   : > { %6290 = vrot.lane.b32.xlu0 %v16343_v15, %s8160_s27  ;;  %v13637_v17 = vpop.permute.xlu1 %6048 }
 0x80d   : > { %16419 = vst [vmem:[#allocation335_spill] sm:$0xff] %v13637_v17 }
 0x80e   : > { %v13639_v53 = vpop.permute.xlu0 %6050  ;;  %6292 = vrot.lane.b32.xlu1 %v16346_v24, %s8160_s27  ;;  %v16426_v24 = vld [vmem:[#allocation16_spill] sm:$0xff] }
 0x80f   : > { %16420 = vst [vmem:[#allocation336_spill] sm:$0xff] %v13639_v53  ;;  %v16425_v53 = vld [vmem:[#allocation12_spill] sm:$0xff] }
 0x810   : > { %6294 = vrot.lane.b32.xlu0 %v16347_v1, %s8160_s27  ;;  %v13645_v2 = vpop.permute.xlu1 %6052 }
 0x811   : > { %16421 = vst [vmem:[#allocation337_spill] sm:$0xff] %v13645_v2 }
 0x812   : > { %v13647_v3 = vpop.permute.xlu0 %6054  ;;  %6296 = vrot.lane.b32.xlu1 %v16422_v45, %s8160_s27  ;;  %v16427_v45 = vld [vmem:[#allocation233_spill] sm:$0xff] }
 0x814   : > { %6298 = vrot.lane.b32.xlu0 %v16423_v12, %s8160_s27  ;;  %v13653_v15 = vpop.permute.xlu1 %6056 }
 0x815   : > { %16424 = vst [vmem:[#allocation2_spill] sm:$0xff] %v13653_v15 }
 0x816   : > { %v13655_v17 = vpop.permute.xlu0 %6058  ;;  %6300 = vrot.lane.b32.xlu1 %v16425_v53, %s8160_s27 }
 0x818   : > { %6302 = vrot.lane.b32.xlu0 %v16426_v24, %s8160_s27  ;;  %v13661_v1 = vpop.permute.xlu1 %6060 }
 0x81a   : > { %v13663_v2 = vpop.permute.xlu0 %6062  ;;  %6304 = vrot.lane.b32.xlu1 %v16358_v61, %s8160_s27 }
 0x81c   : > { %6306 = vrot.lane.b32.xlu0 %v16427_v45, %s8160_s27  ;;  %v13669_v12 = vpop.permute.xlu1 %6064 }
 0x81e   : > { %v13671_v15 = vpop.permute.xlu0 %6066  ;;  %6308 = vrot.lane.b32.xlu1 %v16362_v40, %s8160_s27 }
 0x820   : > { %6310 = vrot.lane.b32.xlu0 %v16363_v54, %s8160_s27  ;;  %v13677_v53 = vpop.permute.xlu1 %6068 }
 0x822   : > { %v13679_v24 = vpop.permute.xlu0 %6070  ;;  %6312 = vrot.lane.b32.xlu1 %v16366_v30, %s8160_s27 }
 0x824   : > { %6314 = vrot.lane.b32.xlu0 %v12721_v11, %s8160_s27  ;;  %v13685_v61 = vpop.permute.xlu1 %6072 }
 0x826   : > { %v13687_v45 = vpop.permute.xlu0 %6074  ;;  %6316 = vrot.lane.b32.xlu1 %v12729_v23, %s8160_s27 }
 0x828   : > { %6318 = vrot.lane.b32.xlu0 %v12737_v33, %s8160_s27  ;;  %v13693_v54 = vpop.permute.xlu1 %6076 }
 0x82a   : > { %v13695_v40 = vpop.permute.xlu0 %6078  ;;  %6320 = vrot.lane.b32.xlu1 %v12745_v41, %s8160_s27 }
 0x82c   : > { %6322 = vrot.lane.b32.xlu0 %v12789_v5, %s8160_s27  ;;  %v13701_v11 = vpop.permute.xlu1 %6080 }
 0x82e   : > { %v13703_v30 = vpop.permute.xlu0 %6082  ;;  %6324 = vrot.lane.b32.xlu1 %v12797_v27, %s8160_s27 }
 0x830   : > { %6326 = vrot.lane.b32.xlu0 %v12805_v19, %s8160_s27  ;;  %v13709_v33 = vpop.permute.xlu1 %6084 }
 0x832   : > { %v13711_v23 = vpop.permute.xlu0 %6086  ;;  %6328 = vrot.lane.b32.xlu1 %v12813_v47, %s8160_s27 }
 0x834   : > { %6330 = vrot.lane.b32.xlu0 %v12857_v46, %s8160_s27  ;;  %v13717_v41 = vpop.permute.xlu1 %6088 }
 0x835   : > { %16428 = vst [vmem:[#allocation10_spill] sm:$0xff] %v13717_v41  ;;  %v16647_v41 = vld [vmem:[#allocation333_spill] sm:$0xff] }
 0x836   : > { %v13719_v5 = vpop.permute.xlu0 %6090  ;;  %6332 = vrot.lane.b32.xlu1 %v12865_v42, %s8160_s27 }
 0x837   : > { %16429 = vst [vmem:[#allocation12_spill] sm:$0xff] %v13719_v5 }
 0x838   : > { %6334 = vrot.lane.b32.xlu0 %v12873_v58, %s8160_s27  ;;  %v13725_v27 = vpop.permute.xlu1 %6092 }
 0x839   : > { %16430 = vst [vmem:[#allocation16_spill] sm:$0xff] %v13725_v27 }
 0x83a   : > { %v13727_v19 = vpop.permute.xlu0 %6094  ;;  %6336 = vrot.lane.b32.xlu1 %v12881_v22, %s8160_s27 }
 0x83b   : > { %16431 = vst [vmem:[#allocation233_spill] sm:$0xff] %v13727_v19 }
 0x83c   : > { %6338 = vrot.lane.b32.xlu0 %v12921_v7, %s8160_s27  ;;  %v13733_v47 = vpop.permute.xlu1 %6096 }
 0x83d   : > { %16432 = vst [vmem:[#allocation338_spill] sm:$0xff] %v13733_v47 }
 0x83e   : > { %v13735_v46 = vpop.permute.xlu0 %6098  ;;  %6340 = vrot.lane.b32.xlu1 %v12927_v16, %s8160_s27 }
 0x83f   : > { %16433 = vst [vmem:[#allocation339_spill] sm:$0xff] %v13735_v46 }
 0x840   : > { %6342 = vrot.lane.b32.xlu0 %v12933_v13, %s8160_s27  ;;  %v13741_v42 = vpop.permute.xlu1 %6100 }
 0x841   : > { %16434 = vst [vmem:[#allocation340_spill] sm:$0xff] %v13741_v42 }
 0x842   : > { %v13743_v58 = vpop.permute.xlu0 %6102  ;;  %6344 = vrot.lane.b32.xlu1 %v12939_v34, %s8160_s27 }
 0x843   : > { %16435 = vst [vmem:[#allocation341_spill] sm:$0xff] %v13743_v58 }
 0x844   : > { %6346 = vrot.lane.b32.xlu0 %v12973_v44, %s8160_s27  ;;  %v13749_v22 = vpop.permute.xlu1 %6104 }
 0x845   : > { %16436 = vst [vmem:[#allocation342_spill] sm:$0xff] %v13749_v22 }
 0x846   : > { %v13751_v7 = vpop.permute.xlu0 %6106  ;;  %6348 = vrot.lane.b32.xlu1 %v12979_v39, %s8160_s27 }
 0x847   : > { %16437 = vst [vmem:[#allocation343_spill] sm:$0xff] %v13751_v7 }
 0x848   : > { %6350 = vrot.lane.b32.xlu0 %v12985_v36, %s8160_s27  ;;  %v13757_v16 = vpop.permute.xlu1 %6108 }
 0x849   : > { %16438 = vst [vmem:[#allocation344_spill] sm:$0xff] %v13757_v16 }
 0x84a   : > { %v13759_v13 = vpop.permute.xlu0 %6110  ;;  %6352 = vrot.lane.b32.xlu1 %v12993_v56, %s8160_s27 }
 0x84b   : > { %16439 = vst [vmem:[#allocation345_spill] sm:$0xff] %v13759_v13 }
 0x84c   : > { %6354 = vrot.lane.b32.xlu0 %v13121_v59, %s8160_s27  ;;  %v13765_v34 = vpop.permute.xlu1 %6112 }
 0x84d   : > { %16440 = vst [vmem:[#allocation346_spill] sm:$0xff] %v13765_v34 }
 0x84e   : > { %v13767_v44 = vpop.permute.xlu0 %6114  ;;  %6356 = vrot.lane.b32.xlu1 %v13129_v50, %s8160_s27 }
 0x84f   : > { %16441 = vst [vmem:[#allocation347_spill] sm:$0xff] %v13767_v44 }
 0x850   : > { %6358 = vrot.lane.b32.xlu0 %v13137_v35, %s8160_s27  ;;  %v13773_v39 = vpop.permute.xlu1 %6116 }
 0x851   : > { %16442 = vst [vmem:[#allocation348_spill] sm:$0xff] %v13773_v39 }
 0x852   : > { %v13775_v36 = vpop.permute.xlu0 %6118  ;;  %6360 = vrot.lane.b32.xlu1 %v13145_v52, %s8160_s27 }
 0x853   : > { %16443 = vst [vmem:[#allocation349_spill] sm:$0xff] %v13775_v36 }
 0x854   : > { %6362 = vrot.lane.b32.xlu0 %v13153_v63, %s8160_s27  ;;  %v13781_v56 = vpop.permute.xlu1 %6120 }
 0x855   : > { %16444 = vst [vmem:[#allocation350_spill] sm:$0xff] %v13781_v56 }
 0x856   : > { %v13783_v59 = vpop.permute.xlu0 %6122  ;;  %6364 = vrot.lane.b32.xlu1 %v13161_v51, %s8160_s27 }
 0x857   : > { %16445 = vst [vmem:[#allocation351_spill] sm:$0xff] %v13783_v59 }
 0x858   : > { %6366 = vrot.lane.b32.xlu0 %v13169_v38, %s8160_s27  ;;  %v13789_v35 = vpop.permute.xlu1 %6124 }
 0x859   : > { %16446 = vst [vmem:[#allocation352_spill] sm:$0xff] %v13789_v35 }
 0x85a   : > { %v13791_v50 = vpop.permute.xlu0 %6126  ;;  %6368 = vrot.lane.b32.xlu1 %v13177_v31, %s8160_s27 }
 0x85b   : > { %16447 = vst [vmem:[#allocation353_spill] sm:$0xff] %v13791_v50 }
 0x85c   : > { %6370 = vrot.lane.b32.xlu0 %v13185_v60, %s8160_s27  ;;  %v13797_v52 = vpop.permute.xlu1 %6128 }
 0x85d   : > { %16448 = vst [vmem:[#allocation354_spill] sm:$0xff] %v13797_v52 }
 0x85e   : > { %v13799_v63 = vpop.permute.xlu0 %6130  ;;  %6372 = vrot.lane.b32.xlu1 %v13193_v62, %s8160_s27 }
 0x85f   : > { %16449 = vst [vmem:[#allocation355_spill] sm:$0xff] %v13799_v63 }
 0x860   : > { %6374 = vrot.lane.b32.xlu0 %v13201_v4, %s8160_s27  ;;  %v13805_v51 = vpop.permute.xlu1 %6132 }
 0x861   : > { %16450 = vst [vmem:[#allocation356_spill] sm:$0xff] %v13805_v51 }
 0x862   : > { %v13807_v38 = vpop.permute.xlu0 %6134  ;;  %6376 = vrot.lane.b32.xlu1 %v13209_v37, %s8160_s27 }
 0x863   : > { %16451 = vst [vmem:[#allocation357_spill] sm:$0xff] %v13807_v38 }
 0x864   : > { %6378 = vrot.lane.b32.xlu0 %v13217_v0, %s8160_s27  ;;  %v13813_v31 = vpop.permute.xlu1 %6136 }
 0x865   : > { %16452 = vst [vmem:[#allocation358_spill] sm:$0xff] %v13813_v31 }
 0x866   : > { %v13815_v60 = vpop.permute.xlu0 %6138  ;;  %6380 = vrot.lane.b32.xlu1 %v13225_v14, %s8160_s27 }
 0x867   : > { %16453 = vst [vmem:[#allocation359_spill] sm:$0xff] %v13815_v60 }
 0x868   : > { %6382 = vrot.lane.b32.xlu0 %v13233_v57, %s8160_s27  ;;  %v13821_v62 = vpop.permute.xlu1 %6140 }
 0x869   : > { %16454 = vst [vmem:[#allocation360_spill] sm:$0xff] %v13821_v62  ;;  %v16475_v62 = vld [vmem:[#allocation212_spill] sm:$0xff] }
 0x86a   : > { %v13823_v4 = vpop.permute.xlu0 %6142  ;;  %6384 = vrot.lane.b32.xlu1 %v13241_v49, %s8160_s27 }
 0x86b   : > { %16455 = vst [vmem:[#allocation361_spill] sm:$0xff] %v13823_v4 }
 0x86c   : > { %6386 = vrot.lane.b32.xlu0 %v13249_v8, %s8160_s27  ;;  %v13829_v37 = vpop.permute.xlu1 %6144 }
 0x86d   : > { %16456 = vst [vmem:[#allocation362_spill] sm:$0xff] %v13829_v37  ;;  %v16473_v37 = vld [vmem:[#allocation182_spill] sm:$0xff] }
 0x86e   : > { %v13831_v0 = vpop.permute.xlu0 %6146  ;;  %6388 = vrot.lane.b32.xlu1 %v13257_v21, %s8160_s27 }
 0x86f   : > { %16457 = vst [vmem:[#allocation363_spill] sm:$0xff] %v13831_v0 }
 0x870   : > { %6390 = vrot.lane.b32.xlu0 %v13265_v32, %s8160_s27  ;;  %v13837_v14 = vpop.permute.xlu1 %6148 }
 0x871   : > { %16458 = vst [vmem:[#allocation364_spill] sm:$0xff] %v13837_v14 }
 0x872   : > { %v13839_v57 = vpop.permute.xlu0 %6150  ;;  %6392 = vrot.lane.b32.xlu1 %v13273_v26, %s8160_s27 }
 0x873   : > { %16459 = vst [vmem:[#allocation365_spill] sm:$0xff] %v13839_v57 }
 0x874   : > { %6394 = vrot.lane.b32.xlu0 %v13281_v18, %s8160_s27  ;;  %v13845_v8 = vpop.permute.xlu1 %6152 }
 0x875   : > { %16460 = vst [vmem:[#allocation366_spill] sm:$0xff] %v13845_v8  ;;  %v16469_v8 = vld [vmem:[#allocation8_spill] sm:$0xff] }
 0x876   : > { %v13847_v49 = vpop.permute.xlu0 %6154  ;;  %6396 = vrot.lane.b32.xlu1 %v13289_v43, %s8160_s27 }
 0x877   : > { %16461 = vst [vmem:[#allocation367_spill] sm:$0xff] %v13847_v49 }
 0x878   : > { %6398 = vrot.lane.b32.xlu0 %v13297_v20, %s8160_s27  ;;  %v13853_v21 = vpop.permute.xlu1 %6156 }
 0x879   : > { %16462 = vst [vmem:[#allocation368_spill] sm:$0xff] %v13853_v21 }
 0x87a   : > { %v13855_v32 = vpop.permute.xlu0 %6158  ;;  %6400 = vrot.lane.b32.xlu1 %v13305_v9, %s8160_s27 }
 0x87b   : > { %16463 = vst [vmem:[#allocation369_spill] sm:$0xff] %v13855_v32 }
 0x87c   : > { %6402 = vrot.lane.b32.xlu0 %v13313_v29, %s8160_s27  ;;  %v13861_v18 = vpop.permute.xlu1 %6160  ;;  %v16465_v29 = vld [vmem:[#allocation4_spill] sm:$0xff] }
 0x87d   : > { %16464 = vst [vmem:[#allocation370_spill] sm:$0xff] %v13861_v18  ;;  %v16466_v18 = vld [vmem:[#allocation64_spill] sm:$0xff] }
 0x87e   : > { %v13863_v26 = vpop.permute.xlu0 %6290  ;;  %6404 = vrot.lane.b32.xlu1 %v13321_v48, %s8160_s27  ;;  %v5650_v32 = vmul.f32 %v16466_v18, %v16465_v29  ;;  %v16468_v48 = vld [vmem:[#allocation65_spill] sm:$0xff]  ;;  %v16471_v18 = vld [vmem:[#allocation164_spill] sm:$0xff] }
 0x87f   : > { %v16472_v29 = vld [vmem:[#allocation217_spill] sm:$0xff] }
 0x880   : > { %6406 = vrot.lane.b32.xlu0 %v13329_v25, %s8160_s27  ;;  %v13869_v20 = vpop.permute.xlu1 %6292  ;;  %v16467_v25 = vld [vmem:[#allocation221_spill] sm:$0xff]  ;;  %v5714_v14 = vsub.f32 1.0, %v5650_v32  ;;  %v16476_v32 = vld [vmem:[#allocation103_spill] sm:$0xff] }
 0x881   : > { %v5651_v49 = vmul.f32 %v16468_v48, %v16467_v25  ;;  %v16474_v48 = vld [vmem:[#allocation102_spill] sm:$0xff] }
 0x882   : > { %v13871_v43 = vpop.permute.xlu0 %6294  ;;  %6408 = vrot.lane.b32.xlu1 %v13337_v28, %s8160_s27  ;;  %v5654_v60 = vmul.f32 %v16475_v62, %v16474_v48  ;;  %v16480_v62 = vld [vmem:[#allocation14_spill] sm:$0xff]  ;;  %v16481_v48 = vld [vmem:[#allocation311_spill] sm:$0xff] }
 0x883   : > { %v5715_v4 = vsub.f32 1.0, %v5651_v49  ;;  %v16478_v49 = vld [vmem:[#allocation74_spill] sm:$0xff]  ;;  %v5657_v51 = vmul.f32 %v16481_v48, %v16480_v62 }
 0x884   : > { %6410 = vrot.lane.b32.xlu0 %v13345_v10, %s8160_s27  ;;  %v13877_v9 = vpop.permute.xlu1 %6296  ;;  %v16470_v10 = vld [vmem:[#allocation55_spill] sm:$0xff]  ;;  %v5718_v38 = vsub.f32 1.0, %v5654_v60 }
 0x885   : > { %v5652_v57 = vmul.f32 %v16470_v10, %v16469_v8  ;;  %v16477_v10 = vld [vmem:[#allocation314_spill] sm:$0xff]  ;;  %v5721_v60 = vsub.f32 1.0, %v5657_v51 }
 0x886   : > { %v13881_v21 = vpop.permute.xlu0 %6298  ;;  %6412 = vrot.lane.b32.xlu1 %v13353_v55, %s8160_s27  ;;  %v5653_v55 = vmul.f32 %v16473_v37, %v16472_v29 }
 0x888   : > { %6414 = vrot.lane.b32.xlu0 %v13361_v6, %s8160_s27  ;;  %v13889_v28 = vpop.permute.xlu1 %6300  ;;  %v5716_v6 = vsub.f32 1.0, %v5652_v57  ;;  %v5717_v8 = vsub.f32 1.0, %v5653_v55 }
 0x88a   : > { %v13893_v0 = vpop.permute.xlu0 %6302  ;;  %6416 = vrot.lane.b32.xlu1 %v16471_v18, %s8160_s27  ;;  %v5655_v18 = vmul.f32 %v16477_v10, %v16476_v32  ;;  %v16483_v10 = vld [vmem:[#allocation216_spill] sm:$0xff] }
 0x88c   : > { %6674 = vrot.lane.b32.xlu0 %v5714_v14, %s8160_s27  ;;  %v13900_v25 = vpop.permute.xlu1 %6304  ;;  %v16479_v14 = vld [vmem:[#allocation194_spill] sm:$0xff] }
 0x88d   : > { %v5656_v29 = vmul.f32 %v16479_v14, %v16478_v49  ;;  %v16484_v49 = vld [vmem:[#allocation232_spill] sm:$0xff]  ;;  %v16485_v14 = vld [vmem:[#allocation3_spill] sm:$0xff] }
 0x88e   : > { %v13904_v31 = vpop.permute.xlu0 %6306  ;;  %6676 = vrot.lane.b32.xlu1 %v5715_v4, %s8160_s27  ;;  %v5719_v4 = vsub.f32 1.0, %v5655_v18  ;;  %v16486_v18 = vld [vmem:[#allocation98_spill] sm:$0xff] }
 0x88f   : > { %v5720_v32 = vsub.f32 1.0, %v5656_v29 }
 0x890   : > { %6678 = vrot.lane.b32.xlu0 %v5716_v6, %s8160_s27  ;;  %v13910_v37 = vpop.permute.xlu1 %6308  ;;  %v16482_v6 = vld [vmem:[#allocation91_spill] sm:$0xff] }
 0x891   : > { %v5658_v63 = vmul.f32 %v16483_v10, %v16482_v6  ;;  %v16488_v6 = vld [vmem:[#allocation94_spill] sm:$0xff] }
 0x892   : > { %v13914_v57 = vpop.permute.xlu0 %6310  ;;  %6680 = vrot.lane.b32.xlu1 %v5717_v8, %s8160_s27  ;;  %v5659_v8 = vmul.f32 %v16485_v14, %v16484_v49  ;;  %v16489_v10 = vld [vmem:[#allocation6_spill] sm:$0xff]  ;;  %v16491_v14 = vld [vmem:[#allocation83_spill] sm:$0xff] }
 0x893   : > { %v5722_v50 = vsub.f32 1.0, %v5658_v63  ;;  %v5661_v35 = vmul.f32 %v16489_v10, %v16488_v6 }
 0x894   : > { %6682 = vrot.lane.b32.xlu0 %v5718_v38, %s8160_s27  ;;  %v13920_v55 = vpop.permute.xlu1 %6312  ;;  %v16487_v38 = vld [vmem:[#allocation7_spill] sm:$0xff] }
 0x895   : > { %v5660_v48 = vmul.f32 %v16487_v38, %v16486_v18  ;;  %v5725_v63 = vsub.f32 1.0, %v5661_v35  ;;  %v16492_v18 = vld [vmem:[#allocation294_spill] sm:$0xff]  ;;  %v16493_v38 = vld [vmem:[#allocation17_spill] sm:$0xff] }
 0x896   : > { %v13924_v52 = vpop.permute.xlu0 %6314  ;;  %6684 = vrot.lane.b32.xlu1 %v5719_v4, %s8160_s27  ;;  %v5723_v4 = vsub.f32 1.0, %v5659_v8  ;;  %v16494_v8 = vld [vmem:[#allocation241_spill] sm:$0xff] }
 0x897   : > { %v5724_v49 = vsub.f32 1.0, %v5660_v48 }
 0x898   : > { %6686 = vrot.lane.b32.xlu0 %v5720_v32, %s8160_s27  ;;  %v13930_v62 = vpop.permute.xlu1 %6316  ;;  %v16490_v32 = vld [vmem:[#allocation295_spill] sm:$0xff] }
 0x899   : > { %v5662_v59 = vmul.f32 %v16491_v14, %v16490_v32  ;;  %v16496_v32 = vld [vmem:[#allocation72_spill] sm:$0xff]  ;;  %v16497_v14 = vld [vmem:[#allocation15_spill] sm:$0xff] }
 0x89a   : > { %v13934_v29 = vpop.permute.xlu0 %6318  ;;  %6688 = vrot.lane.b32.xlu1 %v5721_v60, %s8160_s27  ;;  %v5663_v60 = vmul.f32 %v16493_v38, %v16492_v18  ;;  %v5665_v39 = vmul.f32 %v16497_v14, %v16496_v32  ;;  %v16499_v38 = vld [vmem:[#allocation23_spill] sm:$0xff] }
 0x89b   : > { %v5726_v36 = vsub.f32 1.0, %v5662_v59 }
 0x89c   : > { %6690 = vrot.lane.b32.xlu0 %v5722_v50, %s8160_s27  ;;  %v13940_v51 = vpop.permute.xlu1 %6320  ;;  %v16495_v50 = vld [vmem:[#allocation80_spill] sm:$0xff]  ;;  %v5729_v59 = vsub.f32 1.0, %v5665_v39 }
 0x89d   : > { %v5664_v10 = vmul.f32 %v16495_v50, %v16494_v8  ;;  %v16500_v8 = vld [vmem:[#allocation302_spill] sm:$0xff]  ;;  %v16501_v50 = vld [vmem:[#allocation228_spill] sm:$0xff] }
 0x89e   : > { %v13944_v56 = vpop.permute.xlu0 %6322  ;;  %6692 = vrot.lane.b32.xlu1 %v5723_v4, %s8160_s27  ;;  %v5727_v4 = vsub.f32 1.0, %v5663_v60  ;;  %v16502_v60 = vld [vmem:[#allocation73_spill] sm:$0xff] }
 0x89f   : > { %v5728_v18 = vsub.f32 1.0, %v5664_v10 }
 0x8a0   : > { %6694 = vrot.lane.b32.xlu0 %v5724_v49, %s8160_s27  ;;  %v13950_v6 = vpop.permute.xlu1 %6324  ;;  %v16498_v49 = vld [vmem:[#allocation60_spill] sm:$0xff] }
 0x8a1   : > { %v5666_v44 = vmul.f32 %v16499_v38, %v16498_v49  ;;  %v16504_v49 = vld [vmem:[#allocation307_spill] sm:$0xff]  ;;  %v16505_v38 = vld [vmem:[#allocation96_spill] sm:$0xff] }
 0x8a2   : > { %v13954_v48 = vpop.permute.xlu0 %6326  ;;  %6696 = vrot.lane.b32.xlu1 %v5725_v63, %s8160_s27  ;;  %v5667_v63 = vmul.f32 %v16501_v50, %v16500_v8  ;;  %v5669_v16 = vmul.f32 %v16505_v38, %v16504_v49  ;;  %v16507_v50 = vld [vmem:[#allocation22_spill] sm:$0xff] }
 0x8a3   : > { %v5730_v13 = vsub.f32 1.0, %v5666_v44 }
 0x8a4   : > { %6698 = vrot.lane.b32.xlu0 %v5726_v36, %s8160_s27  ;;  %v13960_v35 = vpop.permute.xlu1 %6328  ;;  %v16503_v36 = vld [vmem:[#allocation13_spill] sm:$0xff]  ;;  %v5733_v44 = vsub.f32 1.0, %v5669_v16 }
 0x8a5   : > { %v5668_v14 = vmul.f32 %v16503_v36, %v16502_v60  ;;  %v16508_v60 = vld [vmem:[#allocation250_spill] sm:$0xff]  ;;  %v16509_v36 = vld [vmem:[#allocation33_spill] sm:$0xff] }
 0x8a6   : > { %v13964_v34 = vpop.permute.xlu0 %6330  ;;  %6700 = vrot.lane.b32.xlu1 %v5727_v4, %s8160_s27  ;;  %v5731_v4 = vsub.f32 1.0, %v5667_v63  ;;  %v16510_v63 = vld [vmem:[#allocation106_spill] sm:$0xff] }
 0x8a7   : > { %v5732_v8 = vsub.f32 1.0, %v5668_v14 }
 0x8a8   : > { %6702 = vrot.lane.b32.xlu0 %v5728_v18, %s8160_s27  ;;  %v13970_v32 = vpop.permute.xlu1 %6332  ;;  %v16506_v18 = vld [vmem:[#allocation32_spill] sm:$0xff] }
 0x8a9   : > { %v5670_v7 = vmul.f32 %v16507_v50, %v16506_v18  ;;  %v16512_v18 = vld [vmem:[#allocation58_spill] sm:$0xff]  ;;  %v16513_v50 = vld [vmem:[#allocation31_spill] sm:$0xff] }
 0x8aa   : > { %v13974_v10 = vpop.permute.xlu0 %6334  ;;  %6704 = vrot.lane.b32.xlu1 %v5729_v59, %s8160_s27  ;;  %v5671_v59 = vmul.f32 %v16509_v36, %v16508_v60  ;;  %v5673_v42 = vmul.f32 %v16513_v50, %v16512_v18  ;;  %v16515_v36 = vld [vmem:[#allocation142_spill] sm:$0xff] }
 0x8ab   : > { %v5734_v58 = vsub.f32 1.0, %v5670_v7 }
 0x8ac   : > { %6706 = vrot.lane.b32.xlu0 %v5730_v13, %s8160_s27  ;;  %v13980_v39 = vpop.permute.xlu1 %6336  ;;  %v16511_v13 = vld [vmem:[#allocation108_spill] sm:$0xff]  ;;  %v5737_v7 = vsub.f32 1.0, %v5673_v42 }
 0x8ad   : > { %v5672_v38 = vmul.f32 %v16511_v13, %v16510_v63  ;;  %v16517_v63 = vld [vmem:[#allocation257_spill] sm:$0xff]  ;;  %v16518_v13 = vld [vmem:[#allocation143_spill] sm:$0xff] }
 0x8ae   : > { %v13984_v22 = vpop.permute.xlu0 %6338  ;;  %6708 = vrot.lane.b32.xlu1 %v5731_v4, %s8160_s27  ;;  %v5735_v4 = vsub.f32 1.0, %v5671_v59  ;;  %v16520_v59 = vld [vmem:[#allocation26_spill] sm:$0xff] }
 0x8af   : > { %v5736_v60 = vsub.f32 1.0, %v5672_v38 }
 0x8b0   : > { %6710 = vrot.lane.b32.xlu0 %v5732_v8, %s8160_s27  ;;  %v13990_v49 = vpop.permute.xlu1 %6340  ;;  %v16514_v8 = vld [vmem:[#allocation28_spill] sm:$0xff] }
 0x8b1   : > { %v5674_v46 = vmul.f32 %v16515_v36, %v16514_v8  ;;  %v16523_v8 = vld [vmem:[#allocation256_spill] sm:$0xff]  ;;  %v16524_v36 = vld [vmem:[#allocation138_spill] sm:$0xff] }
 0x8b2   : > { %v13994_v14 = vpop.permute.xlu0 %6342  ;;  %6712 = vrot.lane.b32.xlu1 %v5733_v44, %s8160_s27  ;;  %v5675_v44 = vmul.f32 %v16518_v13, %v16517_v63  ;;  %v5677_v27 = vmul.f32 %v16524_v36, %v16523_v8  ;;  %v16527_v13 = vld [vmem:[#allocation155_spill] sm:$0xff] }
 0x8b3   : > { %v5738_v19 = vsub.f32 1.0, %v5674_v46 }
 0x8b4   : > { %6714 = vrot.lane.b32.xlu0 %v5734_v58, %s8160_s27  ;;  %v14000_v16 = vpop.permute.xlu1 %6344  ;;  %v16521_v58 = vld [vmem:[#allocation134_spill] sm:$0xff]  ;;  %v5741_v46 = vsub.f32 1.0, %v5677_v27 }
 0x8b5   : > { %v5676_v50 = vmul.f32 %v16521_v58, %v16520_v59  ;;  %v16529_v59 = vld [vmem:[#allocation34_spill] sm:$0xff] }
 0x8b6   : > { %v14004_v47 = vpop.permute.xlu0 %6346  ;;  %6716 = vrot.lane.b32.xlu1 %v5735_v4, %s8160_s27  ;;  %v5739_v4 = vsub.f32 1.0, %v5675_v44  ;;  %v16530_v58 = vld [vmem:[#allocation118_spill] sm:$0xff]  ;;  %v16532_v44 = vld [vmem:[#allocation36_spill] sm:$0xff] }
 0x8b7   : > { %16516 = vst [vmem:[#allocation4_spill] sm:$0xff] %v14004_v47  ;;  %v5740_v63 = vsub.f32 1.0, %v5676_v50 }
 0x8b8   : > { %6718 = vrot.lane.b32.xlu0 %v5736_v60, %s8160_s27  ;;  %v14010_v18 = vpop.permute.xlu1 %6348  ;;  %v16526_v60 = vld [vmem:[#allocation137_spill] sm:$0xff] }
 0x8b9   : > { %16519 = vst [vmem:[#allocation64_spill] sm:$0xff] %v14010_v18  ;;  %v5678_v18 = vmul.f32 %v16527_v13, %v16526_v60  ;;  %v16535_v60 = vld [vmem:[#allocation37_spill] sm:$0xff]  ;;  %v16536_v13 = vld [vmem:[#allocation136_spill] sm:$0xff] }
 0x8ba   : > { %v14014_v38 = vpop.permute.xlu0 %6350  ;;  %6720 = vrot.lane.b32.xlu1 %v5737_v7, %s8160_s27  ;;  %v5679_v7 = vmul.f32 %v16530_v58, %v16529_v59  ;;  %v16539_v58 = vld [vmem:[#allocation167_spill] sm:$0xff] }
 0x8bb   : > { %16522 = vst [vmem:[#allocation221_spill] sm:$0xff] %v14014_v38 }
 0x8bc   : > { %6722 = vrot.lane.b32.xlu0 %v5738_v19, %s8160_s27  ;;  %v14020_v42 = vpop.permute.xlu1 %6352  ;;  %v16533_v19 = vld [vmem:[#allocation154_spill] sm:$0xff] }
 0x8bd   : > { %16525 = vst [vmem:[#allocation65_spill] sm:$0xff] %v14020_v42  ;;  %v5680_v36 = vmul.f32 %v16533_v19, %v16532_v44  ;;  %v5742_v42 = vsub.f32 1.0, %v5678_v18  ;;  %v16541_v44 = vld [vmem:[#allocation38_spill] sm:$0xff]  ;;  %v16542_v19 = vld [vmem:[#allocation263_spill] sm:$0xff] }
 0x8be   : > { %v14024_v5 = vpop.permute.xlu0 %6354  ;;  %6724 = vrot.lane.b32.xlu1 %v5739_v4, %s8160_s27  ;;  %v5743_v4 = vsub.f32 1.0, %v5679_v7  ;;  %v16544_v7 = vld [vmem:[#allocation266_spill] sm:$0xff] }
 0x8bf   : > { %16528 = vst [vmem:[#allocation8_spill] sm:$0xff] %v14024_v5  ;;  %v5681_v5 = vmul.f32 %v16536_v13, %v16535_v60  ;;  %v5744_v59 = vsub.f32 1.0, %v5680_v36 }
 0x8c0   : > { %6726 = vrot.lane.b32.xlu0 %v5740_v63, %s8160_s27  ;;  %v14030_v8 = vpop.permute.xlu1 %6356  ;;  %v16538_v63 = vld [vmem:[#allocation145_spill] sm:$0xff] }
 0x8c1   : > { %16531 = vst [vmem:[#allocation55_spill] sm:$0xff] %v14030_v8  ;;  %v5682_v8 = vmul.f32 %v16539_v58, %v16538_v63  ;;  %v5745_v18 = vsub.f32 1.0, %v5681_v5  ;;  %v16547_v63 = vld [vmem:[#allocation41_spill] sm:$0xff]  ;;  %v16548_v58 = vld [vmem:[#allocation144_spill] sm:$0xff] }
 0x8c2   : > { %v14034_v50 = vpop.permute.xlu0 %6358  ;;  %6728 = vrot.lane.b32.xlu1 %v5741_v46, %s8160_s27  ;;  %v5683_v46 = vmul.f32 %v16542_v19, %v16541_v44  ;;  %v16551_v19 = vld [vmem:[#allocation179_spill] sm:$0xff] }
 0x8c3   : > { %16534 = vst [vmem:[#allocation164_spill] sm:$0xff] %v14034_v50 }
 0x8c4   : > { %6730 = vrot.lane.b32.xlu0 %v5742_v42, %s8160_s27  ;;  %v14040_v27 = vpop.permute.xlu1 %6360  ;;  %v16545_v42 = vld [vmem:[#allocation166_spill] sm:$0xff] }
 0x8c5   : > { %16537 = vst [vmem:[#allocation217_spill] sm:$0xff] %v14040_v27  ;;  %v5684_v13 = vmul.f32 %v16545_v42, %v16544_v7  ;;  %v5746_v27 = vsub.f32 1.0, %v5682_v8  ;;  %v16553_v7 = vld [vmem:[#allocation276_spill] sm:$0xff]  ;;  %v16554_v42 = vld [vmem:[#allocation271_spill] sm:$0xff] }
 0x8c6   : > { %v14044_v38 = vpop.permute.xlu0 %6362  ;;  %6732 = vrot.lane.b32.xlu1 %v5743_v4, %s8160_s27  ;;  %v5747_v4 = vsub.f32 1.0, %v5683_v46  ;;  %v16556_v46 = vld [vmem:[#allocation273_spill] sm:$0xff] }
 0x8c7   : > { %16540 = vst [vmem:[#allocation182_spill] sm:$0xff] %v14044_v38  ;;  %v5685_v38 = vmul.f32 %v16548_v58, %v16547_v63  ;;  %v5748_v44 = vsub.f32 1.0, %v5684_v13 }
 0x8c8   : > { %6734 = vrot.lane.b32.xlu0 %v5744_v59, %s8160_s27  ;;  %v14050_v60 = vpop.permute.xlu1 %6364  ;;  %v16550_v59 = vld [vmem:[#allocation42_spill] sm:$0xff] }
 0x8c9   : > { %16543 = vst [vmem:[#allocation102_spill] sm:$0xff] %v14050_v60  ;;  %v5686_v60 = vmul.f32 %v16551_v19, %v16550_v59  ;;  %v5749_v8 = vsub.f32 1.0, %v5685_v38  ;;  %v16559_v59 = vld [vmem:[#allocation45_spill] sm:$0xff]  ;;  %v16560_v19 = vld [vmem:[#allocation152_spill] sm:$0xff] }
 0x8ca   : > { %v14054_v36 = vpop.permute.xlu0 %6366  ;;  %6736 = vrot.lane.b32.xlu1 %v5745_v18, %s8160_s27  ;;  %v5687_v18 = vmul.f32 %v16554_v42, %v16553_v7  ;;  %v16563_v42 = vld [vmem:[#allocation277_spill] sm:$0xff] }
 0x8cb   : > { %16546 = vst [vmem:[#allocation212_spill] sm:$0xff] %v14054_v36 }
 0x8cc   : > { %6738 = vrot.lane.b32.xlu0 %v5746_v27, %s8160_s27  ;;  %v14060_v5 = vpop.permute.xlu1 %6368  ;;  %v16557_v27 = vld [vmem:[#allocation178_spill] sm:$0xff] }
 0x8cd   : > { %16549 = vst [vmem:[#allocation103_spill] sm:$0xff] %v14060_v5  ;;  %v5688_v58 = vmul.f32 %v16557_v27, %v16556_v46  ;;  %v5750_v5 = vsub.f32 1.0, %v5686_v60  ;;  %v16565_v46 = vld [vmem:[#allocation283_spill] sm:$0xff]  ;;  %v16566_v27 = vld [vmem:[#allocation196_spill] sm:$0xff] }
 0x8ce   : > { %v14064_v50 = vpop.permute.xlu0 %6370  ;;  %6740 = vrot.lane.b32.xlu1 %v5747_v4, %s8160_s27  ;;  %v5751_v4 = vsub.f32 1.0, %v5687_v18  ;;  %v16568_v18 = vld [vmem:[#allocation149_spill] sm:$0xff] }
 0x8cf   : > { %16552 = vst [vmem:[#allocation314_spill] sm:$0xff] %v14064_v50  ;;  %v5689_v50 = vmul.f32 %v16560_v19, %v16559_v59  ;;  %v5752_v7 = vsub.f32 1.0, %v5688_v58 }
 0x8d0   : > { %6742 = vrot.lane.b32.xlu0 %v5748_v44, %s8160_s27  ;;  %v14070_v63 = vpop.permute.xlu1 %6372  ;;  %v16562_v44 = vld [vmem:[#allocation46_spill] sm:$0xff] }
 0x8d1   : > { %16555 = vst [vmem:[#allocation74_spill] sm:$0xff] %v14070_v63  ;;  %v5690_v63 = vmul.f32 %v16563_v42, %v16562_v44  ;;  %v5753_v60 = vsub.f32 1.0, %v5689_v50  ;;  %v16571_v44 = vld [vmem:[#allocation49_spill] sm:$0xff]  ;;  %v16572_v42 = vld [vmem:[#allocation191_spill] sm:$0xff] }
 0x8d2   : > { %v14074_v13 = vpop.permute.xlu0 %6374  ;;  %6744 = vrot.lane.b32.xlu1 %v5749_v8, %s8160_s27  ;;  %v5691_v8 = vmul.f32 %v16566_v27, %v16565_v46  ;;  %v16575_v27 = vld [vmem:[#allocation284_spill] sm:$0xff] }
 0x8d3   : > { %16558 = vst [vmem:[#allocation194_spill] sm:$0xff] %v14074_v13 }
 0x8d4   : > { %6746 = vrot.lane.b32.xlu0 %v5750_v5, %s8160_s27  ;;  %v14080_v38 = vpop.permute.xlu1 %6376  ;;  %v16569_v5 = vld [vmem:[#allocation190_spill] sm:$0xff] }
 0x8d5   : > { %16561 = vst [vmem:[#allocation14_spill] sm:$0xff] %v14080_v38  ;;  %v5692_v19 = vmul.f32 %v16569_v5, %v16568_v18  ;;  %v5754_v38 = vsub.f32 1.0, %v5690_v63  ;;  %v16577_v18 = vld [vmem:[#allocation287_spill] sm:$0xff]  ;;  %v16578_v5 = vld [vmem:[#allocation208_spill] sm:$0xff] }
 0x8d6   : > { %v14084_v36 = vpop.permute.xlu0 %6378  ;;  %6748 = vrot.lane.b32.xlu1 %v5751_v4, %s8160_s27  ;;  %v5755_v4 = vsub.f32 1.0, %v5691_v8  ;;  %v16580_v8 = vld [vmem:[#allocation285_spill] sm:$0xff] }
 0x8d7   : > { %16564 = vst [vmem:[#allocation311_spill] sm:$0xff] %v14084_v36  ;;  %v5693_v36 = vmul.f32 %v16572_v42, %v16571_v44  ;;  %v5756_v46 = vsub.f32 1.0, %v5692_v19 }
 0x8d8   : > { %6750 = vrot.lane.b32.xlu0 %v5752_v7, %s8160_s27  ;;  %v14090_v59 = vpop.permute.xlu1 %6380  ;;  %v16574_v7 = vld [vmem:[#allocation50_spill] sm:$0xff] }
 0x8d9   : > { %16567 = vst [vmem:[#allocation91_spill] sm:$0xff] %v14090_v59  ;;  %v5694_v59 = vmul.f32 %v16575_v27, %v16574_v7  ;;  %v5757_v63 = vsub.f32 1.0, %v5693_v36  ;;  %v16583_v7 = vld [vmem:[#allocation53_spill] sm:$0xff]  ;;  %v16584_v27 = vld [vmem:[#allocation203_spill] sm:$0xff] }
 0x8da   : > { %v14094_v58 = vpop.permute.xlu0 %6382  ;;  %6752 = vrot.lane.b32.xlu1 %v5753_v60, %s8160_s27  ;;  %v5695_v60 = vmul.f32 %v16578_v5, %v16577_v18  ;;  %v16587_v5 = vld [vmem:[#allocation290_spill] sm:$0xff] }
 0x8db   : > { %16570 = vst [vmem:[#allocation216_spill] sm:$0xff] %v14094_v58 }
 0x8dc   : > { %6754 = vrot.lane.b32.xlu0 %v5754_v38, %s8160_s27  ;;  %v14100_v50 = vpop.permute.xlu1 %6384  ;;  %v16581_v38 = vld [vmem:[#allocation176_spill] sm:$0xff] }
 0x8dd   : > { %16573 = vst [vmem:[#allocation232_spill] sm:$0xff] %v14100_v50  ;;  %v5696_v42 = vmul.f32 %v16581_v38, %v16580_v8  ;;  %v5758_v50 = vsub.f32 1.0, %v5694_v59  ;;  %v16589_v8 = vld [vmem:[#allocation292_spill] sm:$0xff] }
 0x8de   : > { %v14104_v13 = vpop.permute.xlu0 %6386  ;;  %6756 = vrot.lane.b32.xlu1 %v5755_v4, %s8160_s27  ;;  %v5759_v4 = vsub.f32 1.0, %v5695_v60  ;;  %v16590_v38 = vld [vmem:[#allocation76_spill] sm:$0xff]  ;;  %v16592_v60 = vld [vmem:[#allocation289_spill] sm:$0xff] }
 0x8df   : > { %16576 = vst [vmem:[#allocation3_spill] sm:$0xff] %v14104_v13  ;;  %v5697_v13 = vmul.f32 %v16584_v27, %v16583_v7  ;;  %v5760_v18 = vsub.f32 1.0, %v5696_v42 }
 0x8e0   : > { %6758 = vrot.lane.b32.xlu0 %v5756_v46, %s8160_s27  ;;  %v14110_v44 = vpop.permute.xlu1 %6388  ;;  %v16586_v46 = vld [vmem:[#allocation54_spill] sm:$0xff] }
 0x8e1   : > { %16579 = vst [vmem:[#allocation98_spill] sm:$0xff] %v14110_v44  ;;  %v5698_v44 = vmul.f32 %v16587_v5, %v16586_v46  ;;  %v5761_v59 = vsub.f32 1.0, %v5697_v13  ;;  %v16595_v46 = vld [vmem:[#allocation57_spill] sm:$0xff] }
 0x8e2   : > { %v14114_v19 = vpop.permute.xlu0 %6390  ;;  %6760 = vrot.lane.b32.xlu1 %v5757_v63, %s8160_s27  ;;  %v5699_v63 = vmul.f32 %v16590_v38, %v16589_v8  ;;  %v16596_v5 = vld [vmem:[#allocation209_spill] sm:$0xff]  ;;  %v16599_v38 = vld [vmem:[#allocation288_spill] sm:$0xff] }
 0x8e3   : > { %16582 = vst [vmem:[#allocation7_spill] sm:$0xff] %v14114_v19 }
 0x8e4   : > { %6762 = vrot.lane.b32.xlu0 %v5758_v50, %s8160_s27  ;;  %v14120_v36 = vpop.permute.xlu1 %6392  ;;  %v16593_v50 = vld [vmem:[#allocation159_spill] sm:$0xff] }
 0x8e5   : > { %16585 = vst [vmem:[#allocation94_spill] sm:$0xff] %v14120_v36  ;;  %v5700_v27 = vmul.f32 %v16593_v50, %v16592_v60  ;;  %v5762_v36 = vsub.f32 1.0, %v5698_v44  ;;  %v16601_v60 = vld [vmem:[#allocation303_spill] sm:$0xff]  ;;  %v16602_v50 = vld [vmem:[#allocation84_spill] sm:$0xff] }
 0x8e6   : > { %v14124_v58 = vpop.permute.xlu0 %6394  ;;  %6764 = vrot.lane.b32.xlu1 %v5759_v4, %s8160_s27  ;;  %v5763_v4 = vsub.f32 1.0, %v5699_v63  ;;  %v16604_v63 = vld [vmem:[#allocation183_spill] sm:$0xff] }
 0x8e7   : > { %16588 = vst [vmem:[#allocation6_spill] sm:$0xff] %v14124_v58  ;;  %v5701_v58 = vmul.f32 %v16596_v5, %v16595_v46  ;;  %v5764_v8 = vsub.f32 1.0, %v5700_v27 }
 0x8e8   : > { %6766 = vrot.lane.b32.xlu0 %v5760_v18, %s8160_s27  ;;  %v14130_v7 = vpop.permute.xlu1 %6396  ;;  %v16598_v18 = vld [vmem:[#allocation59_spill] sm:$0xff] }
 0x8e9   : > { %16591 = vst [vmem:[#allocation295_spill] sm:$0xff] %v14130_v7  ;;  %v5702_v7 = vmul.f32 %v16599_v38, %v16598_v18  ;;  %v5765_v44 = vsub.f32 1.0, %v5701_v58  ;;  %v16607_v18 = vld [vmem:[#allocation296_spill] sm:$0xff]  ;;  %v16608_v38 = vld [vmem:[#allocation77_spill] sm:$0xff] }
 0x8ea   : > { %v14134_v42 = vpop.permute.xlu0 %6398  ;;  %6768 = vrot.lane.b32.xlu1 %v5761_v59, %s8160_s27  ;;  %v5703_v59 = vmul.f32 %v16602_v50, %v16601_v60  ;;  %v16611_v50 = vld [vmem:[#allocation297_spill] sm:$0xff] }
 0x8eb   : > { %16594 = vst [vmem:[#allocation83_spill] sm:$0xff] %v14134_v42 }
 0x8ec   : > { %6770 = vrot.lane.b32.xlu0 %v5762_v36, %s8160_s27  ;;  %v14140_v13 = vpop.permute.xlu1 %6400  ;;  %v16605_v36 = vld [vmem:[#allocation188_spill] sm:$0xff] }
 0x8ed   : > { %16597 = vst [vmem:[#allocation294_spill] sm:$0xff] %v14140_v13  ;;  %v5704_v5 = vmul.f32 %v16605_v36, %v16604_v63  ;;  %v5766_v13 = vsub.f32 1.0, %v5702_v7  ;;  %v16613_v63 = vld [vmem:[#allocation68_spill] sm:$0xff] }
 0x8ee   : > { %v14144_v19 = vpop.permute.xlu0 %6402  ;;  %6772 = vrot.lane.b32.xlu1 %v5763_v4, %s8160_s27  ;;  %v5767_v4 = vsub.f32 1.0, %v5703_v59  ;;  %v16614_v36 = vld [vmem:[#allocation92_spill] sm:$0xff]  ;;  %v16616_v59 = vld [vmem:[#allocation313_spill] sm:$0xff] }
 0x8ef   : > { %16600 = vst [vmem:[#allocation17_spill] sm:$0xff] %v14144_v19  ;;  %v5705_v19 = vmul.f32 %v16608_v38, %v16607_v18  ;;  %v5768_v60 = vsub.f32 1.0, %v5704_v5 }
 0x8f0   : > { %6774 = vrot.lane.b32.xlu0 %v5764_v8, %s8160_s27  ;;  %v14150_v46 = vpop.permute.xlu1 %6404  ;;  %v16610_v8 = vld [vmem:[#allocation213_spill] sm:$0xff] }
 0x8f1   : > { %16603 = vst [vmem:[#allocation241_spill] sm:$0xff] %v14150_v46  ;;  %v5706_v46 = vmul.f32 %v16611_v50, %v16610_v8  ;;  %v5769_v7 = vsub.f32 1.0, %v5705_v19  ;;  %v16619_v8 = vld [vmem:[#allocation67_spill] sm:$0xff]  ;;  %v16620_v50 = vld [vmem:[#allocation85_spill] sm:$0xff] }
 0x8f2   : > { %v14154_v27 = vpop.permute.xlu0 %6406  ;;  %6776 = vrot.lane.b32.xlu1 %v5765_v44, %s8160_s27  ;;  %v5707_v44 = vmul.f32 %v16614_v36, %v16613_v63  ;;  %v16623_v36 = vld [vmem:[#allocation189_spill] sm:$0xff] }
 0x8f3   : > { %16606 = vst [vmem:[#allocation80_spill] sm:$0xff] %v14154_v27 }
 0x8f4   : > { %6778 = vrot.lane.b32.xlu0 %v5766_v13, %s8160_s27  ;;  %v14160_v58 = vpop.permute.xlu1 %6408  ;;  %v16617_v13 = vld [vmem:[#allocation171_spill] sm:$0xff] }
 0x8f5   : > { %16609 = vst [vmem:[#allocation72_spill] sm:$0xff] %v14160_v58  ;;  %v5708_v38 = vmul.f32 %v16617_v13, %v16616_v59  ;;  %v5770_v58 = vsub.f32 1.0, %v5706_v46  ;;  %v16624_v59 = vld [vmem:[#allocation88_spill] sm:$0xff] }
 0x8f6   : > { %v14164_v42 = vpop.permute.xlu0 %6410  ;;  %6780 = vrot.lane.b32.xlu1 %v5767_v4, %s8160_s27  ;;  %v5771_v4 = vsub.f32 1.0, %v5707_v44  ;;  %v16625_v13 = vld [vmem:[#allocation100_spill] sm:$0xff]  ;;  %v16626_v44 = vld [vmem:[#allocation206_spill] sm:$0xff] }
 0x8f7   : > { %16612 = vst [vmem:[#allocation15_spill] sm:$0xff] %v14164_v42  ;;  %v5709_v42 = vmul.f32 %v16620_v50, %v16619_v8  ;;  %v5772_v63 = vsub.f32 1.0, %v5708_v38 }
 0x8f8   : > { %6782 = vrot.lane.b32.xlu0 %v5768_v60, %s8160_s27  ;;  %v14170_v18 = vpop.permute.xlu1 %6412  ;;  %v16622_v60 = vld [vmem:[#allocation9_spill] sm:$0xff] }
 0x8f9   : > { %16615 = vst [vmem:[#allocation60_spill] sm:$0xff] %v14170_v18  ;;  %v5710_v18 = vmul.f32 %v16623_v36, %v16622_v60  ;;  %v5773_v46 = vsub.f32 1.0, %v5709_v42  ;;  %v7058_v60 = vlaneseq  ;;  %v16628_v36 = vld [vmem:[#allocation207_spill] sm:$0xff] }
 0x8fa   : > { %v14174_v5 = vpop.permute.xlu0 %6414  ;;  %6784 = vrot.lane.b32.xlu1 %v5769_v7, %s8160_s27  ;;  %v5711_v7 = vmul.f32 %v16625_v13, %v16624_v59 }
 0x8fb   : > { %16618 = vst [vmem:[#allocation23_spill] sm:$0xff] %v14174_v5  ;;  %v16630_v5 = vld [vmem:[#allocation132_spill] sm:$0xff] }
 0x8fc   : > { %6786 = vrot.lane.b32.xlu0 %v5770_v58, %s8160_s27  ;;  %v14180_v19 = vpop.permute.xlu1 %6416  ;;  %v16627_v58 = vld [vmem:[#allocation200_spill] sm:$0xff]  ;;  %v5775_v42 = vsub.f32 1.0, %v5711_v7  ;;  %v6482_v59 = vmul.f32 %v13863_v26, %v16630_v5  ;;  %v16634_v5 = vld [vmem:[#allocation262_spill] sm:$0xff] }
 0x8fd   : > { %16621 = vst [vmem:[#allocation302_spill] sm:$0xff] %v14180_v19  ;;  %v5712_v50 = vmul.f32 %v16627_v58, %v16626_v44  ;;  %v5774_v19 = vsub.f32 1.0, %v5710_v18  ;;  %v16633_v58 = vld [vmem:[#allocation299_spill] sm:$0xff] }
 0x8fe   : > { %v6675_v27 = vpop.permute.xlu0 %6674  ;;  %6788 = vrot.lane.b32.xlu1 %v5771_v4, %s8160_s27  ;;  %v16629_v4 = vld [vmem:[#allocation93_spill] sm:$0xff] }
 0x8ff   : > { %8013 = vrcp.f32 %v6675_v27  ;;  %v5713_v27 = vmul.f32 %v16629_v4, %v16628_v36  ;;  %v5776_v13 = vsub.f32 1.0, %v5712_v50  ;;  %v14202_v36 = vand.u32 127, %v7058_v60  ;;  %v16635_v4 = vld [vmem:[#allocation329_spill] sm:$0xff] }
 0x900   : > { %6790 = vrot.lane.b32.xlu0 %v5772_v63, %s8160_s27  ;;  %v6677_v8 = vpop.permute.xlu1 %6676 }
 0x901   : > { %8015 = vrcp.f32 %v6677_v8  ;;  %v16631_v8 = vld [vmem:[#allocation40_spill] sm:$0xff]  ;;  %v5777_v7 = vsub.f32 1.0, %v5713_v27  ;;  %vm7060_vm2 = vcmp.lt.s32.totalorder %v14202_v36, 4 }
 0x902   : > { %v6679_v38 = vpop.permute.xlu0 %6678  ;;  %6792 = vrot.lane.b32.xlu1 %v5773_v46, %s8160_s27  ;;  %v6483_v18 = vmul.f32 %v13869_v20, %v16631_v8  ;;  %v16632_v46 = vld [vmem:[#allocation328_spill] sm:$0xff] }
 0x903   : > { %8017 = vrcp.f32 %v6679_v38  ;;  %v6226_v38 = vsel %vm3473_vm1, %v16633_v58, %v16632_v46  ;;  %v16637_v46 = vld [vmem:[#allocation35_spill] sm:$0xff]  ;;  %v16639_v58 = vld [vmem:[#allocation300_spill] sm:$0xff] }
 0x904   : > { %6794 = vrot.lane.b32.xlu0 %v5774_v19, %s8160_s27  ;;  %v6681_v63 = vpop.permute.xlu1 %6680  ;;  %v6546_v26 = vadd.f32 %v6482_v59, %v6226_v38  ;;  %v6484_v19 = vmul.f32 %v13871_v43, %v16634_v5  ;;  %v6485_v60 = vmul.f32 %v13877_v9, %v16637_v46  ;;  %v16638_v43 = vld [vmem:[#allocation330_spill] sm:$0xff]  ;;  %v16640_v38 = vld [vmem:[#allocation140_spill] sm:$0xff] }
 0x905   : > { %8019 = vrcp.f32 %v6681_v63  ;;  %v16636_v63 = vld [vmem:[#allocation62_spill] sm:$0xff]  ;;  %v6486_v5 = vmul.f32 %v13881_v21, %v16640_v38  ;;  %v16645_v46 = vld [vmem:[#allocation44_spill] sm:$0xff] }
 0x906   : > { %v6683_v44 = vpop.permute.xlu0 %6682  ;;  %6796 = vrot.lane.b32.xlu1 %v5775_v42, %s8160_s27  ;;  %v6227_v42 = vsel %vm3473_vm1, %v16636_v63, %v16635_v4  ;;  %v16642_v4 = vld [vmem:[#allocation298_spill] sm:$0xff]  ;;  %v16643_v63 = vld [vmem:[#allocation332_spill] sm:$0xff] }
 0x907   : > { %8021 = vrcp.f32 %v6683_v44  ;;  %v6547_v8 = vadd.f32 %v6483_v18, %v6227_v42  ;;  %v16644_v42 = vld [vmem:[#allocation308_spill] sm:$0xff] }
 0x908   : > { %6798 = vrot.lane.b32.xlu0 %v5776_v13, %s8160_s27  ;;  %v6685_v50 = vpop.permute.xlu1 %6684  ;;  %v6228_v13 = vsel %vm3473_vm1, %v16639_v58, %v16638_v43  ;;  %v16646_v58 = vld [vmem:[#allocation162_spill] sm:$0xff] }
 0x909   : > { %v8014_v20 = vpop.eup %8013  ;;  %8023 = vrcp.f32 %v6685_v50  ;;  %v6548_v50 = vadd.f32 %v6484_v19, %v6228_v13  ;;  %v6230_v19 = vsel %vm3473_vm1, %v16644_v42, %v16643_v63  ;;  %v16652_v42 = vld [vmem:[#allocation156_spill] sm:$0xff] }
 0x90a   : > { %v6867_v44 = vmul.f32 %v8014_v20, %v6546_v26  ;;  %v6687_v27 = vpop.permute.xlu0 %6686  ;;  %6800 = vrot.lane.b32.xlu1 %v5777_v7, %s8160_s27  ;;  %v16641_v20 = vld [vmem:[#allocation331_spill] sm:$0xff]  ;;  %v6550_v47 = vadd.f32 %v6486_v5, %v6230_v19 }
 0x90b   : > { %v8016_v59 = vpop.eup %8015  ;;  %8025 = vrcp.f32 %v6687_v27  ;;  %v6229_v21 = vsel %vm3473_vm1, %v16642_v4, %v16641_v20  ;;  %v6487_v27 = vmul.f32 %v13889_v28, %v16645_v46  ;;  %v16648_v20 = vld [vmem:[#allocation126_spill] sm:$0xff]  ;;  %v16649_v28 = vld [vmem:[#allocation269_spill] sm:$0xff] }
 0x90c   : > { %v6994_v9 = vmax.f32 %v6867_v44, 0.0  ;;  %v6869_v18 = vmul.f32 %v8016_v59, %v6547_v8  ;;  %v6689_v7 = vpop.permute.xlu1 %6688  ;;  %v6549_v43 = vadd.f32 %v6485_v60, %v6229_v21  ;;  %v6231_v4 = vsel %vm3473_vm1, %v16648_v20, %v16647_v41  ;;  %v16651_v41 = vld [vmem:[#allocation39_spill] sm:$0xff] }
 0x90d   : > { %v8018_v26 = vpop.eup %8017  ;;  %8027 = vrcp.f32 %v6689_v7  ;;  %v6488_v60 = vmul.f32 %v13893_v0, %v16649_v28  ;;  %v16650_v7 = vld [vmem:[#allocation163_spill] sm:$0xff]  ;;  %v6551_v63 = vadd.f32 %v6487_v27, %v6231_v4  ;;  %v6489_v5 = vmul.f32 %v13900_v25, %v16651_v41  ;;  %v16655_v27 = vld [vmem:[#allocation148_spill] sm:$0xff] }
 0x90e   : > { %v7061_v44 = vsel %vm7060_vm2, %v6994_v9, %v16646_v58  ;;  %v6995_v8 = vmax.f32 %v6869_v18, 0.0  ;;  %v6871_v59 = vmul.f32 %v8018_v26, %v6548_v50  ;;  %v6691_v13 = vpop.permute.xlu0 %6690  ;;  %v16661_v41 = vld [vmem:[#allocation280_spill] sm:$0xff] }
 0x90f   : > { %v8020_v38 = vpop.eup %8019  ;;  %7126 = vst.msk [vmem:[%s14224_s5] sm:$0xff] %vm7125_vm3, %v7061_v44  ;;  %8029 = vrcp.f32 %v6691_v13  ;;  %v6490_v13 = vmul.f32 %v13904_v31, %v16655_v27 }
 0x910   : > { %v7062_v9 = vsel %vm7060_vm2, %v6995_v8, %v16650_v7  ;;  %v6996_v18 = vmax.f32 %v6871_v59, 0.0  ;;  %v6873_v50 = vmul.f32 %v8020_v38, %v6549_v43  ;;  %v6693_v26 = vpop.permute.xlu1 %6692  ;;  %v16653_v8 = vld [vmem:[#allocation334_spill] sm:$0xff]  ;;  %v16656_v38 = vld [vmem:[#allocation157_spill] sm:$0xff] }
 0x911   : > { %v8022_v21 = vpop.eup %8021  ;;  %7127 = vst.msk [vmem:[%s14224_s5 + $0x8] sm:$0xff] %vm7125_vm3, %v7062_v9  ;;  %8031 = vrcp.f32 %v6693_v26  ;;  %v16654_v43 = vld [vmem:[#allocation30_spill] sm:$0xff]  ;;  %v16657_v9 = vld [vmem:[#allocation335_spill] sm:$0xff]  ;;  %v16659_v26 = vld [vmem:[#allocation336_spill] sm:$0xff] }
 0x912   : > { %v7063_v0 = vsel %vm7060_vm2, %v6996_v18, %v16652_v42  ;;  %v6997_v19 = vmax.f32 %v6873_v50, 0.0  ;;  %v6875_v46 = vmul.f32 %v8022_v21, %v6550_v47  ;;  %v6695_v58 = vpop.permute.xlu0 %6694  ;;  %v6232_v59 = vsel %vm3473_vm1, %v16654_v43, %v16653_v8  ;;  %v16658_v18 = vld [vmem:[#allocation249_spill] sm:$0xff]  ;;  %v16660_v21 = vld [vmem:[#allocation258_spill] sm:$0xff]  ;;  %v16664_v43 = vld [vmem:[#allocation259_spill] sm:$0xff] }
 0x913   : > { %v8024_v44 = vpop.eup %8023  ;;  %7128 = vst.msk [vmem:[%s14224_s5 + $0x10] sm:$0xff] %vm7125_vm3, %v7063_v0  ;;  %8033 = vrcp.f32 %v6695_v58  ;;  %v6552_v25 = vadd.f32 %v6488_v60, %v6232_v59  ;;  %v6233_v50 = vsel %vm3473_vm1, %v16658_v18, %v16657_v9  ;;  %v6234_v31 = vsel %vm3473_vm1, %v16660_v21, %v16659_v26  ;;  %v16662_v0 = vld [vmem:[#allocation174_spill] sm:$0xff]  ;;  %v16663_v8 = vld [vmem:[#allocation337_spill] sm:$0xff]  ;;  %v16668_v18 = vld [vmem:[#allocation168_spill] sm:$0xff] }
 0x914   : > { %v7064_v20 = vsel %vm7060_vm2, %v6997_v19, %v16656_v38  ;;  %v6998_v4 = vmax.f32 %v6875_v46, 0.0  ;;  %v6877_v47 = vmul.f32 %v8024_v44, %v6551_v63  ;;  %v6697_v28 = vpop.permute.xlu1 %6696  ;;  %v6491_v60 = vmul.f32 %v13910_v37, %v16661_v41  ;;  %v16665_v37 = vld [vmem:[#allocation153_spill] sm:$0xff]  ;;  %v16666_v38 = vld [vmem:[#allocation175_spill] sm:$0xff] }
 0x915   : > { %v8026_v7 = vpop.eup %8025  ;;  %7129 = vst.msk [vmem:[%s14224_s5 + $0x18] sm:$0xff] %vm7125_vm3, %v7064_v20  ;;  %8035 = vrcp.f32 %v6697_v28  ;;  %v6553_v42 = vadd.f32 %v6489_v5, %v6233_v50  ;;  %v6235_v59 = vsel %vm3473_vm1, %v16664_v43, %v16663_v8  ;;  %v6554_v27 = vadd.f32 %v6490_v13, %v6234_v31  ;;  %v16667_v13 = vld [vmem:[#allocation43_spill] sm:$0xff]  ;;  %v16669_v41 = vld [vmem:[#allocation309_spill] sm:$0xff]  ;;  %v16672_v43 = vld [vmem:[#allocation2_spill] sm:$0xff] }
 0x916   : > { %v7065_v63 = vsel %vm7060_vm2, %v6998_v4, %v16662_v0  ;;  %v6999_v19 = vmax.f32 %v6877_v47, 0.0  ;;  %v6879_v46 = vmul.f32 %v8026_v7, %v6552_v25  ;;  %v6699_v58 = vpop.permute.xlu0 %6698  ;;  %v6492_v5 = vmul.f32 %v13914_v57, %v16665_v37  ;;  %v16675_v37 = vld [vmem:[#allocation52_spill] sm:$0xff] }
 0x917   : > { %v8028_v44 = vpop.eup %8027  ;;  %7130 = vst.msk [vmem:[%s14224_s5 + $0x20] sm:$0xff] %vm7125_vm3, %v7065_v63  ;;  %8037 = vrcp.f32 %v6699_v58  ;;  %v6555_v7 = vadd.f32 %v6491_v60, %v6235_v59  ;;  %v6493_v9 = vmul.f32 %v13920_v55, %v16667_v13  ;;  %v16670_v60 = vld [vmem:[#allocation158_spill] sm:$0xff]  ;;  %v16671_v63 = vld [vmem:[#allocation169_spill] sm:$0xff]  ;;  %v16673_v59 = vld [vmem:[#allocation127_spill] sm:$0xff] }
 0x918   : > { %v7066_v20 = vsel %vm7060_vm2, %v6999_v19, %v16666_v38  ;;  %v7000_v4 = vmax.f32 %v6879_v46, 0.0  ;;  %v6881_v25 = vmul.f32 %v8028_v44, %v6553_v42  ;;  %v6701_v47 = vpop.permute.xlu1 %6700  ;;  %v6236_v42 = vsel %vm3473_vm1, %v16669_v41, %v13647_v3  ;;  %v16677_v13 = vld [vmem:[#allocation147_spill] sm:$0xff] }
 0x919   : > { %v8030_v28 = vpop.eup %8029  ;;  %7131 = vst.msk [vmem:[%s14224_s5 + $0x28] sm:$0xff] %vm7125_vm3, %v7066_v20  ;;  %8039 = vrcp.f32 %v6701_v47  ;;  %v6494_v0 = vmul.f32 %v13924_v52, %v16670_v60  ;;  %v6556_v55 = vadd.f32 %v6492_v5, %v6236_v42  ;;  %v6237_v3 = vsel %vm3473_vm1, %v16673_v59, %v16672_v43  ;;  %v16676_v20 = vld [vmem:[#allocation186_spill] sm:$0xff]  ;;  %v16684_v59 = vld [vmem:[#allocation181_spill] sm:$0xff] }
 0x91a   : > { %v7067_v57 = vsel %vm7060_vm2, %v7000_v4, %v16668_v18  ;;  %v7001_v50 = vmax.f32 %v6881_v25, 0.0  ;;  %v6883_v26 = vmul.f32 %v8030_v28, %v6554_v27  ;;  %v6703_v21 = vpop.permute.xlu0 %6702  ;;  %v16674_v27 = vld [vmem:[#allocation146_spill] sm:$0xff]  ;;  %v6495_v5 = vmul.f32 %v13930_v62, %v16675_v37  ;;  %v16678_v62 = vld [vmem:[#allocation165_spill] sm:$0xff] }
 0x91b   : > { %v8032_v31 = vpop.eup %8031  ;;  %7132 = vst.msk [vmem:[%s14224_s5 + $0x30] sm:$0xff] %vm7125_vm3, %v7067_v57  ;;  %8041 = vrcp.f32 %v6703_v21  ;;  %v6238_v52 = vsel %vm3473_vm1, %v16674_v27, %v13655_v17  ;;  %v6557_v38 = vadd.f32 %v6493_v9, %v6237_v3  ;;  %v6239_v17 = vsel %vm3473_vm1, %v16677_v13, %v13661_v1  ;;  %v16679_v57 = vld [vmem:[#allocation187_spill] sm:$0xff] }
 0x91c   : > { %v7068_v19 = vsel %vm7060_vm2, %v7001_v50, %v16671_v63  ;;  %v7002_v46 = vmax.f32 %v6883_v26, 0.0  ;;  %v6885_v58 = vmul.f32 %v8032_v31, %v6555_v7  ;;  %v6705_v44 = vpop.permute.xlu1 %6704  ;;  %v6558_v18 = vadd.f32 %v6494_v0, %v6238_v52  ;;  %v16680_v1 = vld [vmem:[#allocation47_spill] sm:$0xff]  ;;  %v16681_v0 = vld [vmem:[#allocation180_spill] sm:$0xff] }
 0x91d   : > { %v8034_v8 = vpop.eup %8033  ;;  %7133 = vst.msk [vmem:[%s14224_s5 + $0x38] sm:$0xff] %vm7125_vm3, %v7068_v19  ;;  %8043 = vrcp.f32 %v6705_v44  ;;  %v6496_v9 = vmul.f32 %v13934_v29, %v16678_v62  ;;  %v6559_v42 = vadd.f32 %v6495_v5, %v6239_v17  ;;  %v6497_v60 = vmul.f32 %v13940_v51, %v16680_v1  ;;  %v16689_v62 = vld [vmem:[#allocation119_spill] sm:$0xff] }
 0x91e   : > { %v7069_v4 = vsel %vm7060_vm2, %v7002_v46, %v16676_v20  ;;  %v7003_v25 = vmax.f32 %v6885_v58, 0.0  ;;  %v6887_v47 = vmul.f32 %v8034_v8, %v6556_v55  ;;  %v6707_v28 = vpop.permute.xlu0 %6706  ;;  %v16682_v58 = vld [vmem:[#allocation150_spill] sm:$0xff]  ;;  %v16686_v20 = vld [vmem:[#allocation160_spill] sm:$0xff] }
 0x91f   : > { %v8036_v7 = vpop.eup %8035  ;;  %7134 = vst.msk [vmem:[%s14224_s5 + $0x40] sm:$0xff] %vm7125_vm3, %v7069_v4  ;;  %8045 = vrcp.f32 %v6707_v28  ;;  %v6240_v44 = vsel %vm3473_vm1, %v16682_v58, %v13663_v2  ;;  %v16683_v8 = vld [vmem:[#allocation170_spill] sm:$0xff]  ;;  %v16687_v4 = vld [vmem:[#allocation56_spill] sm:$0xff] }
 0x920   : > { %v7070_v50 = vsel %vm7060_vm2, %v7003_v25, %v16679_v57  ;;  %v7004_v26 = vmax.f32 %v6887_v47, 0.0  ;;  %v6889_v21 = vmul.f32 %v8036_v7, %v6557_v38  ;;  %v6709_v31 = vpop.permute.xlu1 %6708  ;;  %v6498_v43 = vmul.f32 %v13944_v56, %v16683_v8  ;;  %v16685_v38 = vld [vmem:[#allocation151_spill] sm:$0xff]  ;;  %v16688_v28 = vld [vmem:[#allocation198_spill] sm:$0xff] }
 0x921   : > { %v8038_v41 = vpop.eup %8037  ;;  %7135 = vst.msk [vmem:[%s14224_s5 + $0x48] sm:$0xff] %vm7125_vm3, %v7070_v50  ;;  %8047 = vrcp.f32 %v6709_v31  ;;  %v6560_v51 = vadd.f32 %v6496_v9, %v6240_v44  ;;  %v6241_v2 = vsel %vm3473_vm1, %v16685_v38, %v13669_v12  ;;  %v6242_v56 = vsel %vm3473_vm1, %v16686_v20, %v13671_v15  ;;  %v16691_v50 = vld [vmem:[#allocation199_spill] sm:$0xff] }
 0x922   : > { %v7071_v29 = vsel %vm7060_vm2, %v7004_v26, %v16681_v0  ;;  %v7005_v55 = vmax.f32 %v6889_v21, 0.0  ;;  %v6891_v63 = vmul.f32 %v8038_v41, %v6558_v18  ;;  %v6711_v19 = vpop.permute.xlu0 %6710  ;;  %v6499_v25 = vmul.f32 %v13950_v6, %v16687_v4  ;;  %v16690_v6 = vld [vmem:[#allocation177_spill] sm:$0xff]  ;;  %v16693_v0 = vld [vmem:[#allocation192_spill] sm:$0xff]  ;;  %v16695_v44 = vld [vmem:[#allocation195_spill] sm:$0xff] }
 0x923   : > { %v8040_v46 = vpop.eup %8039  ;;  %7136 = vst.msk [vmem:[%s14224_s5 + $0x50] sm:$0xff] %vm7125_vm3, %v7071_v29  ;;  %8049 = vrcp.f32 %v6711_v19  ;;  %v6561_v47 = vadd.f32 %v6497_v60, %v6241_v2  ;;  %v6243_v15 = vsel %vm3473_vm1, %v16689_v62, %v13677_v53  ;;  %v6562_v9 = vadd.f32 %v6498_v43, %v6242_v56  ;;  %v16692_v53 = vld [vmem:[#allocation51_spill] sm:$0xff]  ;;  %v16696_v43 = vld [vmem:[#allocation193_spill] sm:$0xff]  ;;  %v16700_v56 = vld [vmem:[#allocation210_spill] sm:$0xff] }
 0x924   : > { %v7072_v3 = vsel %vm7060_vm2, %v7005_v55, %v16684_v59  ;;  %v7006_v27 = vmax.f32 %v6891_v63, 0.0  ;;  %v6893_v52 = vmul.f32 %v8040_v46, %v6559_v42  ;;  %v6713_v37 = vpop.permute.xlu1 %6712  ;;  %v6500_v57 = vmul.f32 %v13954_v48, %v16690_v6  ;;  %v16694_v46 = vld [vmem:[#allocation161_spill] sm:$0xff]  ;;  %v16699_v38 = vld [vmem:[#allocation71_spill] sm:$0xff] }
 0x925   : > { %v8042_v5 = vpop.eup %8041  ;;  %7137 = vst.msk [vmem:[%s14224_s5 + $0x58] sm:$0xff] %vm7125_vm3, %v7072_v3  ;;  %8051 = vrcp.f32 %v6713_v37  ;;  %v6563_v1 = vadd.f32 %v6499_v25, %v6243_v15  ;;  %v6501_v60 = vmul.f32 %v13960_v35, %v16692_v53  ;;  %v6244_v58 = vsel %vm3473_vm1, %v16694_v46, %v13679_v24  ;;  %v16697_v37 = vld [vmem:[#allocation267_spill] sm:$0xff] }
 0x926   : > { %v7073_v7 = vsel %vm7060_vm2, %v7006_v27, %v16688_v28  ;;  %v7007_v13 = vmax.f32 %v6893_v52, 0.0  ;;  %v6895_v17 = vmul.f32 %v8042_v5, %v6560_v51  ;;  %v6715_v18 = vpop.permute.xlu0 %6714  ;;  %v6502_v8 = vmul.f32 %v13964_v34, %v16695_v44  ;;  %v16698_v5 = vld [vmem:[#allocation172_spill] sm:$0xff] }
 0x927   : > { %v8044_v12 = vpop.eup %8043  ;;  %7138 = vst.msk [vmem:[%s14224_s5 + $0x60] sm:$0xff] %vm7125_vm3, %v7073_v7  ;;  %8053 = vrcp.f32 %v6715_v18  ;;  %v6564_v35 = vadd.f32 %v6500_v57, %v6244_v58  ;;  %v6245_v24 = vsel %vm3473_vm1, %v16697_v37, %v13685_v61  ;;  %v6246_v34 = vsel %vm3473_vm1, %v16698_v5, %v13687_v45  ;;  %v16701_v7 = vld [vmem:[#allocation133_spill] sm:$0xff]  ;;  %v16703_v18 = vld [vmem:[#allocation211_spill] sm:$0xff]  ;;  %v16710_v44 = vld [vmem:[#allocation184_spill] sm:$0xff] }
 0x928   : > { %v7074_v26 = vsel %vm7060_vm2, %v7007_v13, %v16691_v50  ;;  %v7008_v21 = vmax.f32 %v6895_v17, 0.0  ;;  %v6897_v31 = vmul.f32 %v8044_v12, %v6561_v47  ;;  %v6717_v41 = vpop.permute.xlu1 %6716  ;;  %v6503_v2 = vmul.f32 %v13970_v32, %v16699_v38  ;;  %v16702_v32 = vld [vmem:[#allocation201_spill] sm:$0xff]  ;;  %v16709_v58 = vld [vmem:[#allocation275_spill] sm:$0xff] }
 0x929   : > { %v8046_v42 = vpop.eup %8045  ;;  %7139 = vst.msk [vmem:[%s14224_s5 + $0x68] sm:$0xff] %vm7125_vm3, %v7074_v26  ;;  %8055 = vrcp.f32 %v6717_v41  ;;  %v6565_v20 = vadd.f32 %v6501_v60, %v6245_v24  ;;  %v6247_v45 = vsel %vm3473_vm1, %v16701_v7, %v13693_v54  ;;  %v6566_v13 = vadd.f32 %v6502_v8, %v6246_v34  ;;  %v16704_v54 = vld [vmem:[#allocation61_spill] sm:$0xff]  ;;  %v16705_v26 = vld [vmem:[#allocation204_spill] sm:$0xff]  ;;  %v16715_v34 = vld [vmem:[#allocation219_spill] sm:$0xff] }
 0x92a   : > { %v7075_v48 = vsel %vm7060_vm2, %v7008_v21, %v16693_v0  ;;  %v7009_v29 = vmax.f32 %v6897_v31, 0.0  ;;  %v6899_v55 = vmul.f32 %v8046_v42, %v6562_v9  ;;  %v6719_v63 = vpop.permute.xlu0 %6718  ;;  %v6504_v17 = vmul.f32 %v13974_v10, %v16702_v32  ;;  %v16707_v60 = vld [vmem:[#allocation5_spill] sm:$0xff]  ;;  %v16711_v8 = vld [vmem:[#allocation220_spill] sm:$0xff] }
 0x92b   : > { %v8048_v19 = vpop.eup %8047  ;;  %7140 = vst.msk [vmem:[%s14224_s5 + $0x70] sm:$0xff] %vm7125_vm3, %v7075_v48  ;;  %8057 = vrcp.f32 %v6719_v63  ;;  %v6567_v57 = vadd.f32 %v6503_v2, %v6247_v45  ;;  %v6505_v50 = vmul.f32 %v13980_v39, %v16704_v54  ;;  %v6506_v0 = vmul.f32 %v13984_v22, %v16707_v60  ;;  %v16708_v48 = vld [vmem:[#allocation205_spill] sm:$0xff] }
 0x92c   : > { %v7076_v51 = vsel %vm7060_vm2, %v7009_v29, %v16696_v43  ;;  %v7010_v59 = vmax.f32 %v6899_v55, 0.0  ;;  %v6901_v3 = vmul.f32 %v8048_v19, %v6563_v1  ;;  %v6721_v27 = vpop.permute.xlu1 %6720  ;;  %v16706_v1 = vld [vmem:[#allocation173_spill] sm:$0xff]  ;;  %v6250_v22 = vsel %vm3473_vm1, %v16710_v44, %v13703_v30 }
 0x92d   : > { %v8050_v52 = vpop.eup %8049  ;;  %7141 = vst.msk [vmem:[%s14224_s5 + $0x78] sm:$0xff] %vm7125_vm3, %v7076_v51  ;;  %8059 = vrcp.f32 %v6721_v27  ;;  %v6248_v53 = vsel %vm3473_vm1, %v16706_v1, %v13695_v40  ;;  %v6249_v40 = vsel %vm3473_vm1, %v16709_v58, %v13701_v11  ;;  %v16712_v51 = vld [vmem:[#allocation218_spill] sm:$0xff]  ;;  %v16713_v37 = vld [vmem:[#allocation141_spill] sm:$0xff]  ;;  %v6570_v24 = vadd.f32 %v6506_v0, %v6250_v22  ;;  %v16727_v1 = vld [vmem:[#allocation64_spill] sm:$0xff] }
 0x92e   : > { %v7077_v4 = vsel %vm7060_vm2, %v7010_v59, %v16700_v56  ;;  %v7011_v25 = vmax.f32 %v6901_v3, 0.0  ;;  %v6903_v47 = vmul.f32 %v8050_v52, %v6564_v35  ;;  %v6723_v28 = vpop.permute.xlu0 %6722  ;;  %v6568_v39 = vadd.f32 %v6504_v17, %v6248_v53  ;;  %v16718_v32 = vld [vmem:[#allocation185_spill] sm:$0xff]  ;;  %v16728_v0 = vld [vmem:[#allocation226_spill] sm:$0xff] }
 0x92f   : > { %v8052_v61 = vpop.eup %8051  ;;  %7142 = vst.msk [vmem:[%s14224_s5 + $0x80] sm:$0xff] %vm7125_vm3, %v7077_v4  ;;  %8061 = vrcp.f32 %v6723_v28  ;;  %v6507_v35 = vmul.f32 %v13990_v49, %v16711_v8  ;;  %v6569_v43 = vadd.f32 %v6505_v50, %v6249_v40  ;;  %v6251_v30 = vsel %vm3473_vm1, %v16713_v37, %v13709_v33  ;;  %v16714_v49 = vld [vmem:[#allocation87_spill] sm:$0xff]  ;;  %v16716_v33 = vld [vmem:[#allocation89_spill] sm:$0xff]  ;;  %v16717_v28 = vld [vmem:[#allocation214_spill] sm:$0xff] }
 0x930   : > { %v7078_v12 = vsel %vm7060_vm2, %v7011_v25, %v16703_v18  ;;  %v7012_v62 = vmax.f32 %v6903_v47, 0.0  ;;  %v6905_v15 = vmul.f32 %v8052_v61, %v6565_v20  ;;  %v6725_v9 = vpop.permute.xlu1 %6724  ;;  %v6508_v5 = vmul.f32 %v13994_v14, %v16714_v49  ;;  %v16719_v18 = vld [vmem:[#allocation104_spill] sm:$0xff]  ;;  %v16731_v44 = vld [vmem:[#allocation81_spill] sm:$0xff] }
 0x931   : > { %v8054_v6 = vpop.eup %8053  ;;  %7143 = vst.msk [vmem:[%s14224_s5 + $0x88] sm:$0xff] %vm7125_vm3, %v7078_v12  ;;  %8063 = vrcp.f32 %v6725_v9  ;;  %v6571_v25 = vadd.f32 %v6507_v35, %v6251_v30  ;;  %v6509_v47 = vmul.f32 %v14000_v16, %v16716_v33  ;;  %v6252_v17 = vsel %vm3473_vm1, %v16718_v32, %v13711_v23  ;;  %v16720_v12 = vld [vmem:[#allocation4_spill] sm:$0xff]  ;;  %v16732_v22 = vld [vmem:[#allocation221_spill] sm:$0xff]  ;;  %v16733_v35 = vld [vmem:[#allocation227_spill] sm:$0xff] }
 0x932   : > { %v7079_v10 = vsel %vm7060_vm2, %v7012_v62, %v16705_v26  ;;  %v7013_v21 = vmax.f32 %v6905_v15, 0.0  ;;  %v6907_v31 = vmul.f32 %v8054_v6, %v6566_v13  ;;  %v6727_v41 = vpop.permute.xlu0 %6726  ;;  %v6510_v62 = vmul.f32 %v16720_v12, %v16719_v18  ;;  %v16721_v15 = vld [vmem:[#allocation215_spill] sm:$0xff]  ;;  %v16722_v26 = vld [vmem:[#allocation10_spill] sm:$0xff]  ;;  %v16735_v37 = vld [vmem:[#allocation65_spill] sm:$0xff] }
 0x933   : > { %v8056_v42 = vpop.eup %8055  ;;  %7144 = vst.msk [vmem:[%s14224_s5 + $0x90] sm:$0xff] %vm7125_vm3, %v7079_v10  ;;  %8065 = vrcp.f32 %v6727_v41  ;;  %v6572_v16 = vadd.f32 %v6508_v5, %v6252_v17  ;;  %v16723_v10 = vld [vmem:[#allocation281_spill] sm:$0xff]  ;;  %v6512_v8 = vmul.f32 %v16732_v22, %v16731_v44  ;;  %v16740_v33 = vld [vmem:[#allocation8_spill] sm:$0xff]  ;;  %v16742_v17 = vld [vmem:[#allocation338_spill] sm:$0xff] }
 0x934   : > { %v7080_v29 = vsel %vm7060_vm2, %v7013_v21, %v16708_v48  ;;  %v7014_v55 = vmax.f32 %v6907_v31, 0.0  ;;  %v6909_v63 = vmul.f32 %v8056_v42, %v6567_v57  ;;  %v6729_v19 = vpop.permute.xlu1 %6728  ;;  %v6253_v23 = vsel %vm3473_vm1, %v16723_v10, %v16722_v26  ;;  %v16724_v21 = vld [vmem:[#allocation12_spill] sm:$0xff]  ;;  %v16726_v42 = vld [vmem:[#allocation11_spill] sm:$0xff]  ;;  %v16743_v18 = vld [vmem:[#allocation202_spill] sm:$0xff] }
 0x935   : > { %v8058_v46 = vpop.eup %8057  ;;  %7145 = vst.msk [vmem:[%s14224_s5 + $0x98] sm:$0xff] %vm7125_vm3, %v7080_v29  ;;  %8067 = vrcp.f32 %v6729_v19  ;;  %v16725_v31 = vld [vmem:[#allocation48_spill] sm:$0xff]  ;;  %v6511_v53 = vmul.f32 %v16727_v1, %v16726_v42  ;;  %v6573_v60 = vadd.f32 %v6509_v47, %v6253_v23  ;;  %v6257_v12 = vsel %vm3473_vm1, %v16743_v18, %v16742_v17  ;;  %v16750_v42 = vld [vmem:[#allocation101_spill] sm:$0xff] }
 0x936   : > { %v7081_v59 = vsel %vm7060_vm2, %v7014_v55, %v16712_v51  ;;  %v7015_v3 = vmax.f32 %v6909_v63, 0.0  ;;  %v6911_v27 = vmul.f32 %v8058_v46, %v6568_v39  ;;  %v6731_v52 = vpop.permute.xlu0 %6730  ;;  %v6254_v41 = vsel %vm3473_vm1, %v16725_v31, %v16724_v21  ;;  %v16729_v19 = vld [vmem:[#allocation16_spill] sm:$0xff]  ;;  %v16730_v46 = vld [vmem:[#allocation197_spill] sm:$0xff] }
 0x937   : > { %v8060_v11 = vpop.eup %8059  ;;  %7146 = vst.msk [vmem:[%s14224_s5 + $0xa0] sm:$0xff] %vm7125_vm3, %v7081_v59  ;;  %8069 = vrcp.f32 %v6731_v52  ;;  %v6255_v58 = vsel %vm3473_vm1, %v16730_v46, %v16729_v19  ;;  %v6574_v40 = vadd.f32 %v6510_v62, %v6254_v41  ;;  %v16744_v62 = vld [vmem:[#allocation339_spill] sm:$0xff]  ;;  %v16749_v41 = vld [vmem:[#allocation340_spill] sm:$0xff]  ;;  %v16755_v44 = vld [vmem:[#allocation217_spill] sm:$0xff] }
 0x938   : > { %v7082_v38 = vsel %vm7060_vm2, %v7015_v3, %v16715_v34  ;;  %v7016_v2 = vmax.f32 %v6911_v27, 0.0  ;;  %v6913_v20 = vmul.f32 %v8060_v11, %v6569_v43  ;;  %v6733_v56 = vpop.permute.xlu1 %6732  ;;  %v6575_v52 = vadd.f32 %v6511_v53, %v6255_v58  ;;  %v16734_v11 = vld [vmem:[#allocation79_spill] sm:$0xff] }
 0x939   : > { %v8062_v4 = vpop.eup %8061  ;;  %7147 = vst.msk [vmem:[%s14224_s5 + $0xa8] sm:$0xff] %vm7125_vm3, %v7082_v38  ;;  %8071 = vrcp.f32 %v6733_v56  ;;  %v6513_v30 = vmul.f32 %v16735_v37, %v16734_v11  ;;  %v16738_v56 = vld [vmem:[#allocation286_spill] sm:$0xff]  ;;  %v6259_v1 = vsel %vm3473_vm1, %v16750_v42, %v16749_v41  ;;  %v16759_v37 = vld [vmem:[#allocation112_spill] sm:$0xff] }
 0x93a   : > { %v7083_v14 = vsel %vm7060_vm2, %v7016_v2, %v16717_v28  ;;  %v7017_v61 = vmax.f32 %v6913_v20, 0.0  ;;  %v6915_v7 = vmul.f32 %v8062_v4, %v6570_v24  ;;  %v6735_v45 = vpop.permute.xlu0 %6734  ;;  %v16736_v24 = vld [vmem:[#allocation222_spill] sm:$0xff]  ;;  %v16737_v20 = vld [vmem:[#allocation233_spill] sm:$0xff] }
 0x93b   : > { %v8064_v13 = vpop.eup %8063  ;;  %7148 = vst.msk [vmem:[%s14224_s5 + $0xb0] sm:$0xff] %vm7125_vm3, %v7083_v14  ;;  %8073 = vrcp.f32 %v6735_v45  ;;  %v6256_v4 = vsel %vm3473_vm1, %v16738_v56, %v16737_v20  ;;  %v16741_v14 = vld [vmem:[#allocation223_spill] sm:$0xff] }
 0x93c   : > { %v7084_v9 = vsel %vm7060_vm2, %v7017_v61, %v16721_v15  ;;  %v7018_v6 = vmax.f32 %v6915_v7, 0.0  ;;  %v6917_v57 = vmul.f32 %v8064_v13, %v6571_v25  ;;  %v6737_v54 = vpop.permute.xlu1 %6736  ;;  %v16739_v25 = vld [vmem:[#allocation224_spill] sm:$0xff]  ;;  %v6576_v28 = vadd.f32 %v6512_v8, %v6256_v4  ;;  %v16756_v8 = vld [vmem:[#allocation230_spill] sm:$0xff] }
 0x93d   : > { %v8066_v50 = vpop.eup %8065  ;;  %7149 = vst.msk [vmem:[%s14224_s5 + $0xb8] sm:$0xff] %vm7125_vm3, %v7084_v9  ;;  %8075 = vrcp.f32 %v6737_v54  ;;  %v6514_v47 = vmul.f32 %v16740_v33, %v16739_v25  ;;  %v16746_v9 = vld [vmem:[#allocation97_spill] sm:$0xff]  ;;  %v6577_v54 = vadd.f32 %v6513_v30, %v6257_v12  ;;  %v16760_v30 = vld [vmem:[#allocation182_spill] sm:$0xff]  ;;  %v16763_v25 = vld [vmem:[#allocation107_spill] sm:$0xff] }
 0x93e   : > { %v7085_v39 = vsel %vm7060_vm2, %v7018_v6, %v16728_v0  ;;  %v7019_v48 = vmax.f32 %v6917_v57, 0.0  ;;  %v6919_v29 = vmul.f32 %v8066_v50, %v6572_v16  ;;  %v6739_v55 = vpop.permute.xlu0 %6738  ;;  %v16745_v16 = vld [vmem:[#allocation293_spill] sm:$0xff]  ;;  %v16747_v6 = vld [vmem:[#allocation55_spill] sm:$0xff]  ;;  %v16752_v0 = vld [vmem:[#allocation164_spill] sm:$0xff] }
 0x93f   : > { %v8068_v63 = vpop.eup %8067  ;;  %7150 = vst.msk [vmem:[%s14224_s5 + $0xc0] sm:$0xff] %vm7125_vm3, %v7085_v39  ;;  %8077 = vrcp.f32 %v6739_v55  ;;  %v6258_v15 = vsel %vm3473_vm1, %v16745_v16, %v16744_v62  ;;  %v6515_v57 = vmul.f32 %v16747_v6, %v16746_v9  ;;  %v16748_v50 = vld [vmem:[#allocation235_spill] sm:$0xff]  ;;  %v16762_v4 = vld [vmem:[#allocation342_spill] sm:$0xff] }
 0x940   : > { %v7086_v43 = vsel %vm7060_vm2, %v7019_v48, %v16733_v35  ;;  %v7020_v51 = vmax.f32 %v6919_v29, 0.0  ;;  %v6921_v59 = vmul.f32 %v8068_v63, %v6573_v60  ;;  %v6741_v3 = vpop.permute.xlu1 %6740  ;;  %v6578_v53 = vadd.f32 %v6514_v47, %v6258_v15  ;;  %v16751_v60 = vld [vmem:[#allocation75_spill] sm:$0xff]  ;;  %v16753_v48 = vld [vmem:[#allocation236_spill] sm:$0xff]  ;;  %v16770_v9 = vld [vmem:[#allocation66_spill] sm:$0xff] }
 0x941   : > { %v8070_v27 = vpop.eup %8069  ;;  %7151 = vst.msk [vmem:[%s14224_s5 + $0xc8] sm:$0xff] %vm7125_vm3, %v7086_v43  ;;  %8079 = vrcp.f32 %v6741_v3  ;;  %v6516_v39 = vmul.f32 %v16752_v0, %v16751_v60  ;;  %v6579_v58 = vadd.f32 %v6515_v57, %v6259_v1  ;;  %v6261_v33 = vsel %vm3473_vm1, %v16763_v25, %v16762_v4  ;;  %v16764_v47 = vld [vmem:[#allocation343_spill] sm:$0xff]  ;;  %v16769_v15 = vld [vmem:[#allocation344_spill] sm:$0xff] }
 0x942   : > { %v7087_v49 = vsel %vm7060_vm2, %v7020_v51, %v16736_v24  ;;  %v7021_v5 = vmax.f32 %v6921_v59, 0.0  ;;  %v6923_v34 = vmul.f32 %v8070_v27, %v6574_v40  ;;  %v6743_v38 = vpop.permute.xlu0 %6742  ;;  %v16754_v40 = vld [vmem:[#allocation105_spill] sm:$0xff]  ;;  %v6518_v24 = vmul.f32 %v16760_v30, %v16759_v37  ;;  %v16775_v60 = vld [vmem:[#allocation103_spill] sm:$0xff] }
 0x943   : > { %v8072_v2 = vpop.eup %8071  ;;  %7152 = vst.msk [vmem:[%s14224_s5 + $0xd0] sm:$0xff] %vm7125_vm3, %v7087_v49  ;;  %8081 = vrcp.f32 %v6743_v38  ;;  %v6517_v22 = vmul.f32 %v16755_v44, %v16754_v40  ;;  %v16757_v27 = vld [vmem:[#allocation341_spill] sm:$0xff]  ;;  %v6263_v6 = vsel %vm3473_vm1, %v16770_v9, %v16769_v15 }
 0x944   : > { %v7088_v61 = vsel %vm7060_vm2, %v7021_v5, %v16741_v14  ;;  %v7022_v7 = vmax.f32 %v6923_v34, 0.0  ;;  %v6925_v45 = vmul.f32 %v8072_v2, %v6575_v52  ;;  %v6745_v13 = vpop.permute.xlu1 %6744  ;;  %v16758_v52 = vld [vmem:[#allocation63_spill] sm:$0xff]  ;;  %v16779_v44 = vld [vmem:[#allocation21_spill] sm:$0xff] }
 0x945   : > { %v8074_v32 = vpop.eup %8073  ;;  %7153 = vst.msk [vmem:[%s14224_s5 + $0xd8] sm:$0xff] %vm7125_vm3, %v7088_v61  ;;  %8083 = vrcp.f32 %v6745_v13  ;;  %v6260_v11 = vsel %vm3473_vm1, %v16758_v52, %v16757_v27  ;;  %v16761_v5 = vld [vmem:[#allocation231_spill] sm:$0xff]  ;;  %v6581_v13 = vadd.f32 %v6517_v22, %v6261_v33  ;;  %v16780_v22 = vld [vmem:[#allocation314_spill] sm:$0xff]  ;;  %v16783_v37 = vld [vmem:[#allocation69_spill] sm:$0xff] }
 0x946   : > { %v7089_v26 = vsel %vm7060_vm2, %v7022_v7, %v16748_v50  ;;  %v7023_v10 = vmax.f32 %v6925_v45, 0.0  ;;  %v6927_v23 = vmul.f32 %v8074_v32, %v6576_v28  ;;  %v6747_v21 = vpop.permute.xlu0 %6746  ;;  %v6580_v49 = vadd.f32 %v6516_v39, %v6260_v11  ;;  %v16765_v28 = vld [vmem:[#allocation304_spill] sm:$0xff]  ;;  %v16766_v61 = vld [vmem:[#allocation19_spill] sm:$0xff]  ;;  %v16767_v7 = vld [vmem:[#allocation102_spill] sm:$0xff] }
 0x947   : > { %v8076_v31 = vpop.eup %8075  ;;  %7154 = vst.msk [vmem:[%s14224_s5 + $0xe0] sm:$0xff] %vm7125_vm3, %v7089_v26  ;;  %8085 = vrcp.f32 %v6747_v21  ;;  %v6262_v14 = vsel %vm3473_vm1, %v16765_v28, %v16764_v47  ;;  %v6519_v45 = vmul.f32 %v16767_v7, %v16766_v61  ;;  %v16768_v32 = vld [vmem:[#allocation254_spill] sm:$0xff]  ;;  %v16772_v50 = vld [vmem:[#allocation212_spill] sm:$0xff]  ;;  %v16790_v61 = vld [vmem:[#allocation117_spill] sm:$0xff] }
 0x948   : > { %v7090_v29 = vsel %vm7060_vm2, %v7023_v10, %v16753_v48  ;;  %v7024_v55 = vmax.f32 %v6927_v23, 0.0  ;;  %v6929_v63 = vmul.f32 %v8076_v31, %v6577_v54  ;;  %v6749_v19 = vpop.permute.xlu1 %6748  ;;  %v6582_v57 = vadd.f32 %v6518_v24, %v6262_v14  ;;  %v16771_v54 = vld [vmem:[#allocation25_spill] sm:$0xff]  ;;  %v16773_v10 = vld [vmem:[#allocation255_spill] sm:$0xff]  ;;  %v16776_v39 = vld [vmem:[#allocation244_spill] sm:$0xff] }
 0x949   : > { %v8078_v46 = vpop.eup %8077  ;;  %7155 = vst.msk [vmem:[%s14224_s5 + $0xe8] sm:$0xff] %vm7125_vm3, %v7090_v29  ;;  %8087 = vrcp.f32 %v6749_v19  ;;  %v6520_v26 = vmul.f32 %v16772_v50, %v16771_v54  ;;  %v6583_v1 = vadd.f32 %v6519_v45, %v6263_v6  ;;  %v16782_v11 = vld [vmem:[#allocation346_spill] sm:$0xff]  ;;  %v16784_v24 = vld [vmem:[#allocation347_spill] sm:$0xff]  ;;  %v16789_v14 = vld [vmem:[#allocation348_spill] sm:$0xff] }
 0x94a   : > { %v7091_v35 = vsel %vm7060_vm2, %v7024_v55, %v16756_v8  ;;  %v7025_v43 = vmax.f32 %v6929_v63, 0.0  ;;  %v6931_v51 = vmul.f32 %v8078_v46, %v6578_v53  ;;  %v6751_v59 = vpop.permute.xlu0 %6750  ;;  %v16774_v53 = vld [vmem:[#allocation229_spill] sm:$0xff]  ;;  %v6522_v8 = vmul.f32 %v16780_v22, %v16779_v44  ;;  %v16795_v54 = vld [vmem:[#allocation14_spill] sm:$0xff]  ;;  %v16803_v44 = vld [vmem:[#allocation124_spill] sm:$0xff] }
 0x94b   : > { %v8080_v3 = vpop.eup %8079  ;;  %7156 = vst.msk [vmem:[%s14224_s5 + $0xf0] sm:$0xff] %vm7125_vm3, %v7091_v35  ;;  %8089 = vrcp.f32 %v6751_v59  ;;  %v6521_v0 = vmul.f32 %v16775_v60, %v16774_v53  ;;  %v16777_v46 = vld [vmem:[#allocation345_spill] sm:$0xff]  ;;  %v6265_v30 = vsel %vm3473_vm1, %v16783_v37, %v16782_v11  ;;  %v6267_v7 = vsel %vm3473_vm1, %v16790_v61, %v16789_v14  ;;  %v16799_v60 = vld [vmem:[#allocation128_spill] sm:$0xff] }
 0x94c   : > { %v7092_v34 = vsel %vm7060_vm2, %v7025_v43, %v16761_v5  ;;  %v7026_v38 = vmax.f32 %v6931_v51, 0.0  ;;  %v6933_v2 = vmul.f32 %v8080_v3, %v6579_v58  ;;  %v6753_v20 = vpop.permute.xlu1 %6752  ;;  %v16778_v58 = vld [vmem:[#allocation70_spill] sm:$0xff]  ;;  %v16781_v43 = vld [vmem:[#allocation247_spill] sm:$0xff] }
 0x94d   : > { %v8082_v56 = vpop.eup %8081  ;;  %7157 = vst.msk [vmem:[%s14224_s5 + $0xf8] sm:$0xff] %vm7125_vm3, %v7092_v34  ;;  %8091 = vrcp.f32 %v6753_v20  ;;  %v6264_v40 = vsel %vm3473_vm1, %v16778_v58, %v16777_v46  ;;  %v16786_v34 = vld [vmem:[#allocation291_spill] sm:$0xff]  ;;  %v6585_v20 = vadd.f32 %v6521_v0, %v6265_v30 }
 0x94e   : > { %v7093_v17 = vsel %vm7060_vm2, %v7026_v38, %v16768_v32  ;;  %v7027_v18 = vmax.f32 %v6933_v2, 0.0  ;;  %v6935_v12 = vmul.f32 %v8082_v56, %v6580_v49  ;;  %v6755_v62 = vpop.permute.xlu0 %6754  ;;  %v6584_v35 = vadd.f32 %v6520_v26, %v6264_v40  ;;  %v16785_v49 = vld [vmem:[#allocation116_spill] sm:$0xff]  ;;  %v16787_v38 = vld [vmem:[#allocation74_spill] sm:$0xff]  ;;  %v16800_v0 = vld [vmem:[#allocation311_spill] sm:$0xff] }
 0x94f   : > { %v8084_v16 = vpop.eup %8083  ;;  %7158 = vst.msk [vmem:[%s14224_s5 + $0x100] sm:$0xff] %vm7125_vm3, %v7093_v17  ;;  %8093 = vrcp.f32 %v6755_v62  ;;  %v6266_v5 = vsel %vm3473_vm1, %v16785_v49, %v16784_v24  ;;  %v6523_v2 = vmul.f32 %v16787_v38, %v16786_v34  ;;  %v16788_v56 = vld [vmem:[#allocation264_spill] sm:$0xff]  ;;  %v16792_v32 = vld [vmem:[#allocation194_spill] sm:$0xff] }
 0x950   : > { %v7094_v23 = vsel %vm7060_vm2, %v7027_v18, %v16773_v10  ;;  %v7028_v21 = vmax.f32 %v6935_v12, 0.0  ;;  %v6937_v31 = vmul.f32 %v8084_v16, %v6581_v13  ;;  %v6757_v41 = vpop.permute.xlu1 %6756  ;;  %v6586_v45 = vadd.f32 %v6522_v8, %v6266_v5  ;;  %v16791_v13 = vld [vmem:[#allocation99_spill] sm:$0xff]  ;;  %v16793_v18 = vld [vmem:[#allocation265_spill] sm:$0xff]  ;;  %v16796_v26 = vld [vmem:[#allocation260_spill] sm:$0xff] }
 0x951   : > { %v8086_v42 = vpop.eup %8085  ;;  %7159 = vst.msk [vmem:[%s14224_s5 + $0x108] sm:$0xff] %vm7125_vm3, %v7094_v23  ;;  %8095 = vrcp.f32 %v6757_v41  ;;  %v6524_v17 = vmul.f32 %v16792_v32, %v16791_v13  ;;  %v6587_v6 = vadd.f32 %v6523_v2, %v6267_v7  ;;  %v16802_v40 = vld [vmem:[#allocation350_spill] sm:$0xff]  ;;  %v16804_v8 = vld [vmem:[#allocation351_spill] sm:$0xff]  ;;  %v16809_v5 = vld [vmem:[#allocation352_spill] sm:$0xff] }
 0x952   : > { %v7095_v48 = vsel %vm7060_vm2, %v7028_v21, %v16776_v39  ;;  %v7029_v29 = vmax.f32 %v6937_v31, 0.0  ;;  %v6939_v55 = vmul.f32 %v8086_v42, %v6582_v57  ;;  %v6759_v63 = vpop.permute.xlu0 %6758  ;;  %v16794_v57 = vld [vmem:[#allocation113_spill] sm:$0xff]  ;;  %v6526_v39 = vmul.f32 %v16800_v0, %v16799_v60  ;;  %v16810_v34 = vld [vmem:[#allocation82_spill] sm:$0xff]  ;;  %v16815_v13 = vld [vmem:[#allocation232_spill] sm:$0xff] }
 0x953   : > { %v8088_v19 = vpop.eup %8087  ;;  %7160 = vst.msk [vmem:[%s14224_s5 + $0x110] sm:$0xff] %vm7125_vm3, %v7095_v48  ;;  %8097 = vrcp.f32 %v6759_v63  ;;  %v6525_v50 = vmul.f32 %v16795_v54, %v16794_v57  ;;  %v16797_v42 = vld [vmem:[#allocation349_spill] sm:$0xff]  ;;  %v6269_v22 = vsel %vm3473_vm1, %v16803_v44, %v16802_v40  ;;  %v6271_v38 = vsel %vm3473_vm1, %v16810_v34, %v16809_v5  ;;  %v16823_v60 = vld [vmem:[#allocation86_spill] sm:$0xff] }
 0x954   : > { %v7096_v51 = vsel %vm7060_vm2, %v7029_v29, %v16781_v43  ;;  %v7030_v59 = vmax.f32 %v6939_v55, 0.0  ;;  %v6941_v3 = vmul.f32 %v8088_v19, %v6583_v1  ;;  %v6761_v27 = vpop.permute.xlu1 %6760  ;;  %v16798_v1 = vld [vmem:[#allocation315_spill] sm:$0xff]  ;;  %v16801_v29 = vld [vmem:[#allocation261_spill] sm:$0xff] }
 0x955   : > { %v8090_v52 = vpop.eup %8089  ;;  %7161 = vst.msk [vmem:[%s14224_s5 + $0x118] sm:$0xff] %vm7125_vm3, %v7096_v51  ;;  %8099 = vrcp.f32 %v6761_v27  ;;  %v6268_v53 = vsel %vm3473_vm1, %v16798_v1, %v16797_v42  ;;  %v16806_v51 = vld [vmem:[#allocation27_spill] sm:$0xff]  ;;  %v6589_v27 = vadd.f32 %v6525_v50, %v6269_v22  ;;  %v16819_v54 = vld [vmem:[#allocation29_spill] sm:$0xff] }
 0x956   : > { %v7097_v4 = vsel %vm7060_vm2, %v7030_v59, %v16788_v56  ;;  %v7031_v25 = vmax.f32 %v6941_v3, 0.0  ;;  %v6943_v33 = vmul.f32 %v8090_v52, %v6584_v35  ;;  %v6763_v47 = vpop.permute.xlu0 %6762  ;;  %v6588_v48 = vadd.f32 %v6524_v17, %v6268_v53  ;;  %v16805_v35 = vld [vmem:[#allocation125_spill] sm:$0xff]  ;;  %v16807_v59 = vld [vmem:[#allocation91_spill] sm:$0xff]  ;;  %v16808_v52 = vld [vmem:[#allocation272_spill] sm:$0xff] }
 0x957   : > { %v8092_v28 = vpop.eup %8091  ;;  %7162 = vst.msk [vmem:[%s14224_s5 + $0x120] sm:$0xff] %vm7125_vm3, %v7097_v4  ;;  %8101 = vrcp.f32 %v6763_v47  ;;  %v6270_v43 = vsel %vm3473_vm1, %v16805_v35, %v16804_v8  ;;  %v6527_v3 = vmul.f32 %v16807_v59, %v16806_v51  ;;  %v16812_v56 = vld [vmem:[#allocation216_spill] sm:$0xff]  ;;  %v16820_v50 = vld [vmem:[#allocation3_spill] sm:$0xff]  ;;  %v16822_v53 = vld [vmem:[#allocation354_spill] sm:$0xff] }
 0x958   : > { %v7098_v12 = vsel %vm7060_vm2, %v7031_v25, %v16793_v18  ;;  %v7032_v62 = vmax.f32 %v6943_v33, 0.0  ;;  %v6945_v16 = vmul.f32 %v8092_v28, %v6585_v20  ;;  %v6765_v15 = vpop.permute.xlu1 %6764  ;;  %v6590_v2 = vadd.f32 %v6526_v39, %v6270_v43  ;;  %v16811_v20 = vld [vmem:[#allocation109_spill] sm:$0xff]  ;;  %v16813_v25 = vld [vmem:[#allocation274_spill] sm:$0xff]  ;;  %v16816_v17 = vld [vmem:[#allocation268_spill] sm:$0xff] }
 0x959   : > { %v8094_v9 = vpop.eup %8093  ;;  %7163 = vst.msk [vmem:[%s14224_s5 + $0x128] sm:$0xff] %vm7125_vm3, %v7098_v12  ;;  %8103 = vrcp.f32 %v6765_v15  ;;  %v6528_v4 = vmul.f32 %v16812_v56, %v16811_v20  ;;  %v6591_v7 = vadd.f32 %v6527_v3, %v6271_v38  ;;  %v6273_v0 = vsel %vm3473_vm1, %v16823_v60, %v16822_v53  ;;  %v16824_v39 = vld [vmem:[#allocation355_spill] sm:$0xff]  ;;  %v16829_v43 = vld [vmem:[#allocation356_spill] sm:$0xff]  ;;  %v16830_v51 = vld [vmem:[#allocation110_spill] sm:$0xff] }
 0x95a   : > { %v7099_v10 = vsel %vm7060_vm2, %v7032_v62, %v16796_v26  ;;  %v7033_v23 = vmax.f32 %v6945_v16, 0.0  ;;  %v6947_v21 = vmul.f32 %v8094_v9, %v6586_v45  ;;  %v6767_v31 = vpop.permute.xlu0 %6766  ;;  %v16814_v45 = vld [vmem:[#allocation24_spill] sm:$0xff]  ;;  %v16817_v9 = vld [vmem:[#allocation353_spill] sm:$0xff]  ;;  %v6530_v26 = vmul.f32 %v16820_v50, %v16819_v54  ;;  %v16835_v20 = vld [vmem:[#allocation94_spill] sm:$0xff] }
 0x95b   : > { %v8096_v41 = vpop.eup %8095  ;;  %7164 = vst.msk [vmem:[%s14224_s5 + $0x130] sm:$0xff] %vm7125_vm3, %v7099_v10  ;;  %8105 = vrcp.f32 %v6767_v31  ;;  %v6529_v32 = vmul.f32 %v16815_v13, %v16814_v45  ;;  %v6275_v59 = vsel %vm3473_vm1, %v16830_v51, %v16829_v43  ;;  %v16839_v13 = vld [vmem:[#allocation114_spill] sm:$0xff] }
 0x95c   : > { %v7100_v55 = vsel %vm7060_vm2, %v7033_v23, %v16801_v29  ;;  %v7034_v63 = vmax.f32 %v6947_v21, 0.0  ;;  %v6949_v19 = vmul.f32 %v8096_v41, %v6587_v6  ;;  %v6769_v46 = vpop.permute.xlu1 %6768  ;;  %v16818_v6 = vld [vmem:[#allocation78_spill] sm:$0xff] }
 0x95d   : > { %v8098_v58 = vpop.eup %8097  ;;  %7165 = vst.msk [vmem:[%s14224_s5 + $0x138] sm:$0xff] %vm7125_vm3, %v7100_v55  ;;  %8107 = vrcp.f32 %v6769_v46  ;;  %v6272_v57 = vsel %vm3473_vm1, %v16818_v6, %v16817_v9  ;;  %v16821_v23 = vld [vmem:[#allocation270_spill] sm:$0xff]  ;;  %v6593_v46 = vadd.f32 %v6529_v32, %v6273_v0 }
 0x95e   : > { %v7101_v11 = vsel %vm7060_vm2, %v7034_v63, %v16808_v52  ;;  %v7035_v37 = vmax.f32 %v6949_v19, 0.0  ;;  %v6951_v30 = vmul.f32 %v8098_v58, %v6588_v48  ;;  %v6771_v24 = vpop.permute.xlu0 %6770  ;;  %v6592_v10 = vadd.f32 %v6528_v4, %v6272_v57  ;;  %v16825_v48 = vld [vmem:[#allocation225_spill] sm:$0xff]  ;;  %v16826_v55 = vld [vmem:[#allocation18_spill] sm:$0xff]  ;;  %v16832_v52 = vld [vmem:[#allocation7_spill] sm:$0xff] }
 0x95f   : > { %v8100_v49 = vpop.eup %8099  ;;  %7166 = vst.msk [vmem:[%s14224_s5 + $0x140] sm:$0xff] %vm7125_vm3, %v7101_v11  ;;  %8109 = vrcp.f32 %v6771_v24  ;;  %v6274_v29 = vsel %vm3473_vm1, %v16825_v48, %v16824_v39  ;;  %v16827_v63 = vld [vmem:[#allocation98_spill] sm:$0xff] }
 0x960   : > { %v7102_v33 = vsel %vm7060_vm2, %v7035_v37, %v16813_v25  ;;  %v7036_v47 = vmax.f32 %v6951_v30, 0.0  ;;  %v6953_v28 = vmul.f32 %v8100_v49, %v6589_v27  ;;  %v6773_v14 = vpop.permute.xlu1 %6772  ;;  %v6531_v19 = vmul.f32 %v16827_v63, %v16826_v55  ;;  %v16828_v58 = vld [vmem:[#allocation282_spill] sm:$0xff]  ;;  %v16831_v27 = vld [vmem:[#allocation111_spill] sm:$0xff]  ;;  %v16850_v55 = vld [vmem:[#allocation317_spill] sm:$0xff] }
 0x961   : > { %v8102_v61 = vpop.eup %8101  ;;  %7167 = vst.msk [vmem:[%s14224_s5 + $0x148] sm:$0xff] %vm7125_vm3, %v7102_v33  ;;  %8111 = vrcp.f32 %v6773_v14  ;;  %v6594_v3 = vadd.f32 %v6530_v26, %v6274_v29  ;;  %v6532_v11 = vmul.f32 %v16832_v52, %v16831_v27  ;;  %v16833_v37 = vld [vmem:[#allocation234_spill] sm:$0xff]  ;;  %v16844_v26 = vld [vmem:[#allocation359_spill] sm:$0xff]  ;;  %v16849_v29 = vld [vmem:[#allocation360_spill] sm:$0xff] }
 0x962   : > { %v7103_v18 = vsel %vm7060_vm2, %v7036_v47, %v16816_v17  ;;  %v7037_v12 = vmax.f32 %v6953_v28, 0.0  ;;  %v6955_v62 = vmul.f32 %v8102_v61, %v6590_v2  ;;  %v6775_v16 = vpop.permute.xlu0 %6774  ;;  %v6595_v38 = vadd.f32 %v6531_v19, %v6275_v59  ;;  %v16834_v2 = vld [vmem:[#allocation129_spill] sm:$0xff]  ;;  %v16836_v4 = vld [vmem:[#allocation278_spill] sm:$0xff] }
 0x963   : > { %v8104_v15 = vpop.eup %8103  ;;  %7168 = vst.msk [vmem:[%s14224_s5 + $0x150] sm:$0xff] %vm7125_vm3, %v7103_v18  ;;  %8113 = vrcp.f32 %v6775_v16  ;;  %v6533_v56 = vmul.f32 %v16835_v20, %v16834_v2  ;;  %v16837_v61 = vld [vmem:[#allocation357_spill] sm:$0xff]  ;;  %v16840_v32 = vld [vmem:[#allocation6_spill] sm:$0xff]  ;;  %v6279_v63 = vsel %vm3473_vm1, %v16850_v55, %v16849_v29  ;;  %v16859_v20 = vld [vmem:[#allocation20_spill] sm:$0xff] }
 0x964   : > { %v7104_v21 = vsel %vm7060_vm2, %v7037_v12, %v16821_v23  ;;  %v7038_v31 = vmax.f32 %v6955_v62, 0.0  ;;  %v6957_v41 = vmul.f32 %v8104_v15, %v6591_v7  ;;  %v6777_v42 = vpop.permute.xlu1 %6776  ;;  %v16838_v7 = vld [vmem:[#allocation95_spill] sm:$0xff]  ;;  %v6534_v17 = vmul.f32 %v16840_v32, %v16839_v13  ;;  %v16842_v57 = vld [vmem:[#allocation358_spill] sm:$0xff] }
 0x965   : > { %v8106_v1 = vpop.eup %8105  ;;  %7169 = vst.msk [vmem:[%s14224_s5 + $0x158] sm:$0xff] %vm7125_vm3, %v7104_v21  ;;  %8115 = vrcp.f32 %v6777_v42  ;;  %v6276_v45 = vsel %vm3473_vm1, %v16838_v7, %v16837_v61  ;;  %v16841_v12 = vld [vmem:[#allocation279_spill] sm:$0xff]  ;;  %v16843_v54 = vld [vmem:[#allocation90_spill] sm:$0xff] }
 0x966   : > { %v7105_v40 = vsel %vm7060_vm2, %v7038_v31, %v16828_v58  ;;  %v7039_v44 = vmax.f32 %v6957_v41, 0.0  ;;  %v6959_v22 = vmul.f32 %v8106_v1, %v6592_v10  ;;  %v6779_v8 = vpop.permute.xlu0 %6778  ;;  %v6596_v18 = vadd.f32 %v6532_v11, %v6276_v45  ;;  %v16845_v10 = vld [vmem:[#allocation316_spill] sm:$0xff]  ;;  %v16846_v21 = vld [vmem:[#allocation115_spill] sm:$0xff]  ;;  %v16855_v27 = vld [vmem:[#allocation294_spill] sm:$0xff] }
 0x967   : > { %v8108_v35 = vpop.eup %8107  ;;  %7170 = vst.msk [vmem:[%s14224_s5 + $0x160] sm:$0xff] %vm7125_vm3, %v7105_v40  ;;  %8117 = vrcp.f32 %v6779_v8  ;;  %v6277_v50 = vsel %vm3473_vm1, %v16843_v54, %v16842_v57  ;;  %v6278_v23 = vsel %vm3473_vm1, %v16845_v10, %v16844_v26  ;;  %v16847_v31 = vld [vmem:[#allocation295_spill] sm:$0xff]  ;;  %v16856_v11 = vld [vmem:[#allocation237_spill] sm:$0xff]  ;;  %v16862_v45 = vld [vmem:[#allocation362_spill] sm:$0xff] }
 0x968   : > { %v7106_v30 = vsel %vm7060_vm2, %v7039_v44, %v16833_v37  ;;  %v7040_v24 = vmax.f32 %v6959_v22, 0.0  ;;  %v6961_v49 = vmul.f32 %v8108_v35, %v6593_v46  ;;  %v6781_v5 = vpop.permute.xlu1 %6780  ;;  %v6535_v41 = vmul.f32 %v16847_v31, %v16846_v21  ;;  %v16848_v1 = vld [vmem:[#allocation239_spill] sm:$0xff]  ;;  %v16851_v46 = vld [vmem:[#allocation120_spill] sm:$0xff]  ;;  %v16853_v44 = vld [vmem:[#allocation242_spill] sm:$0xff] }
 0x969   : > { %v8110_v34 = vpop.eup %8109  ;;  %7171 = vst.msk [vmem:[%s14224_s5 + $0x168] sm:$0xff] %vm7125_vm3, %v7106_v30  ;;  %8119 = vrcp.f32 %v6781_v5  ;;  %v6597_v42 = vadd.f32 %v6533_v56, %v6277_v50  ;;  %v6598_v19 = vadd.f32 %v6534_v17, %v6278_v23  ;;  %v16852_v58 = vld [vmem:[#allocation83_spill] sm:$0xff]  ;;  %v16860_v56 = vld [vmem:[#allocation17_spill] sm:$0xff]  ;;  %v16869_v23 = vld [vmem:[#allocation364_spill] sm:$0xff] }
 0x96a   : > { %v7107_v25 = vsel %vm7060_vm2, %v7040_v24, %v16836_v4  ;;  %v7041_v33 = vmax.f32 %v6961_v49, 0.0  ;;  %v6963_v47 = vmul.f32 %v8110_v34, %v6594_v3  ;;  %v6783_v28 = vpop.permute.xlu0 %6782  ;;  %v6536_v40 = vmul.f32 %v16852_v58, %v16851_v46  ;;  %v16854_v3 = vld [vmem:[#allocation121_spill] sm:$0xff]  ;;  %v16863_v13 = vld [vmem:[#allocation319_spill] sm:$0xff]  ;;  %v16875_v46 = vld [vmem:[#allocation72_spill] sm:$0xff] }
 0x96b   : > { %v8112_v14 = vpop.eup %8111  ;;  %7172 = vst.msk [vmem:[%s14224_s5 + $0x170] sm:$0xff] %vm7125_vm3, %v7107_v25  ;;  %8121 = vrcp.f32 %v6783_v28  ;;  %v6599_v59 = vadd.f32 %v6535_v41, %v6279_v63  ;;  %v6537_v52 = vmul.f32 %v16855_v27, %v16854_v3  ;;  %v16857_v34 = vld [vmem:[#allocation361_spill] sm:$0xff]  ;;  %v6538_v4 = vmul.f32 %v16860_v56, %v16859_v20  ;;  %v16864_v17 = vld [vmem:[#allocation363_spill] sm:$0xff] }
 0x96c   : > { %v7108_v62 = vsel %vm7060_vm2, %v7041_v33, %v16841_v12  ;;  %v7042_v16 = vmax.f32 %v6963_v47, 0.0  ;;  %v6965_v15 = vmul.f32 %v8112_v14, %v6595_v38  ;;  %v6785_v9 = vpop.permute.xlu1 %6784  ;;  %v16858_v38 = vld [vmem:[#allocation318_spill] sm:$0xff]  ;;  %v16861_v33 = vld [vmem:[#allocation240_spill] sm:$0xff]  ;;  %v6281_v32 = vsel %vm3473_vm1, %v16863_v13, %v16862_v45  ;;  %v16870_v21 = vld [vmem:[#allocation321_spill] sm:$0xff] }
 0x96d   : > { %v8114_v6 = vpop.eup %8113  ;;  %7173 = vst.msk [vmem:[%s14224_s5 + $0x178] sm:$0xff] %vm7125_vm3, %v7108_v62  ;;  %8123 = vrcp.f32 %v6785_v9  ;;  %v6280_v2 = vsel %vm3473_vm1, %v16858_v38, %v16857_v34  ;;  %v16866_v62 = vld [vmem:[#allocation123_spill] sm:$0xff]  ;;  %v6601_v9 = vadd.f32 %v6537_v52, %v6281_v32  ;;  %v6283_v31 = vsel %vm3473_vm1, %v16870_v21, %v16869_v23 }
 0x96e   : > { %v7109_v53 = vsel %vm7060_vm2, %v7042_v16, %v16848_v1  ;;  %v7043_v60 = vmax.f32 %v6965_v15, 0.0  ;;  %v6967_v0 = vmul.f32 %v8114_v6, %v6596_v18  ;;  %v6787_v39 = vpop.permute.xlu0 %6786  ;;  %v6600_v25 = vadd.f32 %v6536_v40, %v6280_v2  ;;  %v16865_v18 = vld [vmem:[#allocation320_spill] sm:$0xff]  ;;  %v16867_v16 = vld [vmem:[#allocation241_spill] sm:$0xff]  ;;  %v16876_v40 = vld [vmem:[#allocation243_spill] sm:$0xff] }
 0x96f   : > { %v8116_v48 = vpop.eup %8115  ;;  %7174 = vst.msk [vmem:[%s14224_s5 + $0x180] sm:$0xff] %vm7125_vm3, %v7109_v53  ;;  %8125 = vrcp.f32 %v6787_v39  ;;  %v6282_v12 = vsel %vm3473_vm1, %v16865_v18, %v16864_v17  ;;  %v6539_v15 = vmul.f32 %v16867_v16, %v16866_v62  ;;  %v16868_v6 = vld [vmem:[#allocation245_spill] sm:$0xff]  ;;  %v16872_v1 = vld [vmem:[#allocation80_spill] sm:$0xff]  ;;  %v16879_v27 = vld [vmem:[#allocation135_spill] sm:$0xff] }
 0x970   : > { %v7110_v22 = vsel %vm7060_vm2, %v7043_v60, %v16853_v44  ;;  %v7044_v8 = vmax.f32 %v6967_v0, 0.0  ;;  %v6969_v35 = vmul.f32 %v8116_v48, %v6597_v42  ;;  %v6789_v43 = vpop.permute.xlu1 %6788  ;;  %v6602_v41 = vadd.f32 %v6538_v4, %v6282_v12  ;;  %v16871_v42 = vld [vmem:[#allocation238_spill] sm:$0xff]  ;;  %v16873_v60 = vld [vmem:[#allocation248_spill] sm:$0xff]  ;;  %v16880_v52 = vld [vmem:[#allocation15_spill] sm:$0xff] }
 0x971   : > { %v8118_v51 = vpop.eup %8117  ;;  %7175 = vst.msk [vmem:[%s14224_s5 + $0x188] sm:$0xff] %vm7125_vm3, %v7110_v22  ;;  %8127 = vrcp.f32 %v6789_v43  ;;  %v6540_v53 = vmul.f32 %v16872_v1, %v16871_v42  ;;  %v6603_v63 = vadd.f32 %v6539_v15, %v6283_v31  ;;  %v16882_v2 = vld [vmem:[#allocation366_spill] sm:$0xff]  ;;  %v16883_v20 = vld [vmem:[#allocation323_spill] sm:$0xff]  ;;  %v16889_v18 = vld [vmem:[#allocation368_spill] sm:$0xff] }
 0x972   : > { %v7111_v37 = vsel %vm7060_vm2, %v7044_v8, %v16856_v11  ;;  %v7045_v30 = vmax.f32 %v6969_v35, 0.0  ;;  %v6971_v24 = vmul.f32 %v8118_v51, %v6598_v19  ;;  %v6791_v49 = vpop.permute.xlu0 %6790  ;;  %v16874_v19 = vld [vmem:[#allocation122_spill] sm:$0xff]  ;;  %v16877_v51 = vld [vmem:[#allocation365_spill] sm:$0xff]  ;;  %v6542_v11 = vmul.f32 %v16880_v52, %v16879_v27  ;;  %v16884_v4 = vld [vmem:[#allocation367_spill] sm:$0xff] }
 0x973   : > { %v8120_v5 = vpop.eup %8119  ;;  %7176 = vst.msk [vmem:[%s14224_s5 + $0x190] sm:$0xff] %vm7125_vm3, %v7111_v37  ;;  %8129 = vrcp.f32 %v6791_v49  ;;  %v6541_v58 = vmul.f32 %v16875_v46, %v16874_v19  ;;  %v6285_v56 = vsel %vm3473_vm1, %v16883_v20, %v16882_v2  ;;  %v16890_v12 = vld [vmem:[#allocation325_spill] sm:$0xff]  ;;  %v16891_v15 = vld [vmem:[#allocation130_spill] sm:$0xff]  ;;  %v16894_v21 = vld [vmem:[#allocation131_spill] sm:$0xff] }
 0x974   : > { %v7112_v47 = vsel %vm7060_vm2, %v7045_v30, %v16861_v33  ;;  %v7046_v28 = vmax.f32 %v6971_v24, 0.0  ;;  %v6973_v14 = vmul.f32 %v8120_v5, %v6599_v59  ;;  %v6793_v61 = vpop.permute.xlu1 %6792  ;;  %v16878_v59 = vld [vmem:[#allocation322_spill] sm:$0xff]  ;;  %v6287_v62 = vsel %vm3473_vm1, %v16890_v12, %v16889_v18  ;;  %v16896_v42 = vld [vmem:[#allocation251_spill] sm:$0xff]  ;;  %v16903_v52 = vld [vmem:[#allocation312_spill] sm:$0xff] }
 0x975   : > { %v8122_v7 = vpop.eup %8121  ;;  %7177 = vst.msk [vmem:[%s14224_s5 + $0x198] sm:$0xff] %vm7125_vm3, %v7112_v47  ;;  %8131 = vrcp.f32 %v6793_v61  ;;  %v6284_v3 = vsel %vm3473_vm1, %v16878_v59, %v16877_v51  ;;  %v16881_v30 = vld [vmem:[#allocation246_spill] sm:$0xff]  ;;  %v16886_v47 = vld [vmem:[#allocation139_spill] sm:$0xff]  ;;  %v6605_v61 = vadd.f32 %v6541_v58, %v6285_v56 }
 0x976   : > { %v7113_v57 = vsel %vm7060_vm2, %v7046_v28, %v16868_v6  ;;  %v7047_v54 = vmax.f32 %v6973_v14, 0.0  ;;  %v6975_v50 = vmul.f32 %v8122_v7, %v6600_v25  ;;  %v6795_v26 = vpop.permute.xlu0 %6794  ;;  %v6604_v37 = vadd.f32 %v6540_v53, %v6284_v3  ;;  %v16885_v25 = vld [vmem:[#allocation324_spill] sm:$0xff]  ;;  %v16895_v31 = vld [vmem:[#allocation302_spill] sm:$0xff] }
 0x977   : > { %v8124_v10 = vpop.eup %8123  ;;  %7178 = vst.msk [vmem:[%s14224_s5 + $0x1a0] sm:$0xff] %vm7125_vm3, %v7113_v57  ;;  %8133 = vrcp.f32 %v6795_v26  ;;  %v6286_v33 = vsel %vm3473_vm1, %v16885_v25, %v16884_v4  ;;  %v16887_v28 = vld [vmem:[#allocation60_spill] sm:$0xff]  ;;  %v16893_v57 = vld [vmem:[#allocation301_spill] sm:$0xff] }
 0x978   : > { %v7114_v0 = vsel %vm7060_vm2, %v7047_v54, %v16873_v60  ;;  %v7048_v39 = vmax.f32 %v6975_v50, 0.0  ;;  %v6977_v48 = vmul.f32 %v8124_v10, %v6601_v9  ;;  %v6797_v29 = vpop.permute.xlu1 %6796  ;;  %v6543_v14 = vmul.f32 %v16887_v28, %v16886_v47  ;;  %v16888_v7 = vld [vmem:[#allocation252_spill] sm:$0xff]  ;;  %v16892_v9 = vld [vmem:[#allocation23_spill] sm:$0xff] }
 0x979   : > { %v8126_v55 = vpop.eup %8125  ;;  %7179 = vst.msk [vmem:[%s14224_s5 + $0x1a8] sm:$0xff] %vm7125_vm3, %v7114_v0  ;;  %8135 = vrcp.f32 %v6797_v29  ;;  %v6606_v16 = vadd.f32 %v6542_v11, %v6286_v33  ;;  %v6544_v6 = vmul.f32 %v16892_v9, %v16891_v15 }
 0x97a   : > { %v7115_v44 = vsel %vm7060_vm2, %v7048_v39, %v16876_v40  ;;  %v7049_v22 = vmax.f32 %v6977_v48, 0.0  ;;  %v6979_v8 = vmul.f32 %v8126_v55, %v6602_v41  ;;  %v6799_v35 = vpop.permute.xlu0 %6798  ;;  %v6607_v23 = vadd.f32 %v6543_v14, %v6287_v62  ;;  %v16897_v39 = vld [vmem:[#allocation369_spill] sm:$0xff]  ;;  %v16898_v48 = vld [vmem:[#allocation326_spill] sm:$0xff] }
 0x97b   : > { %v8128_v43 = vpop.eup %8127  ;;  %7180 = vst.msk [vmem:[%s14224_s5 + $0x1b0] sm:$0xff] %vm7125_vm3, %v7115_v44  ;;  %8137 = vrcp.f32 %v6799_v35  ;;  %v6545_v41 = vmul.f32 %v16895_v31, %v16894_v21  ;;  %v6288_v29 = vsel %vm3473_vm1, %v16898_v48, %v16897_v39  ;;  %v16900_v44 = vld [vmem:[#allocation370_spill] sm:$0xff] }
 0x97c   : > { %v7116_v24 = vsel %vm7060_vm2, %v7049_v22, %v16881_v30  ;;  %v7050_v49 = vmax.f32 %v6979_v8, 0.0  ;;  %v6981_v5 = vmul.f32 %v8128_v43, %v6603_v63  ;;  %v6801_v34 = vpop.permute.xlu1 %6800  ;;  %v6608_v55 = vadd.f32 %v6544_v6, %v6288_v29  ;;  %v16899_v63 = vld [vmem:[#allocation253_spill] sm:$0xff]  ;;  %v16901_v22 = vld [vmem:[#allocation327_spill] sm:$0xff]  ;;  %v16902_v43 = vld [vmem:[#allocation310_spill] sm:$0xff] }
 0x97d   : > { %v8130_v38 = vpop.eup %8129  ;;  %7181 = vst.msk [vmem:[%s14224_s5 + $0x1b8] sm:$0xff] %vm7125_vm3, %v7116_v24  ;;  %8139 = vrcp.f32 %v6801_v34  ;;  %v6289_v8 = vsel %vm3473_vm1, %v16901_v22, %v16900_v44  ;;  %v16904_v24 = vld [vmem:[#allocation305_spill] sm:$0xff]  ;;  %v16905_v34 = vld [vmem:[#allocation306_spill] sm:$0xff] }
 0x97e   : > { %v7117_v45 = vsel %vm7060_vm2, %v7050_v49, %v16888_v7  ;;  %v7051_v13 = vmax.f32 %v6981_v5, 0.0  ;;  %v6983_v32 = vmul.f32 %v8130_v38, %v6604_v37  ;;  %v6609_v35 = vadd.f32 %v6545_v41, %v6289_v8 }
 0x97f   : > { %v8132_v17 = vpop.eup %8131  ;;  %7182 = vst.msk [vmem:[%s14224_s5 + $0x1c0] sm:$0xff] %vm7125_vm3, %v7117_v45 }
 0x980   : > { %v7118_v54 = vsel %vm7060_vm2, %v7051_v13, %v16893_v57  ;;  %v7052_v50 = vmax.f32 %v6983_v32, 0.0  ;;  %v6985_v26 = vmul.f32 %v8132_v17, %v6605_v61 }
 0x981   : > { %v8134_v10 = vpop.eup %8133  ;;  %7183 = vst.msk [vmem:[%s14224_s5 + $0x1c8] sm:$0xff] %vm7125_vm3, %v7118_v54 }
 0x982   : > { %v7119_v1 = vsel %vm7060_vm2, %v7052_v50, %v16896_v42  ;;  %v7053_v53 = vmax.f32 %v6985_v26, 0.0  ;;  %v6987_v60 = vmul.f32 %v8134_v10, %v6606_v16 }
 0x983   : > { %v8136_v0 = vpop.eup %8135  ;;  %7184 = vst.msk [vmem:[%s14224_s5 + $0x1d0] sm:$0xff] %vm7125_vm3, %v7119_v1 }
 0x984   : > { %v7120_v19 = vsel %vm7060_vm2, %v7053_v53, %v16899_v63  ;;  %v7054_v46 = vmax.f32 %v6987_v60, 0.0  ;;  %v6989_v58 = vmul.f32 %v8136_v0, %v6607_v23 }
 0x985   : > { %v8138_v40 = vpop.eup %8137  ;;  %7185 = vst.msk [vmem:[%s14224_s5 + $0x1d8] sm:$0xff] %vm7125_vm3, %v7120_v19 }
 0x986   : > { %v7121_v51 = vsel %vm7060_vm2, %v7054_v46, %v16902_v43  ;;  %v7055_v59 = vmax.f32 %v6989_v58, 0.0  ;;  %v6991_v3 = vmul.f32 %v8138_v40, %v6608_v55 }
 0x987   : > { %v8140_v27 = vpop.eup %8139  ;;  %7186 = vst.msk [vmem:[%s14224_s5 + $0x1e0] sm:$0xff] %vm7125_vm3, %v7121_v51 }
 0x988   : > { %v7122_v11 = vsel %vm7060_vm2, %v7055_v59, %v16903_v52  ;;  %v7056_v37 = vmax.f32 %v6991_v3, 0.0  ;;  %v6993_v30 = vmul.f32 %v8140_v27, %v6609_v35 }
 0x989   : > { %7187 = vst.msk [vmem:[%s14224_s5 + $0x1e8] sm:$0xff] %vm7125_vm3, %v7122_v11 }
 0x98a   : > { %v7123_v49 = vsel %vm7060_vm2, %v7056_v37, %v16904_v24  ;;  %v7057_v5 = vmax.f32 %v6993_v30, 0.0 }
 0x98b   : > { %7188 = vst.msk [vmem:[%s14224_s5 + $0x1f0] sm:$0xff] %vm7125_vm3, %v7123_v49 }
 0x98c   : > { %v7124_v38 = vsel %vm7060_vm2, %v7057_v5, %v16905_v34 }
 0x98d   : > { %7189 = vst.msk [vmem:[%s14224_s5 + $0x1f8] sm:$0xff] %vm7125_vm3, %v7124_v38 }
 0x98e PF: > { %s14_s15 = sadd.s32 1, %s8150_s15  }
 0x98f   : > { %p11_p4 = scmp.ge.s32.totalorder %s14_s15, 4  }
 0x991   :  { %13 = sbr.rel (!%p11_p4) target bundleno = 1 (0x1), region = 68 }

</bundles_post_ra>
